<compile_context>
chip_gen: v7x
topology: tpu7x:2x2x1
jax: 0.10.0
libtpu: 0.0.40
codegen_flags: <defaults>
</compile_context>

<pallas_src>
import functools

import jax
import jax.numpy as jnp
from jax import lax
from jax.experimental import pallas as pl
from jax.experimental.pallas import tpu as pltpu


def _dense_conv_kernel(x_ref, w1_ref, w2_ref, w3_ref, a_ref, out_ref,
                       xpad_ref, p_ref, *, H, W, C_IN, F, KH, KW):
    """Fused DenseConv forward for one batch element (one grid step).

    x_ref   : (1, H, W, C_IN)        NHWC input tile
    w1_ref  : (F, KH*KW*C_IN + 1)    layer-1 weights, bias folded in last column
    w2_ref  : (F, KH*KW*F + 1)       layer-2 weights (+bias column)
    w3_ref  : (F, KH*KW*F + 1)       layer-3 weights (+bias column)
    a_ref   : (3,) f32 in SMEM       PReLU slopes (single shared param per layer)
    out_ref : (1, 3*F, H*W)          channel-major output (lane-dense, NCHW order)
    xpad_ref: (H+KH-1, W+KW-1, Cmax) VMEM halo scratch (zero border = 'same' pad)
    p_ref   : (H*W, KH*KW*Cmax + 1)  VMEM im2col scratch
    """
    HW = H * W
    f32 = jnp.float32
    ph, pw = KH // 2, KW // 2
    dn = (((1,), (1,)), ((), ()))     # contract the shared K axis of both operands

    def build_patches(cin):
        # im2col into VMEM scratch: 9 tap slices + a ones column (folded bias).
        k = 0
        for kh in range(KH):
            for kw in range(KW):
                tap = xpad_ref[kh:kh + H, kw:kw + W, :cin].reshape(HW, cin)
                p_ref[:, k:k + cin] = tap
                k += cin
        p_ref[:, k:k + 1] = jnp.ones((HW, 1), f32)
        return k + 1                                       # valid patch width K

    def prelu(y, alpha):
        return jnp.where(y > 0, y, alpha * y)

    def conv_both(cin, w_ref, alpha):
        kk = build_patches(cin)
        p = p_ref[:, :kk]                                  # (HW, K)
        w = w_ref[...]                                     # (F, K)
        # Channel-major result (F, HW) -> lane-dense output store.
        y_t = prelu(lax.dot_general(w, p, dn, preferred_element_type=f32), alpha)
        # Channels-last result (HW, F) -> chained into the next layer's halo buf.
        y = prelu(lax.dot_general(p, w, dn, preferred_element_type=f32), alpha)
        return y, y_t

    def conv_out_only(cin, w_ref, alpha):
        kk = build_patches(cin)
        p = p_ref[:, :kk]
        return prelu(lax.dot_general(w_ref[...], p, dn,
                                     preferred_element_type=f32), alpha)

    # Zero the halo buffer every step (border must be zero; also safe under
    # "parallel" grid semantics / megacore sharding).
    xpad_ref[...] = jnp.zeros_like(xpad_ref)

    # ---- layer 1 ----
    xpad_ref[ph:ph + H, pw:pw + W, :C_IN] = x_ref[0].astype(f32)
    y1, y1_t = conv_both(C_IN, w1_ref, a_ref[0])

    # ---- layer 2 (chained entirely in VMEM) ----
    xpad_ref[ph:ph + H, pw:pw + W, :F] = y1.reshape(H, W, F)
    y2, y2_t = conv_both(F, w2_ref, a_ref[1])

    # ---- layer 3 (only feeds the output) ----
    xpad_ref[ph:ph + H, pw:pw + W, :F] = y2.reshape(H, W, F)
    y3_t = conv_out_only(F, w3_ref, a_ref[2])

    # Fused channel concat in channel-major layout: (3F, HW), HW on lanes.
    out = jnp.concatenate([y1_t, y2_t, y3_t], axis=0)
    out_ref[0] = out.astype(out_ref.dtype)


def dense_conv_forward(x_nchw, params):
    """DenseConv.forward: x -> cat([conv1(x), conv2(x1), conv3(x2)], dim=1)."""
    N, C_IN, H, W = x_nchw.shape
    (w1, b1, a1), (w2, b2, a2), (w3, b3, a3) = params
    F = w1.shape[0]
    KH, KW = w1.shape[2], w1.shape[3]

    def pack(w_oihw, b):
        # PyTorch (Cout, Cin, KH, KW) -> (Cout, KH*KW*Cin) with columns ordered
        # (kh, kw, c) to match the kernel's im2col; bias folded as last column.
        f_, cin = w_oihw.shape[0], w_oihw.shape[1]
        w_flat = jnp.transpose(w_oihw, (0, 2, 3, 1)).reshape(f_, KH * KW * cin)
        return jnp.concatenate([w_flat, b.reshape(f_, 1)],
                               axis=1).astype(jnp.float32)

    w1p, w2p, w3p = pack(w1, b1), pack(w2, b2), pack(w3, b3)
    alphas = jnp.stack([jnp.asarray(a, jnp.float32).reshape(())
                        for a in (a1, a2, a3)])

    # NCHW -> NHWC once, so channels sit on the lane axis for im2col.
    x_nhwc = jnp.transpose(x_nchw, (0, 2, 3, 1))

    cmax = max(C_IN, F)
    kernel = functools.partial(_dense_conv_kernel,
                               H=H, W=W, C_IN=C_IN, F=F, KH=KH, KW=KW)

    # TODO(synk): for production resolutions add an H-tile grid axis (with halo
    # rows) to bound per-step VMEM for v7x's 64 MiB, and optionally cast MXU
    # operands to bf16 on v6e/v7x (kept f32 here to match PyTorch numerics).
    out = pl.pallas_call(
        kernel,
        out_shape=jax.ShapeDtypeStruct((N, 3 * F, H * W), x_nchw.dtype),
        grid_spec=pltpu.PrefetchScalarGridSpec(
            num_scalar_prefetch=0,
            grid=(N,),
            in_specs=[
                pl.BlockSpec((1, H, W, C_IN), lambda n: (n, 0, 0, 0)),
                pl.BlockSpec((F, KH * KW * C_IN + 1), lambda n: (0, 0)),
                pl.BlockSpec((F, KH * KW * F + 1), lambda n: (0, 0)),
                pl.BlockSpec((F, KH * KW * F + 1), lambda n: (0, 0)),
                pl.BlockSpec(memory_space=pltpu.MemorySpace.SMEM),
            ],
            out_specs=pl.BlockSpec((1, 3 * F, H * W), lambda n: (n, 0, 0)),
            scratch_shapes=[
                pltpu.VMEM((H + KH - 1, W + KW - 1, cmax), jnp.float32),
                pltpu.VMEM((H * W, KH * KW * cmax + 1), jnp.float32),
            ],
        ),
        compiler_params=pltpu.CompilerParams(
            dimension_semantics=("parallel",)),
    )(x_nhwc, w1p, w2p, w3p, alphas)

    # (N, 3F, H*W) -> (N, 3F, H, W): pure metadata reshape; channel order is
    # already [x1 | x2 | x3], i.e. torch.cat((x1, x2, x3), dim=1) in NCHW.
    return out.reshape(N, 3 * F, H, W)


def init_dense_conv_params(key, n_inputs, n_feats, kernel_size=3):
    """Deterministic synthetic parameters matching the PyTorch module shapes."""
    params = []
    cin = n_inputs
    for _ in range(3):
        key, k_w, k_b = jax.random.split(key, 3)
        # PyTorch Conv2d weight shape (Cout, Cin, KH, KW).
        w = jax.random.normal(k_w, (n_feats, cin, kernel_size, kernel_size),
                              jnp.float32) * 0.1
        b = jax.random.normal(k_b, (n_feats,), jnp.float32) * 0.1
        a = jnp.float32(0.25)   # nn.PReLU() default: single shared slope = 0.25
        params.append((w, b, a))
        cin = n_feats
    return params


def _reference_conv_prelu(x_nchw, w_oihw, b, a):
    y = lax.conv_general_dilated(
        x_nchw, w_oihw, window_strides=(1, 1), padding="SAME",
        dimension_numbers=("NCHW", "OIHW", "NCHW"))
    y = y + b.reshape(1, -1, 1, 1)
    return jnp.where(y > 0, y, a * y)


def _reference_dense_conv(x_nchw, params):
    (w1, b1, a1), (w2, b2, a2), (w3, b3, a3) = params
    x1 = _reference_conv_prelu(x_nchw, w1, b1, a1)
    x2 = _reference_conv_prelu(x1, w2, b2, a2)
    x3 = _reference_conv_prelu(x2, w3, b3, a3)
    return jnp.concatenate((x1, x2, x3), axis=1)


if __name__ == "__main__":
    N, C_IN, H, W = 2, 4, 16, 16
    N_FEATS = 8

    key = jax.random.PRNGKey(0)
    key, kx = jax.random.split(key)
    x = jax.random.normal(kx, (N, C_IN, H, W), jnp.float32)   # NCHW like PyTorch

    params = init_dense_conv_params(key, C_IN, N_FEATS)

    out = jax.block_until_ready(dense_conv_forward(x, params))
    assert out.shape == (N, 3 * N_FEATS, H, W), out.shape

    ref = jax.block_until_ready(_reference_dense_conv(x, params))
    assert jnp.allclose(out, ref, atol=1e-4, rtol=1e-4), float(
        jnp.max(jnp.abs(out - ref)))

    print("KERNEL_OK")
</pallas_src>

<mosaic_0001>
module attributes {stable_mosaic.version = 11 : i64} {
  func.func @_dense_conv_kernel(%arg0: i32, %arg1: memref<1x16x16x4xf32, #tpu.memory_space<vmem>>, %arg2: memref<8x37xf32, #tpu.memory_space<vmem>>, %arg3: memref<8x73xf32, #tpu.memory_space<vmem>>, %arg4: memref<8x73xf32, #tpu.memory_space<vmem>>, %arg5: memref<3xf32, #tpu.memory_space<smem>>, %arg6: memref<1x24x256xf32, #tpu.memory_space<vmem>>, %arg7: memref<18x18x8xf32, #tpu.memory_space<vmem>>, %arg8: memref<256x73xf32, #tpu.memory_space<vmem>>) attributes {dimension_semantics = [#tpu.dimension_semantics<parallel>], iteration_bounds = array<i64: 2>, scalar_prefetch = 0 : i64, scratch_operands = 2 : i64, tpu.core_type = #tpu.core_type<tc>, window_params = [{transform_indices = @transform_0, window_bounds = array<i64: 1, 16, 16, 4>}, {pipeline_mode = #tpu.pipeline_mode<synchronous>, transform_indices = @transform_1, window_bounds = array<i64: 8, 37>}, {pipeline_mode = #tpu.pipeline_mode<synchronous>, transform_indices = @transform_2, window_bounds = array<i64: 8, 73>}, {pipeline_mode = #tpu.pipeline_mode<synchronous>, transform_indices = @transform_3, window_bounds = array<i64: 8, 73>}, {transform_indices = @transform_4, window_bounds = array<i64: 3>}, {transform_indices = @transform_5, window_bounds = array<i64: 1, 24, 256>}]} {
    %cst = arith.constant 0.000000e+00 : f32
    %0 = vector.broadcast %cst : f32 to vector<18x18x8xf32>
    %c0 = arith.constant 0 : index
    %c0_0 = arith.constant 0 : index
    %c0_1 = arith.constant 0 : index
    %1 = vector.load %arg7[%c0, %c0_0, %c0_1] : memref<18x18x8xf32, #tpu.memory_space<vmem>>, vector<18x18x8xf32>
    tpu.vector_store %arg7[%c0, %c0_0, %c0_1], %0 {strides = array<i32>} : memref<18x18x8xf32, #tpu.memory_space<vmem>>, vector<18x18x8xf32>,
    %c0_2 = arith.constant 0 : index
    %c0_3 = arith.constant 0 : index
    %c0_4 = arith.constant 0 : index
    %c0_5 = arith.constant 0 : index
    %2 = vector.load %arg1[%c0_2, %c0_3, %c0_4, %c0_5] : memref<1x16x16x4xf32, #tpu.memory_space<vmem>>, vector<1x16x16x4xf32>
    %3 = vector.shape_cast %2 : vector<1x16x16x4xf32> to vector<16x16x4xf32>
    %c1 = arith.constant 1 : index
    %c1_6 = arith.constant 1 : index
    %c0_7 = arith.constant 0 : index
    %4 = vector.load %arg7[%c1, %c1_6, %c0_7] : memref<18x18x8xf32, #tpu.memory_space<vmem>>, vector<16x16x4xf32>
    tpu.vector_store %arg7[%c1, %c1_6, %c0_7], %3 {strides = array<i32>} : memref<18x18x8xf32, #tpu.memory_space<vmem>>, vector<16x16x4xf32>,
    %c0_8 = arith.constant 0 : index
    %5 = memref.load %arg5[%c0_8] : memref<3xf32, #tpu.memory_space<smem>>
    %c0_9 = arith.constant 0 : index
    %c0_10 = arith.constant 0 : index
    %c0_11 = arith.constant 0 : index
    %6 = vector.load %arg7[%c0_9, %c0_10, %c0_11] : memref<18x18x8xf32, #tpu.memory_space<vmem>>, vector<16x16x4xf32>
    %7 = vector.shape_cast %6 : vector<16x16x4xf32> to vector<256x4xf32>
    %c0_12 = arith.constant 0 : index
    %c0_13 = arith.constant 0 : index
    %8 = vector.load %arg8[%c0_12, %c0_13] : memref<256x73xf32, #tpu.memory_space<vmem>>, vector<256x4xf32>
    tpu.vector_store %arg8[%c0_12, %c0_13], %7 {strides = array<i32>} : memref<256x73xf32, #tpu.memory_space<vmem>>, vector<256x4xf32>,
    %c0_14 = arith.constant 0 : index
    %c1_15 = arith.constant 1 : index
    %c0_16 = arith.constant 0 : index
    %9 = vector.load %arg7[%c0_14, %c1_15, %c0_16] : memref<18x18x8xf32, #tpu.memory_space<vmem>>, vector<16x16x4xf32>
    %10 = vector.shape_cast %9 : vector<16x16x4xf32> to vector<256x4xf32>
    %c0_17 = arith.constant 0 : index
    %c4 = arith.constant 4 : index
    %11 = vector.load %arg8[%c0_17, %c4] : memref<256x73xf32, #tpu.memory_space<vmem>>, vector<256x4xf32>
    tpu.vector_store %arg8[%c0_17, %c4], %10 {strides = array<i32>} : memref<256x73xf32, #tpu.memory_space<vmem>>, vector<256x4xf32>,
    %c0_18 = arith.constant 0 : index
    %c2 = arith.constant 2 : index
    %c0_19 = arith.constant 0 : index
    %12 = vector.load %arg7[%c0_18, %c2, %c0_19] : memref<18x18x8xf32, #tpu.memory_space<vmem>>, vector<16x16x4xf32>
    %13 = vector.shape_cast %12 : vector<16x16x4xf32> to vector<256x4xf32>
    %c0_20 = arith.constant 0 : index
    %c8 = arith.constant 8 : index
    %14 = vector.load %arg8[%c0_20, %c8] : memref<256x73xf32, #tpu.memory_space<vmem>>, vector<256x4xf32>
    tpu.vector_store %arg8[%c0_20, %c8], %13 {strides = array<i32>} : memref<256x73xf32, #tpu.memory_space<vmem>>, vector<256x4xf32>,
    %c1_21 = arith.constant 1 : index
    %c0_22 = arith.constant 0 : index
    %c0_23 = arith.constant 0 : index
    %15 = vector.load %arg7[%c1_21, %c0_22, %c0_23] : memref<18x18x8xf32, #tpu.memory_space<vmem>>, vector<16x16x4xf32>
    %16 = vector.shape_cast %15 : vector<16x16x4xf32> to vector<256x4xf32>
    %c0_24 = arith.constant 0 : index
    %c12 = arith.constant 12 : index
    %17 = vector.load %arg8[%c0_24, %c12] : memref<256x73xf32, #tpu.memory_space<vmem>>, vector<256x4xf32>
    tpu.vector_store %arg8[%c0_24, %c12], %16 {strides = array<i32>} : memref<256x73xf32, #tpu.memory_space<vmem>>, vector<256x4xf32>,
    %c1_25 = arith.constant 1 : index
    %c1_26 = arith.constant 1 : index
    %c0_27 = arith.constant 0 : index
    %18 = vector.load %arg7[%c1_25, %c1_26, %c0_27] : memref<18x18x8xf32, #tpu.memory_space<vmem>>, vector<16x16x4xf32>
    %19 = vector.shape_cast %18 : vector<16x16x4xf32> to vector<256x4xf32>
    %c0_28 = arith.constant 0 : index
    %c16 = arith.constant 16 : index
    %20 = vector.load %arg8[%c0_28, %c16] : memref<256x73xf32, #tpu.memory_space<vmem>>, vector<256x4xf32>
    tpu.vector_store %arg8[%c0_28, %c16], %19 {strides = array<i32>} : memref<256x73xf32, #tpu.memory_space<vmem>>, vector<256x4xf32>,
    %c1_29 = arith.constant 1 : index
    %c2_30 = arith.constant 2 : index
    %c0_31 = arith.constant 0 : index
    %21 = vector.load %arg7[%c1_29, %c2_30, %c0_31] : memref<18x18x8xf32, #tpu.memory_space<vmem>>, vector<16x16x4xf32>
    %22 = vector.shape_cast %21 : vector<16x16x4xf32> to vector<256x4xf32>
    %c0_32 = arith.constant 0 : index
    %c20 = arith.constant 20 : index
    %23 = vector.load %arg8[%c0_32, %c20] : memref<256x73xf32, #tpu.memory_space<vmem>>, vector<256x4xf32>
    tpu.vector_store %arg8[%c0_32, %c20], %22 {strides = array<i32>} : memref<256x73xf32, #tpu.memory_space<vmem>>, vector<256x4xf32>,
    %c2_33 = arith.constant 2 : index
    %c0_34 = arith.constant 0 : index
    %c0_35 = arith.constant 0 : index
    %24 = vector.load %arg7[%c2_33, %c0_34, %c0_35] : memref<18x18x8xf32, #tpu.memory_space<vmem>>, vector<16x16x4xf32>
    %25 = vector.shape_cast %24 : vector<16x16x4xf32> to vector<256x4xf32>
    %c0_36 = arith.constant 0 : index
    %c24 = arith.constant 24 : index
    %26 = vector.load %arg8[%c0_36, %c24] : memref<256x73xf32, #tpu.memory_space<vmem>>, vector<256x4xf32>
    tpu.vector_store %arg8[%c0_36, %c24], %25 {strides = array<i32>} : memref<256x73xf32, #tpu.memory_space<vmem>>, vector<256x4xf32>,
    %c2_37 = arith.constant 2 : index
    %c1_38 = arith.constant 1 : index
    %c0_39 = arith.constant 0 : index
    %27 = vector.load %arg7[%c2_37, %c1_38, %c0_39] : memref<18x18x8xf32, #tpu.memory_space<vmem>>, vector<16x16x4xf32>
    %28 = vector.shape_cast %27 : vector<16x16x4xf32> to vector<256x4xf32>
    %c0_40 = arith.constant 0 : index
    %c28 = arith.constant 28 : index
    %29 = vector.load %arg8[%c0_40, %c28] : memref<256x73xf32, #tpu.memory_space<vmem>>, vector<256x4xf32>
    tpu.vector_store %arg8[%c0_40, %c28], %28 {strides = array<i32>} : memref<256x73xf32, #tpu.memory_space<vmem>>, vector<256x4xf32>,
    %c2_41 = arith.constant 2 : index
    %c2_42 = arith.constant 2 : index
    %c0_43 = arith.constant 0 : index
    %30 = vector.load %arg7[%c2_41, %c2_42, %c0_43] : memref<18x18x8xf32, #tpu.memory_space<vmem>>, vector<16x16x4xf32>
    %31 = vector.shape_cast %30 : vector<16x16x4xf32> to vector<256x4xf32>
    %c0_44 = arith.constant 0 : index
    %c32 = arith.constant 32 : index
    %32 = vector.load %arg8[%c0_44, %c32] : memref<256x73xf32, #tpu.memory_space<vmem>>, vector<256x4xf32>
    tpu.vector_store %arg8[%c0_44, %c32], %31 {strides = array<i32>} : memref<256x73xf32, #tpu.memory_space<vmem>>, vector<256x4xf32>,
    %cst_45 = arith.constant 1.000000e+00 : f32
    %33 = vector.broadcast %cst_45 : f32 to vector<256x1xf32>
    %c0_46 = arith.constant 0 : index
    %c36 = arith.constant 36 : index
    %34 = vector.load %arg8[%c0_46, %c36] : memref<256x73xf32, #tpu.memory_space<vmem>>, vector<256x1xf32>
    tpu.vector_store %arg8[%c0_46, %c36], %33 {strides = array<i32>} : memref<256x73xf32, #tpu.memory_space<vmem>>, vector<256x1xf32>,
    %c0_47 = arith.constant 0 : index
    %c0_48 = arith.constant 0 : index
    %35 = vector.load %arg8[%c0_47, %c0_48] : memref<256x73xf32, #tpu.memory_space<vmem>>, vector<256x37xf32>
    %c0_49 = arith.constant 0 : index
    %c0_50 = arith.constant 0 : index
    %36 = vector.load %arg2[%c0_49, %c0_50] : memref<8x37xf32, #tpu.memory_space<vmem>>, vector<8x37xf32>
    %cst_51 = arith.constant dense<0.000000e+00> : vector<8x256xf32>
    %37 = tpu.matmul %36, %35, %cst_51 {dimension_numbers = #tpu.dot_dimension_numbers<[1], [1], [0], [0], [0, 0, 1, 0], [], []>} : vector<8x37xf32>, vector<256x37xf32>, vector<8x256xf32> -> vector<8x256xf32>
    %cst_52 = arith.constant 0.000000e+00 : f32
    %38 = vector.broadcast %cst_52 : f32 to vector<8x256xf32>
    %39 = arith.cmpf ogt, %37, %38 : vector<8x256xf32>
    %40 = vector.broadcast %5 : f32 to vector<8x256xf32>
    %41 = arith.mulf %40, %37 : vector<8x256xf32>
    %42 = arith.select %39, %37, %41 : vector<8x256xi1>, vector<8x256xf32>
    %cst_53 = arith.constant dense<0.000000e+00> : vector<256x8xf32>
    %43 = tpu.matmul %35, %36, %cst_53 {dimension_numbers = #tpu.dot_dimension_numbers<[1], [1], [0], [0], [0, 0, 1, 0], [], []>} : vector<256x37xf32>, vector<8x37xf32>, vector<256x8xf32> -> vector<256x8xf32>
    %cst_54 = arith.constant 0.000000e+00 : f32
    %44 = vector.broadcast %cst_54 : f32 to vector<256x8xf32>
    %45 = arith.cmpf ogt, %43, %44 : vector<256x8xf32>
    %46 = vector.broadcast %5 : f32 to vector<256x8xf32>
    %47 = arith.mulf %46, %43 : vector<256x8xf32>
    %48 = arith.select %45, %43, %47 : vector<256x8xi1>, vector<256x8xf32>
    %49 = vector.shape_cast %48 : vector<256x8xf32> to vector<16x16x8xf32>
    %c1_55 = arith.constant 1 : index
    %c1_56 = arith.constant 1 : index
    %c0_57 = arith.constant 0 : index
    %50 = vector.load %arg7[%c1_55, %c1_56, %c0_57] : memref<18x18x8xf32, #tpu.memory_space<vmem>>, vector<16x16x8xf32>
    tpu.vector_store %arg7[%c1_55, %c1_56, %c0_57], %49 {strides = array<i32>} : memref<18x18x8xf32, #tpu.memory_space<vmem>>, vector<16x16x8xf32>,
    %c1_58 = arith.constant 1 : index
    %51 = memref.load %arg5[%c1_58] : memref<3xf32, #tpu.memory_space<smem>>
    %c0_59 = arith.constant 0 : index
    %c0_60 = arith.constant 0 : index
    %c0_61 = arith.constant 0 : index
    %52 = vector.load %arg7[%c0_59, %c0_60, %c0_61] : memref<18x18x8xf32, #tpu.memory_space<vmem>>, vector<16x16x8xf32>
    %53 = vector.shape_cast %52 : vector<16x16x8xf32> to vector<256x8xf32>
    %c0_62 = arith.constant 0 : index
    %c0_63 = arith.constant 0 : index
    %54 = vector.load %arg8[%c0_62, %c0_63] : memref<256x73xf32, #tpu.memory_space<vmem>>, vector<256x8xf32>
    tpu.vector_store %arg8[%c0_62, %c0_63], %53 {strides = array<i32>} : memref<256x73xf32, #tpu.memory_space<vmem>>, vector<256x8xf32>,
    %c0_64 = arith.constant 0 : index
    %c1_65 = arith.constant 1 : index
    %c0_66 = arith.constant 0 : index
    %55 = vector.load %arg7[%c0_64, %c1_65, %c0_66] : memref<18x18x8xf32, #tpu.memory_space<vmem>>, vector<16x16x8xf32>
    %56 = vector.shape_cast %55 : vector<16x16x8xf32> to vector<256x8xf32>
    %c0_67 = arith.constant 0 : index
    %c8_68 = arith.constant 8 : index
    %57 = vector.load %arg8[%c0_67, %c8_68] : memref<256x73xf32, #tpu.memory_space<vmem>>, vector<256x8xf32>
    tpu.vector_store %arg8[%c0_67, %c8_68], %56 {strides = array<i32>} : memref<256x73xf32, #tpu.memory_space<vmem>>, vector<256x8xf32>,
    %c0_69 = arith.constant 0 : index
    %c2_70 = arith.constant 2 : index
    %c0_71 = arith.constant 0 : index
    %58 = vector.load %arg7[%c0_69, %c2_70, %c0_71] : memref<18x18x8xf32, #tpu.memory_space<vmem>>, vector<16x16x8xf32>
    %59 = vector.shape_cast %58 : vector<16x16x8xf32> to vector<256x8xf32>
    %c0_72 = arith.constant 0 : index
    %c16_73 = arith.constant 16 : index
    %60 = vector.load %arg8[%c0_72, %c16_73] : memref<256x73xf32, #tpu.memory_space<vmem>>, vector<256x8xf32>
    tpu.vector_store %arg8[%c0_72, %c16_73], %59 {strides = array<i32>} : memref<256x73xf32, #tpu.memory_space<vmem>>, vector<256x8xf32>,
    %c1_74 = arith.constant 1 : index
    %c0_75 = arith.constant 0 : index
    %c0_76 = arith.constant 0 : index
    %61 = vector.load %arg7[%c1_74, %c0_75, %c0_76] : memref<18x18x8xf32, #tpu.memory_space<vmem>>, vector<16x16x8xf32>
    %62 = vector.shape_cast %61 : vector<16x16x8xf32> to vector<256x8xf32>
    %c0_77 = arith.constant 0 : index
    %c24_78 = arith.constant 24 : index
    %63 = vector.load %arg8[%c0_77, %c24_78] : memref<256x73xf32, #tpu.memory_space<vmem>>, vector<256x8xf32>
    tpu.vector_store %arg8[%c0_77, %c24_78], %62 {strides = array<i32>} : memref<256x73xf32, #tpu.memory_space<vmem>>, vector<256x8xf32>,
    %c1_79 = arith.constant 1 : index
    %c1_80 = arith.constant 1 : index
    %c0_81 = arith.constant 0 : index
    %64 = vector.load %arg7[%c1_79, %c1_80, %c0_81] : memref<18x18x8xf32, #tpu.memory_space<vmem>>, vector<16x16x8xf32>
    %65 = vector.shape_cast %64 : vector<16x16x8xf32> to vector<256x8xf32>
    %c0_82 = arith.constant 0 : index
    %c32_83 = arith.constant 32 : index
    %66 = vector.load %arg8[%c0_82, %c32_83] : memref<256x73xf32, #tpu.memory_space<vmem>>, vector<256x8xf32>
    tpu.vector_store %arg8[%c0_82, %c32_83], %65 {strides = array<i32>} : memref<256x73xf32, #tpu.memory_space<vmem>>, vector<256x8xf32>,
    %c1_84 = arith.constant 1 : index
    %c2_85 = arith.constant 2 : index
    %c0_86 = arith.constant 0 : index
    %67 = vector.load %arg7[%c1_84, %c2_85, %c0_86] : memref<18x18x8xf32, #tpu.memory_space<vmem>>, vector<16x16x8xf32>
    %68 = vector.shape_cast %67 : vector<16x16x8xf32> to vector<256x8xf32>
    %c0_87 = arith.constant 0 : index
    %c40 = arith.constant 40 : index
    %69 = vector.load %arg8[%c0_87, %c40] : memref<256x73xf32, #tpu.memory_space<vmem>>, vector<256x8xf32>
    tpu.vector_store %arg8[%c0_87, %c40], %68 {strides = array<i32>} : memref<256x73xf32, #tpu.memory_space<vmem>>, vector<256x8xf32>,
    %c2_88 = arith.constant 2 : index
    %c0_89 = arith.constant 0 : index
    %c0_90 = arith.constant 0 : index
    %70 = vector.load %arg7[%c2_88, %c0_89, %c0_90] : memref<18x18x8xf32, #tpu.memory_space<vmem>>, vector<16x16x8xf32>
    %71 = vector.shape_cast %70 : vector<16x16x8xf32> to vector<256x8xf32>
    %c0_91 = arith.constant 0 : index
    %c48 = arith.constant 48 : index
    %72 = vector.load %arg8[%c0_91, %c48] : memref<256x73xf32, #tpu.memory_space<vmem>>, vector<256x8xf32>
    tpu.vector_store %arg8[%c0_91, %c48], %71 {strides = array<i32>} : memref<256x73xf32, #tpu.memory_space<vmem>>, vector<256x8xf32>,
    %c2_92 = arith.constant 2 : index
    %c1_93 = arith.constant 1 : index
    %c0_94 = arith.constant 0 : index
    %73 = vector.load %arg7[%c2_92, %c1_93, %c0_94] : memref<18x18x8xf32, #tpu.memory_space<vmem>>, vector<16x16x8xf32>
    %74 = vector.shape_cast %73 : vector<16x16x8xf32> to vector<256x8xf32>
    %c0_95 = arith.constant 0 : index
    %c56 = arith.constant 56 : index
    %75 = vector.load %arg8[%c0_95, %c56] : memref<256x73xf32, #tpu.memory_space<vmem>>, vector<256x8xf32>
    tpu.vector_store %arg8[%c0_95, %c56], %74 {strides = array<i32>} : memref<256x73xf32, #tpu.memory_space<vmem>>, vector<256x8xf32>,
    %c2_96 = arith.constant 2 : index
    %c2_97 = arith.constant 2 : index
    %c0_98 = arith.constant 0 : index
    %76 = vector.load %arg7[%c2_96, %c2_97, %c0_98] : memref<18x18x8xf32, #tpu.memory_space<vmem>>, vector<16x16x8xf32>
    %77 = vector.shape_cast %76 : vector<16x16x8xf32> to vector<256x8xf32>
    %c0_99 = arith.constant 0 : index
    %c64 = arith.constant 64 : index
    %78 = vector.load %arg8[%c0_99, %c64] : memref<256x73xf32, #tpu.memory_space<vmem>>, vector<256x8xf32>
    tpu.vector_store %arg8[%c0_99, %c64], %77 {strides = array<i32>} : memref<256x73xf32, #tpu.memory_space<vmem>>, vector<256x8xf32>,
    %cst_100 = arith.constant 1.000000e+00 : f32
    %79 = vector.broadcast %cst_100 : f32 to vector<256x1xf32>
    %c0_101 = arith.constant 0 : index
    %c72 = arith.constant 72 : index
    %80 = vector.load %arg8[%c0_101, %c72] : memref<256x73xf32, #tpu.memory_space<vmem>>, vector<256x1xf32>
    tpu.vector_store %arg8[%c0_101, %c72], %79 {strides = array<i32>} : memref<256x73xf32, #tpu.memory_space<vmem>>, vector<256x1xf32>,
    %c0_102 = arith.constant 0 : index
    %c0_103 = arith.constant 0 : index
    %81 = vector.load %arg8[%c0_102, %c0_103] : memref<256x73xf32, #tpu.memory_space<vmem>>, vector<256x73xf32>
    %c0_104 = arith.constant 0 : index
    %c0_105 = arith.constant 0 : index
    %82 = vector.load %arg3[%c0_104, %c0_105] : memref<8x73xf32, #tpu.memory_space<vmem>>, vector<8x73xf32>
    %cst_106 = arith.constant dense<0.000000e+00> : vector<8x256xf32>
    %83 = tpu.matmul %82, %81, %cst_106 {dimension_numbers = #tpu.dot_dimension_numbers<[1], [1], [0], [0], [0, 0, 1, 0], [], []>} : vector<8x73xf32>, vector<256x73xf32>, vector<8x256xf32> -> vector<8x256xf32>
    %cst_107 = arith.constant 0.000000e+00 : f32
    %84 = vector.broadcast %cst_107 : f32 to vector<8x256xf32>
    %85 = arith.cmpf ogt, %83, %84 : vector<8x256xf32>
    %86 = vector.broadcast %51 : f32 to vector<8x256xf32>
    %87 = arith.mulf %86, %83 : vector<8x256xf32>
    %88 = arith.select %85, %83, %87 : vector<8x256xi1>, vector<8x256xf32>
    %cst_108 = arith.constant dense<0.000000e+00> : vector<256x8xf32>
    %89 = tpu.matmul %81, %82, %cst_108 {dimension_numbers = #tpu.dot_dimension_numbers<[1], [1], [0], [0], [0, 0, 1, 0], [], []>} : vector<256x73xf32>, vector<8x73xf32>, vector<256x8xf32> -> vector<256x8xf32>
    %cst_109 = arith.constant 0.000000e+00 : f32
    %90 = vector.broadcast %cst_109 : f32 to vector<256x8xf32>
    %91 = arith.cmpf ogt, %89, %90 : vector<256x8xf32>
    %92 = vector.broadcast %51 : f32 to vector<256x8xf32>
    %93 = arith.mulf %92, %89 : vector<256x8xf32>
    %94 = arith.select %91, %89, %93 : vector<256x8xi1>, vector<256x8xf32>
    %95 = vector.shape_cast %94 : vector<256x8xf32> to vector<16x16x8xf32>
    %c1_110 = arith.constant 1 : index
    %c1_111 = arith.constant 1 : index
    %c0_112 = arith.constant 0 : index
    %96 = vector.load %arg7[%c1_110, %c1_111, %c0_112] : memref<18x18x8xf32, #tpu.memory_space<vmem>>, vector<16x16x8xf32>
    tpu.vector_store %arg7[%c1_110, %c1_111, %c0_112], %95 {strides = array<i32>} : memref<18x18x8xf32, #tpu.memory_space<vmem>>, vector<16x16x8xf32>,
    %c2_113 = arith.constant 2 : index
    %97 = memref.load %arg5[%c2_113] : memref<3xf32, #tpu.memory_space<smem>>
    %c0_114 = arith.constant 0 : index
    %c0_115 = arith.constant 0 : index
    %c0_116 = arith.constant 0 : index
    %98 = vector.load %arg7[%c0_114, %c0_115, %c0_116] : memref<18x18x8xf32, #tpu.memory_space<vmem>>, vector<16x16x8xf32>
    %99 = vector.shape_cast %98 : vector<16x16x8xf32> to vector<256x8xf32>
    %c0_117 = arith.constant 0 : index
    %c0_118 = arith.constant 0 : index
    %100 = vector.load %arg8[%c0_117, %c0_118] : memref<256x73xf32, #tpu.memory_space<vmem>>, vector<256x8xf32>
    tpu.vector_store %arg8[%c0_117, %c0_118], %99 {strides = array<i32>} : memref<256x73xf32, #tpu.memory_space<vmem>>, vector<256x8xf32>,
    %c0_119 = arith.constant 0 : index
    %c1_120 = arith.constant 1 : index
    %c0_121 = arith.constant 0 : index
    %101 = vector.load %arg7[%c0_119, %c1_120, %c0_121] : memref<18x18x8xf32, #tpu.memory_space<vmem>>, vector<16x16x8xf32>
    %102 = vector.shape_cast %101 : vector<16x16x8xf32> to vector<256x8xf32>
    %c0_122 = arith.constant 0 : index
    %c8_123 = arith.constant 8 : index
    %103 = vector.load %arg8[%c0_122, %c8_123] : memref<256x73xf32, #tpu.memory_space<vmem>>, vector<256x8xf32>
    tpu.vector_store %arg8[%c0_122, %c8_123], %102 {strides = array<i32>} : memref<256x73xf32, #tpu.memory_space<vmem>>, vector<256x8xf32>,
    %c0_124 = arith.constant 0 : index
    %c2_125 = arith.constant 2 : index
    %c0_126 = arith.constant 0 : index
    %104 = vector.load %arg7[%c0_124, %c2_125, %c0_126] : memref<18x18x8xf32, #tpu.memory_space<vmem>>, vector<16x16x8xf32>
    %105 = vector.shape_cast %104 : vector<16x16x8xf32> to vector<256x8xf32>
    %c0_127 = arith.constant 0 : index
    %c16_128 = arith.constant 16 : index
    %106 = vector.load %arg8[%c0_127, %c16_128] : memref<256x73xf32, #tpu.memory_space<vmem>>, vector<256x8xf32>
    tpu.vector_store %arg8[%c0_127, %c16_128], %105 {strides = array<i32>} : memref<256x73xf32, #tpu.memory_space<vmem>>, vector<256x8xf32>,
    %c1_129 = arith.constant 1 : index
    %c0_130 = arith.constant 0 : index
    %c0_131 = arith.constant 0 : index
    %107 = vector.load %arg7[%c1_129, %c0_130, %c0_131] : memref<18x18x8xf32, #tpu.memory_space<vmem>>, vector<16x16x8xf32>
    %108 = vector.shape_cast %107 : vector<16x16x8xf32> to vector<256x8xf32>
    %c0_132 = arith.constant 0 : index
    %c24_133 = arith.constant 24 : index
    %109 = vector.load %arg8[%c0_132, %c24_133] : memref<256x73xf32, #tpu.memory_space<vmem>>, vector<256x8xf32>
    tpu.vector_store %arg8[%c0_132, %c24_133], %108 {strides = array<i32>} : memref<256x73xf32, #tpu.memory_space<vmem>>, vector<256x8xf32>,
    %c1_134 = arith.constant 1 : index
    %c1_135 = arith.constant 1 : index
    %c0_136 = arith.constant 0 : index
    %110 = vector.load %arg7[%c1_134, %c1_135, %c0_136] : memref<18x18x8xf32, #tpu.memory_space<vmem>>, vector<16x16x8xf32>
    %111 = vector.shape_cast %110 : vector<16x16x8xf32> to vector<256x8xf32>
    %c0_137 = arith.constant 0 : index
    %c32_138 = arith.constant 32 : index
    %112 = vector.load %arg8[%c0_137, %c32_138] : memref<256x73xf32, #tpu.memory_space<vmem>>, vector<256x8xf32>
    tpu.vector_store %arg8[%c0_137, %c32_138], %111 {strides = array<i32>} : memref<256x73xf32, #tpu.memory_space<vmem>>, vector<256x8xf32>,
    %c1_139 = arith.constant 1 : index
    %c2_140 = arith.constant 2 : index
    %c0_141 = arith.constant 0 : index
    %113 = vector.load %arg7[%c1_139, %c2_140, %c0_141] : memref<18x18x8xf32, #tpu.memory_space<vmem>>, vector<16x16x8xf32>
    %114 = vector.shape_cast %113 : vector<16x16x8xf32> to vector<256x8xf32>
    %c0_142 = arith.constant 0 : index
    %c40_143 = arith.constant 40 : index
    %115 = vector.load %arg8[%c0_142, %c40_143] : memref<256x73xf32, #tpu.memory_space<vmem>>, vector<256x8xf32>
    tpu.vector_store %arg8[%c0_142, %c40_143], %114 {strides = array<i32>} : memref<256x73xf32, #tpu.memory_space<vmem>>, vector<256x8xf32>,
    %c2_144 = arith.constant 2 : index
    %c0_145 = arith.constant 0 : index
    %c0_146 = arith.constant 0 : index
    %116 = vector.load %arg7[%c2_144, %c0_145, %c0_146] : memref<18x18x8xf32, #tpu.memory_space<vmem>>, vector<16x16x8xf32>
    %117 = vector.shape_cast %116 : vector<16x16x8xf32> to vector<256x8xf32>
    %c0_147 = arith.constant 0 : index
    %c48_148 = arith.constant 48 : index
    %118 = vector.load %arg8[%c0_147, %c48_148] : memref<256x73xf32, #tpu.memory_space<vmem>>, vector<256x8xf32>
    tpu.vector_store %arg8[%c0_147, %c48_148], %117 {strides = array<i32>} : memref<256x73xf32, #tpu.memory_space<vmem>>, vector<256x8xf32>,
    %c2_149 = arith.constant 2 : index
    %c1_150 = arith.constant 1 : index
    %c0_151 = arith.constant 0 : index
    %119 = vector.load %arg7[%c2_149, %c1_150, %c0_151] : memref<18x18x8xf32, #tpu.memory_space<vmem>>, vector<16x16x8xf32>
    %120 = vector.shape_cast %119 : vector<16x16x8xf32> to vector<256x8xf32>
    %c0_152 = arith.constant 0 : index
    %c56_153 = arith.constant 56 : index
    %121 = vector.load %arg8[%c0_152, %c56_153] : memref<256x73xf32, #tpu.memory_space<vmem>>, vector<256x8xf32>
    tpu.vector_store %arg8[%c0_152, %c56_153], %120 {strides = array<i32>} : memref<256x73xf32, #tpu.memory_space<vmem>>, vector<256x8xf32>,
    %c2_154 = arith.constant 2 : index
    %c2_155 = arith.constant 2 : index
    %c0_156 = arith.constant 0 : index
    %122 = vector.load %arg7[%c2_154, %c2_155, %c0_156] : memref<18x18x8xf32, #tpu.memory_space<vmem>>, vector<16x16x8xf32>
    %123 = vector.shape_cast %122 : vector<16x16x8xf32> to vector<256x8xf32>
    %c0_157 = arith.constant 0 : index
    %c64_158 = arith.constant 64 : index
    %124 = vector.load %arg8[%c0_157, %c64_158] : memref<256x73xf32, #tpu.memory_space<vmem>>, vector<256x8xf32>
    tpu.vector_store %arg8[%c0_157, %c64_158], %123 {strides = array<i32>} : memref<256x73xf32, #tpu.memory_space<vmem>>, vector<256x8xf32>,
    %cst_159 = arith.constant 1.000000e+00 : f32
    %125 = vector.broadcast %cst_159 : f32 to vector<256x1xf32>
    %c0_160 = arith.constant 0 : index
    %c72_161 = arith.constant 72 : index
    %126 = vector.load %arg8[%c0_160, %c72_161] : memref<256x73xf32, #tpu.memory_space<vmem>>, vector<256x1xf32>
    tpu.vector_store %arg8[%c0_160, %c72_161], %125 {strides = array<i32>} : memref<256x73xf32, #tpu.memory_space<vmem>>, vector<256x1xf32>,
    %c0_162 = arith.constant 0 : index
    %c0_163 = arith.constant 0 : index
    %127 = vector.load %arg8[%c0_162, %c0_163] : memref<256x73xf32, #tpu.memory_space<vmem>>, vector<256x73xf32>
    %c0_164 = arith.constant 0 : index
    %c0_165 = arith.constant 0 : index
    %128 = vector.load %arg4[%c0_164, %c0_165] : memref<8x73xf32, #tpu.memory_space<vmem>>, vector<8x73xf32>
    %cst_166 = arith.constant dense<0.000000e+00> : vector<8x256xf32>
    %129 = tpu.matmul %128, %127, %cst_166 {dimension_numbers = #tpu.dot_dimension_numbers<[1], [1], [0], [0], [0, 0, 1, 0], [], []>} : vector<8x73xf32>, vector<256x73xf32>, vector<8x256xf32> -> vector<8x256xf32>
    %cst_167 = arith.constant 0.000000e+00 : f32
    %130 = vector.broadcast %cst_167 : f32 to vector<8x256xf32>
    %131 = arith.cmpf ogt, %129, %130 : vector<8x256xf32>
    %132 = vector.broadcast %97 : f32 to vector<8x256xf32>
    %133 = arith.mulf %132, %129 : vector<8x256xf32>
    %134 = arith.select %131, %129, %133 : vector<8x256xi1>, vector<8x256xf32>
    %135 = tpu.concatenate %42, %88, %134 in 0 : vector<8x256xf32>, vector<8x256xf32>, vector<8x256xf32> -> vector<24x256xf32>
    %c0_168 = arith.constant 0 : index
    %c0_169 = arith.constant 0 : index
    %c0_170 = arith.constant 0 : index
    %136 = vector.load %arg6[%c0_168, %c0_169, %c0_170] : memref<1x24x256xf32, #tpu.memory_space<vmem>>, vector<1x24x256xf32>
    %137 = vector.shape_cast %136 : vector<1x24x256xf32> to vector<24x256xf32>
    %138 = vector.shape_cast %135 : vector<24x256xf32> to vector<1x24x256xf32>
    tpu.vector_store %arg6[%c0_168, %c0_169, %c0_170], %138 {strides = array<i32>} : memref<1x24x256xf32, #tpu.memory_space<vmem>>, vector<1x24x256xf32>,
    return
  }
  func.func @transform_0(%arg0: i32) -> (i32, i32, i32, i32) {
    %c0_i32 = arith.constant 0 : i32
    %c0_i32_0 = arith.constant 0 : i32
    %c0_i32_1 = arith.constant 0 : i32
    %c0_i32_2 = arith.constant 0 : i32
    return %arg0, %c0_i32, %c0_i32_0, %c0_i32_1 : i32, i32, i32, i32
  }
  func.func @transform_1(%arg0: i32) -> (i32, i32) {
    %c0_i32 = arith.constant 0 : i32
    %c0_i32_0 = arith.constant 0 : i32
    %c0_i32_1 = arith.constant 0 : i32
    return %c0_i32, %c0_i32_0 : i32, i32
  }
  func.func @transform_2(%arg0: i32) -> (i32, i32) {
    %c0_i32 = arith.constant 0 : i32
    %c0_i32_0 = arith.constant 0 : i32
    %c0_i32_1 = arith.constant 0 : i32
    return %c0_i32, %c0_i32_0 : i32, i32
  }
  func.func @transform_3(%arg0: i32) -> (i32, i32) {
    %c0_i32 = arith.constant 0 : i32
    %c0_i32_0 = arith.constant 0 : i32
    %c0_i32_1 = arith.constant 0 : i32
    return %c0_i32, %c0_i32_0 : i32, i32
  }
  func.func @transform_4(%arg0: i32) -> i32 {
    %c0_i32 = arith.constant 0 : i32
    %c0_i32_0 = arith.constant 0 : i32
    return %c0_i32 : i32
  }
  func.func @transform_5(%arg0: i32) -> (i32, i32, i32) {
    %c0_i32 = arith.constant 0 : i32
    %c0_i32_0 = arith.constant 0 : i32
    %c0_i32_1 = arith.constant 0 : i32
    return %arg0, %c0_i32, %c0_i32_0 : i32, i32, i32
  }
}

</mosaic_0001>

<bundles_post_ra>
// kernel: tpu_custom_call.1
= control target key start
LH: loop header
LB: loop body
LE: loop exit
PB: predicated region body
PF: predicated region fallthrough
CT: control target
= control target key end

     0   :  { %10 = vsyncpa [#allocation6], 0  ;;  %s11285_s0 = inlined_call_operand.vmem [shape: f32[2,16,16,4], index: 0, kind: input, shape index: {}]   ;;  %s11286_s1 = inlined_call_operand.vmem [shape: f32[8,37], index: 1, kind: input, shape index: {}]   ;;  %s11287_s2 = inlined_call_operand.vmem [shape: f32[8,73], index: 2, kind: input, shape index: {}]   ;;  %s11288_s3 = inlined_call_operand.vmem [shape: f32[8,73], index: 3, kind: input, shape index: {}]   ;;  %s11289_s4 = inlined_call_operand.vmem [shape: f32[3], index: 4, kind: input, shape index: {}]   ;;  %s11290_s5 = inlined_call_operand.hbm [shape: f32[2,24,256], index: 5, kind: output, shape index: {}]  }
   0x1   :  { %11 = vsyncpa [#allocation5], 0 }
   0x2   :  { %13 = vsyncpa [#allocation5 + $0x1], 0  ;;  %s7499_s18 = smov 0   ;;  %s7501_s19 = smov 0  }
   0x3   :  { %s7503_s20 = smov 0   ;;  %s7505_s21 = smov 0  }
   0x4 LB: > { %s7520_s22 = sadd.s32 4294967295, %s7450_s21   ;;  %s6709_s23 = sadd.s32 4294967294, %s7450_s21   ;;  %s7450_s21 = sphi %s7505_s21, %s11695_s21   ;;  %s7446_s20 = sphi %s7503_s20, %s11694_s20   ;;  %s7442_s19 = sphi %s7501_s19, %s11693_s19   ;;  %s7438_s18 = sphi %s7499_s18, %s11692_s18  }
   0x5   : > { %s7524_s24 = sadd.s32 1, %s7450_s21   ;;  %s136_s25 = sadd.s32 1, %s7446_s20 }
   0x6   : > { %s133_s26 = ssub.s32 %s7450_s21, %s7524_s24  ;;  %p146_p0 = scmp.ne.s32.totalorder %s7446_s20, %s7442_s19 }
   0x7   : > { %p134_p1 = scmp.eq.s32.totalorder %s133_s26, 0  ;;  %p147_p2 = scmp.eq.s32.totalorder %s7520_s22, 1 }
   0x8   : > { %p152_p3 = scmp.ne.s32.totalorder %s7442_s19, %s7438_s18  ;;  %p153_p4 = scmp.eq.s32.totalorder %s6709_s23, 1 }
   0x9   : > { %s7535_s27 = scalar_select %p134_p1, %s7446_s20, %s136_s25  }
   0xa   : > { %p7537_p5 = por %p147_p2, %p146_p0  ;;  %p7541_p6 = por %p153_p4, %p152_p3 }
   0xb   : > { %p6710_p7 = scmp.ge.s32.totalorder %s7450_s21, 1  ;;  %p160_p8 = scmp.lt.s32.totalorder %s7450_s21, 3 }
   0xc   : > { %p7316_p9 = scmp.eq.s32.totalorder %s7520_s22, 0  ;;  %s182_s8 = sshll.u32 %s11289_s4, 4  ;;  %s183_s8 = int_to_ptr.vmem [resolvable:$true] %s182_s8 }
   0xd   : > { %p7548_p10 = pnand %p6710_p7, %p160_p8  ;;  %s7369_s9 = scalar_lea.vmem %s183_s8, 16 }
   0xe   : > { %p7370_p13 = scmp.ne.s32.totalorder %s183_s8, %s7369_s9  ;;  %p7377_p3 = scmp.lt.s32.totalorder %s183_s8, %s183_s8 }
   0xf   : > { %p7308_p11 = pneg %p7548_p10  ;;  %p7378_p4 = scmp.lt.s32.totalorder %s7369_s9, %s7369_s9 }
  0x11   : > { %p7309_p12 = pnand %p7316_p9, %p7308_p11  ;;  %p7379_p7 = por %p7378_p4, %p7377_p3 }
  0x13   : > { %p7371_p0 = pneg %p7309_p12 }
  0x15   : > { %p7372_p1 = pnand %p7371_p0, %p7370_p13 }
  0x17   : > { %p7373_p2 = pneg %p7372_p1 }
  0x19   : > { %p7380_p8 = pnand %p7379_p7, %p7373_p2 }
  0x1b   : > { %7383 = shalt.err (!%p7380_p8)
}
  0x1c   : > { %s7452_s10 = smov [#allocation4]   ;;  %203 = sbr.rel (%p7548_p10) target bundleno = 2524 (0x9dc), region = 40 }
  0x1d   : > { %7311 = dma.vmem_to_smem (!%p7309_p12), %s183_s8, 16, %s7452_s10, [#allocation6]  }
  0x23   : > { %7429 = dma.done.wait (%p7316_p9), [#allocation6], 16  }
  0x24   : > { %7431 = vsyncadd (%p7316_p9), [#allocation6], 4294967280 }
  0x25   : > { %209 = sfence }
  0x26   : > { %vm237_vm0 = vcmask 64512   ;;  %p232_p11 = scmp.lt.s32.totalorder %s7520_s22, 1  ;;  %vm240_vm1 = vcmask 58368   ;;  %v7453_v0 = vmov 0.0   ;;  %vm326_vm2 = vcmask 31744   ;;  %s7454_s16 = smov 4  }
  0x27   : > { %238 = vst.msk [vmem:[#allocation2] sm:$0xff] %vm237_vm0, %v7453_v0  ;;  %239 = vst.msk [vmem:[#allocation2 + $0x8] sm:$0xff] %vm237_vm0, %v7453_v0  ;;  %s7455_s17 = smov 8   ;;  %vm584_vm3 = vcmask 64544   ;;  %s7456_s23 = smov 12   ;;  %vm777_vm4 = vcmask 97344  }
  0x28   : > { %242 = vst.msk [vmem:[#allocation2 + $0x18] sm:$0xff] %vm237_vm0, %v7453_v0  ;;  %243 = vst.msk [vmem:[#allocation2 + $0x20] sm:$0xff] %vm237_vm0, %v7453_v0  ;;  %s233_s11 = scalar_select %p232_p11, %s7520_s22, 1  ;;  %vm970_vm5 = vcmask 130144   ;;  %vm1163_vm6 = vcmask 162944   ;;  %vm1356_vm7 = vcmask 195744  }
  0x29   : > { %245 = vst.msk [vmem:[#allocation2 + $0x30] sm:$0xff] %vm237_vm0, %v7453_v0  ;;  %246 = vst.msk [vmem:[#allocation2 + $0x38] sm:$0xff] %vm237_vm0, %v7453_v0  ;;  %s7457_s25 = smov 16   ;;  %s7458_s26 = smov 20   ;;  %vm1550_vm8 = vcmask 228544   ;;  %vm2035_vm9 = vcmask 302080  }
  0x2a   : > { %248 = vst.msk [vmem:[#allocation2 + $0x48] sm:$0xff] %vm237_vm0, %v7453_v0  ;;  %249 = vst.msk [vmem:[#allocation2 + $0x50] sm:$0xff] %vm237_vm0, %v7453_v0  ;;  %s6887_s12 = sshll.u32 %s233_s11, 8  ;;  %s7459_s30 = smov 24   ;;  %vm1743_vm10 = vcmask 261344   ;;  %vm1936_vm11 = vcmask 294144  }
  0x2b   : > { %251 = vst.msk [vmem:[#allocation2 + $0x60] sm:$0xff] %vm237_vm0, %v7453_v0  ;;  %252 = vst.msk [vmem:[#allocation2 + $0x68] sm:$0xff] %vm237_vm0, %v7453_v0  ;;  %s7626_s15 = scalar_lea.vmem %s11285_s0, %s6887_s12  ;;  %s7460_s6 = smov 28   ;;  %vm1969_vm12 = vcmask 302368   ;;  %vm2791_vm13 = vcmask 130112  }
  0x2c   : > { %254 = vst.msk [vmem:[#allocation2 + $0x78] sm:$0xff] %vm237_vm0, %v7453_v0  ;;  %255 = vst.msk [vmem:[#allocation2 + $0x80] sm:$0xff] %vm237_vm0, %v7453_v0  ;;  %v293_v1 = vld [vmem:[%s7626_s15] sm:$0xff]  ;;  %v294_v2 = vld [vmem:[%s7626_s15 + $0x8] sm:$0xff]  ;;  %s7461_s9 = smov 32   ;;  %s359_s10 = sld [smem:[#allocation4]] }
  0x2d   : > { %257 = vst.msk [vmem:[#allocation2 + $0x90] sm:$0xff] %vm237_vm0, %v7453_v0  ;;  %258 = vst.msk [vmem:[#allocation2 + $0x98] sm:$0xff] %vm237_vm0, %v7453_v0  ;;  %v295_v3 = vld [vmem:[%s7626_s15 + $0x10] sm:$0xff]  ;;  %v296_v4 = vld [vmem:[%s7626_s15 + $0x18] sm:$0xff]  ;;  %s7463_s11 = smov 40   ;;  %s7464_s12 = smov 48  }
  0x2e   : > { %260 = vst.msk [vmem:[#allocation2 + $0xa8] sm:$0xff] %vm237_vm0, %v7453_v0  ;;  %261 = vst.msk [vmem:[#allocation2 + $0xb0] sm:$0xff] %vm237_vm0, %v7453_v0  ;;  %v297_v5 = vld [vmem:[%s7626_s15 + $0x20] sm:$0xff]  ;;  %v298_v6 = vld [vmem:[%s7626_s15 + $0x28] sm:$0xff]  ;;  %s7465_s13 = smov 56   ;;  %s7466_s14 = smov 64  }
  0x2f   : > { %263 = vst.msk [vmem:[#allocation2 + $0xc0] sm:$0xff] %vm237_vm0, %v7453_v0  ;;  %264 = vst.msk [vmem:[#allocation2 + $0xc8] sm:$0xff] %vm237_vm0, %v7453_v0  ;;  %v424_v7 = vld [vmem:[#allocation2 + $0x1] sm:$0xff]  ;;  %v299_v9 = vld [vmem:[%s7626_s15 + $0x30] sm:$0xff] }
  0x30   : > { %266 = vst.msk [vmem:[#allocation2 + $0xd8] sm:$0xff] %vm237_vm0, %v7453_v0  ;;  %267 = vst.msk [vmem:[#allocation2 + $0xe0] sm:$0xff] %vm237_vm0, %v7453_v0  ;;  %488 = vrot.lane.b32.xlu0 %v424_v7, %s7454_s16  ;;  %v300_v10 = vld [vmem:[%s7626_s15 + $0x38] sm:$0xff]  ;;  %v301_v11 = vld [vmem:[%s7626_s15 + $0x40] sm:$0xff] }
  0x31   : > { %269 = vst.msk [vmem:[#allocation2 + $0xf0] sm:$0xff] %vm237_vm0, %v7453_v0  ;;  %270 = vst.msk [vmem:[#allocation2 + $0xf8] sm:$0xff] %vm237_vm0, %v7453_v0  ;;  %v302_v12 = vld [vmem:[%s7626_s15 + $0x48] sm:$0xff]  ;;  %v303_v13 = vld [vmem:[%s7626_s15 + $0x50] sm:$0xff] }
  0x32   : > { %272 = vst.msk [vmem:[#allocation2 + $0x108] sm:$0xff] %vm237_vm0, %v7453_v0  ;;  %273 = vst.msk [vmem:[#allocation2 + $0x110] sm:$0xff] %vm237_vm0, %v7453_v0  ;;  %v304_v14 = vld [vmem:[%s7626_s15 + $0x58] sm:$0xff]  ;;  %v305_v15 = vld [vmem:[%s7626_s15 + $0x60] sm:$0xff] }
  0x33   : > { %275 = vst.msk [vmem:[#allocation2 + $0x120] sm:$0xff] %vm237_vm0, %v7453_v0  ;;  %276 = vst.msk [vmem:[#allocation2 + $0x128] sm:$0xff] %vm237_vm0, %v7453_v0  ;;  %v306_v16 = vld [vmem:[%s7626_s15 + $0x68] sm:$0xff]  ;;  %v307_v17 = vld [vmem:[%s7626_s15 + $0x70] sm:$0xff] }
  0x34   : > { %278 = vst.msk [vmem:[#allocation2 + $0x138] sm:$0xff] %vm237_vm0, %v7453_v0  ;;  %279 = vst.msk [vmem:[#allocation2 + $0x140] sm:$0xff] %vm237_vm0, %v7453_v0  ;;  %v308_v18 = vld [vmem:[%s7626_s15 + $0x78] sm:$0xff]  ;;  %v309_v19 = vld [vmem:[%s7626_s15 + $0x80] sm:$0xff] }
  0x35   : > { %281 = vst.msk [vmem:[#allocation2 + $0x150] sm:$0xff] %vm237_vm0, %v7453_v0  ;;  %282 = vst.msk [vmem:[#allocation2 + $0x158] sm:$0xff] %vm237_vm0, %v7453_v0  ;;  %v310_v20 = vld [vmem:[%s7626_s15 + $0x88] sm:$0xff]  ;;  %v311_v21 = vld [vmem:[%s7626_s15 + $0x90] sm:$0xff] }
  0x36   : > { %284 = vst.msk [vmem:[#allocation2 + $0x168] sm:$0xff] %vm237_vm0, %v7453_v0  ;;  %285 = vst.msk [vmem:[#allocation2 + $0x170] sm:$0xff] %vm237_vm0, %v7453_v0  ;;  %v312_v22 = vld [vmem:[%s7626_s15 + $0x98] sm:$0xff]  ;;  %v313_v23 = vld [vmem:[%s7626_s15 + $0xa0] sm:$0xff] }
  0x37   : > { %287 = vst.msk [vmem:[#allocation2 + $0x180] sm:$0xff] %vm237_vm0, %v7453_v0  ;;  %288 = vst.msk [vmem:[#allocation2 + $0x188] sm:$0xff] %vm237_vm0, %v7453_v0  ;;  %v314_v24 = vld [vmem:[%s7626_s15 + $0xa8] sm:$0xff]  ;;  %v315_v28 = vld [vmem:[%s7626_s15 + $0xb0] sm:$0xff] }
  0x38   : > { %290 = vst.msk [vmem:[#allocation2 + $0x198] sm:$0xff] %vm237_vm0, %v7453_v0  ;;  %291 = vst.msk [vmem:[#allocation2 + $0x1a0] sm:$0xff] %vm237_vm0, %v7453_v0  ;;  %v316_v29 = vld [vmem:[%s7626_s15 + $0xb8] sm:$0xff]  ;;  %v317_v33 = vld [vmem:[%s7626_s15 + $0xc0] sm:$0xff] }
  0x39   : > { %241 = vst.msk [vmem:[#allocation2 + $0x10] sm:$0x3] %vm240_vm1, %v7453_v0  ;;  %244 = vst.msk [vmem:[#allocation2 + $0x28] sm:$0x3] %vm240_vm1, %v7453_v0  ;;  %v318_v34 = vld [vmem:[%s7626_s15 + $0xc8] sm:$0xff]  ;;  %v319_v35 = vld [vmem:[%s7626_s15 + $0xd0] sm:$0xff] }
  0x3a   : > { %247 = vst.msk [vmem:[#allocation2 + $0x40] sm:$0x3] %vm240_vm1, %v7453_v0  ;;  %250 = vst.msk [vmem:[#allocation2 + $0x58] sm:$0x3] %vm240_vm1, %v7453_v0  ;;  %v320_v36 = vld [vmem:[%s7626_s15 + $0xd8] sm:$0xff]  ;;  %v321_v37 = vld [vmem:[%s7626_s15 + $0xe0] sm:$0xff] }
  0x3b   : > { %253 = vst.msk [vmem:[#allocation2 + $0x70] sm:$0x3] %vm240_vm1, %v7453_v0  ;;  %256 = vst.msk [vmem:[#allocation2 + $0x88] sm:$0x3] %vm240_vm1, %v7453_v0  ;;  %v322_v38 = vld [vmem:[%s7626_s15 + $0xe8] sm:$0xff]  ;;  %v360_v45 = vld [vmem:[#allocation2] sm:$0xff] }
  0x3c   : > { %259 = vst.msk [vmem:[#allocation2 + $0xa0] sm:$0x3] %vm240_vm1, %v7453_v0  ;;  %262 = vst.msk [vmem:[#allocation2 + $0xb8] sm:$0x3] %vm240_vm1, %v7453_v0  ;;  %v361_v48 = vld [vmem:[#allocation2 + $0x8] sm:$0xff] }
  0x3d   : > { %265 = vst.msk [vmem:[#allocation2 + $0xd0] sm:$0x3] %vm240_vm1, %v7453_v0  ;;  %268 = vst.msk [vmem:[#allocation2 + $0xe8] sm:$0x3] %vm240_vm1, %v7453_v0 }
  0x3e   : > { %271 = vst.msk [vmem:[#allocation2 + $0x100] sm:$0x3] %vm240_vm1, %v7453_v0  ;;  %274 = vst.msk [vmem:[#allocation2 + $0x118] sm:$0x3] %vm240_vm1, %v7453_v0 }
  0x3f   : > { %277 = vst.msk [vmem:[#allocation2 + $0x130] sm:$0x3] %vm240_vm1, %v7453_v0  ;;  %280 = vst.msk [vmem:[#allocation2 + $0x148] sm:$0x3] %vm240_vm1, %v7453_v0 }
  0x40   : > { %283 = vst.msk [vmem:[#allocation2 + $0x160] sm:$0x3] %vm240_vm1, %v7453_v0  ;;  %286 = vst.msk [vmem:[#allocation2 + $0x178] sm:$0x3] %vm240_vm1, %v7453_v0  ;;  %v425_v8 = vld [vmem:[#allocation2 + $0x9] sm:$0xff] }
  0x41   : > { %289 = vst.msk [vmem:[#allocation2 + $0x190] sm:$0x3] %vm240_vm1, %v7453_v0  ;;  %292 = vst.msk [vmem:[#allocation2 + $0x1a8] sm:$0x3] %vm240_vm1, %v7453_v0  ;;  %490 = vrot.lane.b32.xlu0 %v425_v8, %s7454_s16 }
  0x42   : > { %327 = vst.msk [vmem:[#allocation2 + $0x19] sm:$0xff] %vm326_vm2, %v293_v1  ;;  %328 = vst.msk [vmem:[#allocation2 + $0x21] sm:$0xff] %vm326_vm2, %v294_v2 }
  0x43   : > { %329 = vst.msk [vmem:[#allocation2 + $0x31] sm:$0xff] %vm326_vm2, %v295_v3  ;;  %330 = vst.msk [vmem:[#allocation2 + $0x39] sm:$0xff] %vm326_vm2, %v296_v4 }
  0x44   : > { %331 = vst.msk [vmem:[#allocation2 + $0x49] sm:$0xff] %vm326_vm2, %v297_v5  ;;  %332 = vst.msk [vmem:[#allocation2 + $0x51] sm:$0xff] %vm326_vm2, %v298_v6 }
  0x45   : > { %333 = vst.msk [vmem:[#allocation2 + $0x61] sm:$0xff] %vm326_vm2, %v299_v9  ;;  %334 = vst.msk [vmem:[#allocation2 + $0x69] sm:$0xff] %vm326_vm2, %v300_v10 }
  0x46   : > { %335 = vst.msk [vmem:[#allocation2 + $0x79] sm:$0xff] %vm326_vm2, %v301_v11  ;;  %336 = vst.msk [vmem:[#allocation2 + $0x81] sm:$0xff] %vm326_vm2, %v302_v12 }
  0x47   : > { %337 = vst.msk [vmem:[#allocation2 + $0x91] sm:$0xff] %vm326_vm2, %v303_v13  ;;  %338 = vst.msk [vmem:[#allocation2 + $0x99] sm:$0xff] %vm326_vm2, %v304_v14 }
  0x48   : > { %339 = vst.msk [vmem:[#allocation2 + $0xa9] sm:$0xff] %vm326_vm2, %v305_v15  ;;  %340 = vst.msk [vmem:[#allocation2 + $0xb1] sm:$0xff] %vm326_vm2, %v306_v16 }
  0x49   : > { %341 = vst.msk [vmem:[#allocation2 + $0xc1] sm:$0xff] %vm326_vm2, %v307_v17  ;;  %342 = vst.msk [vmem:[#allocation2 + $0xc9] sm:$0xff] %vm326_vm2, %v308_v18  ;;  %v7671_v25 = vld [vmem:[#allocation2 + $0x19] sm:$0xff]  ;;  %v7680_v27 = vld [vmem:[#allocation2 + $0x21] sm:$0xff] }
  0x4a   : > { %343 = vst.msk [vmem:[#allocation2 + $0xd9] sm:$0xff] %vm326_vm2, %v309_v19  ;;  %344 = vst.msk [vmem:[#allocation2 + $0xe1] sm:$0xff] %vm326_vm2, %v310_v20  ;;  %v7673_v26 = vld [vmem:[#allocation2 + $0x31] sm:$0xff]  ;;  %492 = vrot.lane.b32.xlu1 %v7671_v25, %s7454_s16  ;;  %v7692_v31 = vld [vmem:[#allocation2 + $0x39] sm:$0xff] }
  0x4b   : > { %345 = vst.msk [vmem:[#allocation2 + $0xf1] sm:$0xff] %vm326_vm2, %v311_v21  ;;  %346 = vst.msk [vmem:[#allocation2 + $0xf9] sm:$0xff] %vm326_vm2, %v312_v22  ;;  %496 = vrot.lane.b32.xlu0 %v7673_v26, %s7454_s16  ;;  %v7688_v30 = vld [vmem:[#allocation2 + $0x49] sm:$0xff]  ;;  %v7709_v39 = vld [vmem:[#allocation2 + $0x51] sm:$0xff] }
  0x4c   : > { %347 = vst.msk [vmem:[#allocation2 + $0x109] sm:$0xff] %vm326_vm2, %v313_v23  ;;  %348 = vst.msk [vmem:[#allocation2 + $0x111] sm:$0xff] %vm326_vm2, %v314_v24  ;;  %v7696_v32 = vld [vmem:[#allocation2 + $0x61] sm:$0xff]  ;;  %v7720_v41 = vld [vmem:[#allocation2 + $0x69] sm:$0xff] }
  0x4d   : > { %349 = vst.msk [vmem:[#allocation2 + $0x121] sm:$0xff] %vm326_vm2, %v315_v28  ;;  %350 = vst.msk [vmem:[#allocation2 + $0x129] sm:$0xff] %vm326_vm2, %v316_v29  ;;  %v7716_v40 = vld [vmem:[#allocation2 + $0x79] sm:$0xff]  ;;  %v7728_v43 = vld [vmem:[#allocation2 + $0x81] sm:$0xff] }
  0x4e   : > { %494 = vrot.lane.b32.xlu1 %v7680_v27, %s7454_s16  ;;  %351 = vst.msk [vmem:[#allocation2 + $0x139] sm:$0xff] %vm326_vm2, %v317_v33  ;;  %352 = vst.msk [vmem:[#allocation2 + $0x141] sm:$0xff] %vm326_vm2, %v318_v34  ;;  %v7724_v42 = vld [vmem:[#allocation2 + $0x91] sm:$0xff]  ;;  %v7738_v47 = vld [vmem:[#allocation2 + $0x99] sm:$0xff] }
  0x4f   : > { %500 = vrot.lane.b32.xlu0 %v7688_v30, %s7454_s16  ;;  %353 = vst.msk [vmem:[#allocation2 + $0x151] sm:$0xff] %vm326_vm2, %v319_v35  ;;  %354 = vst.msk [vmem:[#allocation2 + $0x159] sm:$0xff] %vm326_vm2, %v320_v36  ;;  %v7732_v44 = vld [vmem:[#allocation2 + $0xa9] sm:$0xff]  ;;  %v7736_v46 = vld [vmem:[#allocation2 + $0x18] sm:$0xff] }
  0x50   : > { %355 = vst.msk [vmem:[#allocation2 + $0x169] sm:$0xff] %vm326_vm2, %v321_v37  ;;  %356 = vst.msk [vmem:[#allocation2 + $0x171] sm:$0xff] %vm326_vm2, %v322_v38  ;;  %v7746_v49 = vld [vmem:[#allocation2 + $0x20] sm:$0xff]  ;;  %v7752_v51 = vld [vmem:[#allocation2 + $0x30] sm:$0xff] }
  0x51   : > { %392 = vst.msk [vmem:[#allocation3] sm:$0xff] %vm326_vm2, %v360_v45  ;;  %394 = vst.msk [vmem:[#allocation3 + $0x10] sm:$0xff] %vm326_vm2, %v7736_v46  ;;  %v7748_v50 = vld [vmem:[#allocation2 + $0xc1] sm:$0xff]  ;;  %v7754_v52 = vld [vmem:[#allocation2 + $0x38] sm:$0xff] }
  0x52   : > { %498 = vrot.lane.b32.xlu1 %v7692_v31, %s7454_s16  ;;  %393 = vst.msk [vmem:[#allocation3 + $0x8] sm:$0xff] %vm326_vm2, %v361_v48  ;;  %395 = vst.msk [vmem:[#allocation3 + $0x18] sm:$0xff] %vm326_vm2, %v7746_v49  ;;  %v7758_v53 = vld [vmem:[#allocation2 + $0xb1] sm:$0xff]  ;;  %v7764_v54 = vld [vmem:[#allocation2 + $0x48] sm:$0xff] }
  0x53   : > { %504 = vrot.lane.b32.xlu0 %v7696_v32, %s7454_s16  ;;  %396 = vst.msk [vmem:[#allocation3 + $0x20] sm:$0xff] %vm326_vm2, %v7752_v51  ;;  %397 = vst.msk [vmem:[#allocation3 + $0x28] sm:$0xff] %vm326_vm2, %v7754_v52  ;;  %v7766_v55 = vld [vmem:[#allocation2 + $0x50] sm:$0xff]  ;;  %v7768_v56 = vld [vmem:[#allocation2 + $0xd9] sm:$0xff] }
  0x54   : > { %398 = vst.msk [vmem:[#allocation3 + $0x30] sm:$0xff] %vm326_vm2, %v7764_v54  ;;  %399 = vst.msk [vmem:[#allocation3 + $0x38] sm:$0xff] %vm326_vm2, %v7766_v55  ;;  %v7774_v57 = vld [vmem:[#allocation2 + $0x60] sm:$0xff]  ;;  %v7776_v58 = vld [vmem:[#allocation2 + $0x68] sm:$0xff] }
  0x55   : > { %v7778_v59 = vld [vmem:[#allocation2 + $0x78] sm:$0xff]  ;;  %400 = vst.msk [vmem:[#allocation3 + $0x40] sm:$0xff] %vm326_vm2, %v7774_v57  ;;  %401 = vst.msk [vmem:[#allocation3 + $0x48] sm:$0xff] %vm326_vm2, %v7776_v58  ;;  %v7788_v60 = vld [vmem:[#allocation2 + $0x80] sm:$0xff] }
  0x56   : > { %502 = vrot.lane.b32.xlu1 %v7709_v39, %s7454_s16  ;;  %402 = vst.msk [vmem:[#allocation3 + $0x50] sm:$0xff] %vm326_vm2, %v7778_v59  ;;  %v7790_v61 = vld [vmem:[#allocation2 + $0x90] sm:$0xff]  ;;  %v7792_v62 = vld [vmem:[#allocation2 + $0x98] sm:$0xff]  ;;  %403 = vst.msk [vmem:[#allocation3 + $0x58] sm:$0xff] %vm326_vm2, %v7788_v60 }
  0x57   : > { %508 = vrot.lane.b32.xlu0 %v7716_v40, %s7454_s16  ;;  %v7794_v63 = vld [vmem:[#allocation2 + $0xc9] sm:$0xff]  ;;  %404 = vst.msk [vmem:[#allocation3 + $0x60] sm:$0xff] %vm326_vm2, %v7790_v61  ;;  %405 = vst.msk [vmem:[#allocation3 + $0x68] sm:$0xff] %vm326_vm2, %v7792_v62  ;;  %v7806_v2 = vld [vmem:[#allocation2 + $0xc0] sm:$0xff] }
  0x58   : > { %v7802_v0 = vld [vmem:[#allocation2 + $0xa8] sm:$0xff]  ;;  %v7804_v1 = vld [vmem:[#allocation2 + $0xb0] sm:$0xff]  ;;  %408 = vst.msk [vmem:[#allocation3 + $0x80] sm:$0xff] %vm326_vm2, %v7806_v2  ;;  %v7818_v4 = vld [vmem:[#allocation2 + $0xd8] sm:$0xff] }
  0x59   : > { %406 = vst.msk [vmem:[#allocation3 + $0x70] sm:$0xff] %vm326_vm2, %v7802_v0  ;;  %407 = vst.msk [vmem:[#allocation3 + $0x78] sm:$0xff] %vm326_vm2, %v7804_v1  ;;  %v7816_v3 = vld [vmem:[#allocation2 + $0xc8] sm:$0xff]  ;;  %v7820_v5 = vld [vmem:[#allocation2 + $0xe0] sm:$0xff] }
  0x5a   : > { %506 = vrot.lane.b32.xlu1 %v7720_v41, %s7454_s16  ;;  %409 = vst.msk [vmem:[#allocation3 + $0x88] sm:$0xff] %vm326_vm2, %v7816_v3  ;;  %410 = vst.msk [vmem:[#allocation3 + $0x90] sm:$0xff] %vm326_vm2, %v7818_v4  ;;  %v7828_v6 = vld [vmem:[#allocation2 + $0xf0] sm:$0xff]  ;;  %v7830_v7 = vld [vmem:[#allocation2 + $0xf8] sm:$0xff] }
  0x5b   : > { %512 = vrot.lane.b32.xlu0 %v7724_v42, %s7454_s16  ;;  %411 = vst.msk [vmem:[#allocation3 + $0x98] sm:$0xff] %vm326_vm2, %v7820_v5  ;;  %v7832_v8 = vld [vmem:[#allocation2 + $0x108] sm:$0xff]  ;;  %412 = vst.msk [vmem:[#allocation3 + $0xa0] sm:$0xff] %vm326_vm2, %v7828_v6  ;;  %v7842_v9 = vld [vmem:[#allocation2 + $0x110] sm:$0xff] }
  0x5c   : > { %413 = vst.msk [vmem:[#allocation3 + $0xa8] sm:$0xff] %vm326_vm2, %v7830_v7  ;;  %414 = vst.msk [vmem:[#allocation3 + $0xb0] sm:$0xff] %vm326_vm2, %v7832_v8  ;;  %v7844_v10 = vld [vmem:[#allocation2 + $0xf1] sm:$0xff]  ;;  %v7850_v11 = vld [vmem:[#allocation2 + $0x120] sm:$0xff] }
  0x5d   : > { %415 = vst.msk [vmem:[#allocation3 + $0xb8] sm:$0xff] %vm326_vm2, %v7842_v9  ;;  %v7852_v12 = vld [vmem:[#allocation2 + $0x128] sm:$0xff]  ;;  %416 = vst.msk [vmem:[#allocation3 + $0xc0] sm:$0xff] %vm326_vm2, %v7850_v11  ;;  %v7866_v15 = vld [vmem:[#allocation2 + $0x138] sm:$0xff] }
  0x5e   : > { %510 = vrot.lane.b32.xlu1 %v7728_v43, %s7454_s16  ;;  %v7854_v13 = vld [vmem:[#allocation2 + $0xe1] sm:$0xff]  ;;  %417 = vst.msk [vmem:[#allocation3 + $0xc8] sm:$0xff] %vm326_vm2, %v7852_v12  ;;  %v7862_v14 = vld [vmem:[#allocation2 + $0x109] sm:$0xff]  ;;  %v7870_v17 = vld [vmem:[#allocation2 + $0xf9] sm:$0xff] }
  0x5f   : > { %516 = vrot.lane.b32.xlu0 %v7732_v44, %s7454_s16  ;;  %v7868_v16 = vld [vmem:[#allocation2 + $0x140] sm:$0xff]  ;;  %418 = vst.msk [vmem:[#allocation3 + $0xd0] sm:$0xff] %vm326_vm2, %v7866_v15  ;;  %v7882_v19 = vld [vmem:[#allocation2 + $0x150] sm:$0xff]  ;;  %v7884_v20 = vld [vmem:[#allocation2 + $0x158] sm:$0xff] }
  0x60   : > { %419 = vst.msk [vmem:[#allocation3 + $0xd8] sm:$0xff] %vm326_vm2, %v7868_v16  ;;  %v7878_v18 = vld [vmem:[#allocation2 + $0x121] sm:$0xff]  ;;  %v7886_v21 = vld [vmem:[#allocation2 + $0x111] sm:$0xff]  ;;  %420 = vst.msk [vmem:[#allocation3 + $0xe0] sm:$0xff] %vm326_vm2, %v7882_v19 }
  0x61   : > { %421 = vst.msk [vmem:[#allocation3 + $0xe8] sm:$0xff] %vm326_vm2, %v7884_v20  ;;  %v7894_v22 = vld [vmem:[#allocation2 + $0x139] sm:$0xff]  ;;  %v7898_v23 = vld [vmem:[#allocation2 + $0x168] sm:$0xff]  ;;  %v7900_v24 = vld [vmem:[#allocation2 + $0x170] sm:$0xff] }
  0x62   : > { %514 = vrot.lane.b32.xlu1 %v7738_v47, %s7454_s16  ;;  %v7902_v28 = vld [vmem:[#allocation2 + $0x129] sm:$0xff]  ;;  %422 = vst.msk [vmem:[#allocation3 + $0xf0] sm:$0xff] %vm326_vm2, %v7898_v23  ;;  %423 = vst.msk [vmem:[#allocation3 + $0xf8] sm:$0xff] %vm326_vm2, %v7900_v24  ;;  %v7910_v29 = vld [vmem:[#allocation2 + $0x151] sm:$0xff] }
  0x63   : > { %520 = vrot.lane.b32.xlu0 %v7748_v50, %s7454_s16  ;;  %v7914_v33 = vld [vmem:[#allocation2 + $0x141] sm:$0xff]  ;;  %v323_v34 = vld [vmem:[%s7626_s15 + $0xf0] sm:$0xff]  ;;  %v324_v36 = vld [vmem:[%s7626_s15 + $0xf8] sm:$0xff] }
  0x64   : > { %11429 = vst [vmem:[#allocation10_spill] sm:$0xff] %v7914_v33  ;;  %v7919_v35 = vld [vmem:[#allocation2 + $0x169] sm:$0xff]  ;;  %357 = vst.msk [vmem:[#allocation2 + $0x181] sm:$0xff] %vm326_vm2, %v323_v34  ;;  %v7926_v37 = vld [vmem:[#allocation2 + $0x159] sm:$0xff] }
  0x65   : > { %11430 = vst [vmem:[#allocation11_spill] sm:$0xff] %v7919_v35  ;;  %358 = vst.msk [vmem:[#allocation2 + $0x189] sm:$0xff] %vm326_vm2, %v324_v36  ;;  %v617_v38 = vld [vmem:[#allocation2 + $0x2] sm:$0xff]  ;;  %v7932_v45 = vld [vmem:[#allocation2 + $0x171] sm:$0xff] }
  0x66   : > { %518 = vrot.lane.b32.xlu1 %v7758_v53, %s7454_s16  ;;  %11431 = vst [vmem:[#allocation12_spill] sm:$0xff] %v7926_v37  ;;  %11432 = vst [vmem:[#allocation13_spill] sm:$0xff] %v7932_v45  ;;  %v7935_v48 = vld [vmem:[#allocation2 + $0x1a] sm:$0xff]  ;;  %v618_v34 = vld [vmem:[#allocation2 + $0xa] sm:$0xff] }
  0x67   : > { %524 = vrot.lane.b32.xlu0 %v7768_v56, %s7454_s16  ;;  %11433 = vst [vmem:[#allocation14_spill] sm:$0xff] %v7935_v48  ;;  %v7941_v36 = vld [vmem:[#allocation2 + $0x32] sm:$0xff] }
  0x68   : > { %11434 = vst [vmem:[#allocation15_spill] sm:$0xff] %v7941_v36 }
  0x6a   : > { %522 = vrot.lane.b32.xlu1 %v7794_v63, %s7454_s16 }
  0x6b   : > { %528 = vrot.lane.b32.xlu0 %v7844_v10, %s7454_s16 }
  0x6e   : > { %526 = vrot.lane.b32.xlu1 %v7854_v13, %s7454_s16 }
  0x6f   : > { %532 = vrot.lane.b32.xlu0 %v7862_v14, %s7454_s16 }
  0x72   : > { %530 = vrot.lane.b32.xlu1 %v7870_v17, %s7454_s16 }
  0x73   : > { %536 = vrot.lane.b32.xlu0 %v7878_v18, %s7454_s16 }
  0x76   : > { %534 = vrot.lane.b32.xlu1 %v7886_v21, %s7454_s16 }
  0x77   : > { %540 = vrot.lane.b32.xlu0 %v7894_v22, %s7454_s16 }
  0x7a   : > { %538 = vrot.lane.b32.xlu1 %v7902_v28, %s7454_s16 }
  0x7b   : > { %544 = vrot.lane.b32.xlu0 %v7910_v29, %s7454_s16 }
  0x7e   : > { %542 = vrot.lane.b32.xlu1 %v7914_v33, %s7454_s16 }
  0x7f   : > { %548 = vrot.lane.b32.xlu0 %v7919_v35, %s7454_s16  ;;  %v7944_v35 = vld [vmem:[#allocation2 + $0x22] sm:$0xff] }
  0x80   : > { %11435 = vst [vmem:[#allocation16_spill] sm:$0xff] %v7944_v35 }
  0x82   : > { %546 = vrot.lane.b32.xlu1 %v7926_v37, %s7454_s16  ;;  %v7948_v37 = vld [vmem:[#allocation2 + $0x4a] sm:$0xff] }
  0x83   : > { %681 = vrot.lane.b32.xlu0 %v617_v38, %s7455_s17  ;;  %11436 = vst [vmem:[#allocation17_spill] sm:$0xff] %v7948_v37  ;;  %v7952_v38 = vld [vmem:[#allocation2 + $0x3a] sm:$0xff] }
  0x84   : > { %11437 = vst [vmem:[#allocation18_spill] sm:$0xff] %v7952_v38 }
  0x86   : > { %550 = vrot.lane.b32.xlu1 %v7932_v45, %s7454_s16  ;;  %v8032_v45 = vld [vmem:[#allocation2 + $0x12a] sm:$0xff] }
  0x87   : > { %685 = vrot.lane.b32.xlu0 %v7935_v48, %s7455_s17  ;;  %v7956_v48 = vld [vmem:[#allocation2 + $0x62] sm:$0xff]  ;;  %11457 = vst [vmem:[#allocation38_spill] sm:$0xff] %v8032_v45 }
  0x88   : > { %11438 = vst [vmem:[#allocation19_spill] sm:$0xff] %v7956_v48 }
  0x8a   : > { %683 = vrot.lane.b32.xlu1 %v618_v34, %s7455_s17  ;;  %v7960_v34 = vld [vmem:[#allocation2 + $0x52] sm:$0xff] }
  0x8b   : > { %689 = vrot.lane.b32.xlu0 %v7941_v36, %s7455_s17  ;;  %11439 = vst [vmem:[#allocation20_spill] sm:$0xff] %v7960_v34  ;;  %v7964_v36 = vld [vmem:[#allocation2 + $0x7a] sm:$0xff] }
  0x8c   : > { %11440 = vst [vmem:[#allocation21_spill] sm:$0xff] %v7964_v36 }
  0x8e   : > { %687 = vrot.lane.b32.xlu1 %v7944_v35, %s7455_s17  ;;  %v7968_v35 = vld [vmem:[#allocation2 + $0x6a] sm:$0xff] }
  0x8f   : > { %693 = vrot.lane.b32.xlu0 %v7948_v37, %s7455_s17  ;;  %11441 = vst [vmem:[#allocation22_spill] sm:$0xff] %v7968_v35  ;;  %v7972_v37 = vld [vmem:[#allocation2 + $0x92] sm:$0xff] }
  0x90   : > { %11442 = vst [vmem:[#allocation23_spill] sm:$0xff] %v7972_v37 }
  0x92   : > { %691 = vrot.lane.b32.xlu1 %v7952_v38, %s7455_s17  ;;  %v7976_v38 = vld [vmem:[#allocation2 + $0x82] sm:$0xff] }
  0x93   : > { %697 = vrot.lane.b32.xlu0 %v7956_v48, %s7455_s17  ;;  %11443 = vst [vmem:[#allocation24_spill] sm:$0xff] %v7976_v38  ;;  %v7980_v48 = vld [vmem:[#allocation2 + $0xaa] sm:$0xff] }
  0x94   : > { %11444 = vst [vmem:[#allocation25_spill] sm:$0xff] %v7980_v48 }
  0x96   : > { %695 = vrot.lane.b32.xlu1 %v7960_v34, %s7455_s17  ;;  %v7984_v34 = vld [vmem:[#allocation2 + $0x9a] sm:$0xff] }
  0x97   : > { %701 = vrot.lane.b32.xlu0 %v7964_v36, %s7455_s17  ;;  %11445 = vst [vmem:[#allocation26_spill] sm:$0xff] %v7984_v34  ;;  %v7988_v36 = vld [vmem:[#allocation2 + $0xc2] sm:$0xff] }
  0x98   : > { %11446 = vst [vmem:[#allocation27_spill] sm:$0xff] %v7988_v36 }
  0x9a   : > { %699 = vrot.lane.b32.xlu1 %v7968_v35, %s7455_s17  ;;  %v7992_v35 = vld [vmem:[#allocation2 + $0xb2] sm:$0xff] }
  0x9b   : > { %705 = vrot.lane.b32.xlu0 %v7972_v37, %s7455_s17  ;;  %11447 = vst [vmem:[#allocation28_spill] sm:$0xff] %v7992_v35  ;;  %v7996_v37 = vld [vmem:[#allocation2 + $0xda] sm:$0xff] }
  0x9c   : > { %11448 = vst [vmem:[#allocation29_spill] sm:$0xff] %v7996_v37 }
  0x9e   : > { %703 = vrot.lane.b32.xlu1 %v7976_v38, %s7455_s17  ;;  %v8000_v38 = vld [vmem:[#allocation2 + $0xca] sm:$0xff] }
  0x9f   : > { %709 = vrot.lane.b32.xlu0 %v7980_v48, %s7455_s17  ;;  %11449 = vst [vmem:[#allocation30_spill] sm:$0xff] %v8000_v38  ;;  %v8004_v48 = vld [vmem:[#allocation2 + $0xf2] sm:$0xff] }
  0xa0   : > { %11450 = vst [vmem:[#allocation31_spill] sm:$0xff] %v8004_v48 }
  0xa2   : > { %707 = vrot.lane.b32.xlu1 %v7984_v34, %s7455_s17  ;;  %v8008_v34 = vld [vmem:[#allocation2 + $0xe2] sm:$0xff] }
  0xa3   : > { %713 = vrot.lane.b32.xlu0 %v7988_v36, %s7455_s17  ;;  %11451 = vst [vmem:[#allocation32_spill] sm:$0xff] %v8008_v34  ;;  %v8012_v36 = vld [vmem:[#allocation2 + $0x10a] sm:$0xff] }
  0xa4   : > { %11452 = vst [vmem:[#allocation33_spill] sm:$0xff] %v8012_v36 }
  0xa6   : > { %711 = vrot.lane.b32.xlu1 %v7992_v35, %s7455_s17  ;;  %v8016_v35 = vld [vmem:[#allocation2 + $0xfa] sm:$0xff] }
  0xa7   : > { %717 = vrot.lane.b32.xlu0 %v7996_v37, %s7455_s17  ;;  %11453 = vst [vmem:[#allocation34_spill] sm:$0xff] %v8016_v35  ;;  %v8020_v37 = vld [vmem:[#allocation2 + $0x122] sm:$0xff] }
  0xa8   : > { %11454 = vst [vmem:[#allocation35_spill] sm:$0xff] %v8020_v37 }
  0xaa   : > { %715 = vrot.lane.b32.xlu1 %v8000_v38, %s7455_s17  ;;  %v8024_v38 = vld [vmem:[#allocation2 + $0x112] sm:$0xff] }
  0xab   : > { %721 = vrot.lane.b32.xlu0 %v8004_v48, %s7455_s17  ;;  %11455 = vst [vmem:[#allocation36_spill] sm:$0xff] %v8024_v38  ;;  %v8028_v48 = vld [vmem:[#allocation2 + $0x13a] sm:$0xff] }
  0xac   : > { %11456 = vst [vmem:[#allocation37_spill] sm:$0xff] %v8028_v48 }
  0xae   : > { %719 = vrot.lane.b32.xlu1 %v8008_v34, %s7455_s17  ;;  %v489_v34 = vpop.permute.xlu0 %488 }
  0xaf   : > { %725 = vrot.lane.b32.xlu0 %v8012_v36, %s7455_s17  ;;  %585 = vst.msk [vmem:[#allocation3] sm:$0xff] %vm584_vm3, %v489_v34  ;;  %v8041_v36 = vld [vmem:[#allocation2 + $0x142] sm:$0xff]  ;;  %v8047_v34 = vld [vmem:[#allocation2 + $0x16a] sm:$0xff] }
  0xb0   : > { %11458 = vst [vmem:[#allocation39_spill] sm:$0xff] %v8041_v36 }
  0xb2   : > { %723 = vrot.lane.b32.xlu1 %v8016_v35, %s7455_s17  ;;  %v8037_v35 = vld [vmem:[#allocation2 + $0x152] sm:$0xff] }
  0xb3   : > { %729 = vrot.lane.b32.xlu0 %v8020_v37, %s7455_s17  ;;  %v491_v37 = vpop.permute.xlu0 %490 }
  0xb4   : > { %586 = vst.msk [vmem:[#allocation3 + $0x8] sm:$0xff] %vm584_vm3, %v491_v37  ;;  %v8059_v37 = vld [vmem:[#allocation2 + $0x172] sm:$0xff] }
  0xb6   : > { %727 = vrot.lane.b32.xlu1 %v8024_v38, %s7455_s17  ;;  %v8051_v38 = vld [vmem:[#allocation2 + $0x15a] sm:$0xff] }
  0xb7   : > { %733 = vrot.lane.b32.xlu0 %v8028_v48, %s7455_s17 }
  0xba   : > { %731 = vrot.lane.b32.xlu1 %v8032_v45, %s7455_s17 }
  0xbb   : > { %737 = vrot.lane.b32.xlu0 %v8037_v35, %s7455_s17 }
  0xbc   : > { %v493_v33 = vpop.permute.xlu1 %492 }
  0xbd   : > { %587 = vst.msk [vmem:[#allocation3 + $0x10] sm:$0xff] %vm584_vm3, %v493_v33  ;;  %v497_v48 = vpop.permute.xlu0 %496 }
  0xbe   : > { %735 = vrot.lane.b32.xlu1 %v8041_v36, %s7455_s17  ;;  %589 = vst.msk [vmem:[#allocation3 + $0x20] sm:$0xff] %vm584_vm3, %v497_v48 }
  0xbf   : > { %741 = vrot.lane.b32.xlu0 %v8047_v34, %s7455_s17 }
  0xc0   : > { %v495_v45 = vpop.permute.xlu1 %494 }
  0xc1   : > { %588 = vst.msk [vmem:[#allocation3 + $0x18] sm:$0xff] %vm584_vm3, %v495_v45  ;;  %v501_v33 = vpop.permute.xlu0 %500 }
  0xc2   : > { %739 = vrot.lane.b32.xlu1 %v8051_v38, %s7455_s17  ;;  %591 = vst.msk [vmem:[#allocation3 + $0x30] sm:$0xff] %vm584_vm3, %v501_v33 }
  0xc3   : > { %874 = vrot.lane.b32.xlu0 %v7736_v46, %s7456_s23 }
  0xc4   : > { %v499_v36 = vpop.permute.xlu1 %498 }
  0xc5   : > { %590 = vst.msk [vmem:[#allocation3 + $0x28] sm:$0xff] %vm584_vm3, %v499_v36  ;;  %v505_v48 = vpop.permute.xlu0 %504 }
  0xc6   : > { %743 = vrot.lane.b32.xlu1 %v8059_v37, %s7455_s17  ;;  %593 = vst.msk [vmem:[#allocation3 + $0x40] sm:$0xff] %vm584_vm3, %v505_v48 }
  0xc7   : > { %878 = vrot.lane.b32.xlu0 %v7752_v51, %s7456_s23 }
  0xc8   : > { %v503_v45 = vpop.permute.xlu1 %502 }
  0xc9   : > { %592 = vst.msk [vmem:[#allocation3 + $0x38] sm:$0xff] %vm584_vm3, %v503_v45  ;;  %v509_v33 = vpop.permute.xlu0 %508 }
  0xca   : > { %876 = vrot.lane.b32.xlu1 %v7746_v49, %s7456_s23  ;;  %595 = vst.msk [vmem:[#allocation3 + $0x50] sm:$0xff] %vm584_vm3, %v509_v33 }
  0xcb   : > { %882 = vrot.lane.b32.xlu0 %v7764_v54, %s7456_s23 }
  0xcc   : > { %v507_v46 = vpop.permute.xlu1 %506 }
  0xcd   : > { %594 = vst.msk [vmem:[#allocation3 + $0x48] sm:$0xff] %vm584_vm3, %v507_v46  ;;  %v513_v36 = vpop.permute.xlu0 %512 }
  0xce   : > { %880 = vrot.lane.b32.xlu1 %v7754_v52, %s7456_s23  ;;  %597 = vst.msk [vmem:[#allocation3 + $0x60] sm:$0xff] %vm584_vm3, %v513_v36 }
  0xcf   : > { %886 = vrot.lane.b32.xlu0 %v7774_v57, %s7456_s23 }
  0xd0   : > { %v511_v48 = vpop.permute.xlu1 %510 }
  0xd1   : > { %596 = vst.msk [vmem:[#allocation3 + $0x58] sm:$0xff] %vm584_vm3, %v511_v48  ;;  %v517_v49 = vpop.permute.xlu0 %516 }
  0xd2   : > { %884 = vrot.lane.b32.xlu1 %v7766_v55, %s7456_s23  ;;  %599 = vst.msk [vmem:[#allocation3 + $0x70] sm:$0xff] %vm584_vm3, %v517_v49 }
  0xd3   : > { %890 = vrot.lane.b32.xlu0 %v7778_v59, %s7456_s23 }
  0xd4   : > { %v515_v45 = vpop.permute.xlu1 %514 }
  0xd5   : > { %598 = vst.msk [vmem:[#allocation3 + $0x68] sm:$0xff] %vm584_vm3, %v515_v45  ;;  %v521_v33 = vpop.permute.xlu0 %520 }
  0xd6   : > { %888 = vrot.lane.b32.xlu1 %v7776_v58, %s7456_s23  ;;  %601 = vst.msk [vmem:[#allocation3 + $0x80] sm:$0xff] %vm584_vm3, %v521_v33 }
  0xd7   : > { %894 = vrot.lane.b32.xlu0 %v7790_v61, %s7456_s23 }
  0xd8   : > { %v519_v46 = vpop.permute.xlu1 %518 }
  0xd9   : > { %600 = vst.msk [vmem:[#allocation3 + $0x78] sm:$0xff] %vm584_vm3, %v519_v46  ;;  %v525_v36 = vpop.permute.xlu0 %524 }
  0xda   : > { %892 = vrot.lane.b32.xlu1 %v7788_v60, %s7456_s23  ;;  %603 = vst.msk [vmem:[#allocation3 + $0x90] sm:$0xff] %vm584_vm3, %v525_v36 }
  0xdb   : > { %898 = vrot.lane.b32.xlu0 %v7802_v0, %s7456_s23 }
  0xdc   : > { %v523_v48 = vpop.permute.xlu1 %522 }
  0xdd   : > { %602 = vst.msk [vmem:[#allocation3 + $0x88] sm:$0xff] %vm584_vm3, %v523_v48  ;;  %v529_v49 = vpop.permute.xlu0 %528 }
  0xde   : > { %896 = vrot.lane.b32.xlu1 %v7792_v62, %s7456_s23  ;;  %605 = vst.msk [vmem:[#allocation3 + $0xa0] sm:$0xff] %vm584_vm3, %v529_v49 }
  0xdf   : > { %902 = vrot.lane.b32.xlu0 %v7806_v2, %s7456_s23 }
  0xe0   : > { %v527_v45 = vpop.permute.xlu1 %526 }
  0xe1   : > { %604 = vst.msk [vmem:[#allocation3 + $0x98] sm:$0xff] %vm584_vm3, %v527_v45  ;;  %v533_v33 = vpop.permute.xlu0 %532 }
  0xe2   : > { %900 = vrot.lane.b32.xlu1 %v7804_v1, %s7456_s23  ;;  %607 = vst.msk [vmem:[#allocation3 + $0xb0] sm:$0xff] %vm584_vm3, %v533_v33 }
  0xe3   : > { %906 = vrot.lane.b32.xlu0 %v7818_v4, %s7456_s23 }
  0xe4   : > { %v531_v46 = vpop.permute.xlu1 %530 }
  0xe5   : > { %606 = vst.msk [vmem:[#allocation3 + $0xa8] sm:$0xff] %vm584_vm3, %v531_v46  ;;  %v537_v36 = vpop.permute.xlu0 %536 }
  0xe6   : > { %904 = vrot.lane.b32.xlu1 %v7816_v3, %s7456_s23  ;;  %609 = vst.msk [vmem:[#allocation3 + $0xc0] sm:$0xff] %vm584_vm3, %v537_v36 }
  0xe7   : > { %910 = vrot.lane.b32.xlu0 %v7828_v6, %s7456_s23 }
  0xe8   : > { %v535_v48 = vpop.permute.xlu1 %534 }
  0xe9   : > { %608 = vst.msk [vmem:[#allocation3 + $0xb8] sm:$0xff] %vm584_vm3, %v535_v48  ;;  %v541_v49 = vpop.permute.xlu0 %540 }
  0xea   : > { %908 = vrot.lane.b32.xlu1 %v7820_v5, %s7456_s23  ;;  %611 = vst.msk [vmem:[#allocation3 + $0xd0] sm:$0xff] %vm584_vm3, %v541_v49 }
  0xeb   : > { %914 = vrot.lane.b32.xlu0 %v7832_v8, %s7456_s23 }
  0xec   : > { %v539_v45 = vpop.permute.xlu1 %538 }
  0xed   : > { %610 = vst.msk [vmem:[#allocation3 + $0xc8] sm:$0xff] %vm584_vm3, %v539_v45  ;;  %v545_v33 = vpop.permute.xlu0 %544 }
  0xee   : > { %912 = vrot.lane.b32.xlu1 %v7830_v7, %s7456_s23  ;;  %613 = vst.msk [vmem:[#allocation3 + $0xe0] sm:$0xff] %vm584_vm3, %v545_v33 }
  0xef   : > { %918 = vrot.lane.b32.xlu0 %v7850_v11, %s7456_s23 }
  0xf0   : > { %v543_v46 = vpop.permute.xlu1 %542 }
  0xf1   : > { %612 = vst.msk [vmem:[#allocation3 + $0xd8] sm:$0xff] %vm584_vm3, %v543_v46  ;;  %v549_v36 = vpop.permute.xlu0 %548 }
  0xf2   : > { %916 = vrot.lane.b32.xlu1 %v7842_v9, %s7456_s23  ;;  %615 = vst.msk [vmem:[#allocation3 + $0xf0] sm:$0xff] %vm584_vm3, %v549_v36  ;;  %v8149_v36 = vld [vmem:[#allocation2 + $0x180] sm:$0xff] }
  0xf3   : > { %922 = vrot.lane.b32.xlu0 %v7866_v15, %s7456_s23 }
  0xf4   : > { %v547_v48 = vpop.permute.xlu1 %546 }
  0xf5   : > { %614 = vst.msk [vmem:[#allocation3 + $0xe8] sm:$0xff] %vm584_vm3, %v547_v48  ;;  %v682_v49 = vpop.permute.xlu0 %681 }
  0xf6   : > { %920 = vrot.lane.b32.xlu1 %v7852_v12, %s7456_s23  ;;  %778 = vst.msk [vmem:[#allocation3] sm:$0xff] %vm777_vm4, %v682_v49 }
  0xf7   : > { %926 = vrot.lane.b32.xlu0 %v7882_v19, %s7456_s23 }
  0xf8   : > { %v551_v45 = vpop.permute.xlu1 %550 }
  0xf9   : > { %616 = vst.msk [vmem:[#allocation3 + $0xf8] sm:$0xff] %vm584_vm3, %v551_v45  ;;  %v686_v33 = vpop.permute.xlu0 %685 }
  0xfa   : > { %924 = vrot.lane.b32.xlu1 %v7868_v16, %s7456_s23  ;;  %780 = vst.msk [vmem:[#allocation3 + $0x10] sm:$0xff] %vm777_vm4, %v686_v33  ;;  %v8159_v33 = vld [vmem:[#allocation2 + $0x188] sm:$0xff] }
  0xfb   : > { %930 = vrot.lane.b32.xlu0 %v7898_v23, %s7456_s23 }
  0xfc   : > { %v684_v46 = vpop.permute.xlu1 %683 }
  0xfd   : > { %779 = vst.msk [vmem:[#allocation3 + $0x8] sm:$0xff] %vm777_vm4, %v684_v46  ;;  %v690_v48 = vpop.permute.xlu0 %689 }
  0xfe   : > { %928 = vrot.lane.b32.xlu1 %v7884_v20, %s7456_s23  ;;  %782 = vst.msk [vmem:[#allocation3 + $0x20] sm:$0xff] %vm777_vm4, %v690_v48 }
  0xff   : > { %934 = vrot.lane.b32.xlu0 %v8149_v36, %s7456_s23 }
 0x100   : > { %v688_v49 = vpop.permute.xlu1 %687 }
 0x101   : > { %781 = vst.msk [vmem:[#allocation3 + $0x18] sm:$0xff] %vm777_vm4, %v688_v49  ;;  %v694_v45 = vpop.permute.xlu0 %693 }
 0x102   : > { %932 = vrot.lane.b32.xlu1 %v7900_v24, %s7456_s23  ;;  %784 = vst.msk [vmem:[#allocation3 + $0x30] sm:$0xff] %vm777_vm4, %v694_v45 }
 0x103   : > { %1067 = vrot.lane.b32.xlu0 %v7671_v25, %s7457_s25 }
 0x104   : > { %v692_v46 = vpop.permute.xlu1 %691 }
 0x105   : > { %783 = vst.msk [vmem:[#allocation3 + $0x28] sm:$0xff] %vm777_vm4, %v692_v46  ;;  %v698_v48 = vpop.permute.xlu0 %697 }
 0x106   : > { %936 = vrot.lane.b32.xlu1 %v8159_v33, %s7456_s23  ;;  %786 = vst.msk [vmem:[#allocation3 + $0x40] sm:$0xff] %vm777_vm4, %v698_v48 }
 0x107   : > { %1071 = vrot.lane.b32.xlu0 %v7673_v26, %s7457_s25 }
 0x108   : > { %v696_v49 = vpop.permute.xlu1 %695 }
 0x109   : > { %785 = vst.msk [vmem:[#allocation3 + $0x38] sm:$0xff] %vm777_vm4, %v696_v49  ;;  %v702_v45 = vpop.permute.xlu0 %701  ;;  %v11460_v49 = vld [vmem:[#allocation11_spill] sm:$0xff] }
 0x10a   : > { %1069 = vrot.lane.b32.xlu1 %v7680_v27, %s7457_s25  ;;  %788 = vst.msk [vmem:[#allocation3 + $0x50] sm:$0xff] %vm777_vm4, %v702_v45  ;;  %v11461_v45 = vld [vmem:[#allocation12_spill] sm:$0xff] }
 0x10b   : > { %1075 = vrot.lane.b32.xlu0 %v7688_v30, %s7457_s25 }
 0x10c   : > { %v700_v25 = vpop.permute.xlu1 %699 }
 0x10d   : > { %787 = vst.msk [vmem:[#allocation3 + $0x48] sm:$0xff] %vm777_vm4, %v700_v25  ;;  %v706_v46 = vpop.permute.xlu0 %705 }
 0x10e   : > { %1073 = vrot.lane.b32.xlu1 %v7692_v31, %s7457_s25  ;;  %790 = vst.msk [vmem:[#allocation3 + $0x60] sm:$0xff] %vm777_vm4, %v706_v46  ;;  %v11462_v46 = vld [vmem:[#allocation13_spill] sm:$0xff] }
 0x10f   : > { %1079 = vrot.lane.b32.xlu0 %v7696_v32, %s7457_s25 }
 0x110   : > { %v704_v26 = vpop.permute.xlu1 %703 }
 0x111   : > { %789 = vst.msk [vmem:[#allocation3 + $0x58] sm:$0xff] %vm777_vm4, %v704_v26  ;;  %v710_v27 = vpop.permute.xlu0 %709 }
 0x112   : > { %1077 = vrot.lane.b32.xlu1 %v7709_v39, %s7457_s25  ;;  %792 = vst.msk [vmem:[#allocation3 + $0x70] sm:$0xff] %vm777_vm4, %v710_v27  ;;  %v8259_v27 = vld [vmem:[#allocation2 + $0x189] sm:$0xff] }
 0x113   : > { %1083 = vrot.lane.b32.xlu0 %v7716_v40, %s7457_s25 }
 0x114   : > { %v708_v30 = vpop.permute.xlu1 %707 }
 0x115   : > { %791 = vst.msk [vmem:[#allocation3 + $0x68] sm:$0xff] %vm777_vm4, %v708_v30  ;;  %v714_v31 = vpop.permute.xlu0 %713 }
 0x116   : > { %1081 = vrot.lane.b32.xlu1 %v7720_v41, %s7457_s25  ;;  %794 = vst.msk [vmem:[#allocation3 + $0x80] sm:$0xff] %vm777_vm4, %v714_v31  ;;  %v11463_v31 = vld [vmem:[#allocation14_spill] sm:$0xff] }
 0x117   : > { %1087 = vrot.lane.b32.xlu0 %v7724_v42, %s7457_s25 }
 0x118   : > { %v712_v32 = vpop.permute.xlu1 %711 }
 0x119   : > { %793 = vst.msk [vmem:[#allocation3 + $0x78] sm:$0xff] %vm777_vm4, %v712_v32  ;;  %v718_v39 = vpop.permute.xlu0 %717 }
 0x11a   : > { %1085 = vrot.lane.b32.xlu1 %v7728_v43, %s7457_s25  ;;  %796 = vst.msk [vmem:[#allocation3 + $0x90] sm:$0xff] %vm777_vm4, %v718_v39 }
 0x11b   : > { %1091 = vrot.lane.b32.xlu0 %v7732_v44, %s7457_s25 }
 0x11c   : > { %v716_v40 = vpop.permute.xlu1 %715 }
 0x11d   : > { %795 = vst.msk [vmem:[#allocation3 + $0x88] sm:$0xff] %vm777_vm4, %v716_v40  ;;  %v722_v41 = vpop.permute.xlu0 %721  ;;  %v11464_v40 = vld [vmem:[#allocation15_spill] sm:$0xff] }
 0x11e   : > { %1089 = vrot.lane.b32.xlu1 %v7738_v47, %s7457_s25  ;;  %798 = vst.msk [vmem:[#allocation3 + $0xa0] sm:$0xff] %vm777_vm4, %v722_v41  ;;  %v11465_v41 = vld [vmem:[#allocation16_spill] sm:$0xff] }
 0x11f   : > { %1095 = vrot.lane.b32.xlu0 %v7748_v50, %s7457_s25 }
 0x120   : > { %v720_v42 = vpop.permute.xlu1 %719 }
 0x121   : > { %797 = vst.msk [vmem:[#allocation3 + $0x98] sm:$0xff] %vm777_vm4, %v720_v42  ;;  %v726_v43 = vpop.permute.xlu0 %725 }
 0x122   : > { %1093 = vrot.lane.b32.xlu1 %v7758_v53, %s7457_s25  ;;  %800 = vst.msk [vmem:[#allocation3 + $0xb0] sm:$0xff] %vm777_vm4, %v726_v43 }
 0x123   : > { %1099 = vrot.lane.b32.xlu0 %v7768_v56, %s7457_s25 }
 0x124   : > { %v724_v44 = vpop.permute.xlu1 %723 }
 0x125   : > { %799 = vst.msk [vmem:[#allocation3 + $0xa8] sm:$0xff] %vm777_vm4, %v724_v44  ;;  %v730_v47 = vpop.permute.xlu0 %729  ;;  %v11466_v44 = vld [vmem:[#allocation17_spill] sm:$0xff] }
 0x126   : > { %1097 = vrot.lane.b32.xlu1 %v7794_v63, %s7457_s25  ;;  %802 = vst.msk [vmem:[#allocation3 + $0xc0] sm:$0xff] %vm777_vm4, %v730_v47  ;;  %v11467_v47 = vld [vmem:[#allocation18_spill] sm:$0xff] }
 0x127   : > { %1103 = vrot.lane.b32.xlu0 %v7844_v10, %s7457_s25 }
 0x128   : > { %v728_v50 = vpop.permute.xlu1 %727 }
 0x129   : > { %801 = vst.msk [vmem:[#allocation3 + $0xb8] sm:$0xff] %vm777_vm4, %v728_v50  ;;  %v734_v53 = vpop.permute.xlu0 %733 }
 0x12a   : > { %1101 = vrot.lane.b32.xlu1 %v7854_v13, %s7457_s25  ;;  %804 = vst.msk [vmem:[#allocation3 + $0xd0] sm:$0xff] %vm777_vm4, %v734_v53 }
 0x12b   : > { %1107 = vrot.lane.b32.xlu0 %v7862_v14, %s7457_s25 }
 0x12c   : > { %v732_v56 = vpop.permute.xlu1 %731 }
 0x12d   : > { %803 = vst.msk [vmem:[#allocation3 + $0xc8] sm:$0xff] %vm777_vm4, %v732_v56  ;;  %v738_v63 = vpop.permute.xlu0 %737  ;;  %v11468_v56 = vld [vmem:[#allocation19_spill] sm:$0xff] }
 0x12e   : > { %1105 = vrot.lane.b32.xlu1 %v7870_v17, %s7457_s25  ;;  %806 = vst.msk [vmem:[#allocation3 + $0xe0] sm:$0xff] %vm777_vm4, %v738_v63  ;;  %v11469_v63 = vld [vmem:[#allocation20_spill] sm:$0xff] }
 0x12f   : > { %1111 = vrot.lane.b32.xlu0 %v7878_v18, %s7457_s25 }
 0x130   : > { %v736_v10 = vpop.permute.xlu1 %735 }
 0x131   : > { %805 = vst.msk [vmem:[#allocation3 + $0xd8] sm:$0xff] %vm777_vm4, %v736_v10  ;;  %v742_v13 = vpop.permute.xlu0 %741 }
 0x132   : > { %1109 = vrot.lane.b32.xlu1 %v7886_v21, %s7457_s25  ;;  %808 = vst.msk [vmem:[#allocation3 + $0xf0] sm:$0xff] %vm777_vm4, %v742_v13  ;;  %v11459_v21 = vld [vmem:[#allocation10_spill] sm:$0xff] }
 0x133   : > { %1115 = vrot.lane.b32.xlu0 %v7894_v22, %s7457_s25 }
 0x134   : > { %v740_v14 = vpop.permute.xlu1 %739 }
 0x135   : > { %807 = vst.msk [vmem:[#allocation3 + $0xe8] sm:$0xff] %vm777_vm4, %v740_v14  ;;  %v875_v17 = vpop.permute.xlu0 %874  ;;  %v11470_v14 = vld [vmem:[#allocation21_spill] sm:$0xff] }
 0x136   : > { %1113 = vrot.lane.b32.xlu1 %v7902_v28, %s7457_s25  ;;  %971 = vst.msk [vmem:[#allocation3] sm:$0xff] %vm970_vm5, %v875_v17  ;;  %v8249_v28 = vld [vmem:[#allocation2 + $0x181] sm:$0xff]  ;;  %v11471_v17 = vld [vmem:[#allocation22_spill] sm:$0xff] }
 0x137   : > { %1119 = vrot.lane.b32.xlu0 %v7910_v29, %s7457_s25 }
 0x138   : > { %v744_v18 = vpop.permute.xlu1 %743 }
 0x139   : > { %809 = vst.msk [vmem:[#allocation3 + $0xf8] sm:$0xff] %vm777_vm4, %v744_v18  ;;  %v879_v48 = vpop.permute.xlu0 %878 }
 0x13a   : > { %1117 = vrot.lane.b32.xlu1 %v11459_v21, %s7457_s25  ;;  %973 = vst.msk [vmem:[#allocation3 + $0x10] sm:$0xff] %vm970_vm5, %v879_v48  ;;  %v11472_v48 = vld [vmem:[#allocation23_spill] sm:$0xff] }
 0x13b   : > { %1123 = vrot.lane.b32.xlu0 %v11460_v49, %s7457_s25 }
 0x13c   : > { %v877_v22 = vpop.permute.xlu1 %876 }
 0x13d   : > { %972 = vst.msk [vmem:[#allocation3 + $0x8] sm:$0xff] %vm970_vm5, %v877_v22  ;;  %v883_v29 = vpop.permute.xlu0 %882  ;;  %v11473_v22 = vld [vmem:[#allocation24_spill] sm:$0xff] }
 0x13e   : > { %1121 = vrot.lane.b32.xlu1 %v11461_v45, %s7457_s25  ;;  %975 = vst.msk [vmem:[#allocation3 + $0x20] sm:$0xff] %vm970_vm5, %v883_v29  ;;  %v11474_v29 = vld [vmem:[#allocation25_spill] sm:$0xff] }
 0x13f   : > { %1127 = vrot.lane.b32.xlu0 %v8249_v28, %s7457_s25 }
 0x140   : > { %v881_v25 = vpop.permute.xlu1 %880 }
 0x141   : > { %974 = vst.msk [vmem:[#allocation3 + $0x18] sm:$0xff] %vm970_vm5, %v881_v25  ;;  %v887_v26 = vpop.permute.xlu0 %886  ;;  %v11475_v25 = vld [vmem:[#allocation26_spill] sm:$0xff] }
 0x142   : > { %1125 = vrot.lane.b32.xlu1 %v11462_v46, %s7457_s25  ;;  %977 = vst.msk [vmem:[#allocation3 + $0x30] sm:$0xff] %vm970_vm5, %v887_v26 }
 0x143   : > { %1260 = vrot.lane.b32.xlu0 %v11463_v31, %s7458_s26  ;;  %v11477_v31 = vld [vmem:[#allocation28_spill] sm:$0xff] }
 0x144   : > { %v885_v30 = vpop.permute.xlu1 %884 }
 0x145   : > { %976 = vst.msk [vmem:[#allocation3 + $0x28] sm:$0xff] %vm970_vm5, %v885_v30  ;;  %v891_v32 = vpop.permute.xlu0 %890  ;;  %v11476_v30 = vld [vmem:[#allocation27_spill] sm:$0xff] }
 0x146   : > { %1129 = vrot.lane.b32.xlu1 %v8259_v27, %s7457_s25  ;;  %979 = vst.msk [vmem:[#allocation3 + $0x40] sm:$0xff] %vm970_vm5, %v891_v32 }
 0x147   : > { %1264 = vrot.lane.b32.xlu0 %v11464_v40, %s7458_s26  ;;  %v11478_v40 = vld [vmem:[#allocation29_spill] sm:$0xff] }
 0x148   : > { %v889_v39 = vpop.permute.xlu1 %888 }
 0x149   : > { %978 = vst.msk [vmem:[#allocation3 + $0x38] sm:$0xff] %vm970_vm5, %v889_v39  ;;  %v895_v42 = vpop.permute.xlu0 %894 }
 0x14a   : > { %1262 = vrot.lane.b32.xlu1 %v11465_v41, %s7458_s26  ;;  %981 = vst.msk [vmem:[#allocation3 + $0x50] sm:$0xff] %vm970_vm5, %v895_v42  ;;  %v11479_v41 = vld [vmem:[#allocation30_spill] sm:$0xff] }
 0x14b   : > { %1268 = vrot.lane.b32.xlu0 %v11466_v44, %s7458_s26  ;;  %v11480_v44 = vld [vmem:[#allocation31_spill] sm:$0xff] }
 0x14c   : > { %v893_v43 = vpop.permute.xlu1 %892 }
 0x14d   : > { %980 = vst.msk [vmem:[#allocation3 + $0x48] sm:$0xff] %vm970_vm5, %v893_v43  ;;  %v899_v50 = vpop.permute.xlu0 %898 }
 0x14e   : > { %1266 = vrot.lane.b32.xlu1 %v11467_v47, %s7458_s26  ;;  %983 = vst.msk [vmem:[#allocation3 + $0x60] sm:$0xff] %vm970_vm5, %v899_v50  ;;  %v11481_v47 = vld [vmem:[#allocation32_spill] sm:$0xff] }
 0x14f   : > { %1272 = vrot.lane.b32.xlu0 %v11468_v56, %s7458_s26  ;;  %v11482_v56 = vld [vmem:[#allocation33_spill] sm:$0xff] }
 0x150   : > { %v897_v53 = vpop.permute.xlu1 %896 }
 0x151   : > { %982 = vst.msk [vmem:[#allocation3 + $0x58] sm:$0xff] %vm970_vm5, %v897_v53  ;;  %v903_v10 = vpop.permute.xlu0 %902 }
 0x152   : > { %1270 = vrot.lane.b32.xlu1 %v11469_v63, %s7458_s26  ;;  %985 = vst.msk [vmem:[#allocation3 + $0x70] sm:$0xff] %vm970_vm5, %v903_v10  ;;  %v11483_v63 = vld [vmem:[#allocation34_spill] sm:$0xff] }
 0x153   : > { %1276 = vrot.lane.b32.xlu0 %v11470_v14, %s7458_s26  ;;  %v11484_v14 = vld [vmem:[#allocation35_spill] sm:$0xff] }
 0x154   : > { %v901_v13 = vpop.permute.xlu1 %900 }
 0x155   : > { %984 = vst.msk [vmem:[#allocation3 + $0x68] sm:$0xff] %vm970_vm5, %v901_v13  ;;  %v907_v18 = vpop.permute.xlu0 %906 }
 0x156   : > { %1274 = vrot.lane.b32.xlu1 %v11471_v17, %s7458_s26  ;;  %987 = vst.msk [vmem:[#allocation3 + $0x80] sm:$0xff] %vm970_vm5, %v907_v18  ;;  %v11485_v17 = vld [vmem:[#allocation36_spill] sm:$0xff] }
 0x157   : > { %1280 = vrot.lane.b32.xlu0 %v11472_v48, %s7458_s26  ;;  %v11486_v48 = vld [vmem:[#allocation37_spill] sm:$0xff] }
 0x158   : > { %v905_v21 = vpop.permute.xlu1 %904 }
 0x159   : > { %986 = vst.msk [vmem:[#allocation3 + $0x78] sm:$0xff] %vm970_vm5, %v905_v21  ;;  %v911_v49 = vpop.permute.xlu0 %910 }
 0x15a   : > { %1278 = vrot.lane.b32.xlu1 %v11473_v22, %s7458_s26  ;;  %989 = vst.msk [vmem:[#allocation3 + $0x90] sm:$0xff] %vm970_vm5, %v911_v49  ;;  %v11487_v22 = vld [vmem:[#allocation38_spill] sm:$0xff] }
 0x15b   : > { %1284 = vrot.lane.b32.xlu0 %v11474_v29, %s7458_s26  ;;  %v11488_v29 = vld [vmem:[#allocation39_spill] sm:$0xff] }
 0x15c   : > { %v909_v45 = vpop.permute.xlu1 %908 }
 0x15d   : > { %988 = vst.msk [vmem:[#allocation3 + $0x88] sm:$0xff] %vm970_vm5, %v909_v45  ;;  %v915_v46 = vpop.permute.xlu0 %914 }
 0x15e   : > { %1282 = vrot.lane.b32.xlu1 %v11475_v25, %s7458_s26  ;;  %991 = vst.msk [vmem:[#allocation3 + $0xa0] sm:$0xff] %vm970_vm5, %v915_v46 }
 0x15f   : > { %1288 = vrot.lane.b32.xlu0 %v11476_v30, %s7458_s26 }
 0x160   : > { %v913_v26 = vpop.permute.xlu1 %912 }
 0x161   : > { %990 = vst.msk [vmem:[#allocation3 + $0x98] sm:$0xff] %vm970_vm5, %v913_v26  ;;  %v919_v32 = vpop.permute.xlu0 %918  ;;  %v8349_v26 = vld [vmem:[#allocation2 + $0x182] sm:$0xff] }
 0x162   : > { %1286 = vrot.lane.b32.xlu1 %v11477_v31, %s7458_s26  ;;  %993 = vst.msk [vmem:[#allocation3 + $0xb0] sm:$0xff] %vm970_vm5, %v919_v32  ;;  %v8359_v31 = vld [vmem:[#allocation2 + $0x18a] sm:$0xff] }
 0x163   : > { %1292 = vrot.lane.b32.xlu0 %v11478_v40, %s7458_s26 }
 0x164   : > { %v917_v39 = vpop.permute.xlu1 %916 }
 0x165   : > { %992 = vst.msk [vmem:[#allocation3 + $0xa8] sm:$0xff] %vm970_vm5, %v917_v39  ;;  %v923_v42 = vpop.permute.xlu0 %922 }
 0x166   : > { %1290 = vrot.lane.b32.xlu1 %v11479_v41, %s7458_s26  ;;  %995 = vst.msk [vmem:[#allocation3 + $0xc0] sm:$0xff] %vm970_vm5, %v923_v42 }
 0x167   : > { %1296 = vrot.lane.b32.xlu0 %v11480_v44, %s7458_s26 }
 0x168   : > { %v921_v43 = vpop.permute.xlu1 %920 }
 0x169   : > { %994 = vst.msk [vmem:[#allocation3 + $0xb8] sm:$0xff] %vm970_vm5, %v921_v43  ;;  %v927_v50 = vpop.permute.xlu0 %926 }
 0x16a   : > { %1294 = vrot.lane.b32.xlu1 %v11481_v47, %s7458_s26  ;;  %997 = vst.msk [vmem:[#allocation3 + $0xd0] sm:$0xff] %vm970_vm5, %v927_v50  ;;  %v1584_v47 = vld [vmem:[#allocation2 + $0x39] sm:$0xff] }
 0x16b   : > { %1300 = vrot.lane.b32.xlu0 %v11482_v56, %s7458_s26  ;;  %v1586_v56 = vld [vmem:[#allocation2 + $0x51] sm:$0xff] }
 0x16c   : > { %v925_v53 = vpop.permute.xlu1 %924 }
 0x16d   : > { %996 = vst.msk [vmem:[#allocation3 + $0xc8] sm:$0xff] %vm970_vm5, %v925_v53  ;;  %v931_v10 = vpop.permute.xlu0 %930 }
 0x16e   : > { %1298 = vrot.lane.b32.xlu1 %v11483_v63, %s7458_s26  ;;  %999 = vst.msk [vmem:[#allocation3 + $0xe0] sm:$0xff] %vm970_vm5, %v931_v10  ;;  %v1589_v10 = vld [vmem:[#allocation2 + $0x79] sm:$0xff] }
 0x16f   : > { %1304 = vrot.lane.b32.xlu0 %v11484_v14, %s7458_s26  ;;  %v1588_v14 = vld [vmem:[#allocation2 + $0x69] sm:$0xff] }
 0x170   : > { %v929_v13 = vpop.permute.xlu1 %928 }
 0x171   : > { %998 = vst.msk [vmem:[#allocation3 + $0xd8] sm:$0xff] %vm970_vm5, %v929_v13  ;;  %v935_v18 = vpop.permute.xlu0 %934 }
 0x172   : > { %1302 = vrot.lane.b32.xlu1 %v11485_v17, %s7458_s26  ;;  %1001 = vst.msk [vmem:[#allocation3 + $0xf0] sm:$0xff] %vm970_vm5, %v935_v18  ;;  %v1591_v18 = vld [vmem:[#allocation2 + $0x91] sm:$0xff] }
 0x173   : > { %1308 = vrot.lane.b32.xlu0 %v11486_v48, %s7458_s26  ;;  %v1590_v48 = vld [vmem:[#allocation2 + $0x81] sm:$0xff] }
 0x174   : > { %v933_v21 = vpop.permute.xlu1 %932 }
 0x175   : > { %1000 = vst.msk [vmem:[#allocation3 + $0xe8] sm:$0xff] %vm970_vm5, %v933_v21  ;;  %v1068_v49 = vpop.permute.xlu0 %1067 }
 0x176   : > { %1306 = vrot.lane.b32.xlu1 %v11487_v22, %s7458_s26  ;;  %1164 = vst.msk [vmem:[#allocation3] sm:$0xff] %vm1163_vm6, %v1068_v49  ;;  %v1593_v49 = vld [vmem:[#allocation2 + $0xa9] sm:$0xff] }
 0x177   : > { %1312 = vrot.lane.b32.xlu0 %v8037_v35, %s7458_s26 }
 0x178   : > { %v937_v45 = vpop.permute.xlu1 %936 }
 0x179   : > { %1002 = vst.msk [vmem:[#allocation3 + $0xf8] sm:$0xff] %vm970_vm5, %v937_v45  ;;  %v1072_v25 = vpop.permute.xlu0 %1071 }
 0x17a   : > { %1310 = vrot.lane.b32.xlu1 %v11488_v29, %s7458_s26  ;;  %1166 = vst.msk [vmem:[#allocation3 + $0x10] sm:$0xff] %vm1163_vm6, %v1072_v25  ;;  %v1592_v29 = vld [vmem:[#allocation2 + $0x99] sm:$0xff] }
 0x17b   : > { %1316 = vrot.lane.b32.xlu0 %v8047_v34, %s7458_s26 }
 0x17c   : > { %v1070_v46 = vpop.permute.xlu1 %1069 }
 0x17d   : > { %1165 = vst.msk [vmem:[#allocation3 + $0x8] sm:$0xff] %vm1163_vm6, %v1070_v46  ;;  %v1076_v35 = vpop.permute.xlu0 %1075  ;;  %v1595_v46 = vld [vmem:[#allocation2 + $0xc1] sm:$0xff] }
 0x17e   : > { %1314 = vrot.lane.b32.xlu1 %v8051_v38, %s7458_s26  ;;  %1168 = vst.msk [vmem:[#allocation3 + $0x20] sm:$0xff] %vm1163_vm6, %v1076_v35 }
 0x17f   : > { %1320 = vrot.lane.b32.xlu0 %v8349_v26, %s7458_s26 }
 0x180   : > { %v1074_v30 = vpop.permute.xlu1 %1073 }
 0x181   : > { %1167 = vst.msk [vmem:[#allocation3 + $0x18] sm:$0xff] %vm1163_vm6, %v1074_v30  ;;  %v1080_v34 = vpop.permute.xlu0 %1079  ;;  %v1594_v30 = vld [vmem:[#allocation2 + $0xb1] sm:$0xff] }
 0x182   : > { %1318 = vrot.lane.b32.xlu1 %v8059_v37, %s7458_s26  ;;  %1170 = vst.msk [vmem:[#allocation3 + $0x30] sm:$0xff] %vm1163_vm6, %v1080_v34 }
 0x183   : > { %1454 = vrot.lane.b32.xlu0 %v7752_v51, %s7459_s30 }
 0x184   : > { %v1078_v32 = vpop.permute.xlu1 %1077 }
 0x185   : > { %1169 = vst.msk [vmem:[#allocation3 + $0x28] sm:$0xff] %vm1163_vm6, %v1078_v32  ;;  %v1084_v38 = vpop.permute.xlu0 %1083  ;;  %v1597_v32 = vld [vmem:[#allocation2 + $0xd9] sm:$0xff] }
 0x186   : > { %1322 = vrot.lane.b32.xlu1 %v8359_v31, %s7458_s26  ;;  %1172 = vst.msk [vmem:[#allocation3 + $0x40] sm:$0xff] %vm1163_vm6, %v1084_v38 }
 0x187   : > { %1458 = vrot.lane.b32.xlu0 %v7764_v54, %s7459_s30 }
 0x188   : > { %v1082_v39 = vpop.permute.xlu1 %1081 }
 0x189   : > { %1171 = vst.msk [vmem:[#allocation3 + $0x38] sm:$0xff] %vm1163_vm6, %v1082_v39  ;;  %v1088_v37 = vpop.permute.xlu0 %1087  ;;  %v1596_v39 = vld [vmem:[#allocation2 + $0xc9] sm:$0xff] }
 0x18a   : > { %1456 = vrot.lane.b32.xlu1 %v7754_v52, %s7459_s30  ;;  %1174 = vst.msk [vmem:[#allocation3 + $0x50] sm:$0xff] %vm1163_vm6, %v1088_v37 }
 0x18b   : > { %1462 = vrot.lane.b32.xlu0 %v7774_v57, %s7459_s30 }
 0x18c   : > { %v1086_v51 = vpop.permute.xlu1 %1085 }
 0x18d   : > { %1173 = vst.msk [vmem:[#allocation3 + $0x48] sm:$0xff] %vm1163_vm6, %v1086_v51  ;;  %v1092_v40 = vpop.permute.xlu0 %1091  ;;  %v1599_v51 = vld [vmem:[#allocation2 + $0xf1] sm:$0xff] }
 0x18e   : > { %1460 = vrot.lane.b32.xlu1 %v7766_v55, %s7459_s30  ;;  %1176 = vst.msk [vmem:[#allocation3 + $0x60] sm:$0xff] %vm1163_vm6, %v1092_v40 }
 0x18f   : > { %1466 = vrot.lane.b32.xlu0 %v7778_v59, %s7459_s30 }
 0x190   : > { %v1090_v54 = vpop.permute.xlu1 %1089 }
 0x191   : > { %1175 = vst.msk [vmem:[#allocation3 + $0x58] sm:$0xff] %vm1163_vm6, %v1090_v54  ;;  %v1096_v52 = vpop.permute.xlu0 %1095  ;;  %v1598_v54 = vld [vmem:[#allocation2 + $0xe1] sm:$0xff] }
 0x192   : > { %1464 = vrot.lane.b32.xlu1 %v7776_v58, %s7459_s30  ;;  %1178 = vst.msk [vmem:[#allocation3 + $0x70] sm:$0xff] %vm1163_vm6, %v1096_v52 }
 0x193   : > { %1470 = vrot.lane.b32.xlu0 %v7790_v61, %s7459_s30 }
 0x194   : > { %v1094_v57 = vpop.permute.xlu1 %1093 }
 0x195   : > { %1177 = vst.msk [vmem:[#allocation3 + $0x68] sm:$0xff] %vm1163_vm6, %v1094_v57  ;;  %v1100_v55 = vpop.permute.xlu0 %1099  ;;  %v1601_v57 = vld [vmem:[#allocation2 + $0x109] sm:$0xff] }
 0x196   : > { %1468 = vrot.lane.b32.xlu1 %v7788_v60, %s7459_s30  ;;  %1180 = vst.msk [vmem:[#allocation3 + $0x80] sm:$0xff] %vm1163_vm6, %v1100_v55 }
 0x197   : > { %1474 = vrot.lane.b32.xlu0 %v7802_v0, %s7459_s30 }
 0x198   : > { %v1098_v59 = vpop.permute.xlu1 %1097 }
 0x199   : > { %1179 = vst.msk [vmem:[#allocation3 + $0x78] sm:$0xff] %vm1163_vm6, %v1098_v59  ;;  %v1104_v58 = vpop.permute.xlu0 %1103  ;;  %v1600_v59 = vld [vmem:[#allocation2 + $0xf9] sm:$0xff] }
 0x19a   : > { %1472 = vrot.lane.b32.xlu1 %v7792_v62, %s7459_s30  ;;  %1182 = vst.msk [vmem:[#allocation3 + $0x90] sm:$0xff] %vm1163_vm6, %v1104_v58 }
 0x19b   : > { %1478 = vrot.lane.b32.xlu0 %v7806_v2, %s7459_s30 }
 0x19c   : > { %v1102_v61 = vpop.permute.xlu1 %1101 }
 0x19d   : > { %1181 = vst.msk [vmem:[#allocation3 + $0x88] sm:$0xff] %vm1163_vm6, %v1102_v61  ;;  %v1108_v60 = vpop.permute.xlu0 %1107  ;;  %v1603_v61 = vld [vmem:[#allocation2 + $0x121] sm:$0xff] }
 0x19e   : > { %1476 = vrot.lane.b32.xlu1 %v7804_v1, %s7459_s30  ;;  %1184 = vst.msk [vmem:[#allocation3 + $0xa0] sm:$0xff] %vm1163_vm6, %v1108_v60 }
 0x19f   : > { %1482 = vrot.lane.b32.xlu0 %v7818_v4, %s7459_s30 }
 0x1a0   : > { %v1106_v0 = vpop.permute.xlu1 %1105 }
 0x1a1   : > { %1183 = vst.msk [vmem:[#allocation3 + $0x98] sm:$0xff] %vm1163_vm6, %v1106_v0  ;;  %v1112_v62 = vpop.permute.xlu0 %1111  ;;  %v1602_v0 = vld [vmem:[#allocation2 + $0x111] sm:$0xff] }
 0x1a2   : > { %1480 = vrot.lane.b32.xlu1 %v7816_v3, %s7459_s30  ;;  %1186 = vst.msk [vmem:[#allocation3 + $0xb0] sm:$0xff] %vm1163_vm6, %v1112_v62 }
 0x1a3   : > { %1486 = vrot.lane.b32.xlu0 %v7828_v6, %s7459_s30 }
 0x1a4   : > { %v1110_v2 = vpop.permute.xlu1 %1109 }
 0x1a5   : > { %1185 = vst.msk [vmem:[#allocation3 + $0xa8] sm:$0xff] %vm1163_vm6, %v1110_v2  ;;  %v1116_v1 = vpop.permute.xlu0 %1115  ;;  %v1605_v2 = vld [vmem:[#allocation2 + $0x139] sm:$0xff] }
 0x1a6   : > { %1484 = vrot.lane.b32.xlu1 %v7820_v5, %s7459_s30  ;;  %1188 = vst.msk [vmem:[#allocation3 + $0xc0] sm:$0xff] %vm1163_vm6, %v1116_v1 }
 0x1a7   : > { %1490 = vrot.lane.b32.xlu0 %v7832_v8, %s7459_s30 }
 0x1a8   : > { %v1114_v4 = vpop.permute.xlu1 %1113 }
 0x1a9   : > { %1187 = vst.msk [vmem:[#allocation3 + $0xb8] sm:$0xff] %vm1163_vm6, %v1114_v4  ;;  %v1120_v3 = vpop.permute.xlu0 %1119  ;;  %v1604_v4 = vld [vmem:[#allocation2 + $0x129] sm:$0xff] }
 0x1aa   : > { %1488 = vrot.lane.b32.xlu1 %v7830_v7, %s7459_s30  ;;  %1190 = vst.msk [vmem:[#allocation3 + $0xd0] sm:$0xff] %vm1163_vm6, %v1120_v3 }
 0x1ab   : > { %1494 = vrot.lane.b32.xlu0 %v7850_v11, %s7459_s30 }
 0x1ac   : > { %v1118_v6 = vpop.permute.xlu1 %1117 }
 0x1ad   : > { %1189 = vst.msk [vmem:[#allocation3 + $0xc8] sm:$0xff] %vm1163_vm6, %v1118_v6  ;;  %v1124_v5 = vpop.permute.xlu0 %1123  ;;  %v1607_v6 = vld [vmem:[#allocation2 + $0x151] sm:$0xff] }
 0x1ae   : > { %1492 = vrot.lane.b32.xlu1 %v7842_v9, %s7459_s30  ;;  %1192 = vst.msk [vmem:[#allocation3 + $0xe0] sm:$0xff] %vm1163_vm6, %v1124_v5 }
 0x1af   : > { %1498 = vrot.lane.b32.xlu0 %v7866_v15, %s7459_s30 }
 0x1b0   : > { %v1122_v8 = vpop.permute.xlu1 %1121 }
 0x1b1   : > { %1191 = vst.msk [vmem:[#allocation3 + $0xd8] sm:$0xff] %vm1163_vm6, %v1122_v8  ;;  %v1128_v7 = vpop.permute.xlu0 %1127  ;;  %v1606_v8 = vld [vmem:[#allocation2 + $0x141] sm:$0xff] }
 0x1b2   : > { %1496 = vrot.lane.b32.xlu1 %v7852_v12, %s7459_s30  ;;  %1194 = vst.msk [vmem:[#allocation3 + $0xf0] sm:$0xff] %vm1163_vm6, %v1128_v7 }
 0x1b3   : > { %1502 = vrot.lane.b32.xlu0 %v7882_v19, %s7459_s30 }
 0x1b4   : > { %v1126_v11 = vpop.permute.xlu1 %1125 }
 0x1b5   : > { %1193 = vst.msk [vmem:[#allocation3 + $0xe8] sm:$0xff] %vm1163_vm6, %v1126_v11  ;;  %v1261_v9 = vpop.permute.xlu0 %1260  ;;  %v1609_v11 = vld [vmem:[#allocation2 + $0x169] sm:$0xff] }
 0x1b6   : > { %1500 = vrot.lane.b32.xlu1 %v7868_v16, %s7459_s30  ;;  %1357 = vst.msk [vmem:[#allocation3] sm:$0xff] %vm1356_vm7, %v1261_v9  ;;  %v1420_v16 = vld [vmem:[#allocation2 + $0x198] sm:$0xff] }
 0x1b7   : > { %1506 = vrot.lane.b32.xlu0 %v7898_v23, %s7459_s30 }
 0x1b8   : > { %v1130_v15 = vpop.permute.xlu1 %1129 }
 0x1b9   : > { %1195 = vst.msk [vmem:[#allocation3 + $0xf8] sm:$0xff] %vm1163_vm6, %v1130_v15  ;;  %v1265_v12 = vpop.permute.xlu0 %1264  ;;  %v1608_v15 = vld [vmem:[#allocation2 + $0x159] sm:$0xff] }
 0x1ba   : > { %1504 = vrot.lane.b32.xlu1 %v7884_v20, %s7459_s30  ;;  %1359 = vst.msk [vmem:[#allocation3 + $0x10] sm:$0xff] %vm1356_vm7, %v1265_v12  ;;  %v1583_v20 = vld [vmem:[#allocation2 + $0x31] sm:$0xff] }
 0x1bb   : > { %1510 = vrot.lane.b32.xlu0 %v8149_v36, %s7459_s30  ;;  %v1421_v36 = vld [vmem:[#allocation2 + $0x1a0] sm:$0xff] }
 0x1bc   : > { %v1263_v19 = vpop.permute.xlu1 %1262 }
 0x1bd   : > { %1358 = vst.msk [vmem:[#allocation3 + $0x8] sm:$0xff] %vm1356_vm7, %v1263_v19  ;;  %v1269_v41 = vpop.permute.xlu0 %1268 }
 0x1be   : > { %1508 = vrot.lane.b32.xlu1 %v7900_v24, %s7459_s30  ;;  %1361 = vst.msk [vmem:[#allocation3 + $0x20] sm:$0xff] %vm1356_vm7, %v1269_v41  ;;  %v1585_v24 = vld [vmem:[#allocation2 + $0x49] sm:$0xff] }
 0x1bf   : > { %1514 = vrot.lane.b32.xlu0 %v1420_v16, %s7459_s30  ;;  %v1610_v16 = vld [vmem:[#allocation2 + $0x171] sm:$0xff] }
 0x1c0   : > { %v1267_v23 = vpop.permute.xlu1 %1266 }
 0x1c1   : > { %1360 = vst.msk [vmem:[#allocation3 + $0x18] sm:$0xff] %vm1356_vm7, %v1267_v23  ;;  %v1273_v42 = vpop.permute.xlu0 %1272  ;;  %v1613_v23 = vld [vmem:[#allocation2 + $0x199] sm:$0xff] }
 0x1c2   : > { %1512 = vrot.lane.b32.xlu1 %v8159_v33, %s7459_s30  ;;  %1363 = vst.msk [vmem:[#allocation3 + $0x30] sm:$0xff] %vm1356_vm7, %v1273_v42  ;;  %v1587_v33 = vld [vmem:[#allocation2 + $0x61] sm:$0xff] }
 0x1c3   : > { %1647 = vrot.lane.b32.xlu0 %v1583_v20, %s7460_s6 }
 0x1c4   : > { %v1271_v43 = vpop.permute.xlu1 %1270 }
 0x1c5   : > { %1362 = vst.msk [vmem:[#allocation3 + $0x28] sm:$0xff] %vm1356_vm7, %v1271_v43  ;;  %v1277_v44 = vpop.permute.xlu0 %1276  ;;  %v2034_v43 = vld [vmem:[%s11286_s1] sm:$0xff] }
 0x1c6   : > { %1516 = vrot.lane.b32.xlu1 %v1421_v36, %s7459_s30  ;;  %1365 = vst.msk [vmem:[#allocation3 + $0x40] sm:$0xff] %vm1356_vm7, %v1277_v44  ;;  %v1776_v36 = vld [vmem:[#allocation2 + $0x32] sm:$0xff]  ;;  %7056 = vmatprep.subr.msk.mxu1 %vm2035_vm9, %v2034_v43 }
 0x1c7   : > { %1651 = vrot.lane.b32.xlu0 %v1585_v24, %s7460_s6  ;;  %v1614_v24 = vld [vmem:[#allocation2 + $0x1a1] sm:$0xff]  ;;  %7057 = vmatpush3.xpose.msk.msra.mxu1 %vm2035_vm9, %v2034_v43 }
 0x1c8   : > { %v1275_v50 = vpop.permute.xlu1 %1274  ;;  %6920 = vmatprep.mubr.msk.f32.mxu0 %vm2035_vm9, %v2034_v43 }
 0x1c9   : > { %1364 = vst.msk [vmem:[#allocation3 + $0x38] sm:$0xff] %vm1356_vm7, %v1275_v50  ;;  %v1281_v53 = vpop.permute.xlu0 %1280  ;;  %v1777_v50 = vld [vmem:[#allocation2 + $0x3a] sm:$0xff] }
 0x1ca   : > { %1649 = vrot.lane.b32.xlu1 %v1584_v47, %s7460_s6  ;;  %1367 = vst.msk [vmem:[#allocation3 + $0x50] sm:$0xff] %vm1356_vm7, %v1281_v53  ;;  %v1778_v47 = vld [vmem:[#allocation2 + $0x4a] sm:$0xff]  ;;  %v1780_v53 = vld [vmem:[#allocation2 + $0x62] sm:$0xff] }
 0x1cb   : > { %1655 = vrot.lane.b32.xlu0 %v1587_v33, %s7460_s6 }
 0x1cc   : > { %v1279_v63 = vpop.permute.xlu1 %1278 }
 0x1cd   : > { %1366 = vst.msk [vmem:[#allocation3 + $0x48] sm:$0xff] %vm1356_vm7, %v1279_v63  ;;  %v1285_v13 = vpop.permute.xlu0 %1284  ;;  %v1779_v63 = vld [vmem:[#allocation2 + $0x52] sm:$0xff] }
 0x1ce   : > { %1653 = vrot.lane.b32.xlu1 %v1586_v56, %s7460_s6  ;;  %1369 = vst.msk [vmem:[#allocation3 + $0x60] sm:$0xff] %vm1356_vm7, %v1285_v13  ;;  %v1782_v13 = vld [vmem:[#allocation2 + $0x7a] sm:$0xff] }
 0x1cf   : > { %1659 = vrot.lane.b32.xlu0 %v1589_v10, %s7460_s6 }
 0x1d0   : > { %v1283_v17 = vpop.permute.xlu1 %1282 }
 0x1d1   : > { %1368 = vst.msk [vmem:[#allocation3 + $0x58] sm:$0xff] %vm1356_vm7, %v1283_v17  ;;  %v1289_v21 = vpop.permute.xlu0 %1288  ;;  %v1781_v17 = vld [vmem:[#allocation2 + $0x6a] sm:$0xff] }
 0x1d2   : > { %1657 = vrot.lane.b32.xlu1 %v1588_v14, %s7460_s6  ;;  %1371 = vst.msk [vmem:[#allocation3 + $0x70] sm:$0xff] %vm1356_vm7, %v1289_v21  ;;  %v1784_v21 = vld [vmem:[#allocation2 + $0x92] sm:$0xff] }
 0x1d3   : > { %1663 = vrot.lane.b32.xlu0 %v1591_v18, %s7460_s6 }
 0x1d4   : > { %v1287_v22 = vpop.permute.xlu1 %1286 }
 0x1d5   : > { %1370 = vst.msk [vmem:[#allocation3 + $0x68] sm:$0xff] %vm1356_vm7, %v1287_v22  ;;  %v1293_v45 = vpop.permute.xlu0 %1292  ;;  %v1783_v22 = vld [vmem:[#allocation2 + $0x82] sm:$0xff] }
 0x1d6   : > { %1661 = vrot.lane.b32.xlu1 %v1590_v48, %s7460_s6  ;;  %1373 = vst.msk [vmem:[#allocation3 + $0x80] sm:$0xff] %vm1356_vm7, %v1293_v45  ;;  %v1786_v45 = vld [vmem:[#allocation2 + $0xaa] sm:$0xff] }
 0x1d7   : > { %1667 = vrot.lane.b32.xlu0 %v1593_v49, %s7460_s6 }
 0x1d8   : > { %v1291_v25 = vpop.permute.xlu1 %1290 }
 0x1d9   : > { %1372 = vst.msk [vmem:[#allocation3 + $0x78] sm:$0xff] %vm1356_vm7, %v1291_v25  ;;  %v1297_v35 = vpop.permute.xlu0 %1296  ;;  %v1785_v25 = vld [vmem:[#allocation2 + $0x9a] sm:$0xff] }
 0x1da   : > { %1665 = vrot.lane.b32.xlu1 %v1592_v29, %s7460_s6  ;;  %1375 = vst.msk [vmem:[#allocation3 + $0x90] sm:$0xff] %vm1356_vm7, %v1297_v35  ;;  %v1788_v35 = vld [vmem:[#allocation2 + $0xc2] sm:$0xff] }
 0x1db   : > { %1671 = vrot.lane.b32.xlu0 %v1595_v46, %s7460_s6 }
 0x1dc   : > { %v1295_v34 = vpop.permute.xlu1 %1294 }
 0x1dd   : > { %1374 = vst.msk [vmem:[#allocation3 + $0x88] sm:$0xff] %vm1356_vm7, %v1295_v34  ;;  %v1301_v38 = vpop.permute.xlu0 %1300  ;;  %v1787_v34 = vld [vmem:[#allocation2 + $0xb2] sm:$0xff] }
 0x1de   : > { %1669 = vrot.lane.b32.xlu1 %v1594_v30, %s7460_s6  ;;  %1377 = vst.msk [vmem:[#allocation3 + $0xa0] sm:$0xff] %vm1356_vm7, %v1301_v38  ;;  %v1790_v38 = vld [vmem:[#allocation2 + $0xda] sm:$0xff] }
 0x1df   : > { %1675 = vrot.lane.b32.xlu0 %v1597_v32, %s7460_s6 }
 0x1e0   : > { %v1299_v37 = vpop.permute.xlu1 %1298 }
 0x1e1   : > { %1376 = vst.msk [vmem:[#allocation3 + $0x98] sm:$0xff] %vm1356_vm7, %v1299_v37  ;;  %v1305_v40 = vpop.permute.xlu0 %1304  ;;  %v1789_v37 = vld [vmem:[#allocation2 + $0xca] sm:$0xff] }
 0x1e2   : > { %1673 = vrot.lane.b32.xlu1 %v1596_v39, %s7460_s6  ;;  %1379 = vst.msk [vmem:[#allocation3 + $0xb0] sm:$0xff] %vm1356_vm7, %v1305_v40  ;;  %v1792_v40 = vld [vmem:[#allocation2 + $0xf2] sm:$0xff] }
 0x1e3   : > { %1679 = vrot.lane.b32.xlu0 %v1599_v51, %s7460_s6 }
 0x1e4   : > { %v1303_v52 = vpop.permute.xlu1 %1302 }
 0x1e5   : > { %1378 = vst.msk [vmem:[#allocation3 + $0xa8] sm:$0xff] %vm1356_vm7, %v1303_v52  ;;  %v1309_v55 = vpop.permute.xlu0 %1308  ;;  %v1791_v52 = vld [vmem:[#allocation2 + $0xe2] sm:$0xff] }
 0x1e6   : > { %1677 = vrot.lane.b32.xlu1 %v1598_v54, %s7460_s6  ;;  %1381 = vst.msk [vmem:[#allocation3 + $0xc0] sm:$0xff] %vm1356_vm7, %v1309_v55  ;;  %v1794_v55 = vld [vmem:[#allocation2 + $0x10a] sm:$0xff] }
 0x1e7   : > { %1683 = vrot.lane.b32.xlu0 %v1601_v57, %s7460_s6 }
 0x1e8   : > { %v1307_v58 = vpop.permute.xlu1 %1306 }
 0x1e9   : > { %1380 = vst.msk [vmem:[#allocation3 + $0xb8] sm:$0xff] %vm1356_vm7, %v1307_v58  ;;  %v1313_v60 = vpop.permute.xlu0 %1312  ;;  %v1793_v58 = vld [vmem:[#allocation2 + $0xfa] sm:$0xff] }
 0x1ea   : > { %1681 = vrot.lane.b32.xlu1 %v1600_v59, %s7460_s6  ;;  %1383 = vst.msk [vmem:[#allocation3 + $0xd0] sm:$0xff] %vm1356_vm7, %v1313_v60  ;;  %v1796_v60 = vld [vmem:[#allocation2 + $0x122] sm:$0xff] }
 0x1eb   : > { %1687 = vrot.lane.b32.xlu0 %v1603_v61, %s7460_s6 }
 0x1ec   : > { %v1311_v62 = vpop.permute.xlu1 %1310 }
 0x1ed   : > { %1382 = vst.msk [vmem:[#allocation3 + $0xc8] sm:$0xff] %vm1356_vm7, %v1311_v62  ;;  %v1317_v1 = vpop.permute.xlu0 %1316  ;;  %v1795_v62 = vld [vmem:[#allocation2 + $0x112] sm:$0xff] }
 0x1ee   : > { %1685 = vrot.lane.b32.xlu1 %v1602_v0, %s7460_s6  ;;  %1385 = vst.msk [vmem:[#allocation3 + $0xe0] sm:$0xff] %vm1356_vm7, %v1317_v1  ;;  %v1798_v1 = vld [vmem:[#allocation2 + $0x13a] sm:$0xff] }
 0x1ef   : > { %1691 = vrot.lane.b32.xlu0 %v1605_v2, %s7460_s6 }
 0x1f0   : > { %v1315_v3 = vpop.permute.xlu1 %1314 }
 0x1f1   : > { %1384 = vst.msk [vmem:[#allocation3 + $0xd8] sm:$0xff] %vm1356_vm7, %v1315_v3  ;;  %v1321_v5 = vpop.permute.xlu0 %1320  ;;  %v1797_v3 = vld [vmem:[#allocation2 + $0x12a] sm:$0xff] }
 0x1f2   : > { %1689 = vrot.lane.b32.xlu1 %v1604_v4, %s7460_s6  ;;  %1387 = vst.msk [vmem:[#allocation3 + $0xf0] sm:$0xff] %vm1356_vm7, %v1321_v5  ;;  %v1800_v5 = vld [vmem:[#allocation2 + $0x152] sm:$0xff] }
 0x1f3   : > { %1695 = vrot.lane.b32.xlu0 %v1607_v6, %s7460_s6 }
 0x1f4   : > { %v1319_v7 = vpop.permute.xlu1 %1318 }
 0x1f5   : > { %1386 = vst.msk [vmem:[#allocation3 + $0xe8] sm:$0xff] %vm1356_vm7, %v1319_v7  ;;  %v1455_v9 = vpop.permute.xlu0 %1454  ;;  %v1799_v7 = vld [vmem:[#allocation2 + $0x142] sm:$0xff] }
 0x1f6   : > { %1693 = vrot.lane.b32.xlu1 %v1606_v8, %s7460_s6  ;;  %1551 = vst.msk [vmem:[#allocation3] sm:$0xff] %vm1550_vm8, %v1455_v9  ;;  %v1802_v9 = vld [vmem:[#allocation2 + $0x16a] sm:$0xff] }
 0x1f7   : > { %1699 = vrot.lane.b32.xlu0 %v1609_v11, %s7460_s6 }
 0x1f8   : > { %v1323_v12 = vpop.permute.xlu1 %1322 }
 0x1f9   : > { %1388 = vst.msk [vmem:[#allocation3 + $0xf8] sm:$0xff] %vm1356_vm7, %v1323_v12  ;;  %v1459_v19 = vpop.permute.xlu0 %1458  ;;  %v1801_v12 = vld [vmem:[#allocation2 + $0x15a] sm:$0xff] }
 0x1fa   : > { %1697 = vrot.lane.b32.xlu1 %v1608_v15, %s7460_s6  ;;  %1553 = vst.msk [vmem:[#allocation3 + $0x10] sm:$0xff] %vm1550_vm8, %v1459_v19 }
 0x1fb   : > { %1703 = vrot.lane.b32.xlu0 %v8249_v28, %s7460_s6 }
 0x1fc   : > { %v1457_v41 = vpop.permute.xlu1 %1456 }
 0x1fd   : > { %1552 = vst.msk [vmem:[#allocation3 + $0x8] sm:$0xff] %vm1550_vm8, %v1457_v41  ;;  %v1463_v20 = vpop.permute.xlu0 %1462  ;;  %v1803_v41 = vld [vmem:[#allocation2 + $0x172] sm:$0xff] }
 0x1fe   : > { %1701 = vrot.lane.b32.xlu1 %v1610_v16, %s7460_s6  ;;  %1555 = vst.msk [vmem:[#allocation3 + $0x20] sm:$0xff] %vm1550_vm8, %v1463_v20  ;;  %v1806_v20 = vld [vmem:[#allocation2 + $0x19a] sm:$0xff] }
 0x1ff   : > { %1707 = vrot.lane.b32.xlu0 %v1613_v23, %s7460_s6 }
 0x200   : > { %v1461_v42 = vpop.permute.xlu1 %1460 }
 0x201   : > { %1554 = vst.msk [vmem:[#allocation3 + $0x18] sm:$0xff] %vm1550_vm8, %v1461_v42  ;;  %v1467_v28 = vpop.permute.xlu0 %1466 }
 0x202   : > { %1705 = vrot.lane.b32.xlu1 %v8259_v27, %s7460_s6  ;;  %1557 = vst.msk [vmem:[#allocation3 + $0x30] sm:$0xff] %vm1550_vm8, %v1467_v28 }
 0x203   : > { %1840 = vrot.lane.b32.xlu0 %v1776_v36, %s7461_s9 }
 0x204   : > { %v1465_v44 = vpop.permute.xlu1 %1464 }
 0x205   : > { %1556 = vst.msk [vmem:[#allocation3 + $0x28] sm:$0xff] %vm1550_vm8, %v1465_v44  ;;  %v1471_v27 = vpop.permute.xlu0 %1470 }
 0x206   : > { %1709 = vrot.lane.b32.xlu1 %v1614_v24, %s7460_s6  ;;  %1559 = vst.msk [vmem:[#allocation3 + $0x40] sm:$0xff] %vm1550_vm8, %v1471_v27  ;;  %s229_s6 = sand.u32 1, %s7442_s19  }
 0x207   : > { %1844 = vrot.lane.b32.xlu0 %v1778_v47, %s7461_s9  ;;  %s7300_s7 = smul.u32 48, %s229_s6 }
 0x208   : > { %v1469_v33 = vpop.permute.xlu1 %1468 }
 0x209   : > { %1558 = vst.msk [vmem:[#allocation3 + $0x38] sm:$0xff] %vm1550_vm8, %v1469_v33  ;;  %v1475_v56 = vpop.permute.xlu0 %1474  ;;  %s10105_s8 = scalar_lea.vmem [#allocation7], %s7300_s7  ;;  %s7467_s7 = smov [#allocation7]  }
 0x20a   : > { %1842 = vrot.lane.b32.xlu1 %v1777_v50, %s7461_s9  ;;  %1561 = vst.msk [vmem:[#allocation3 + $0x50] sm:$0xff] %vm1550_vm8, %v1475_v56 }
 0x20b   : > { %1848 = vrot.lane.b32.xlu0 %v1780_v53, %s7461_s9 }
 0x20c   : > { %v1473_v10 = vpop.permute.xlu1 %1472 }
 0x20d   : > { %1560 = vst.msk [vmem:[#allocation3 + $0x48] sm:$0xff] %vm1550_vm8, %v1473_v10  ;;  %v1479_v14 = vpop.permute.xlu0 %1478 }
 0x20e   : > { %1846 = vrot.lane.b32.xlu1 %v1779_v63, %s7461_s9  ;;  %1563 = vst.msk [vmem:[#allocation3 + $0x60] sm:$0xff] %vm1550_vm8, %v1479_v14 }
 0x20f   : > { %1852 = vrot.lane.b32.xlu0 %v1782_v13, %s7461_s9 }
 0x210   : > { %v1477_v18 = vpop.permute.xlu1 %1476 }
 0x211   : > { %1562 = vst.msk [vmem:[#allocation3 + $0x58] sm:$0xff] %vm1550_vm8, %v1477_v18  ;;  %v1483_v48 = vpop.permute.xlu0 %1482 }
 0x212   : > { %1850 = vrot.lane.b32.xlu1 %v1781_v17, %s7461_s9  ;;  %1565 = vst.msk [vmem:[#allocation3 + $0x70] sm:$0xff] %vm1550_vm8, %v1483_v48 }
 0x213   : > { %1856 = vrot.lane.b32.xlu0 %v1784_v21, %s7461_s9 }
 0x214   : > { %v1481_v49 = vpop.permute.xlu1 %1480 }
 0x215   : > { %1564 = vst.msk [vmem:[#allocation3 + $0x68] sm:$0xff] %vm1550_vm8, %v1481_v49  ;;  %v1487_v29 = vpop.permute.xlu0 %1486 }
 0x216   : > { %1854 = vrot.lane.b32.xlu1 %v1783_v22, %s7461_s9  ;;  %1567 = vst.msk [vmem:[#allocation3 + $0x80] sm:$0xff] %vm1550_vm8, %v1487_v29 }
 0x217   : > { %1860 = vrot.lane.b32.xlu0 %v1786_v45, %s7461_s9 }
 0x218   : > { %v1485_v46 = vpop.permute.xlu1 %1484 }
 0x219   : > { %1566 = vst.msk [vmem:[#allocation3 + $0x78] sm:$0xff] %vm1550_vm8, %v1485_v46  ;;  %v1491_v30 = vpop.permute.xlu0 %1490 }
 0x21a   : > { %1858 = vrot.lane.b32.xlu1 %v1785_v25, %s7461_s9  ;;  %1569 = vst.msk [vmem:[#allocation3 + $0x90] sm:$0xff] %vm1550_vm8, %v1491_v30 }
 0x21b   : > { %1864 = vrot.lane.b32.xlu0 %v1788_v35, %s7461_s9 }
 0x21c   : > { %v1489_v32 = vpop.permute.xlu1 %1488 }
 0x21d   : > { %1568 = vst.msk [vmem:[#allocation3 + $0x88] sm:$0xff] %vm1550_vm8, %v1489_v32  ;;  %v1495_v39 = vpop.permute.xlu0 %1494  ;;  %v11321_v32 = vmov 1.0  }
 0x21e   : > { %1862 = vrot.lane.b32.xlu1 %v1787_v34, %s7461_s9  ;;  %1571 = vst.msk [vmem:[#allocation3 + $0xa0] sm:$0xff] %vm1550_vm8, %v1495_v39 }
 0x21f   : > { %1868 = vrot.lane.b32.xlu0 %v1790_v38, %s7461_s9 }
 0x220   : > { %v1493_v51 = vpop.permute.xlu1 %1492 }
 0x221   : > { %1570 = vst.msk [vmem:[#allocation3 + $0x98] sm:$0xff] %vm1550_vm8, %v1493_v51  ;;  %v1499_v54 = vpop.permute.xlu0 %1498 }
 0x222   : > { %1866 = vrot.lane.b32.xlu1 %v1789_v37, %s7461_s9  ;;  %1573 = vst.msk [vmem:[#allocation3 + $0xb0] sm:$0xff] %vm1550_vm8, %v1499_v54 }
 0x223   : > { %1872 = vrot.lane.b32.xlu0 %v1792_v40, %s7461_s9 }
 0x224   : > { %v1497_v57 = vpop.permute.xlu1 %1496 }
 0x225   : > { %1572 = vst.msk [vmem:[#allocation3 + $0xa8] sm:$0xff] %vm1550_vm8, %v1497_v57  ;;  %v1503_v59 = vpop.permute.xlu0 %1502 }
 0x226   : > { %1870 = vrot.lane.b32.xlu1 %v1791_v52, %s7461_s9  ;;  %1575 = vst.msk [vmem:[#allocation3 + $0xc0] sm:$0xff] %vm1550_vm8, %v1503_v59 }
 0x227   : > { %1876 = vrot.lane.b32.xlu0 %v1794_v55, %s7461_s9 }
 0x228   : > { %v1501_v61 = vpop.permute.xlu1 %1500 }
 0x229   : > { %1574 = vst.msk [vmem:[#allocation3 + $0xb8] sm:$0xff] %vm1550_vm8, %v1501_v61  ;;  %v1507_v0 = vpop.permute.xlu0 %1506 }
 0x22a   : > { %1874 = vrot.lane.b32.xlu1 %v1793_v58, %s7461_s9  ;;  %1577 = vst.msk [vmem:[#allocation3 + $0xd0] sm:$0xff] %vm1550_vm8, %v1507_v0 }
 0x22b   : > { %1880 = vrot.lane.b32.xlu0 %v1796_v60, %s7461_s9 }
 0x22c   : > { %v1505_v2 = vpop.permute.xlu1 %1504 }
 0x22d   : > { %1576 = vst.msk [vmem:[#allocation3 + $0xc8] sm:$0xff] %vm1550_vm8, %v1505_v2  ;;  %v1511_v4 = vpop.permute.xlu0 %1510 }
 0x22e   : > { %1878 = vrot.lane.b32.xlu1 %v1795_v62, %s7461_s9  ;;  %1579 = vst.msk [vmem:[#allocation3 + $0xe0] sm:$0xff] %vm1550_vm8, %v1511_v4 }
 0x22f   : > { %1884 = vrot.lane.b32.xlu0 %v1798_v1, %s7461_s9 }
 0x230   : > { %v1509_v6 = vpop.permute.xlu1 %1508 }
 0x231   : > { %1578 = vst.msk [vmem:[#allocation3 + $0xd8] sm:$0xff] %vm1550_vm8, %v1509_v6  ;;  %v1515_v8 = vpop.permute.xlu0 %1514 }
 0x232   : > { %1882 = vrot.lane.b32.xlu1 %v1797_v3, %s7461_s9  ;;  %1581 = vst.msk [vmem:[#allocation3 + $0xf0] sm:$0xff] %vm1550_vm8, %v1515_v8 }
 0x233   : > { %1888 = vrot.lane.b32.xlu0 %v1800_v5, %s7461_s9 }
 0x234   : > { %v1513_v11 = vpop.permute.xlu1 %1512 }
 0x235   : > { %1580 = vst.msk [vmem:[#allocation3 + $0xe8] sm:$0xff] %vm1550_vm8, %v1513_v11  ;;  %v1648_v15 = vpop.permute.xlu0 %1647 }
 0x236   : > { %1886 = vrot.lane.b32.xlu1 %v1799_v7, %s7461_s9  ;;  %1744 = vst.msk [vmem:[#allocation3] sm:$0xff] %vm1743_vm10, %v1648_v15 }
 0x237   : > { %1892 = vrot.lane.b32.xlu0 %v1802_v9, %s7461_s9 }
 0x238   : > { %v1517_v19 = vpop.permute.xlu1 %1516 }
 0x239   : > { %1582 = vst.msk [vmem:[#allocation3 + $0xf8] sm:$0xff] %vm1550_vm8, %v1517_v19  ;;  %v1652_v16 = vpop.permute.xlu0 %1651 }
 0x23a   : > { %1890 = vrot.lane.b32.xlu1 %v1801_v12, %s7461_s9  ;;  %1746 = vst.msk [vmem:[#allocation3 + $0x10] sm:$0xff] %vm1743_vm10, %v1652_v16 }
 0x23b   : > { %1896 = vrot.lane.b32.xlu0 %v8349_v26, %s7461_s9  ;;  %v1807_v26 = vld [vmem:[#allocation2 + $0x1a2] sm:$0xff] }
 0x23c   : > { %v1650_v23 = vpop.permute.xlu1 %1649 }
 0x23d   : > { %1745 = vst.msk [vmem:[#allocation3 + $0x8] sm:$0xff] %vm1743_vm10, %v1650_v23  ;;  %v1656_v42 = vpop.permute.xlu0 %1655 }
 0x23e   : > { %1894 = vrot.lane.b32.xlu1 %v1803_v41, %s7461_s9  ;;  %1748 = vst.msk [vmem:[#allocation3 + $0x20] sm:$0xff] %vm1743_vm10, %v1656_v42 }
 0x23f   : > { %1900 = vrot.lane.b32.xlu0 %v1806_v20, %s7461_s9 }
 0x240   : > { %v1654_v36 = vpop.permute.xlu1 %1653 }
 0x241   : > { %1747 = vst.msk [vmem:[#allocation3 + $0x18] sm:$0xff] %vm1743_vm10, %v1654_v36  ;;  %v1660_v43 = vpop.permute.xlu0 %1659 }
 0x242   : > { %1898 = vrot.lane.b32.xlu1 %v8359_v31, %s7461_s9  ;;  %1750 = vst.msk [vmem:[#allocation3 + $0x30] sm:$0xff] %vm1743_vm10, %v1660_v43 }
 0x244   : > { %v1658_v28 = vpop.permute.xlu1 %1657 }
 0x245   : > { %1749 = vst.msk [vmem:[#allocation3 + $0x28] sm:$0xff] %vm1743_vm10, %v1658_v28  ;;  %v1664_v24 = vpop.permute.xlu0 %1663 }
 0x246   : > { %1902 = vrot.lane.b32.xlu1 %v1807_v26, %s7461_s9  ;;  %1752 = vst.msk [vmem:[#allocation3 + $0x40] sm:$0xff] %vm1743_vm10, %v1664_v24 }
 0x248   : > { %v1662_v44 = vpop.permute.xlu1 %1661 }
 0x249   : > { %1751 = vst.msk [vmem:[#allocation3 + $0x38] sm:$0xff] %vm1743_vm10, %v1662_v44  ;;  %v1668_v47 = vpop.permute.xlu0 %1667 }
 0x24a   : > { %1754 = vst.msk [vmem:[#allocation3 + $0x50] sm:$0xff] %vm1743_vm10, %v1668_v47 }
 0x24c   : > { %v1666_v27 = vpop.permute.xlu1 %1665 }
 0x24d   : > { %1753 = vst.msk [vmem:[#allocation3 + $0x48] sm:$0xff] %vm1743_vm10, %v1666_v27  ;;  %v1672_v31 = vpop.permute.xlu0 %1671 }
 0x24e   : > { %1756 = vst.msk [vmem:[#allocation3 + $0x60] sm:$0xff] %vm1743_vm10, %v1672_v31 }
 0x250   : > { %v1670_v50 = vpop.permute.xlu1 %1669 }
 0x251   : > { %1755 = vst.msk [vmem:[#allocation3 + $0x58] sm:$0xff] %vm1743_vm10, %v1670_v50  ;;  %v1676_v33 = vpop.permute.xlu0 %1675 }
 0x252   : > { %1758 = vst.msk [vmem:[#allocation3 + $0x70] sm:$0xff] %vm1743_vm10, %v1676_v33 }
 0x254   : > { %v1674_v53 = vpop.permute.xlu1 %1673 }
 0x255   : > { %1757 = vst.msk [vmem:[#allocation3 + $0x68] sm:$0xff] %vm1743_vm10, %v1674_v53  ;;  %v1680_v56 = vpop.permute.xlu0 %1679 }
 0x256   : > { %1760 = vst.msk [vmem:[#allocation3 + $0x80] sm:$0xff] %vm1743_vm10, %v1680_v56 }
 0x258   : > { %v1678_v63 = vpop.permute.xlu1 %1677 }
 0x259   : > { %1759 = vst.msk [vmem:[#allocation3 + $0x78] sm:$0xff] %vm1743_vm10, %v1678_v63  ;;  %v1684_v10 = vpop.permute.xlu0 %1683 }
 0x25a   : > { %1762 = vst.msk [vmem:[#allocation3 + $0x90] sm:$0xff] %vm1743_vm10, %v1684_v10 }
 0x25c   : > { %v1682_v13 = vpop.permute.xlu1 %1681 }
 0x25d   : > { %1761 = vst.msk [vmem:[#allocation3 + $0x88] sm:$0xff] %vm1743_vm10, %v1682_v13  ;;  %v1688_v14 = vpop.permute.xlu0 %1687 }
 0x25e   : > { %1764 = vst.msk [vmem:[#allocation3 + $0xa0] sm:$0xff] %vm1743_vm10, %v1688_v14 }
 0x260   : > { %v1686_v17 = vpop.permute.xlu1 %1685 }
 0x261   : > { %1763 = vst.msk [vmem:[#allocation3 + $0x98] sm:$0xff] %vm1743_vm10, %v1686_v17  ;;  %v1692_v18 = vpop.permute.xlu0 %1691 }
 0x262   : > { %1766 = vst.msk [vmem:[#allocation3 + $0xb0] sm:$0xff] %vm1743_vm10, %v1692_v18 }
 0x264   : > { %v1690_v21 = vpop.permute.xlu1 %1689 }
 0x265   : > { %1765 = vst.msk [vmem:[#allocation3 + $0xa8] sm:$0xff] %vm1743_vm10, %v1690_v21  ;;  %v1696_v48 = vpop.permute.xlu0 %1695 }
 0x266   : > { %1768 = vst.msk [vmem:[#allocation3 + $0xc0] sm:$0xff] %vm1743_vm10, %v1696_v48 }
 0x268   : > { %v1694_v22 = vpop.permute.xlu1 %1693 }
 0x269   : > { %1767 = vst.msk [vmem:[#allocation3 + $0xb8] sm:$0xff] %vm1743_vm10, %v1694_v22  ;;  %v1700_v49 = vpop.permute.xlu0 %1699 }
 0x26a   : > { %1770 = vst.msk [vmem:[#allocation3 + $0xd0] sm:$0xff] %vm1743_vm10, %v1700_v49 }
 0x26c   : > { %v1698_v45 = vpop.permute.xlu1 %1697 }
 0x26d   : > { %1769 = vst.msk [vmem:[#allocation3 + $0xc8] sm:$0xff] %vm1743_vm10, %v1698_v45  ;;  %v1704_v29 = vpop.permute.xlu0 %1703 }
 0x26e   : > { %1772 = vst.msk [vmem:[#allocation3 + $0xe0] sm:$0xff] %vm1743_vm10, %v1704_v29 }
 0x270   : > { %v1702_v25 = vpop.permute.xlu1 %1701 }
 0x271   : > { %1771 = vst.msk [vmem:[#allocation3 + $0xd8] sm:$0xff] %vm1743_vm10, %v1702_v25  ;;  %v1708_v46 = vpop.permute.xlu0 %1707 }
 0x272   : > { %1774 = vst.msk [vmem:[#allocation3 + $0xf0] sm:$0xff] %vm1743_vm10, %v1708_v46 }
 0x274   : > { %v1706_v35 = vpop.permute.xlu1 %1705 }
 0x275   : > { %1773 = vst.msk [vmem:[#allocation3 + $0xe8] sm:$0xff] %vm1743_vm10, %v1706_v35  ;;  %v1841_v30 = vpop.permute.xlu0 %1840 }
 0x276   : > { %1937 = vst.msk [vmem:[#allocation3] sm:$0xff] %vm1936_vm11, %v1841_v30 }
 0x277   : > { %1970 = vst.msk [vmem:[#allocation3] sm:$0xff] %vm1969_vm12, %v11321_v32 }
 0x278   : > { %v1710_v34 = vpop.permute.xlu1 %1709 }
 0x279   : > { %1775 = vst.msk [vmem:[#allocation3 + $0xf8] sm:$0xff] %vm1743_vm10, %v1710_v34  ;;  %v1845_v38 = vpop.permute.xlu0 %1844 }
 0x27a   : > { %1939 = vst.msk [vmem:[#allocation3 + $0x10] sm:$0xff] %vm1936_vm11, %v1845_v38  ;;  %v2632_v38 = vld [vmem:[#allocation2 + $0x9] sm:$0xff] }
 0x27b   : > { %1972 = vst.msk [vmem:[#allocation3 + $0x10] sm:$0xff] %vm1969_vm12, %v11321_v32  ;;  %2697 = vrot.lane.b32.xlu1 %v2632_v38, %s7455_s17 }
 0x27c   : > { %v1843_v39 = vpop.permute.xlu1 %1842 }
 0x27d   : > { %1938 = vst.msk [vmem:[#allocation3 + $0x8] sm:$0xff] %vm1936_vm11, %v1843_v39  ;;  %v1849_v37 = vpop.permute.xlu0 %1848  ;;  %v2631_v39 = vld [vmem:[#allocation2 + $0x1] sm:$0xff] }
 0x27e   : > { %1971 = vst.msk [vmem:[#allocation3 + $0x8] sm:$0xff] %vm1969_vm12, %v11321_v32  ;;  %v8632_v51 = vld [vmem:[#allocation3] sm:$0xff]  ;;  %2695 = vrot.lane.b32.xlu0 %v2631_v39, %s7455_s17 }
 0x27f   : > { %1941 = vst.msk [vmem:[#allocation3 + $0x20] sm:$0xff] %vm1936_vm11, %v1849_v37  ;;  %11489 = vst [vmem:[#allocation10_spill] sm:$0xff] %v8632_v51  ;;  %7058 = vmatprep.mubr.msk.f32.mxu1 %vm2035_vm9, %v8632_v51  ;;  %v2568_v37 = vld [vmem:[#allocation2 + $0x8] sm:$0xff] }
 0x280   : > { %v1847_v40 = vpop.permute.xlu1 %1846  ;;  %1974 = vst.msk [vmem:[#allocation3 + $0x20] sm:$0xff] %vm1969_vm12, %v11321_v32 }
 0x281   : > { %1940 = vst.msk [vmem:[#allocation3 + $0x18] sm:$0xff] %vm1936_vm11, %v1847_v40  ;;  %v1853_v54 = vpop.permute.xlu0 %1852  ;;  %v2567_v40 = vld [vmem:[#allocation2] sm:$0xff] }
 0x282   : > { %1973 = vst.msk [vmem:[#allocation3 + $0x18] sm:$0xff] %vm1969_vm12, %v11321_v32  ;;  %v8644_v57 = vld [vmem:[#allocation3 + $0x10] sm:$0xff] }
 0x283   : > { %1943 = vst.msk [vmem:[#allocation3 + $0x30] sm:$0xff] %vm1936_vm11, %v1853_v54  ;;  %11490 = vst [vmem:[#allocation11_spill] sm:$0xff] %v8644_v57 }
 0x284   : > { %v1851_v52 = vpop.permute.xlu1 %1850  ;;  %1976 = vst.msk [vmem:[#allocation3 + $0x30] sm:$0xff] %vm1969_vm12, %v11321_v32 }
 0x285   : > { %1942 = vst.msk [vmem:[#allocation3 + $0x28] sm:$0xff] %vm1936_vm11, %v1851_v52  ;;  %v8647_v55 = vld [vmem:[#allocation3 + $0x8] sm:$0xff]  ;;  %v1857_v59 = vpop.permute.xlu0 %1856 }
 0x286   : > { %11491 = vst [vmem:[#allocation12_spill] sm:$0xff] %v8647_v55  ;;  %1975 = vst.msk [vmem:[#allocation3 + $0x28] sm:$0xff] %vm1969_vm12, %v11321_v32  ;;  %7059 = vmatmul.mubr.msk.f32.vlgmr.msra.gmra.mrb[0].mxu1 %vm2035_vm9, %v8647_v55 }
 0x287   : > { %7061 = vmatprep.mubr.msk.f32.mxu1 %vm2035_vm9, %v8644_v57  ;;  %1945 = vst.msk [vmem:[#allocation3 + $0x40] sm:$0xff] %vm1936_vm11, %v1857_v59  ;;  %v8658_v61 = vld [vmem:[#allocation3 + $0x20] sm:$0xff]  ;;  %v8852_v59 = vstv %s359_s10  ;;  %s6783_s10 = sld [smem:[#allocation4 + $0x1]] }
 0x288   : > { %v1855_v58 = vpop.permute.xlu1 %1854  ;;  %1978 = vst.msk [vmem:[#allocation3 + $0x40] sm:$0xff] %vm1969_vm12, %v11321_v32  ;;  %11492 = vst [vmem:[#allocation13_spill] sm:$0xff] %v8658_v61 }
 0x289   : > { %1944 = vst.msk [vmem:[#allocation3 + $0x38] sm:$0xff] %vm1936_vm11, %v1855_v58  ;;  %v8661_v60 = vld [vmem:[#allocation3 + $0x18] sm:$0xff]  ;;  %v1861_v0 = vpop.permute.xlu0 %1860  ;;  %11521 = vst [vmem:[#allocation42_spill] sm:$0xff] %v8852_v59 }
 0x28a   : > { %11493 = vst [vmem:[#allocation14_spill] sm:$0xff] %v8661_v60  ;;  %1977 = vst.msk [vmem:[#allocation3 + $0x38] sm:$0xff] %vm1969_vm12, %v11321_v32  ;;  %7062 = vmatmul.mubr.msk.f32.gmra.mrb[2].mxu1 %vm2035_vm9, %v8661_v60 }
 0x28b   : > { %7064 = vmatprep.mubr.msk.f32.mxu1 %vm2035_vm9, %v8658_v61  ;;  %1947 = vst.msk [vmem:[#allocation3 + $0x50] sm:$0xff] %vm1936_vm11, %v1861_v0  ;;  %v8672_v2 = vld [vmem:[#allocation3 + $0x30] sm:$0xff] }
 0x28c   : > { %v1859_v62 = vpop.permute.xlu1 %1858  ;;  %1980 = vst.msk [vmem:[#allocation3 + $0x50] sm:$0xff] %vm1969_vm12, %v11321_v32  ;;  %11494 = vst [vmem:[#allocation15_spill] sm:$0xff] %v8672_v2 }
 0x28d   : > { %1946 = vst.msk [vmem:[#allocation3 + $0x48] sm:$0xff] %vm1936_vm11, %v1859_v62  ;;  %v8675_v1 = vld [vmem:[#allocation3 + $0x28] sm:$0xff]  ;;  %v1865_v4 = vpop.permute.xlu0 %1864 }
 0x28e   : > { %11495 = vst [vmem:[#allocation16_spill] sm:$0xff] %v8675_v1  ;;  %1979 = vst.msk [vmem:[#allocation3 + $0x48] sm:$0xff] %vm1969_vm12, %v11321_v32  ;;  %7065 = vmatmul.mubr.msk.f32.gmra.mrb[4].mxu1 %vm2035_vm9, %v8675_v1 }
 0x28f   : > { %7067 = vmatprep.mubr.msk.f32.mxu1 %vm2035_vm9, %v8672_v2  ;;  %1949 = vst.msk [vmem:[#allocation3 + $0x60] sm:$0xff] %vm1936_vm11, %v1865_v4  ;;  %v8686_v6 = vld [vmem:[#allocation3 + $0x40] sm:$0xff] }
 0x290   : > { %v1863_v3 = vpop.permute.xlu1 %1862  ;;  %1982 = vst.msk [vmem:[#allocation3 + $0x60] sm:$0xff] %vm1969_vm12, %v11321_v32  ;;  %11496 = vst [vmem:[#allocation17_spill] sm:$0xff] %v8686_v6 }
 0x291   : > { %1948 = vst.msk [vmem:[#allocation3 + $0x58] sm:$0xff] %vm1936_vm11, %v1863_v3  ;;  %v8689_v5 = vld [vmem:[#allocation3 + $0x38] sm:$0xff]  ;;  %v1869_v8 = vpop.permute.xlu0 %1868 }
 0x292   : > { %11497 = vst [vmem:[#allocation18_spill] sm:$0xff] %v8689_v5  ;;  %1981 = vst.msk [vmem:[#allocation3 + $0x58] sm:$0xff] %vm1969_vm12, %v11321_v32  ;;  %7068 = vmatmul.mubr.msk.f32.gmra.mrb[6].mxu1 %vm2035_vm9, %v8689_v5 }
 0x293   : > { %7070 = vmatprep.mubr.msk.f32.mxu1 %vm2035_vm9, %v8686_v6  ;;  %1951 = vst.msk [vmem:[#allocation3 + $0x70] sm:$0xff] %vm1936_vm11, %v1869_v8  ;;  %v8700_v11 = vld [vmem:[#allocation3 + $0x50] sm:$0xff] }
 0x294   : > { %v1867_v7 = vpop.permute.xlu1 %1866  ;;  %1984 = vst.msk [vmem:[#allocation3 + $0x70] sm:$0xff] %vm1969_vm12, %v11321_v32  ;;  %11498 = vst [vmem:[#allocation19_spill] sm:$0xff] %v8700_v11 }
 0x295   : > { %1950 = vst.msk [vmem:[#allocation3 + $0x68] sm:$0xff] %vm1936_vm11, %v1867_v7  ;;  %v8703_v9 = vld [vmem:[#allocation3 + $0x48] sm:$0xff]  ;;  %v1873_v15 = vpop.permute.xlu0 %1872 }
 0x296   : > { %11499 = vst [vmem:[#allocation20_spill] sm:$0xff] %v8703_v9  ;;  %1983 = vst.msk [vmem:[#allocation3 + $0x68] sm:$0xff] %vm1969_vm12, %v11321_v32  ;;  %7071 = vmatmul.mubr.msk.f32.gmra.mrb[8].mxu1 %vm2035_vm9, %v8703_v9 }
 0x297   : > { %7073 = vmatprep.mubr.msk.f32.mxu1 %vm2035_vm9, %v8700_v11  ;;  %1953 = vst.msk [vmem:[#allocation3 + $0x80] sm:$0xff] %vm1936_vm11, %v1873_v15  ;;  %v8714_v19 = vld [vmem:[#allocation3 + $0x60] sm:$0xff] }
 0x298   : > { %v1871_v12 = vpop.permute.xlu1 %1870  ;;  %1986 = vst.msk [vmem:[#allocation3 + $0x80] sm:$0xff] %vm1969_vm12, %v11321_v32  ;;  %11500 = vst [vmem:[#allocation21_spill] sm:$0xff] %v8714_v19 }
 0x299   : > { %1952 = vst.msk [vmem:[#allocation3 + $0x78] sm:$0xff] %vm1936_vm11, %v1871_v12  ;;  %v8717_v16 = vld [vmem:[#allocation3 + $0x58] sm:$0xff]  ;;  %v1877_v41 = vpop.permute.xlu0 %1876 }
 0x29a   : > { %11501 = vst [vmem:[#allocation22_spill] sm:$0xff] %v8717_v16  ;;  %1985 = vst.msk [vmem:[#allocation3 + $0x78] sm:$0xff] %vm1969_vm12, %v11321_v32  ;;  %7074 = vmatmul.mubr.msk.f32.gmra.mrb[10].mxu1 %vm2035_vm9, %v8717_v16 }
 0x29b   : > { %7076 = vmatprep.mubr.msk.f32.mxu1 %vm2035_vm9, %v8714_v19  ;;  %1955 = vst.msk [vmem:[#allocation3 + $0x90] sm:$0xff] %vm1936_vm11, %v1877_v41  ;;  %v8728_v20 = vld [vmem:[#allocation3 + $0x70] sm:$0xff] }
 0x29c   : > { %v1875_v23 = vpop.permute.xlu1 %1874  ;;  %1988 = vst.msk [vmem:[#allocation3 + $0x90] sm:$0xff] %vm1969_vm12, %v11321_v32  ;;  %11502 = vst [vmem:[#allocation23_spill] sm:$0xff] %v8728_v20 }
 0x29d   : > { %1954 = vst.msk [vmem:[#allocation3 + $0x88] sm:$0xff] %vm1936_vm11, %v1875_v23  ;;  %v8731_v42 = vld [vmem:[#allocation3 + $0x68] sm:$0xff]  ;;  %v1881_v36 = vpop.permute.xlu0 %1880 }
 0x29e   : > { %11503 = vst [vmem:[#allocation24_spill] sm:$0xff] %v8731_v42  ;;  %1987 = vst.msk [vmem:[#allocation3 + $0x88] sm:$0xff] %vm1969_vm12, %v11321_v32  ;;  %7077 = vmatmul.mubr.msk.f32.gmra.mrb[12].mxu1 %vm2035_vm9, %v8731_v42 }
 0x29f   : > { %7079 = vmatprep.mubr.msk.f32.mxu1 %vm2035_vm9, %v8728_v20  ;;  %1957 = vst.msk [vmem:[#allocation3 + $0xa0] sm:$0xff] %vm1936_vm11, %v1881_v36  ;;  %v8742_v26 = vld [vmem:[#allocation3 + $0x80] sm:$0xff] }
 0x2a0   : > { %v1879_v43 = vpop.permute.xlu1 %1878  ;;  %1990 = vst.msk [vmem:[#allocation3 + $0xa0] sm:$0xff] %vm1969_vm12, %v11321_v32  ;;  %11504 = vst [vmem:[#allocation25_spill] sm:$0xff] %v8742_v26 }
 0x2a1   : > { %1956 = vst.msk [vmem:[#allocation3 + $0x98] sm:$0xff] %vm1936_vm11, %v1879_v43  ;;  %v8745_v28 = vld [vmem:[#allocation3 + $0x78] sm:$0xff]  ;;  %v1885_v24 = vpop.permute.xlu0 %1884 }
 0x2a2   : > { %11505 = vst [vmem:[#allocation26_spill] sm:$0xff] %v8745_v28  ;;  %1989 = vst.msk [vmem:[#allocation3 + $0x98] sm:$0xff] %vm1969_vm12, %v11321_v32  ;;  %7080 = vmatmul.mubr.msk.f32.gmra.mrb[14].mxu1 %vm2035_vm9, %v8745_v28 }
 0x2a3   : > { %7082 = vmatprep.mubr.msk.f32.mxu1 %vm2035_vm9, %v8742_v26  ;;  %1959 = vst.msk [vmem:[#allocation3 + $0xb0] sm:$0xff] %vm1936_vm11, %v1885_v24  ;;  %v8756_v47 = vld [vmem:[#allocation3 + $0x90] sm:$0xff] }
 0x2a4   : > { %v1883_v44 = vpop.permute.xlu1 %1882  ;;  %1992 = vst.msk [vmem:[#allocation3 + $0xb0] sm:$0xff] %vm1969_vm12, %v11321_v32  ;;  %11506 = vst [vmem:[#allocation27_spill] sm:$0xff] %v8756_v47 }
 0x2a5   : > { %1958 = vst.msk [vmem:[#allocation3 + $0xa8] sm:$0xff] %vm1936_vm11, %v1883_v44  ;;  %v8759_v27 = vld [vmem:[#allocation3 + $0x88] sm:$0xff]  ;;  %v1889_v31 = vpop.permute.xlu0 %1888 }
 0x2a6   : > { %11507 = vst [vmem:[#allocation28_spill] sm:$0xff] %v8759_v27  ;;  %1991 = vst.msk [vmem:[#allocation3 + $0xa8] sm:$0xff] %vm1969_vm12, %v11321_v32  ;;  %7083 = vmatmul.mubr.msk.f32.gmra.mrb[16].mxu1 %vm2035_vm9, %v8759_v27 }
 0x2a7   : > { %7085 = vmatprep.mubr.msk.f32.mxu1 %vm2035_vm9, %v8756_v47  ;;  %1961 = vst.msk [vmem:[#allocation3 + $0xc0] sm:$0xff] %vm1936_vm11, %v1889_v31  ;;  %v8770_v33 = vld [vmem:[#allocation3 + $0xa0] sm:$0xff] }
 0x2a8   : > { %v1887_v50 = vpop.permute.xlu1 %1886  ;;  %1994 = vst.msk [vmem:[#allocation3 + $0xc0] sm:$0xff] %vm1969_vm12, %v11321_v32  ;;  %11508 = vst [vmem:[#allocation29_spill] sm:$0xff] %v8770_v33 }
 0x2a9   : > { %1960 = vst.msk [vmem:[#allocation3 + $0xb8] sm:$0xff] %vm1936_vm11, %v1887_v50  ;;  %v8773_v53 = vld [vmem:[#allocation3 + $0x98] sm:$0xff]  ;;  %v1893_v56 = vpop.permute.xlu0 %1892 }
 0x2aa   : > { %11509 = vst [vmem:[#allocation30_spill] sm:$0xff] %v8773_v53  ;;  %1993 = vst.msk [vmem:[#allocation3 + $0xb8] sm:$0xff] %vm1969_vm12, %v11321_v32  ;;  %7086 = vmatmul.mubr.msk.f32.gmra.mrb[18].mxu1 %vm2035_vm9, %v8773_v53 }
 0x2ab   : > { %7088 = vmatprep.mubr.msk.f32.mxu1 %vm2035_vm9, %v8770_v33  ;;  %1963 = vst.msk [vmem:[#allocation3 + $0xd0] sm:$0xff] %vm1936_vm11, %v1893_v56  ;;  %v8784_v10 = vld [vmem:[#allocation3 + $0xb0] sm:$0xff] }
 0x2ac   : > { %v1891_v63 = vpop.permute.xlu1 %1890  ;;  %1996 = vst.msk [vmem:[#allocation3 + $0xd0] sm:$0xff] %vm1969_vm12, %v11321_v32  ;;  %11510 = vst [vmem:[#allocation31_spill] sm:$0xff] %v8784_v10 }
 0x2ad   : > { %1962 = vst.msk [vmem:[#allocation3 + $0xc8] sm:$0xff] %vm1936_vm11, %v1891_v63  ;;  %v8787_v13 = vld [vmem:[#allocation3 + $0xa8] sm:$0xff]  ;;  %v1897_v14 = vpop.permute.xlu0 %1896 }
 0x2ae   : > { %11511 = vst [vmem:[#allocation32_spill] sm:$0xff] %v8787_v13  ;;  %1995 = vst.msk [vmem:[#allocation3 + $0xc8] sm:$0xff] %vm1969_vm12, %v11321_v32  ;;  %7089 = vmatmul.mubr.msk.f32.gmra.mrb[20].mxu1 %vm2035_vm9, %v8787_v13 }
 0x2af   : > { %7091 = vmatprep.mubr.msk.f32.mxu1 %vm2035_vm9, %v8784_v10  ;;  %1965 = vst.msk [vmem:[#allocation3 + $0xe0] sm:$0xff] %vm1936_vm11, %v1897_v14  ;;  %v8798_v18 = vld [vmem:[#allocation3 + $0xc0] sm:$0xff] }
 0x2b0   : > { %v1895_v17 = vpop.permute.xlu1 %1894  ;;  %1998 = vst.msk [vmem:[#allocation3 + $0xe0] sm:$0xff] %vm1969_vm12, %v11321_v32  ;;  %11512 = vst [vmem:[#allocation33_spill] sm:$0xff] %v8798_v18 }
 0x2b1   : > { %1964 = vst.msk [vmem:[#allocation3 + $0xd8] sm:$0xff] %vm1936_vm11, %v1895_v17  ;;  %v8801_v21 = vld [vmem:[#allocation3 + $0xb8] sm:$0xff]  ;;  %v1901_v48 = vpop.permute.xlu0 %1900 }
 0x2b2   : > { %11513 = vst [vmem:[#allocation34_spill] sm:$0xff] %v8801_v21  ;;  %1997 = vst.msk [vmem:[#allocation3 + $0xd8] sm:$0xff] %vm1969_vm12, %v11321_v32  ;;  %7092 = vmatmul.mubr.msk.f32.gmra.mrb[22].mxu1 %vm2035_vm9, %v8801_v21 }
 0x2b3   : > { %7094 = vmatprep.mubr.msk.f32.mxu1 %vm2035_vm9, %v8798_v18  ;;  %1967 = vst.msk [vmem:[#allocation3 + $0xf0] sm:$0xff] %vm1936_vm11, %v1901_v48  ;;  %v8810_v49 = vld [vmem:[#allocation3 + $0xd0] sm:$0xff] }
 0x2b4   : > { %v1899_v22 = vpop.permute.xlu1 %1898  ;;  %11514 = vst [vmem:[#allocation35_spill] sm:$0xff] %v8810_v49  ;;  %2000 = vst.msk [vmem:[#allocation3 + $0xf0] sm:$0xff] %vm1969_vm12, %v11321_v32 }
 0x2b5   : > { %1966 = vst.msk [vmem:[#allocation3 + $0xe8] sm:$0xff] %vm1936_vm11, %v1899_v22  ;;  %v8815_v45 = vld [vmem:[#allocation3 + $0xc8] sm:$0xff] }
 0x2b6   : > { %11515 = vst [vmem:[#allocation36_spill] sm:$0xff] %v8815_v45  ;;  %1999 = vst.msk [vmem:[#allocation3 + $0xe8] sm:$0xff] %vm1969_vm12, %v11321_v32  ;;  %7095 = vmatmul.mubr.msk.f32.gmra.mrb[24].mxu1 %vm2035_vm9, %v8815_v45 }
 0x2b7   : > { %7097 = vmatprep.mubr.msk.f32.mxu1 %vm2035_vm9, %v8810_v49  ;;  %v8823_v29 = vld [vmem:[#allocation3 + $0xe0] sm:$0xff]  ;;  %2600 = vst.msk [vmem:[#allocation3 + $0x8] sm:$0xff] %vm237_vm0, %v2568_v37  ;;  %2599 = vst.msk [vmem:[#allocation3] sm:$0xff] %vm237_vm0, %v2567_v40 }
 0x2b8   : > { %11516 = vst [vmem:[#allocation37_spill] sm:$0xff] %v8823_v29  ;;  %v1903_v25 = vpop.permute.xlu1 %1902 }
 0x2b9   : > { %v8825_v46 = vld [vmem:[#allocation3 + $0xd8] sm:$0xff]  ;;  %1968 = vst.msk [vmem:[#allocation3 + $0xf8] sm:$0xff] %vm1936_vm11, %v1903_v25 }
 0x2ba   : > { %11517 = vst [vmem:[#allocation38_spill] sm:$0xff] %v8825_v46  ;;  %7098 = vmatmul.mubr.msk.f32.gmra.mrb[26].mxu1 %vm2035_vm9, %v8825_v46  ;;  %2001 = vst.msk [vmem:[#allocation3 + $0xf8] sm:$0xff] %vm1969_vm12, %v11321_v32 }
 0x2bb   : > { %7100 = vmatprep.mubr.msk.f32.mxu1 %vm2035_vm9, %v8823_v29  ;;  %v8834_v35 = vld [vmem:[#allocation3 + $0xf0] sm:$0xff] }
 0x2bc   : > { %11518 = vst [vmem:[#allocation39_spill] sm:$0xff] %v8834_v35 }
 0x2bd   : > { %v8836_v30 = vld [vmem:[#allocation3 + $0xe8] sm:$0xff] }
 0x2be   : > { %11519 = vst [vmem:[#allocation40_spill] sm:$0xff] %v8836_v30  ;;  %7101 = vmatmul.mubr.msk.f32.gmra.mrb[28].mxu1 %vm2035_vm9, %v8836_v30 }
 0x2bf   : > { %7103 = vmatprep.mubr.msk.f32.mxu1 %vm2035_vm9, %v8834_v35 }
 0x2c1   : > { %v8842_v34 = vld [vmem:[#allocation3 + $0xf8] sm:$0xff] }
 0x2c2   : > { %11520 = vst [vmem:[#allocation41_spill] sm:$0xff] %v8842_v34  ;;  %7104 = vmatmul.mubr.msk.f32.gmra.mrb[30].mxu1 %vm2035_vm9, %v8842_v34 }
 0x2ed   : > { %v2698_v54 = vpop.permute.xlu1 %2697 }
 0x2ee   : > { %2793 = vst.msk [vmem:[#allocation3 + $0x8] sm:$0xff] %vm2791_vm13, %v2698_v54 }
 0x2f0   : > { %v2696_v52 = vpop.permute.xlu0 %2695 }
 0x2f1   : > { %2792 = vst.msk [vmem:[#allocation3] sm:$0xff] %vm2791_vm13, %v2696_v52 }
 0x359   : > { %v7060_v58 = vpop.f32.mrb[0].mxu1 }
 0x35a   : > { %vm2439_vm14 = vcmp.gt.f32.partialorder %v7060_v58, 0.0  ;;  %v2471_v0 = vmul.f32 %v7060_v58, %v8852_v59  ;;  %v2279_v62 = vpop.f32.mrb[1].mxu1 }
 0x35b   : > { %vm2438_vm15 = vcmp.gt.f32.partialorder %v2279_v62, 0.0  ;;  %v2470_v4 = vmul.f32 %v2279_v62, %v8852_v59 }
 0x35c   : > { %v2503_v3 = vsel %vm2439_vm14, %v7060_v58, %v2471_v0 }
 0x35d   : > { %2535 = vst.msk [vmem:[#allocation2 + $0x21] sm:$0xff] %vm237_vm0, %v2503_v3  ;;  %v2502_v8 = vsel %vm2438_vm15, %v2279_v62, %v2470_v4  ;;  %v7063_v7 = vpop.f32.mrb[2].mxu1 }
 0x35e   : > { %2534 = vst.msk [vmem:[#allocation2 + $0x19] sm:$0xff] %vm237_vm0, %v2502_v8  ;;  %vm2441_vm1 = vcmp.gt.f32.partialorder %v7063_v7, 0.0  ;;  %v2473_v15 = vmul.f32 %v7063_v7, %v8852_v59  ;;  %v2289_v12 = vpop.f32.mrb[3].mxu1 }
 0x35f   : > { %vm2440_vm2 = vcmp.gt.f32.partialorder %v2289_v12, 0.0  ;;  %v2472_v41 = vmul.f32 %v2289_v12, %v8852_v59 }
 0x360   : > { %v2505_v23 = vsel %vm2441_vm1, %v7063_v7, %v2473_v15 }
 0x361   : > { %2537 = vst.msk [vmem:[#allocation2 + $0x39] sm:$0xff] %vm237_vm0, %v2505_v23  ;;  %v2504_v36 = vsel %vm2440_vm2, %v2289_v12, %v2472_v41  ;;  %v7066_v43 = vpop.f32.mrb[4].mxu1 }
 0x362   : > { %2536 = vst.msk [vmem:[#allocation2 + $0x31] sm:$0xff] %vm237_vm0, %v2504_v36  ;;  %vm2443_vm3 = vcmp.gt.f32.partialorder %v7066_v43, 0.0  ;;  %v2475_v24 = vmul.f32 %v7066_v43, %v8852_v59  ;;  %v2299_v44 = vpop.f32.mrb[5].mxu1 }
 0x363   : > { %vm2442_vm4 = vcmp.gt.f32.partialorder %v2299_v44, 0.0  ;;  %v2474_v31 = vmul.f32 %v2299_v44, %v8852_v59 }
 0x364   : > { %v2507_v50 = vsel %vm2443_vm3, %v7066_v43, %v2475_v24  ;;  %v8864_v56 = vld [vmem:[#allocation2 + $0x21] sm:$0xff] }
 0x365   : > { %2539 = vst.msk [vmem:[#allocation2 + $0x51] sm:$0xff] %vm237_vm0, %v2507_v50  ;;  %v2506_v63 = vsel %vm2442_vm4, %v2299_v44, %v2474_v31  ;;  %2701 = vrot.lane.b32.xlu1 %v8864_v56, %s7455_s17  ;;  %v7069_v14 = vpop.f32.mrb[6].mxu1  ;;  %v8869_v17 = vld [vmem:[#allocation2 + $0x19] sm:$0xff]  ;;  %v9160_v53 = vld [vmem:[#allocation2 + $0x22] sm:$0xff] }
 0x366   : > { %v8871_v48 = vld [vmem:[#allocation2 + $0x20] sm:$0xff]  ;;  %2538 = vst.msk [vmem:[#allocation2 + $0x49] sm:$0xff] %vm237_vm0, %v2506_v63  ;;  %vm2445_vm5 = vcmp.gt.f32.partialorder %v7069_v14, 0.0  ;;  %v2477_v22 = vmul.f32 %v7069_v14, %v8852_v59  ;;  %2699 = vrot.lane.b32.xlu0 %v8869_v17, %s7455_s17  ;;  %v2309_v25 = vpop.f32.mrb[7].mxu1  ;;  %v8879_v38 = vld [vmem:[#allocation2 + $0x18] sm:$0xff]  ;;  %11525 = vst [vmem:[#allocation46_spill] sm:$0xff] %v9160_v53 }
 0x367   : > { %2602 = vst.msk [vmem:[#allocation3 + $0x18] sm:$0xff] %vm237_vm0, %v8871_v48  ;;  %vm2444_vm6 = vcmp.gt.f32.partialorder %v2309_v25, 0.0  ;;  %v2476_v39 = vmul.f32 %v2309_v25, %v8852_v59  ;;  %2601 = vst.msk [vmem:[#allocation3 + $0x10] sm:$0xff] %vm237_vm0, %v8879_v38  ;;  %v9164_v47 = vld [vmem:[#allocation2 + $0x1a] sm:$0xff] }
 0x368   : > { %v2509_v37 = vsel %vm2445_vm5, %v7069_v14, %v2477_v22  ;;  %v8884_v40 = vld [vmem:[#allocation2 + $0x39] sm:$0xff]  ;;  %11526 = vst [vmem:[#allocation47_spill] sm:$0xff] %v9164_v47 }
 0x369   : > { %2541 = vst.msk [vmem:[#allocation2 + $0x69] sm:$0xff] %vm237_vm0, %v2509_v37  ;;  %v2508_v54 = vsel %vm2444_vm6, %v2309_v25, %v2476_v39  ;;  %2705 = vrot.lane.b32.xlu1 %v8884_v40, %s7455_s17  ;;  %v7072_v52 = vpop.f32.mrb[8].mxu1  ;;  %v8889_v58 = vld [vmem:[#allocation2 + $0x31] sm:$0xff] }
 0x36a   : > { %v8891_v0 = vld [vmem:[#allocation2 + $0x38] sm:$0xff]  ;;  %2540 = vst.msk [vmem:[#allocation2 + $0x61] sm:$0xff] %vm237_vm0, %v2508_v54  ;;  %vm2447_vm7 = vcmp.gt.f32.partialorder %v7072_v52, 0.0  ;;  %v2479_v62 = vmul.f32 %v7072_v52, %v8852_v59  ;;  %2703 = vrot.lane.b32.xlu0 %v8889_v58, %s7455_s17  ;;  %v2319_v4 = vpop.f32.mrb[9].mxu1  ;;  %v8899_v3 = vld [vmem:[#allocation2 + $0x30] sm:$0xff] }
 0x36b   : > { %2604 = vst.msk [vmem:[#allocation3 + $0x28] sm:$0xff] %vm237_vm0, %v8891_v0  ;;  %vm2446_vm8 = vcmp.gt.f32.partialorder %v2319_v4, 0.0  ;;  %v2478_v8 = vmul.f32 %v2319_v4, %v8852_v59  ;;  %2603 = vst.msk [vmem:[#allocation3 + $0x20] sm:$0xff] %vm237_vm0, %v8899_v3 }
 0x36c   : > { %v2511_v7 = vsel %vm2447_vm7, %v7072_v52, %v2479_v62  ;;  %v8904_v15 = vld [vmem:[#allocation2 + $0x51] sm:$0xff] }
 0x36d   : > { %2543 = vst.msk [vmem:[#allocation2 + $0x81] sm:$0xff] %vm237_vm0, %v2511_v7  ;;  %v2510_v12 = vsel %vm2446_vm8, %v2319_v4, %v2478_v8  ;;  %2709 = vrot.lane.b32.xlu1 %v8904_v15, %s7455_s17  ;;  %v7075_v41 = vpop.f32.mrb[10].mxu1  ;;  %v8909_v23 = vld [vmem:[#allocation2 + $0x49] sm:$0xff] }
 0x36e   : > { %v8911_v36 = vld [vmem:[#allocation2 + $0x50] sm:$0xff]  ;;  %2542 = vst.msk [vmem:[#allocation2 + $0x79] sm:$0xff] %vm237_vm0, %v2510_v12  ;;  %vm2449_vm10 = vcmp.gt.f32.partialorder %v7075_v41, 0.0  ;;  %v2481_v43 = vmul.f32 %v7075_v41, %v8852_v59  ;;  %2707 = vrot.lane.b32.xlu0 %v8909_v23, %s7455_s17  ;;  %v2329_v24 = vpop.f32.mrb[11].mxu1  ;;  %v8919_v44 = vld [vmem:[#allocation2 + $0x48] sm:$0xff] }
 0x36f   : > { %2606 = vst.msk [vmem:[#allocation3 + $0x38] sm:$0xff] %vm237_vm0, %v8911_v36  ;;  %vm2448_vm11 = vcmp.gt.f32.partialorder %v2329_v24, 0.0  ;;  %v2480_v31 = vmul.f32 %v2329_v24, %v8852_v59  ;;  %2605 = vst.msk [vmem:[#allocation3 + $0x30] sm:$0xff] %vm237_vm0, %v8919_v44 }
 0x370   : > { %v2513_v50 = vsel %vm2449_vm10, %v7075_v41, %v2481_v43  ;;  %v8924_v63 = vld [vmem:[#allocation2 + $0x69] sm:$0xff] }
 0x371   : > { %2545 = vst.msk [vmem:[#allocation2 + $0x99] sm:$0xff] %vm237_vm0, %v2513_v50  ;;  %v2512_v14 = vsel %vm2448_vm11, %v2329_v24, %v2480_v31  ;;  %2713 = vrot.lane.b32.xlu1 %v8924_v63, %s7455_s17  ;;  %v7078_v22 = vpop.f32.mrb[12].mxu1  ;;  %v8929_v25 = vld [vmem:[#allocation2 + $0x61] sm:$0xff] }
 0x372   : > { %v8931_v39 = vld [vmem:[#allocation2 + $0x68] sm:$0xff]  ;;  %2544 = vst.msk [vmem:[#allocation2 + $0x91] sm:$0xff] %vm237_vm0, %v2512_v14  ;;  %vm2451_vm12 = vcmp.gt.f32.partialorder %v7078_v22, 0.0  ;;  %v2483_v37 = vmul.f32 %v7078_v22, %v8852_v59  ;;  %2711 = vrot.lane.b32.xlu0 %v8929_v25, %s7455_s17  ;;  %v2339_v54 = vpop.f32.mrb[13].mxu1  ;;  %v8939_v52 = vld [vmem:[#allocation2 + $0x60] sm:$0xff] }
 0x373   : > { %2608 = vst.msk [vmem:[#allocation3 + $0x48] sm:$0xff] %vm237_vm0, %v8931_v39  ;;  %vm2450_vm14 = vcmp.gt.f32.partialorder %v2339_v54, 0.0  ;;  %v2482_v62 = vmul.f32 %v2339_v54, %v8852_v59  ;;  %2607 = vst.msk [vmem:[#allocation3 + $0x40] sm:$0xff] %vm237_vm0, %v8939_v52 }
 0x374   : > { %v2515_v4 = vsel %vm2451_vm12, %v7078_v22, %v2483_v37  ;;  %v8944_v8 = vld [vmem:[#allocation2 + $0x81] sm:$0xff] }
 0x375   : > { %2547 = vst.msk [vmem:[#allocation2 + $0xb1] sm:$0xff] %vm237_vm0, %v2515_v4  ;;  %v2514_v7 = vsel %vm2450_vm14, %v2339_v54, %v2482_v62  ;;  %2717 = vrot.lane.b32.xlu1 %v8944_v8, %s7455_s17  ;;  %v7081_v12 = vpop.f32.mrb[14].mxu1  ;;  %v8949_v41 = vld [vmem:[#allocation2 + $0x79] sm:$0xff] }
 0x376   : > { %v8951_v43 = vld [vmem:[#allocation2 + $0x80] sm:$0xff]  ;;  %2546 = vst.msk [vmem:[#allocation2 + $0xa9] sm:$0xff] %vm237_vm0, %v2514_v7  ;;  %vm2453_vm15 = vcmp.gt.f32.partialorder %v7081_v12, 0.0  ;;  %v2485_v24 = vmul.f32 %v7081_v12, %v8852_v59  ;;  %2715 = vrot.lane.b32.xlu0 %v8949_v41, %s7455_s17  ;;  %v2349_v31 = vpop.f32.mrb[15].mxu1  ;;  %v8959_v50 = vld [vmem:[#allocation2 + $0x78] sm:$0xff] }
 0x377   : > { %2610 = vst.msk [vmem:[#allocation3 + $0x58] sm:$0xff] %vm237_vm0, %v8951_v43  ;;  %vm2452_vm1 = vcmp.gt.f32.partialorder %v2349_v31, 0.0  ;;  %v2484_v14 = vmul.f32 %v2349_v31, %v8852_v59  ;;  %2609 = vst.msk [vmem:[#allocation3 + $0x50] sm:$0xff] %vm237_vm0, %v8959_v50 }
 0x378   : > { %v2517_v22 = vsel %vm2453_vm15, %v7081_v12, %v2485_v24  ;;  %v8964_v37 = vld [vmem:[#allocation2 + $0x99] sm:$0xff] }
 0x379   : > { %2549 = vst.msk [vmem:[#allocation2 + $0xc9] sm:$0xff] %vm237_vm0, %v2517_v22  ;;  %v2516_v54 = vsel %vm2452_vm1, %v2349_v31, %v2484_v14  ;;  %2721 = vrot.lane.b32.xlu1 %v8964_v37, %s7455_s17  ;;  %v7084_v62 = vpop.f32.mrb[16].mxu1  ;;  %v8969_v4 = vld [vmem:[#allocation2 + $0x91] sm:$0xff] }
 0x37a   : > { %v8971_v7 = vld [vmem:[#allocation2 + $0x98] sm:$0xff]  ;;  %2548 = vst.msk [vmem:[#allocation2 + $0xc1] sm:$0xff] %vm237_vm0, %v2516_v54  ;;  %vm2455_vm2 = vcmp.gt.f32.partialorder %v7084_v62, 0.0  ;;  %v2487_v32 = vmul.f32 %v7084_v62, %v8852_v59  ;;  %2719 = vrot.lane.b32.xlu0 %v8969_v4, %s7455_s17  ;;  %v2359_v12 = vpop.f32.mrb[17].mxu1  ;;  %v8979_v24 = vld [vmem:[#allocation2 + $0x90] sm:$0xff] }
 0x37b   : > { %2612 = vst.msk [vmem:[#allocation3 + $0x68] sm:$0xff] %vm237_vm0, %v8971_v7  ;;  %vm2454_vm3 = vcmp.gt.f32.partialorder %v2359_v12, 0.0  ;;  %v2486_v31 = vmul.f32 %v2359_v12, %v8852_v59  ;;  %2611 = vst.msk [vmem:[#allocation3 + $0x60] sm:$0xff] %vm237_vm0, %v8979_v24 }
 0x37c   : > { %v2519_v14 = vsel %vm2455_vm2, %v7084_v62, %v2487_v32  ;;  %v8984_v22 = vld [vmem:[#allocation2 + $0xb1] sm:$0xff] }
 0x37d   : > { %2551 = vst.msk [vmem:[#allocation2 + $0xe1] sm:$0xff] %vm237_vm0, %v2519_v14  ;;  %v2518_v54 = vsel %vm2454_vm3, %v2359_v12, %v2486_v31  ;;  %2725 = vrot.lane.b32.xlu1 %v8984_v22, %s7455_s17  ;;  %v7087_v28 = vpop.f32.mrb[18].mxu1  ;;  %v8989_v20 = vld [vmem:[#allocation2 + $0xa9] sm:$0xff] }
 0x37e   : > { %v8991_v34 = vld [vmem:[#allocation2 + $0xb0] sm:$0xff]  ;;  %2550 = vst.msk [vmem:[#allocation2 + $0xd9] sm:$0xff] %vm237_vm0, %v2518_v54  ;;  %vm2457_vm4 = vcmp.gt.f32.partialorder %v7087_v28, 0.0  ;;  %v2489_v35 = vmul.f32 %v7087_v28, %v8852_v59  ;;  %2723 = vrot.lane.b32.xlu0 %v8989_v20, %s7455_s17  ;;  %v2369_v32 = vpop.f32.mrb[19].mxu1  ;;  %v8999_v62 = vld [vmem:[#allocation2 + $0xa8] sm:$0xff] }
 0x37f   : > { %2614 = vst.msk [vmem:[#allocation3 + $0x78] sm:$0xff] %vm237_vm0, %v8991_v34  ;;  %vm2456_vm5 = vcmp.gt.f32.partialorder %v2369_v32, 0.0  ;;  %v2488_v12 = vmul.f32 %v2369_v32, %v8852_v59  ;;  %2613 = vst.msk [vmem:[#allocation3 + $0x70] sm:$0xff] %vm237_vm0, %v8999_v62 }
 0x380   : > { %v2521_v31 = vsel %vm2457_vm4, %v7087_v28, %v2489_v35  ;;  %v9004_v14 = vld [vmem:[#allocation2 + $0xc9] sm:$0xff] }
 0x381   : > { %2553 = vst.msk [vmem:[#allocation2 + $0xf9] sm:$0xff] %vm237_vm0, %v2521_v31  ;;  %v2520_v54 = vsel %vm2456_vm5, %v2369_v32, %v2488_v12  ;;  %2729 = vrot.lane.b32.xlu1 %v9004_v14, %s7455_s17  ;;  %v7090_v42 = vpop.f32.mrb[20].mxu1  ;;  %v9009_v19 = vld [vmem:[#allocation2 + $0xc1] sm:$0xff]  ;;  %vm2984_vm5 = vcmask 195712  }
 0x382   : > { %v9011_v30 = vld [vmem:[#allocation2 + $0xc8] sm:$0xff]  ;;  %2552 = vst.msk [vmem:[#allocation2 + $0xf1] sm:$0xff] %vm237_vm0, %v2520_v54  ;;  %vm2459_vm6 = vcmp.gt.f32.partialorder %v7090_v42, 0.0  ;;  %v2491_v29 = vmul.f32 %v7090_v42, %v8852_v59  ;;  %2727 = vrot.lane.b32.xlu0 %v9009_v19, %s7455_s17  ;;  %v2379_v28 = vpop.f32.mrb[21].mxu1  ;;  %v9019_v35 = vld [vmem:[#allocation2 + $0xc0] sm:$0xff] }
 0x383   : > { %2616 = vst.msk [vmem:[#allocation3 + $0x88] sm:$0xff] %vm237_vm0, %v9011_v30  ;;  %vm2458_vm7 = vcmp.gt.f32.partialorder %v2379_v28, 0.0  ;;  %v2490_v32 = vmul.f32 %v2379_v28, %v8852_v59  ;;  %2615 = vst.msk [vmem:[#allocation3 + $0x80] sm:$0xff] %vm237_vm0, %v9019_v35 }
 0x384   : > { %v2523_v12 = vsel %vm2459_vm6, %v7090_v42, %v2491_v29  ;;  %v9024_v31 = vld [vmem:[#allocation2 + $0xe1] sm:$0xff]  ;;  %vm3177_vm6 = vcmask 261312  }
 0x385   : > { %2555 = vst.msk [vmem:[#allocation2 + $0x111] sm:$0xff] %vm237_vm0, %v2523_v12  ;;  %v2522_v54 = vsel %vm2458_vm7, %v2379_v28, %v2490_v32  ;;  %2733 = vrot.lane.b32.xlu1 %v9024_v31, %s7455_s17  ;;  %v7093_v16 = vpop.f32.mrb[22].mxu1  ;;  %v9029_v11 = vld [vmem:[#allocation2 + $0xd9] sm:$0xff]  ;;  %vm3370_vm7 = vcmask 326912  }
 0x386   : > { %v9031_v46 = vld [vmem:[#allocation2 + $0xe0] sm:$0xff]  ;;  %2554 = vst.msk [vmem:[#allocation2 + $0x109] sm:$0xff] %vm237_vm0, %v2522_v54  ;;  %vm2461_vm8 = vcmp.gt.f32.partialorder %v7093_v16, 0.0  ;;  %v2493_v49 = vmul.f32 %v7093_v16, %v8852_v59  ;;  %2731 = vrot.lane.b32.xlu0 %v9029_v11, %s7455_s17  ;;  %v2389_v42 = vpop.f32.mrb[23].mxu1  ;;  %v9039_v29 = vld [vmem:[#allocation2 + $0xd8] sm:$0xff] }
 0x387   : > { %2618 = vst.msk [vmem:[#allocation3 + $0x98] sm:$0xff] %vm237_vm0, %v9031_v46  ;;  %vm2460_vm10 = vcmp.gt.f32.partialorder %v2389_v42, 0.0  ;;  %v2492_v28 = vmul.f32 %v2389_v42, %v8852_v59  ;;  %2617 = vst.msk [vmem:[#allocation3 + $0x90] sm:$0xff] %vm237_vm0, %v9039_v29 }
 0x388   : > { %v2525_v32 = vsel %vm2461_vm8, %v7093_v16, %v2493_v49  ;;  %v9044_v12 = vld [vmem:[#allocation2 + $0xf9] sm:$0xff]  ;;  %vm3563_vm8 = vcmask 392512  }
 0x389   : > { %2557 = vst.msk [vmem:[#allocation2 + $0x129] sm:$0xff] %vm237_vm0, %v2525_v32  ;;  %v2524_v54 = vsel %vm2460_vm10, %v2389_v42, %v2492_v28  ;;  %2737 = vrot.lane.b32.xlu1 %v9044_v12, %s7455_s17  ;;  %v7096_v9 = vpop.f32.mrb[24].mxu1  ;;  %v9049_v6 = vld [vmem:[#allocation2 + $0xf1] sm:$0xff]  ;;  %vm9647_vm10 = vmpackc.low %vm2035_vm9, %vm2035_vm9 }
 0x38a   : > { %v9051_v45 = vld [vmem:[#allocation2 + $0xf8] sm:$0xff]  ;;  %2556 = vst.msk [vmem:[#allocation2 + $0x121] sm:$0xff] %vm237_vm0, %v2524_v54  ;;  %vm2463_vm11 = vcmp.gt.f32.partialorder %v7096_v9, 0.0  ;;  %v2495_v18 = vmul.f32 %v7096_v9, %v8852_v59  ;;  %2735 = vrot.lane.b32.xlu0 %v9049_v6, %s7455_s17  ;;  %v2399_v16 = vpop.f32.mrb[25].mxu1  ;;  %v9059_v49 = vld [vmem:[#allocation2 + $0xf0] sm:$0xff] }
 0x38b   : > { %2620 = vst.msk [vmem:[#allocation3 + $0xa8] sm:$0xff] %vm237_vm0, %v9051_v45  ;;  %vm2462_vm12 = vcmp.gt.f32.partialorder %v2399_v16, 0.0  ;;  %v2494_v42 = vmul.f32 %v2399_v16, %v8852_v59  ;;  %2619 = vst.msk [vmem:[#allocation3 + $0xa0] sm:$0xff] %vm237_vm0, %v9059_v49 }
 0x38c   : > { %v2527_v28 = vsel %vm2463_vm11, %v7096_v9, %v2495_v18  ;;  %v9064_v32 = vld [vmem:[#allocation2 + $0x111] sm:$0xff]  ;;  %vm3756_vm11 = vcmask 458112  }
 0x38d   : > { %2559 = vst.msk [vmem:[#allocation2 + $0x141] sm:$0xff] %vm237_vm0, %v2527_v28  ;;  %v2526_v54 = vsel %vm2462_vm12, %v2399_v16, %v2494_v42  ;;  %2741 = vrot.lane.b32.xlu1 %v9064_v32, %s7455_s17  ;;  %v7099_v5 = vpop.f32.mrb[26].mxu1  ;;  %v9069_v2 = vld [vmem:[#allocation2 + $0x109] sm:$0xff]  ;;  %vm4241_vm12 = vcmask 596992  }
 0x38e   : > { %v9071_v21 = vld [vmem:[#allocation2 + $0x110] sm:$0xff]  ;;  %2558 = vst.msk [vmem:[#allocation2 + $0x139] sm:$0xff] %vm237_vm0, %v2526_v54  ;;  %vm2465_vm14 = vcmp.gt.f32.partialorder %v7099_v5, 0.0  ;;  %v2497_v10 = vmul.f32 %v7099_v5, %v8852_v59  ;;  %2739 = vrot.lane.b32.xlu0 %v9069_v2, %s7455_s17  ;;  %v2409_v9 = vpop.f32.mrb[27].mxu1  ;;  %v9079_v18 = vld [vmem:[#allocation2 + $0x108] sm:$0xff] }
 0x38f   : > { %2622 = vst.msk [vmem:[#allocation3 + $0xb8] sm:$0xff] %vm237_vm0, %v9071_v21  ;;  %vm2464_vm15 = vcmp.gt.f32.partialorder %v2409_v9, 0.0  ;;  %v2496_v16 = vmul.f32 %v2409_v9, %v8852_v59  ;;  %2621 = vst.msk [vmem:[#allocation3 + $0xb0] sm:$0xff] %vm237_vm0, %v9079_v18 }
 0x390   : > { %v2529_v42 = vsel %vm2465_vm14, %v7099_v5, %v2497_v10  ;;  %v9084_v28 = vld [vmem:[#allocation2 + $0x129] sm:$0xff]  ;;  %vm4142_vm14 = vcmask 589312  }
 0x391   : > { %2561 = vst.msk [vmem:[#allocation2 + $0x159] sm:$0xff] %vm237_vm0, %v2529_v42  ;;  %v2528_v54 = vsel %vm2464_vm15, %v2409_v9, %v2496_v16  ;;  %2745 = vrot.lane.b32.xlu1 %v9084_v28, %s7455_s17  ;;  %v7102_v1 = vpop.f32.mrb[28].mxu1  ;;  %v9089_v61 = vld [vmem:[#allocation2 + $0x121] sm:$0xff]  ;;  %vm4175_vm15 = vcmask 597568  }
 0x392   : > { %v9091_v13 = vld [vmem:[#allocation2 + $0x128] sm:$0xff]  ;;  %2560 = vst.msk [vmem:[#allocation2 + $0x151] sm:$0xff] %vm237_vm0, %v2528_v54  ;;  %vm2467_vm1 = vcmp.gt.f32.partialorder %v7102_v1, 0.0  ;;  %v2499_v33 = vmul.f32 %v7102_v1, %v8852_v59  ;;  %2743 = vrot.lane.b32.xlu0 %v9089_v61, %s7455_s17  ;;  %v2419_v5 = vpop.f32.mrb[29].mxu1  ;;  %v9099_v10 = vld [vmem:[#allocation2 + $0x120] sm:$0xff] }
 0x393   : > { %2624 = vst.msk [vmem:[#allocation3 + $0xc8] sm:$0xff] %vm237_vm0, %v9091_v13  ;;  %vm2466_vm2 = vcmp.gt.f32.partialorder %v2419_v5, 0.0  ;;  %v2498_v9 = vmul.f32 %v2419_v5, %v8852_v59  ;;  %2623 = vst.msk [vmem:[#allocation3 + $0xc0] sm:$0xff] %vm237_vm0, %v9099_v10 }
 0x394   : > { %v2531_v16 = vsel %vm2467_vm1, %v7102_v1, %v2499_v33  ;;  %v9104_v42 = vld [vmem:[#allocation2 + $0x141] sm:$0xff] }
 0x395   : > { %2563 = vst.msk [vmem:[#allocation2 + $0x171] sm:$0xff] %vm237_vm0, %v2531_v16  ;;  %v2530_v54 = vsel %vm2466_vm2, %v2419_v5, %v2498_v9  ;;  %2749 = vrot.lane.b32.xlu1 %v9104_v42, %s7455_s17  ;;  %v9109_v60 = vld [vmem:[#allocation2 + $0x139] sm:$0xff]  ;;  %v7105_v55 = vpop.f32.mrb[30].mxu1 }
 0x396   : > { %v9111_v57 = vld [vmem:[#allocation2 + $0x140] sm:$0xff]  ;;  %2562 = vst.msk [vmem:[#allocation2 + $0x169] sm:$0xff] %vm237_vm0, %v2530_v54  ;;  %2747 = vrot.lane.b32.xlu0 %v9109_v60, %s7455_s17  ;;  %v9118_v1 = vld [vmem:[#allocation2 + $0x138] sm:$0xff]  ;;  %vm2469_vm3 = vcmp.gt.f32.partialorder %v7105_v55, 0.0  ;;  %v2501_v33 = vmul.f32 %v7105_v55, %v8852_v59  ;;  %v2429_v5 = vpop.f32.mrb[31].mxu1 }
 0x397   : > { %2626 = vst.msk [vmem:[#allocation3 + $0xd8] sm:$0xff] %vm237_vm0, %v9111_v57  ;;  %2625 = vst.msk [vmem:[#allocation3 + $0xd0] sm:$0xff] %vm237_vm0, %v9118_v1  ;;  %vm2468_vm4 = vcmp.gt.f32.partialorder %v2429_v5, 0.0  ;;  %v2500_v9 = vmul.f32 %v2429_v5, %v8852_v59 }
 0x398   : > { %v9124_v16 = vld [vmem:[#allocation2 + $0x159] sm:$0xff]  ;;  %v2533_v54 = vsel %vm2469_vm3, %v7105_v55, %v2501_v33 }
 0x399   : > { %2753 = vrot.lane.b32.xlu1 %v9124_v16, %s7455_s17  ;;  %v9128_v51 = vld [vmem:[#allocation2 + $0x151] sm:$0xff]  ;;  %2565 = vst.msk [vmem:[#allocation2 + $0x189] sm:$0xff] %vm237_vm0, %v2533_v54  ;;  %v2532_v26 = vsel %vm2468_vm4, %v2429_v5, %v2500_v9  ;;  %v2824_v54 = vld [vmem:[#allocation2 + $0x2] sm:$0xff] }
 0x39a   : > { %11522 = vst [vmem:[#allocation43_spill] sm:$0xff] %v9128_v51  ;;  %v9130_v27 = vld [vmem:[#allocation2 + $0x158] sm:$0xff]  ;;  %2751 = vrot.lane.b32.xlu0 %v9128_v51, %s7455_s17  ;;  %v9137_v59 = vld [vmem:[#allocation2 + $0x150] sm:$0xff]  ;;  %2564 = vst.msk [vmem:[#allocation2 + $0x181] sm:$0xff] %vm237_vm0, %v2532_v26 }
 0x39b   : > { %2628 = vst.msk [vmem:[#allocation3 + $0xe8] sm:$0xff] %vm237_vm0, %v9130_v27  ;;  %2627 = vst.msk [vmem:[#allocation3 + $0xe0] sm:$0xff] %vm237_vm0, %v9137_v59  ;;  %v2825_v9 = vld [vmem:[#allocation2 + $0xa] sm:$0xff] }
 0x39c   : > { %v9142_v55 = vld [vmem:[#allocation2 + $0x171] sm:$0xff] }
 0x39d   : > { %11523 = vst [vmem:[#allocation44_spill] sm:$0xff] %v9142_v55  ;;  %2757 = vrot.lane.b32.xlu1 %v9142_v55, %s7455_s17  ;;  %v9146_v33 = vld [vmem:[#allocation2 + $0x169] sm:$0xff]  ;;  %v9172_v55 = vld [vmem:[#allocation2 + $0x32] sm:$0xff] }
 0x39e   : > { %11524 = vst [vmem:[#allocation45_spill] sm:$0xff] %v9146_v33  ;;  %v9148_v5 = vld [vmem:[#allocation2 + $0x170] sm:$0xff]  ;;  %2755 = vrot.lane.b32.xlu0 %v9146_v33, %s7455_s17  ;;  %v9154_v26 = vld [vmem:[#allocation2 + $0x168] sm:$0xff]  ;;  %v9168_v33 = vld [vmem:[#allocation2 + $0x3a] sm:$0xff] }
 0x39f   : > { %2630 = vst.msk [vmem:[#allocation3 + $0xf8] sm:$0xff] %vm237_vm0, %v9148_v5  ;;  %2629 = vst.msk [vmem:[#allocation3 + $0xf0] sm:$0xff] %vm237_vm0, %v9154_v26  ;;  %v9275_v51 = vld [vmem:[#allocation2 + $0x172] sm:$0xff] }
 0x3a0   : > { %11527 = vst [vmem:[#allocation48_spill] sm:$0xff] %v9168_v33  ;;  %11528 = vst [vmem:[#allocation49_spill] sm:$0xff] %v9172_v55 }
 0x3a1   : > { %2890 = vrot.lane.b32.xlu1 %v2825_v9, %s7457_s25  ;;  %v9176_v9 = vld [vmem:[#allocation2 + $0x52] sm:$0xff] }
 0x3a2   : > { %2888 = vrot.lane.b32.xlu0 %v2824_v54, %s7457_s25  ;;  %11529 = vst [vmem:[#allocation50_spill] sm:$0xff] %v9176_v9  ;;  %v9180_v54 = vld [vmem:[#allocation2 + $0x4a] sm:$0xff] }
 0x3a3   : > { %11530 = vst [vmem:[#allocation51_spill] sm:$0xff] %v9180_v54 }
 0x3a5   : > { %2894 = vrot.lane.b32.xlu1 %v9160_v53, %s7457_s25 }
 0x3a6   : > { %2892 = vrot.lane.b32.xlu0 %v9164_v47, %s7457_s25  ;;  %v9184_v47 = vld [vmem:[#allocation2 + $0x6a] sm:$0xff] }
 0x3a7   : > { %11531 = vst [vmem:[#allocation52_spill] sm:$0xff] %v9184_v47 }
 0x3a9   : > { %2898 = vrot.lane.b32.xlu1 %v9168_v33, %s7457_s25  ;;  %v9188_v33 = vld [vmem:[#allocation2 + $0x62] sm:$0xff] }
 0x3aa   : > { %2896 = vrot.lane.b32.xlu0 %v9172_v55, %s7457_s25  ;;  %11532 = vst [vmem:[#allocation53_spill] sm:$0xff] %v9188_v33  ;;  %v9192_v55 = vld [vmem:[#allocation2 + $0x82] sm:$0xff] }
 0x3ab   : > { %11533 = vst [vmem:[#allocation54_spill] sm:$0xff] %v9192_v55 }
 0x3ad   : > { %2902 = vrot.lane.b32.xlu1 %v9176_v9, %s7457_s25  ;;  %v9196_v9 = vld [vmem:[#allocation2 + $0x7a] sm:$0xff] }
 0x3ae   : > { %2900 = vrot.lane.b32.xlu0 %v9180_v54, %s7457_s25  ;;  %11534 = vst [vmem:[#allocation55_spill] sm:$0xff] %v9196_v9  ;;  %v9200_v54 = vld [vmem:[#allocation2 + $0x9a] sm:$0xff] }
 0x3af   : > { %11535 = vst [vmem:[#allocation56_spill] sm:$0xff] %v9200_v54 }
 0x3b1   : > { %2906 = vrot.lane.b32.xlu1 %v9184_v47, %s7457_s25  ;;  %v9204_v47 = vld [vmem:[#allocation2 + $0x92] sm:$0xff] }
 0x3b2   : > { %2904 = vrot.lane.b32.xlu0 %v9188_v33, %s7457_s25  ;;  %11536 = vst [vmem:[#allocation57_spill] sm:$0xff] %v9204_v47  ;;  %v9208_v33 = vld [vmem:[#allocation2 + $0xb2] sm:$0xff] }
 0x3b3   : > { %11537 = vst [vmem:[#allocation58_spill] sm:$0xff] %v9208_v33 }
 0x3b5   : > { %2910 = vrot.lane.b32.xlu1 %v9192_v55, %s7457_s25  ;;  %v9212_v55 = vld [vmem:[#allocation2 + $0xaa] sm:$0xff] }
 0x3b6   : > { %2908 = vrot.lane.b32.xlu0 %v9196_v9, %s7457_s25  ;;  %11538 = vst [vmem:[#allocation59_spill] sm:$0xff] %v9212_v55  ;;  %v9216_v9 = vld [vmem:[#allocation2 + $0xca] sm:$0xff] }
 0x3b7   : > { %11539 = vst [vmem:[#allocation60_spill] sm:$0xff] %v9216_v9 }
 0x3b9   : > { %2914 = vrot.lane.b32.xlu1 %v9200_v54, %s7457_s25  ;;  %v9220_v54 = vld [vmem:[#allocation2 + $0xc2] sm:$0xff] }
 0x3ba   : > { %2912 = vrot.lane.b32.xlu0 %v9204_v47, %s7457_s25  ;;  %11540 = vst [vmem:[#allocation61_spill] sm:$0xff] %v9220_v54  ;;  %v9224_v47 = vld [vmem:[#allocation2 + $0xe2] sm:$0xff] }
 0x3bb   : > { %11541 = vst [vmem:[#allocation62_spill] sm:$0xff] %v9224_v47 }
 0x3bd   : > { %2918 = vrot.lane.b32.xlu1 %v9208_v33, %s7457_s25  ;;  %v9228_v33 = vld [vmem:[#allocation2 + $0xda] sm:$0xff] }
 0x3be   : > { %2916 = vrot.lane.b32.xlu0 %v9212_v55, %s7457_s25  ;;  %11542 = vst [vmem:[#allocation63_spill] sm:$0xff] %v9228_v33  ;;  %v9232_v55 = vld [vmem:[#allocation2 + $0xfa] sm:$0xff] }
 0x3bf   : > { %11543 = vst [vmem:[#allocation64_spill] sm:$0xff] %v9232_v55 }
 0x3c1   : > { %2922 = vrot.lane.b32.xlu1 %v9216_v9, %s7457_s25  ;;  %v9236_v9 = vld [vmem:[#allocation2 + $0xf2] sm:$0xff] }
 0x3c2   : > { %2920 = vrot.lane.b32.xlu0 %v9220_v54, %s7457_s25  ;;  %11544 = vst [vmem:[#allocation65_spill] sm:$0xff] %v9236_v9  ;;  %v9240_v54 = vld [vmem:[#allocation2 + $0x112] sm:$0xff] }
 0x3c3   : > { %11545 = vst [vmem:[#allocation66_spill] sm:$0xff] %v9240_v54 }
 0x3c5   : > { %2926 = vrot.lane.b32.xlu1 %v9224_v47, %s7457_s25  ;;  %v9244_v47 = vld [vmem:[#allocation2 + $0x10a] sm:$0xff] }
 0x3c6   : > { %2924 = vrot.lane.b32.xlu0 %v9228_v33, %s7457_s25  ;;  %11546 = vst [vmem:[#allocation67_spill] sm:$0xff] %v9244_v47  ;;  %v9248_v33 = vld [vmem:[#allocation2 + $0x12a] sm:$0xff] }
 0x3c7   : > { %11547 = vst [vmem:[#allocation68_spill] sm:$0xff] %v9248_v33 }
 0x3c9   : > { %2930 = vrot.lane.b32.xlu1 %v9232_v55, %s7457_s25  ;;  %v9252_v55 = vld [vmem:[#allocation2 + $0x122] sm:$0xff] }
 0x3ca   : > { %2928 = vrot.lane.b32.xlu0 %v9236_v9, %s7457_s25  ;;  %11548 = vst [vmem:[#allocation69_spill] sm:$0xff] %v9252_v55  ;;  %v9256_v9 = vld [vmem:[#allocation2 + $0x142] sm:$0xff] }
 0x3cb   : > { %11549 = vst [vmem:[#allocation70_spill] sm:$0xff] %v9256_v9 }
 0x3cd   : > { %2934 = vrot.lane.b32.xlu1 %v9240_v54, %s7457_s25  ;;  %v9260_v54 = vld [vmem:[#allocation2 + $0x13a] sm:$0xff] }
 0x3ce   : > { %2932 = vrot.lane.b32.xlu0 %v9244_v47, %s7457_s25  ;;  %11550 = vst [vmem:[#allocation71_spill] sm:$0xff] %v9260_v54 }
 0x3d1   : > { %2938 = vrot.lane.b32.xlu1 %v9248_v33, %s7457_s25  ;;  %v9265_v33 = vld [vmem:[#allocation2 + $0x15a] sm:$0xff] }
 0x3d2   : > { %2936 = vrot.lane.b32.xlu0 %v9252_v55, %s7457_s25  ;;  %v9270_v55 = vld [vmem:[#allocation2 + $0x152] sm:$0xff] }
 0x3d3   : > { %11551 = vst [vmem:[#allocation72_spill] sm:$0xff] %v9270_v55 }
 0x3d5   : > { %2942 = vrot.lane.b32.xlu1 %v9256_v9, %s7457_s25 }
 0x3d6   : > { %2940 = vrot.lane.b32.xlu0 %v9260_v54, %s7457_s25 }
 0x3d7   : > { %v2702_v47 = vpop.permute.xlu1 %2701 }
 0x3d8   : > { %2795 = vst.msk [vmem:[#allocation3 + $0x18] sm:$0xff] %vm2791_vm13, %v2702_v47  ;;  %v2700_v53 = vpop.permute.xlu0 %2699  ;;  %v9280_v47 = vld [vmem:[#allocation2 + $0x16a] sm:$0xff] }
 0x3d9   : > { %2794 = vst.msk [vmem:[#allocation3 + $0x10] sm:$0xff] %vm2791_vm13, %v2700_v53  ;;  %2946 = vrot.lane.b32.xlu1 %v9265_v33, %s7457_s25 }
 0x3da   : > { %2944 = vrot.lane.b32.xlu0 %v9270_v55, %s7457_s25 }
 0x3db   : > { %v2706_v9 = vpop.permute.xlu1 %2705 }
 0x3dc   : > { %2797 = vst.msk [vmem:[#allocation3 + $0x28] sm:$0xff] %vm2791_vm13, %v2706_v9  ;;  %v2704_v54 = vpop.permute.xlu0 %2703 }
 0x3dd   : > { %2796 = vst.msk [vmem:[#allocation3 + $0x20] sm:$0xff] %vm2791_vm13, %v2704_v54  ;;  %2950 = vrot.lane.b32.xlu1 %v9275_v51, %s7457_s25 }
 0x3de   : > { %2948 = vrot.lane.b32.xlu0 %v9280_v47, %s7457_s25 }
 0x3df   : > { %v2710_v53 = vpop.permute.xlu1 %2709 }
 0x3e0   : > { %2799 = vst.msk [vmem:[#allocation3 + $0x38] sm:$0xff] %vm2791_vm13, %v2710_v53  ;;  %v2708_v55 = vpop.permute.xlu0 %2707 }
 0x3e1   : > { %2798 = vst.msk [vmem:[#allocation3 + $0x30] sm:$0xff] %vm2791_vm13, %v2708_v55  ;;  %3083 = vrot.lane.b32.xlu1 %v8871_v48, %s7459_s30 }
 0x3e2   : > { %3081 = vrot.lane.b32.xlu0 %v8879_v38, %s7459_s30 }
 0x3e3   : > { %v2714_v9 = vpop.permute.xlu1 %2713 }
 0x3e4   : > { %2801 = vst.msk [vmem:[#allocation3 + $0x48] sm:$0xff] %vm2791_vm13, %v2714_v9  ;;  %v2712_v54 = vpop.permute.xlu0 %2711 }
 0x3e5   : > { %2800 = vst.msk [vmem:[#allocation3 + $0x40] sm:$0xff] %vm2791_vm13, %v2712_v54  ;;  %3087 = vrot.lane.b32.xlu1 %v8891_v0, %s7459_s30 }
 0x3e6   : > { %3085 = vrot.lane.b32.xlu0 %v8899_v3, %s7459_s30 }
 0x3e7   : > { %v2718_v53 = vpop.permute.xlu1 %2717 }
 0x3e8   : > { %2803 = vst.msk [vmem:[#allocation3 + $0x58] sm:$0xff] %vm2791_vm13, %v2718_v53  ;;  %v2716_v55 = vpop.permute.xlu0 %2715 }
 0x3e9   : > { %2802 = vst.msk [vmem:[#allocation3 + $0x50] sm:$0xff] %vm2791_vm13, %v2716_v55  ;;  %3091 = vrot.lane.b32.xlu1 %v8911_v36, %s7459_s30 }
 0x3ea   : > { %3089 = vrot.lane.b32.xlu0 %v8919_v44, %s7459_s30 }
 0x3eb   : > { %v2722_v48 = vpop.permute.xlu1 %2721 }
 0x3ec   : > { %2805 = vst.msk [vmem:[#allocation3 + $0x68] sm:$0xff] %vm2791_vm13, %v2722_v48  ;;  %v2720_v38 = vpop.permute.xlu0 %2719 }
 0x3ed   : > { %2804 = vst.msk [vmem:[#allocation3 + $0x60] sm:$0xff] %vm2791_vm13, %v2720_v38  ;;  %3095 = vrot.lane.b32.xlu1 %v8931_v39, %s7459_s30 }
 0x3ee   : > { %3093 = vrot.lane.b32.xlu0 %v8939_v52, %s7459_s30 }
 0x3ef   : > { %v2726_v9 = vpop.permute.xlu1 %2725 }
 0x3f0   : > { %2807 = vst.msk [vmem:[#allocation3 + $0x78] sm:$0xff] %vm2791_vm13, %v2726_v9  ;;  %v2724_v54 = vpop.permute.xlu0 %2723 }
 0x3f1   : > { %2806 = vst.msk [vmem:[#allocation3 + $0x70] sm:$0xff] %vm2791_vm13, %v2724_v54  ;;  %3099 = vrot.lane.b32.xlu1 %v8951_v43, %s7459_s30 }
 0x3f2   : > { %3097 = vrot.lane.b32.xlu0 %v8959_v50, %s7459_s30 }
 0x3f3   : > { %v2730_v53 = vpop.permute.xlu1 %2729 }
 0x3f4   : > { %2809 = vst.msk [vmem:[#allocation3 + $0x88] sm:$0xff] %vm2791_vm13, %v2730_v53  ;;  %v2728_v55 = vpop.permute.xlu0 %2727 }
 0x3f5   : > { %2808 = vst.msk [vmem:[#allocation3 + $0x80] sm:$0xff] %vm2791_vm13, %v2728_v55  ;;  %3103 = vrot.lane.b32.xlu1 %v8971_v7, %s7459_s30 }
 0x3f6   : > { %3101 = vrot.lane.b32.xlu0 %v8979_v24, %s7459_s30 }
 0x3f7   : > { %v2734_v48 = vpop.permute.xlu1 %2733 }
 0x3f8   : > { %2811 = vst.msk [vmem:[#allocation3 + $0x98] sm:$0xff] %vm2791_vm13, %v2734_v48  ;;  %v2732_v38 = vpop.permute.xlu0 %2731 }
 0x3f9   : > { %2810 = vst.msk [vmem:[#allocation3 + $0x90] sm:$0xff] %vm2791_vm13, %v2732_v38  ;;  %3107 = vrot.lane.b32.xlu1 %v8991_v34, %s7459_s30 }
 0x3fa   : > { %3105 = vrot.lane.b32.xlu0 %v8999_v62, %s7459_s30 }
 0x3fb   : > { %v2738_v9 = vpop.permute.xlu1 %2737 }
 0x3fc   : > { %2813 = vst.msk [vmem:[#allocation3 + $0xa8] sm:$0xff] %vm2791_vm13, %v2738_v9  ;;  %v2736_v54 = vpop.permute.xlu0 %2735 }
 0x3fd   : > { %2812 = vst.msk [vmem:[#allocation3 + $0xa0] sm:$0xff] %vm2791_vm13, %v2736_v54  ;;  %3111 = vrot.lane.b32.xlu1 %v9011_v30, %s7459_s30 }
 0x3fe   : > { %3109 = vrot.lane.b32.xlu0 %v9019_v35, %s7459_s30 }
 0x3ff   : > { %v2742_v53 = vpop.permute.xlu1 %2741 }
 0x400   : > { %2815 = vst.msk [vmem:[#allocation3 + $0xb8] sm:$0xff] %vm2791_vm13, %v2742_v53  ;;  %v2740_v55 = vpop.permute.xlu0 %2739 }
 0x401   : > { %2814 = vst.msk [vmem:[#allocation3 + $0xb0] sm:$0xff] %vm2791_vm13, %v2740_v55  ;;  %3115 = vrot.lane.b32.xlu1 %v9031_v46, %s7459_s30 }
 0x402   : > { %3113 = vrot.lane.b32.xlu0 %v9039_v29, %s7459_s30 }
 0x403   : > { %v2746_v48 = vpop.permute.xlu1 %2745 }
 0x404   : > { %2817 = vst.msk [vmem:[#allocation3 + $0xc8] sm:$0xff] %vm2791_vm13, %v2746_v48  ;;  %v2744_v38 = vpop.permute.xlu0 %2743  ;;  %v11554_v48 = vld [vmem:[#allocation45_spill] sm:$0xff] }
 0x405   : > { %2816 = vst.msk [vmem:[#allocation3 + $0xc0] sm:$0xff] %vm2791_vm13, %v2744_v38  ;;  %3119 = vrot.lane.b32.xlu1 %v9051_v45, %s7459_s30 }
 0x406   : > { %3117 = vrot.lane.b32.xlu0 %v9059_v49, %s7459_s30 }
 0x407   : > { %v2750_v30 = vpop.permute.xlu1 %2749 }
 0x408   : > { %2819 = vst.msk [vmem:[#allocation3 + $0xd8] sm:$0xff] %vm2791_vm13, %v2750_v30  ;;  %v2748_v35 = vpop.permute.xlu0 %2747 }
 0x409   : > { %2818 = vst.msk [vmem:[#allocation3 + $0xd0] sm:$0xff] %vm2791_vm13, %v2748_v35  ;;  %3123 = vrot.lane.b32.xlu1 %v9071_v21, %s7459_s30  ;;  %v9474_v35 = vld [vmem:[#allocation2 + $0x181] sm:$0xff] }
 0x40a   : > { %3121 = vrot.lane.b32.xlu0 %v9079_v18, %s7459_s30 }
 0x40b   : > { %v2754_v46 = vpop.permute.xlu1 %2753 }
 0x40c   : > { %2821 = vst.msk [vmem:[#allocation3 + $0xe8] sm:$0xff] %vm2791_vm13, %v2754_v46  ;;  %v2752_v29 = vpop.permute.xlu0 %2751 }
 0x40d   : > { %2820 = vst.msk [vmem:[#allocation3 + $0xe0] sm:$0xff] %vm2791_vm13, %v2752_v29  ;;  %3127 = vrot.lane.b32.xlu1 %v9091_v13, %s7459_s30 }
 0x40e   : > { %3125 = vrot.lane.b32.xlu0 %v9099_v10, %s7459_s30 }
 0x40f   : > { %v2758_v45 = vpop.permute.xlu1 %2757 }
 0x410   : > { %2823 = vst.msk [vmem:[#allocation3 + $0xf8] sm:$0xff] %vm2791_vm13, %v2758_v45  ;;  %v2756_v49 = vpop.permute.xlu0 %2755  ;;  %v11555_v45 = vld [vmem:[#allocation46_spill] sm:$0xff] }
 0x411   : > { %2822 = vst.msk [vmem:[#allocation3 + $0xf0] sm:$0xff] %vm2791_vm13, %v2756_v49  ;;  %3131 = vrot.lane.b32.xlu1 %v9111_v57, %s7459_s30  ;;  %v11556_v49 = vld [vmem:[#allocation47_spill] sm:$0xff] }
 0x412   : > { %3129 = vrot.lane.b32.xlu0 %v9118_v1, %s7459_s30 }
 0x413   : > { %v2891_v21 = vpop.permute.xlu1 %2890 }
 0x414   : > { %2986 = vst.msk [vmem:[#allocation3 + $0x8] sm:$0xff] %vm2984_vm5, %v2891_v21  ;;  %v2889_v13 = vpop.permute.xlu0 %2888 }
 0x415   : > { %2985 = vst.msk [vmem:[#allocation3] sm:$0xff] %vm2984_vm5, %v2889_v13  ;;  %3135 = vrot.lane.b32.xlu1 %v9130_v27, %s7459_s30  ;;  %v3048_v27 = vld [vmem:[#allocation2 + $0x188] sm:$0xff] }
 0x416   : > { %3133 = vrot.lane.b32.xlu0 %v9137_v59, %s7459_s30  ;;  %v3047_v59 = vld [vmem:[#allocation2 + $0x180] sm:$0xff] }
 0x417   : > { %v2895_v18 = vpop.permute.xlu1 %2894 }
 0x418   : > { %2988 = vst.msk [vmem:[#allocation3 + $0x18] sm:$0xff] %vm2984_vm5, %v2895_v18  ;;  %v2893_v57 = vpop.permute.xlu0 %2892  ;;  %v11557_v18 = vld [vmem:[#allocation48_spill] sm:$0xff] }
 0x419   : > { %2987 = vst.msk [vmem:[#allocation3 + $0x10] sm:$0xff] %vm2984_vm5, %v2893_v57  ;;  %3139 = vrot.lane.b32.xlu1 %v9148_v5, %s7459_s30  ;;  %v11558_v57 = vld [vmem:[#allocation49_spill] sm:$0xff] }
 0x41a   : > { %3137 = vrot.lane.b32.xlu0 %v9154_v26, %s7459_s30 }
 0x41b   : > { %v2899_v10 = vpop.permute.xlu1 %2898 }
 0x41c   : > { %2990 = vst.msk [vmem:[#allocation3 + $0x28] sm:$0xff] %vm2984_vm5, %v2899_v10  ;;  %v2897_v1 = vpop.permute.xlu0 %2896 }
 0x41d   : > { %2989 = vst.msk [vmem:[#allocation3 + $0x20] sm:$0xff] %vm2984_vm5, %v2897_v1  ;;  %3143 = vrot.lane.b32.xlu1 %v3048_v27, %s7459_s30  ;;  %v11559_v27 = vld [vmem:[#allocation50_spill] sm:$0xff] }
 0x41e   : > { %3141 = vrot.lane.b32.xlu0 %v3047_v59, %s7459_s30  ;;  %v11560_v59 = vld [vmem:[#allocation51_spill] sm:$0xff] }
 0x41f   : > { %v2903_v9 = vpop.permute.xlu1 %2902 }
 0x420   : > { %2992 = vst.msk [vmem:[#allocation3 + $0x38] sm:$0xff] %vm2984_vm5, %v2903_v9  ;;  %v2901_v54 = vpop.permute.xlu0 %2900 }
 0x421   : > { %2991 = vst.msk [vmem:[#allocation3 + $0x30] sm:$0xff] %vm2984_vm5, %v2901_v54  ;;  %3276 = vrot.lane.b32.xlu1 %v8864_v56, %s7461_s9 }
 0x422   : > { %3274 = vrot.lane.b32.xlu0 %v8869_v17, %s7461_s9 }
 0x423   : > { %v2907_v5 = vpop.permute.xlu1 %2906 }
 0x424   : > { %2994 = vst.msk [vmem:[#allocation3 + $0x48] sm:$0xff] %vm2984_vm5, %v2907_v5  ;;  %v2905_v26 = vpop.permute.xlu0 %2904  ;;  %v11561_v5 = vld [vmem:[#allocation52_spill] sm:$0xff] }
 0x425   : > { %2993 = vst.msk [vmem:[#allocation3 + $0x40] sm:$0xff] %vm2984_vm5, %v2905_v26  ;;  %3280 = vrot.lane.b32.xlu1 %v8884_v40, %s7461_s9  ;;  %v11562_v26 = vld [vmem:[#allocation53_spill] sm:$0xff] }
 0x426   : > { %3278 = vrot.lane.b32.xlu0 %v8889_v58, %s7461_s9 }
 0x427   : > { %v2911_v53 = vpop.permute.xlu1 %2910 }
 0x428   : > { %2996 = vst.msk [vmem:[#allocation3 + $0x58] sm:$0xff] %vm2984_vm5, %v2911_v53  ;;  %v2909_v55 = vpop.permute.xlu0 %2908 }
 0x429   : > { %2995 = vst.msk [vmem:[#allocation3 + $0x50] sm:$0xff] %vm2984_vm5, %v2909_v55  ;;  %3284 = vrot.lane.b32.xlu1 %v8904_v15, %s7461_s9 }
 0x42a   : > { %3282 = vrot.lane.b32.xlu0 %v8909_v23, %s7461_s9 }
 0x42b   : > { %v2915_v56 = vpop.permute.xlu1 %2914 }
 0x42c   : > { %2998 = vst.msk [vmem:[#allocation3 + $0x68] sm:$0xff] %vm2984_vm5, %v2915_v56  ;;  %v2913_v17 = vpop.permute.xlu0 %2912  ;;  %v11563_v56 = vld [vmem:[#allocation54_spill] sm:$0xff] }
 0x42d   : > { %2997 = vst.msk [vmem:[#allocation3 + $0x60] sm:$0xff] %vm2984_vm5, %v2913_v17  ;;  %3288 = vrot.lane.b32.xlu1 %v8924_v63, %s7461_s9  ;;  %v11564_v17 = vld [vmem:[#allocation55_spill] sm:$0xff] }
 0x42e   : > { %3286 = vrot.lane.b32.xlu0 %v8929_v25, %s7461_s9 }
 0x42f   : > { %v2919_v40 = vpop.permute.xlu1 %2918 }
 0x430   : > { %3000 = vst.msk [vmem:[#allocation3 + $0x78] sm:$0xff] %vm2984_vm5, %v2919_v40  ;;  %v2917_v58 = vpop.permute.xlu0 %2916 }
 0x431   : > { %2999 = vst.msk [vmem:[#allocation3 + $0x70] sm:$0xff] %vm2984_vm5, %v2917_v58  ;;  %3292 = vrot.lane.b32.xlu1 %v8944_v8, %s7461_s9 }
 0x432   : > { %3290 = vrot.lane.b32.xlu0 %v8949_v41, %s7461_s9 }
 0x433   : > { %v2923_v15 = vpop.permute.xlu1 %2922 }
 0x434   : > { %3002 = vst.msk [vmem:[#allocation3 + $0x88] sm:$0xff] %vm2984_vm5, %v2923_v15  ;;  %v2921_v23 = vpop.permute.xlu0 %2920  ;;  %v11565_v15 = vld [vmem:[#allocation56_spill] sm:$0xff] }
 0x435   : > { %3001 = vst.msk [vmem:[#allocation3 + $0x80] sm:$0xff] %vm2984_vm5, %v2921_v23  ;;  %3296 = vrot.lane.b32.xlu1 %v8964_v37, %s7461_s9  ;;  %v11566_v23 = vld [vmem:[#allocation57_spill] sm:$0xff] }
 0x436   : > { %3294 = vrot.lane.b32.xlu0 %v8969_v4, %s7461_s9 }
 0x437   : > { %v2927_v63 = vpop.permute.xlu1 %2926 }
 0x438   : > { %3004 = vst.msk [vmem:[#allocation3 + $0x98] sm:$0xff] %vm2984_vm5, %v2927_v63  ;;  %v2925_v25 = vpop.permute.xlu0 %2924 }
 0x439   : > { %3003 = vst.msk [vmem:[#allocation3 + $0x90] sm:$0xff] %vm2984_vm5, %v2925_v25  ;;  %3300 = vrot.lane.b32.xlu1 %v8984_v22, %s7461_s9 }
 0x43a   : > { %3298 = vrot.lane.b32.xlu0 %v8989_v20, %s7461_s9 }
 0x43b   : > { %v2931_v8 = vpop.permute.xlu1 %2930 }
 0x43c   : > { %3006 = vst.msk [vmem:[#allocation3 + $0xa8] sm:$0xff] %vm2984_vm5, %v2931_v8  ;;  %v2929_v41 = vpop.permute.xlu0 %2928  ;;  %v11567_v8 = vld [vmem:[#allocation58_spill] sm:$0xff] }
 0x43d   : > { %3005 = vst.msk [vmem:[#allocation3 + $0xa0] sm:$0xff] %vm2984_vm5, %v2929_v41  ;;  %3304 = vrot.lane.b32.xlu1 %v9004_v14, %s7461_s9  ;;  %v11568_v41 = vld [vmem:[#allocation59_spill] sm:$0xff] }
 0x43e   : > { %3302 = vrot.lane.b32.xlu0 %v9009_v19, %s7461_s9 }
 0x43f   : > { %v2935_v37 = vpop.permute.xlu1 %2934 }
 0x440   : > { %3008 = vst.msk [vmem:[#allocation3 + $0xb8] sm:$0xff] %vm2984_vm5, %v2935_v37  ;;  %v2933_v4 = vpop.permute.xlu0 %2932 }
 0x441   : > { %3007 = vst.msk [vmem:[#allocation3 + $0xb0] sm:$0xff] %vm2984_vm5, %v2933_v4  ;;  %3308 = vrot.lane.b32.xlu1 %v9024_v31, %s7461_s9 }
 0x442   : > { %3306 = vrot.lane.b32.xlu0 %v9029_v11, %s7461_s9 }
 0x443   : > { %v2939_v20 = vpop.permute.xlu1 %2938 }
 0x444   : > { %3010 = vst.msk [vmem:[#allocation3 + $0xc8] sm:$0xff] %vm2984_vm5, %v2939_v20  ;;  %v2937_v22 = vpop.permute.xlu0 %2936  ;;  %v11569_v20 = vld [vmem:[#allocation60_spill] sm:$0xff] }
 0x445   : > { %3009 = vst.msk [vmem:[#allocation3 + $0xc0] sm:$0xff] %vm2984_vm5, %v2937_v22  ;;  %3312 = vrot.lane.b32.xlu1 %v9044_v12, %s7461_s9  ;;  %v11570_v22 = vld [vmem:[#allocation61_spill] sm:$0xff] }
 0x446   : > { %3310 = vrot.lane.b32.xlu0 %v9049_v6, %s7461_s9 }
 0x447   : > { %v2943_v19 = vpop.permute.xlu1 %2942 }
 0x448   : > { %3012 = vst.msk [vmem:[#allocation3 + $0xd8] sm:$0xff] %vm2984_vm5, %v2943_v19  ;;  %v2941_v14 = vpop.permute.xlu0 %2940 }
 0x449   : > { %3011 = vst.msk [vmem:[#allocation3 + $0xd0] sm:$0xff] %vm2984_vm5, %v2941_v14  ;;  %3316 = vrot.lane.b32.xlu1 %v9064_v32, %s7461_s9 }
 0x44a   : > { %3314 = vrot.lane.b32.xlu0 %v9069_v2, %s7461_s9 }
 0x44b   : > { %v2947_v11 = vpop.permute.xlu1 %2946 }
 0x44c   : > { %3014 = vst.msk [vmem:[#allocation3 + $0xe8] sm:$0xff] %vm2984_vm5, %v2947_v11  ;;  %v2945_v31 = vpop.permute.xlu0 %2944  ;;  %v11571_v11 = vld [vmem:[#allocation62_spill] sm:$0xff] }
 0x44d   : > { %3013 = vst.msk [vmem:[#allocation3 + $0xe0] sm:$0xff] %vm2984_vm5, %v2945_v31  ;;  %3320 = vrot.lane.b32.xlu1 %v9084_v28, %s7461_s9  ;;  %v11572_v31 = vld [vmem:[#allocation63_spill] sm:$0xff] }
 0x44e   : > { %3318 = vrot.lane.b32.xlu0 %v9089_v61, %s7461_s9  ;;  %v11552_v61 = vld [vmem:[#allocation43_spill] sm:$0xff] }
 0x44f   : > { %v2951_v6 = vpop.permute.xlu1 %2950 }
 0x450   : > { %3016 = vst.msk [vmem:[#allocation3 + $0xf8] sm:$0xff] %vm2984_vm5, %v2951_v6  ;;  %v2949_v12 = vpop.permute.xlu0 %2948 }
 0x451   : > { %3015 = vst.msk [vmem:[#allocation3 + $0xf0] sm:$0xff] %vm2984_vm5, %v2949_v12  ;;  %3324 = vrot.lane.b32.xlu1 %v9104_v42, %s7461_s9 }
 0x452   : > { %3322 = vrot.lane.b32.xlu0 %v9109_v60, %s7461_s9  ;;  %v11553_v60 = vld [vmem:[#allocation44_spill] sm:$0xff] }
 0x453   : > { %v3084_v2 = vpop.permute.xlu1 %3083 }
 0x454   : > { %3179 = vst.msk [vmem:[#allocation3 + $0x8] sm:$0xff] %vm3177_vm6, %v3084_v2  ;;  %v3082_v32 = vpop.permute.xlu0 %3081  ;;  %v11573_v2 = vld [vmem:[#allocation64_spill] sm:$0xff] }
 0x455   : > { %3178 = vst.msk [vmem:[#allocation3] sm:$0xff] %vm3177_vm6, %v3082_v32  ;;  %3328 = vrot.lane.b32.xlu1 %v9124_v16, %s7461_s9  ;;  %v9469_v16 = vld [vmem:[#allocation2 + $0x189] sm:$0xff] }
 0x456   : > { %3326 = vrot.lane.b32.xlu0 %v11552_v61, %s7461_s9  ;;  %v11574_v32 = vld [vmem:[#allocation65_spill] sm:$0xff] }
 0x457   : > { %v3088_v28 = vpop.permute.xlu1 %3087 }
 0x458   : > { %3181 = vst.msk [vmem:[#allocation3 + $0x18] sm:$0xff] %vm3177_vm6, %v3088_v28  ;;  %v3086_v42 = vpop.permute.xlu0 %3085 }
 0x459   : > { %3180 = vst.msk [vmem:[#allocation3 + $0x10] sm:$0xff] %vm3177_vm6, %v3086_v42  ;;  %3332 = vrot.lane.b32.xlu1 %v11553_v60, %s7461_s9  ;;  %v11575_v42 = vld [vmem:[#allocation66_spill] sm:$0xff]  ;;  %v11576_v60 = vld [vmem:[#allocation67_spill] sm:$0xff] }
 0x45a   : > { %3330 = vrot.lane.b32.xlu0 %v11554_v48, %s7461_s9 }
 0x45b   : > { %v3092_v38 = vpop.permute.xlu1 %3091 }
 0x45c   : > { %3183 = vst.msk [vmem:[#allocation3 + $0x28] sm:$0xff] %vm3177_vm6, %v3092_v38  ;;  %v3090_v30 = vpop.permute.xlu0 %3089 }
 0x45d   : > { %3182 = vst.msk [vmem:[#allocation3 + $0x20] sm:$0xff] %vm3177_vm6, %v3090_v30  ;;  %3336 = vrot.lane.b32.xlu1 %v9469_v16, %s7461_s9  ;;  %v11577_v30 = vld [vmem:[#allocation68_spill] sm:$0xff] }
 0x45e   : > { %3334 = vrot.lane.b32.xlu0 %v9474_v35, %s7461_s9 }
 0x45f   : > { %v3096_v46 = vpop.permute.xlu1 %3095 }
 0x460   : > { %3185 = vst.msk [vmem:[#allocation3 + $0x38] sm:$0xff] %vm3177_vm6, %v3096_v46  ;;  %v3094_v29 = vpop.permute.xlu0 %3093  ;;  %v11578_v46 = vld [vmem:[#allocation69_spill] sm:$0xff] }
 0x461   : > { %3184 = vst.msk [vmem:[#allocation3 + $0x30] sm:$0xff] %vm3177_vm6, %v3094_v29  ;;  %3469 = vrot.lane.b32.xlu1 %v11555_v45, %s7463_s11 }
 0x462   : > { %3467 = vrot.lane.b32.xlu0 %v11556_v49, %s7463_s11  ;;  %v11579_v49 = vld [vmem:[#allocation70_spill] sm:$0xff] }
 0x463   : > { %v3100_v21 = vpop.permute.xlu1 %3099 }
 0x464   : > { %3187 = vst.msk [vmem:[#allocation3 + $0x48] sm:$0xff] %vm3177_vm6, %v3100_v21  ;;  %v3098_v13 = vpop.permute.xlu0 %3097  ;;  %v11580_v21 = vld [vmem:[#allocation71_spill] sm:$0xff] }
 0x465   : > { %3186 = vst.msk [vmem:[#allocation3 + $0x40] sm:$0xff] %vm3177_vm6, %v3098_v13  ;;  %3473 = vrot.lane.b32.xlu1 %v11557_v18, %s7463_s11 }
 0x466   : > { %3471 = vrot.lane.b32.xlu0 %v11558_v57, %s7463_s11  ;;  %v11581_v57 = vld [vmem:[#allocation72_spill] sm:$0xff] }
 0x467   : > { %v3104_v10 = vpop.permute.xlu1 %3103 }
 0x468   : > { %3189 = vst.msk [vmem:[#allocation3 + $0x58] sm:$0xff] %vm3177_vm6, %v3104_v10  ;;  %v3102_v1 = vpop.permute.xlu0 %3101 }
 0x469   : > { %3188 = vst.msk [vmem:[#allocation3 + $0x50] sm:$0xff] %vm3177_vm6, %v3102_v1  ;;  %3477 = vrot.lane.b32.xlu1 %v11559_v27, %s7463_s11 }
 0x46a   : > { %3475 = vrot.lane.b32.xlu0 %v11560_v59, %s7463_s11 }
 0x46b   : > { %v3108_v9 = vpop.permute.xlu1 %3107 }
 0x46c   : > { %3191 = vst.msk [vmem:[#allocation3 + $0x68] sm:$0xff] %vm3177_vm6, %v3108_v9  ;;  %v3106_v54 = vpop.permute.xlu0 %3105  ;;  %v9574_v9 = vld [vmem:[#allocation2 + $0x182] sm:$0xff] }
 0x46d   : > { %3190 = vst.msk [vmem:[#allocation3 + $0x60] sm:$0xff] %vm3177_vm6, %v3106_v54  ;;  %3481 = vrot.lane.b32.xlu1 %v11561_v5, %s7463_s11 }
 0x46e   : > { %3479 = vrot.lane.b32.xlu0 %v11562_v26, %s7463_s11 }
 0x46f   : > { %v3112_v53 = vpop.permute.xlu1 %3111 }
 0x470   : > { %3193 = vst.msk [vmem:[#allocation3 + $0x78] sm:$0xff] %vm3177_vm6, %v3112_v53  ;;  %v3110_v55 = vpop.permute.xlu0 %3109 }
 0x471   : > { %3192 = vst.msk [vmem:[#allocation3 + $0x70] sm:$0xff] %vm3177_vm6, %v3110_v55  ;;  %3485 = vrot.lane.b32.xlu1 %v11563_v56, %s7463_s11  ;;  %v3983_v56 = vld [vmem:[#allocation2 + $0x3a] sm:$0xff] }
 0x472   : > { %3483 = vrot.lane.b32.xlu0 %v11564_v17, %s7463_s11 }
 0x473   : > { %v3116_v40 = vpop.permute.xlu1 %3115 }
 0x474   : > { %3195 = vst.msk [vmem:[#allocation3 + $0x88] sm:$0xff] %vm3177_vm6, %v3116_v40  ;;  %v3114_v58 = vpop.permute.xlu0 %3113 }
 0x475   : > { %3194 = vst.msk [vmem:[#allocation3 + $0x80] sm:$0xff] %vm3177_vm6, %v3114_v58  ;;  %3489 = vrot.lane.b32.xlu1 %v11565_v15, %s7463_s11  ;;  %v3792_v58 = vld [vmem:[#allocation2 + $0x51] sm:$0xff]  ;;  %v3791_v15 = vld [vmem:[#allocation2 + $0x49] sm:$0xff] }
 0x476   : > { %3487 = vrot.lane.b32.xlu0 %v11566_v23, %s7463_s11 }
 0x477   : > { %v3120_v63 = vpop.permute.xlu1 %3119 }
 0x478   : > { %3197 = vst.msk [vmem:[#allocation3 + $0x98] sm:$0xff] %vm3177_vm6, %v3120_v63  ;;  %v3118_v25 = vpop.permute.xlu0 %3117 }
 0x479   : > { %3196 = vst.msk [vmem:[#allocation3 + $0x90] sm:$0xff] %vm3177_vm6, %v3118_v25  ;;  %3493 = vrot.lane.b32.xlu1 %v11567_v8, %s7463_s11  ;;  %v3985_v25 = vld [vmem:[#allocation2 + $0x52] sm:$0xff]  ;;  %v3984_v8 = vld [vmem:[#allocation2 + $0x4a] sm:$0xff] }
 0x47a   : > { %3491 = vrot.lane.b32.xlu0 %v11568_v41, %s7463_s11 }
 0x47b   : > { %v3124_v37 = vpop.permute.xlu1 %3123 }
 0x47c   : > { %3199 = vst.msk [vmem:[#allocation3 + $0xa8] sm:$0xff] %vm3177_vm6, %v3124_v37  ;;  %v3122_v4 = vpop.permute.xlu0 %3121 }
 0x47d   : > { %3198 = vst.msk [vmem:[#allocation3 + $0xa0] sm:$0xff] %vm3177_vm6, %v3122_v4  ;;  %3497 = vrot.lane.b32.xlu1 %v11569_v20, %s7463_s11  ;;  %v3794_v4 = vld [vmem:[#allocation2 + $0x69] sm:$0xff]  ;;  %v3793_v20 = vld [vmem:[#allocation2 + $0x61] sm:$0xff] }
 0x47e   : > { %3495 = vrot.lane.b32.xlu0 %v11570_v22, %s7463_s11 }
 0x47f   : > { %v3128_v19 = vpop.permute.xlu1 %3127 }
 0x480   : > { %3201 = vst.msk [vmem:[#allocation3 + $0xb8] sm:$0xff] %vm3177_vm6, %v3128_v19  ;;  %v3126_v14 = vpop.permute.xlu0 %3125 }
 0x481   : > { %3200 = vst.msk [vmem:[#allocation3 + $0xb0] sm:$0xff] %vm3177_vm6, %v3126_v14  ;;  %3501 = vrot.lane.b32.xlu1 %v11571_v11, %s7463_s11  ;;  %v3987_v14 = vld [vmem:[#allocation2 + $0x6a] sm:$0xff]  ;;  %v3986_v11 = vld [vmem:[#allocation2 + $0x62] sm:$0xff] }
 0x482   : > { %3499 = vrot.lane.b32.xlu0 %v11572_v31, %s7463_s11 }
 0x483   : > { %v3132_v6 = vpop.permute.xlu1 %3131 }
 0x484   : > { %3203 = vst.msk [vmem:[#allocation3 + $0xc8] sm:$0xff] %vm3177_vm6, %v3132_v6  ;;  %v3130_v12 = vpop.permute.xlu0 %3129 }
 0x485   : > { %3202 = vst.msk [vmem:[#allocation3 + $0xc0] sm:$0xff] %vm3177_vm6, %v3130_v12  ;;  %3505 = vrot.lane.b32.xlu1 %v11573_v2, %s7463_s11  ;;  %v3796_v12 = vld [vmem:[#allocation2 + $0x81] sm:$0xff]  ;;  %v11582_v2 = vld [vmem:[#allocation27_spill] sm:$0xff] }
 0x486   : > { %3503 = vrot.lane.b32.xlu0 %v11574_v32, %s7463_s11  ;;  %v11583_v32 = vld [vmem:[#allocation30_spill] sm:$0xff] }
 0x487   : > { %v3136_v61 = vpop.permute.xlu1 %3135 }
 0x488   : > { %3205 = vst.msk [vmem:[#allocation3 + $0xd8] sm:$0xff] %vm3177_vm6, %v3136_v61  ;;  %v3134_v28 = vpop.permute.xlu0 %3133  ;;  %v7162_v61 = vpack.c.bf16 %v11583_v32, %v11582_v2 }
 0x489   : > { %3204 = vst.msk [vmem:[#allocation3 + $0xd0] sm:$0xff] %vm3177_vm6, %v3134_v28  ;;  %3509 = vrot.lane.b32.xlu1 %v11575_v42, %s7463_s11  ;;  %v3795_v28 = vld [vmem:[#allocation2 + $0x79] sm:$0xff]  ;;  %v11584_v42 = vld [vmem:[#allocation25_spill] sm:$0xff] }
 0x48a   : > { %3507 = vrot.lane.b32.xlu0 %v11576_v60, %s7463_s11  ;;  %v11585_v60 = vld [vmem:[#allocation28_spill] sm:$0xff] }
 0x48b   : > { %v3140_v48 = vpop.permute.xlu1 %3139 }
 0x48c   : > { %3207 = vst.msk [vmem:[#allocation3 + $0xe8] sm:$0xff] %vm3177_vm6, %v3140_v48  ;;  %v3138_v38 = vpop.permute.xlu0 %3137  ;;  %v7156_v48 = vpack.c.bf16 %v11585_v60, %v11584_v42  ;;  %v11605_v42 = vld [vmem:[#allocation38_spill] sm:$0xff] }
 0x48d   : > { %3206 = vst.msk [vmem:[#allocation3 + $0xe0] sm:$0xff] %vm3177_vm6, %v3138_v38  ;;  %3513 = vrot.lane.b32.xlu1 %v11577_v30, %s7463_s11  ;;  %v11588_v30 = vld [vmem:[#allocation10_spill] sm:$0xff]  ;;  %v4240_v38 = vld [vmem:[%s11287_s2] sm:$0xff] }
 0x48e   : > { %3511 = vrot.lane.b32.xlu0 %v11578_v46, %s7463_s11  ;;  %v11589_v46 = vld [vmem:[#allocation12_spill] sm:$0xff]  ;;  %7158 = vmatprep.subr.msk.bf16.mxu0 %vm9647_vm10, %v7156_v48 }
 0x48f   : > { %v3144_v29 = vpop.permute.xlu1 %3143  ;;  %v3994_v48 = vld [vmem:[#allocation2 + $0xc2] sm:$0xff]  ;;  %6987 = vmatprep.mubr.msk.f32.mxu1 %vm4241_vm12, %v4240_v38 }
 0x490   : > { %3209 = vst.msk [vmem:[#allocation3 + $0xf8] sm:$0xff] %vm3177_vm6, %v3144_v29  ;;  %v3142_v45 = vpop.permute.xlu0 %3141  ;;  %v7159_v29 = vpack.c.bf16 %v11589_v46, %v11588_v30 }
 0x491   : > { %3208 = vst.msk [vmem:[#allocation3 + $0xf0] sm:$0xff] %vm3177_vm6, %v3142_v45  ;;  %3517 = vrot.lane.b32.xlu1 %v11579_v49, %s7463_s11 }
 0x492   : > { %3515 = vrot.lane.b32.xlu0 %v11580_v21, %s7463_s11  ;;  %v3989_v21 = vld [vmem:[#allocation2 + $0x82] sm:$0xff]  ;;  %7161 = vmatpush3.bf16.xpose.msk.msra.mxu0 %vm9647_vm10, %v7159_v29 }
 0x493   : > { %v3277_v13 = vpop.permute.xlu1 %3276  ;;  %7164 = vmatprep.subr.msk.bf16.mxu0 %vm9647_vm10, %v7162_v61  ;;  %v3995_v61 = vld [vmem:[#allocation2 + $0xca] sm:$0xff]  ;;  %v3611_v29 = vld [vmem:[#allocation2 + $0xe0] sm:$0xff] }
 0x494   : > { %3372 = vst.msk [vmem:[#allocation3 + $0x8] sm:$0xff] %vm3370_vm7, %v3277_v13  ;;  %v3275_v18 = vpop.permute.xlu0 %3274  ;;  %v3988_v13 = vld [vmem:[#allocation2 + $0x7a] sm:$0xff] }
 0x495   : > { %3371 = vst.msk [vmem:[#allocation3] sm:$0xff] %vm3370_vm7, %v3275_v18  ;;  %3521 = vrot.lane.b32.xlu1 %v9265_v33, %s7463_s11  ;;  %v9569_v33 = vld [vmem:[#allocation2 + $0x18a] sm:$0xff] }
 0x496   : > { %3519 = vrot.lane.b32.xlu0 %v11581_v57, %s7463_s11  ;;  %v11590_v57 = vld [vmem:[#allocation11_spill] sm:$0xff] }
 0x497   : > { %v3281_v10 = vpop.permute.xlu1 %3280 }
 0x498   : > { %3374 = vst.msk [vmem:[#allocation3 + $0x18] sm:$0xff] %vm3370_vm7, %v3281_v10  ;;  %v3279_v1 = vpop.permute.xlu0 %3278  ;;  %v11591_v10 = vld [vmem:[#allocation14_spill] sm:$0xff] }
 0x499   : > { %3373 = vst.msk [vmem:[#allocation3 + $0x10] sm:$0xff] %vm3370_vm7, %v3279_v1  ;;  %3525 = vrot.lane.b32.xlu1 %v9275_v51, %s7463_s11  ;;  %v7165_v1 = vpack.c.bf16 %v11591_v10, %v11590_v57  ;;  %v3804_v10 = vld [vmem:[#allocation2 + $0xe1] sm:$0xff] }
 0x49a   : > { %3523 = vrot.lane.b32.xlu0 %v9280_v47, %s7463_s11 }
 0x49b   : > { %v3285_v27 = vpop.permute.xlu1 %3284  ;;  %7167 = vmatpush3.bf16.xpose.msk.msra.mxu0 %vm9647_vm10, %v7165_v1  ;;  %v11608_v1 = vld [vmem:[#allocation37_spill] sm:$0xff] }
 0x49c   : > { %3376 = vst.msk [vmem:[#allocation3 + $0x28] sm:$0xff] %vm3370_vm7, %v3285_v27  ;;  %v3283_v59 = vpop.permute.xlu0 %3282 }
 0x49d   : > { %3375 = vst.msk [vmem:[#allocation3 + $0x20] sm:$0xff] %vm3370_vm7, %v3283_v59  ;;  %3529 = vrot.lane.b32.xlu1 %v9569_v33, %s7463_s11  ;;  %v3798_v59 = vld [vmem:[#allocation2 + $0x99] sm:$0xff] }
 0x49e   : > { %3527 = vrot.lane.b32.xlu0 %v9574_v9, %s7463_s11 }
 0x49f   : > { %v3289_v51 = vpop.permute.xlu1 %3288 }
 0x4a0   : > { %3378 = vst.msk [vmem:[#allocation3 + $0x38] sm:$0xff] %vm3370_vm7, %v3289_v51  ;;  %v3287_v47 = vpop.permute.xlu0 %3286  ;;  %v11592_v51 = vld [vmem:[#allocation29_spill] sm:$0xff] }
 0x4a1   : > { %3377 = vst.msk [vmem:[#allocation3 + $0x30] sm:$0xff] %vm3370_vm7, %v3287_v47  ;;  %3662 = vrot.lane.b32.xlu1 %v8891_v0, %s7464_s12  ;;  %v11593_v47 = vld [vmem:[#allocation32_spill] sm:$0xff] }
 0x4a2   : > { %3660 = vrot.lane.b32.xlu0 %v8899_v3, %s7464_s12 }
 0x4a3   : > { %v3293_v54 = vpop.permute.xlu1 %3292 }
 0x4a4   : > { %3380 = vst.msk [vmem:[#allocation3 + $0x48] sm:$0xff] %vm3370_vm7, %v3293_v54  ;;  %v3291_v5 = vpop.permute.xlu0 %3290  ;;  %v7168_v54 = vpack.c.bf16 %v11593_v47, %v11592_v51  ;;  %v3803_v51 = vld [vmem:[#allocation2 + $0xd9] sm:$0xff] }
 0x4a5   : > { %3379 = vst.msk [vmem:[#allocation3 + $0x40] sm:$0xff] %vm3370_vm7, %v3291_v5  ;;  %3666 = vrot.lane.b32.xlu1 %v8911_v36, %s7464_s12  ;;  %v3797_v5 = vld [vmem:[#allocation2 + $0x91] sm:$0xff] }
 0x4a6   : > { %3664 = vrot.lane.b32.xlu0 %v8919_v44, %s7464_s12  ;;  %7170 = vmatprep.subr.msk.bf16.mxu0 %vm9647_vm10, %v7168_v54 }
 0x4a7   : > { %v3297_v26 = vpop.permute.xlu1 %3296 }
 0x4a8   : > { %3382 = vst.msk [vmem:[#allocation3 + $0x58] sm:$0xff] %vm3370_vm7, %v3297_v26  ;;  %v3295_v53 = vpop.permute.xlu0 %3294 }
 0x4a9   : > { %3381 = vst.msk [vmem:[#allocation3 + $0x50] sm:$0xff] %vm3370_vm7, %v3295_v53  ;;  %3670 = vrot.lane.b32.xlu1 %v8931_v39, %s7464_s12 }
 0x4aa   : > { %3668 = vrot.lane.b32.xlu0 %v8939_v52, %s7464_s12 }
 0x4ab   : > { %v3301_v0 = vpop.permute.xlu1 %3300 }
 0x4ac   : > { %3384 = vst.msk [vmem:[#allocation3 + $0x68] sm:$0xff] %vm3370_vm7, %v3301_v0  ;;  %v3299_v3 = vpop.permute.xlu0 %3298  ;;  %v3991_v0 = vld [vmem:[#allocation2 + $0x9a] sm:$0xff] }
 0x4ad   : > { %3383 = vst.msk [vmem:[#allocation3 + $0x60] sm:$0xff] %vm3370_vm7, %v3299_v3  ;;  %3674 = vrot.lane.b32.xlu1 %v8951_v43, %s7464_s12  ;;  %v3990_v3 = vld [vmem:[#allocation2 + $0x92] sm:$0xff] }
 0x4ae   : > { %3672 = vrot.lane.b32.xlu0 %v8959_v50, %s7464_s12 }
 0x4af   : > { %v3305_v36 = vpop.permute.xlu1 %3304 }
 0x4b0   : > { %3386 = vst.msk [vmem:[#allocation3 + $0x78] sm:$0xff] %vm3370_vm7, %v3305_v36  ;;  %v3303_v44 = vpop.permute.xlu0 %3302 }
 0x4b1   : > { %3385 = vst.msk [vmem:[#allocation3 + $0x70] sm:$0xff] %vm3370_vm7, %v3303_v44  ;;  %3678 = vrot.lane.b32.xlu1 %v8971_v7, %s7464_s12  ;;  %v3790_v7 = vld [vmem:[#allocation2 + $0x39] sm:$0xff]  ;;  %v11594_v44 = vld [vmem:[#allocation13_spill] sm:$0xff] }
 0x4b2   : > { %3676 = vrot.lane.b32.xlu0 %v8979_v24, %s7464_s12  ;;  %v3789_v24 = vld [vmem:[#allocation2 + $0x31] sm:$0xff] }
 0x4b3   : > { %v3309_v39 = vpop.permute.xlu1 %3308 }
 0x4b4   : > { %3388 = vst.msk [vmem:[#allocation3 + $0x88] sm:$0xff] %vm3370_vm7, %v3309_v39  ;;  %v3307_v52 = vpop.permute.xlu0 %3306  ;;  %v11595_v39 = vld [vmem:[#allocation16_spill] sm:$0xff] }
 0x4b5   : > { %3387 = vst.msk [vmem:[#allocation3 + $0x80] sm:$0xff] %vm3370_vm7, %v3307_v52  ;;  %3682 = vrot.lane.b32.xlu1 %v8991_v34, %s7464_s12  ;;  %v7171_v52 = vpack.c.bf16 %v11595_v39, %v11594_v44  ;;  %v3613_v39 = vld [vmem:[#allocation2 + $0xf8] sm:$0xff] }
 0x4b6   : > { %3680 = vrot.lane.b32.xlu0 %v8999_v62, %s7464_s12  ;;  %v3982_v62 = vld [vmem:[#allocation2 + $0x32] sm:$0xff] }
 0x4b7   : > { %v3313_v43 = vpop.permute.xlu1 %3312  ;;  %7173 = vmatpush3.bf16.xpose.msk.msra.mxu0 %vm9647_vm10, %v7171_v52  ;;  %v11612_v52 = vld [vmem:[#allocation39_spill] sm:$0xff] }
 0x4b8   : > { %3390 = vst.msk [vmem:[#allocation3 + $0x98] sm:$0xff] %vm3370_vm7, %v3313_v43  ;;  %v3311_v50 = vpop.permute.xlu0 %3310 }
 0x4b9   : > { %3389 = vst.msk [vmem:[#allocation3 + $0x90] sm:$0xff] %vm3370_vm7, %v3311_v50  ;;  %3855 = vrot.lane.b32.xlu1 %v3790_v7, %s7465_s13  ;;  %v3800_v50 = vld [vmem:[#allocation2 + $0xb1] sm:$0xff] }
 0x4ba   : > { %3853 = vrot.lane.b32.xlu0 %v3789_v24, %s7465_s13  ;;  %v11596_v7 = vld [vmem:[#allocation31_spill] sm:$0xff]  ;;  %v11597_v24 = vld [vmem:[#allocation34_spill] sm:$0xff] }
 0x4bb   : > { %v3317_v55 = vpop.permute.xlu1 %3316 }
 0x4bc   : > { %3392 = vst.msk [vmem:[#allocation3 + $0xa8] sm:$0xff] %vm3370_vm7, %v3317_v55  ;;  %v3315_v34 = vpop.permute.xlu0 %3314  ;;  %v7174_v55 = vpack.c.bf16 %v11597_v24, %v11596_v7  ;;  %v3612_v7 = vld [vmem:[#allocation2 + $0xf0] sm:$0xff] }
 0x4bd   : > { %3391 = vst.msk [vmem:[#allocation3 + $0xa0] sm:$0xff] %vm3370_vm7, %v3315_v34  ;;  %4048 = vrot.lane.b32.xlu1 %v3983_v56, %s7466_s14  ;;  %v3799_v34 = vld [vmem:[#allocation2 + $0xa9] sm:$0xff] }
 0x4be   : > { %4046 = vrot.lane.b32.xlu0 %v3982_v62, %s7466_s14  ;;  %7176 = vmatprep.subr.msk.bf16.mxu0 %vm9647_vm10, %v7174_v55 }
 0x4bf   : > { %v3321_v17 = vpop.permute.xlu1 %3320 }
 0x4c0   : > { %3394 = vst.msk [vmem:[#allocation3 + $0xb8] sm:$0xff] %vm3370_vm7, %v3321_v17  ;;  %v3319_v40 = vpop.permute.xlu0 %3318  ;;  %v3993_v17 = vld [vmem:[#allocation2 + $0xb2] sm:$0xff] }
 0x4c1   : > { %3393 = vst.msk [vmem:[#allocation3 + $0xb0] sm:$0xff] %vm3370_vm7, %v3319_v40  ;;  %3859 = vrot.lane.b32.xlu1 %v3792_v58, %s7465_s13  ;;  %v3992_v40 = vld [vmem:[#allocation2 + $0xaa] sm:$0xff] }
 0x4c2   : > { %3857 = vrot.lane.b32.xlu0 %v3791_v15, %s7465_s13  ;;  %v11598_v15 = vld [vmem:[#allocation15_spill] sm:$0xff] }
 0x4c3   : > { %v3325_v23 = vpop.permute.xlu1 %3324 }
 0x4c4   : > { %3396 = vst.msk [vmem:[#allocation3 + $0xc8] sm:$0xff] %vm3370_vm7, %v3325_v23  ;;  %v3323_v63 = vpop.permute.xlu0 %3322  ;;  %v11599_v23 = vld [vmem:[#allocation18_spill] sm:$0xff] }
 0x4c5   : > { %3395 = vst.msk [vmem:[#allocation3 + $0xc0] sm:$0xff] %vm3370_vm7, %v3323_v63  ;;  %4052 = vrot.lane.b32.xlu1 %v3985_v25, %s7466_s14  ;;  %v7177_v63 = vpack.c.bf16 %v11599_v23, %v11598_v15  ;;  %v3999_v23 = vld [vmem:[#allocation2 + $0xfa] sm:$0xff] }
 0x4c6   : > { %4050 = vrot.lane.b32.xlu0 %v3984_v8, %s7466_s14  ;;  %v3609_v8 = vld [vmem:[#allocation2 + $0xc8] sm:$0xff] }
 0x4c7   : > { %v3329_v41 = vpop.permute.xlu1 %3328  ;;  %7179 = vmatpush3.bf16.xpose.msk.msra.mxu0 %vm9647_vm10, %v7177_v63  ;;  %v3998_v63 = vld [vmem:[#allocation2 + $0xf2] sm:$0xff] }
 0x4c8   : > { %3398 = vst.msk [vmem:[#allocation3 + $0xd8] sm:$0xff] %vm3370_vm7, %v3329_v41  ;;  %v3327_v37 = vpop.permute.xlu0 %3326  ;;  %v11600_v41 = vld [vmem:[#allocation33_spill] sm:$0xff] }
 0x4c9   : > { %3397 = vst.msk [vmem:[#allocation3 + $0xd0] sm:$0xff] %vm3370_vm7, %v3327_v37  ;;  %3863 = vrot.lane.b32.xlu1 %v3794_v4, %s7465_s13  ;;  %v11601_v37 = vld [vmem:[#allocation36_spill] sm:$0xff] }
 0x4ca   : > { %3861 = vrot.lane.b32.xlu0 %v3793_v20, %s7465_s13  ;;  %v7180_v4 = vpack.c.bf16 %v11601_v37, %v11600_v41  ;;  %v3608_v20 = vld [vmem:[#allocation2 + $0xc0] sm:$0xff]  ;;  %v3615_v41 = vld [vmem:[#allocation2 + $0x110] sm:$0xff]  ;;  %v3614_v37 = vld [vmem:[#allocation2 + $0x108] sm:$0xff] }
 0x4cb   : > { %v3333_v22 = vpop.permute.xlu1 %3332 }
 0x4cc   : > { %3400 = vst.msk [vmem:[#allocation3 + $0xe8] sm:$0xff] %vm3370_vm7, %v3333_v22  ;;  %v3331_v19 = vpop.permute.xlu0 %3330  ;;  %7182 = vmatprep.subr.msk.bf16.mxu0 %vm9647_vm10, %v7180_v4 }
 0x4cd   : > { %3399 = vst.msk [vmem:[#allocation3 + $0xe0] sm:$0xff] %vm3370_vm7, %v3331_v19  ;;  %4056 = vrot.lane.b32.xlu1 %v3987_v14, %s7466_s14  ;;  %v3802_v14 = vld [vmem:[#allocation2 + $0xc9] sm:$0xff] }
 0x4ce   : > { %4054 = vrot.lane.b32.xlu0 %v3986_v11, %s7466_s14  ;;  %v3801_v11 = vld [vmem:[#allocation2 + $0xc1] sm:$0xff] }
 0x4cf   : > { %v3337_v31 = vpop.permute.xlu1 %3336 }
 0x4d0   : > { %3402 = vst.msk [vmem:[#allocation3 + $0xf8] sm:$0xff] %vm3370_vm7, %v3337_v31  ;;  %v3335_v6 = vpop.permute.xlu0 %3334 }
 0x4d1   : > { %3401 = vst.msk [vmem:[#allocation3 + $0xf0] sm:$0xff] %vm3370_vm7, %v3335_v6  ;;  %3867 = vrot.lane.b32.xlu1 %v3796_v12, %s7465_s13  ;;  %v11602_v6 = vld [vmem:[#allocation17_spill] sm:$0xff]  ;;  %v11603_v12 = vld [vmem:[#allocation20_spill] sm:$0xff] }
 0x4d2   : > { %3865 = vrot.lane.b32.xlu0 %v3795_v28, %s7465_s13  ;;  %v7183_v2 = vpack.c.bf16 %v11603_v12, %v11602_v6  ;;  %v11604_v28 = vld [vmem:[#allocation35_spill] sm:$0xff]  ;;  %v4000_v12 = vld [vmem:[#allocation2 + $0x10a] sm:$0xff] }
 0x4d3   : > { %v3470_v45 = vpop.permute.xlu1 %3469  ;;  %v7186_v60 = vpack.c.bf16 %v11605_v42, %v11604_v28  ;;  %v4001_v6 = vld [vmem:[#allocation2 + $0x112] sm:$0xff]  ;;  %v3616_v28 = vld [vmem:[#allocation2 + $0x120] sm:$0xff] }
 0x4d4   : > { %3565 = vst.msk [vmem:[#allocation3 + $0x8] sm:$0xff] %vm3563_vm8, %v3470_v45  ;;  %v3468_v49 = vpop.permute.xlu0 %3467  ;;  %7185 = vmatpush3.bf16.xpose.msk.msra.mxu0 %vm9647_vm10, %v7183_v2  ;;  %v3610_v45 = vld [vmem:[#allocation2 + $0xd8] sm:$0xff] }
 0x4d5   : > { %3564 = vst.msk [vmem:[#allocation3] sm:$0xff] %vm3563_vm8, %v3468_v49  ;;  %4060 = vrot.lane.b32.xlu1 %v3989_v21, %s7466_s14  ;;  %7188 = vmatprep.subr.msk.bf16.mxu0 %vm9647_vm10, %v7186_v60  ;;  %v11606_v21 = vld [vmem:[#allocation19_spill] sm:$0xff] }
 0x4d6   : > { %4058 = vrot.lane.b32.xlu0 %v3988_v13, %s7466_s14  ;;  %v11607_v13 = vld [vmem:[#allocation22_spill] sm:$0xff] }
 0x4d7   : > { %v3474_v18 = vpop.permute.xlu1 %3473 }
 0x4d8   : > { %3567 = vst.msk [vmem:[#allocation3 + $0x18] sm:$0xff] %vm3563_vm8, %v3474_v18  ;;  %v3472_v27 = vpop.permute.xlu0 %3471  ;;  %v7189_v18 = vpack.c.bf16 %v11607_v13, %v11606_v21 }
 0x4d9   : > { %3566 = vst.msk [vmem:[#allocation3 + $0x10] sm:$0xff] %vm3563_vm8, %v3472_v27  ;;  %3871 = vrot.lane.b32.xlu1 %v3798_v59, %s7465_s13  ;;  %v11609_v27 = vld [vmem:[#allocation40_spill] sm:$0xff] }
 0x4da   : > { %3869 = vrot.lane.b32.xlu0 %v3797_v5, %s7465_s13  ;;  %v7192_v59 = vpack.c.bf16 %v11609_v27, %v11608_v1  ;;  %v3997_v5 = vld [vmem:[#allocation2 + $0xe2] sm:$0xff] }
 0x4db   : > { %v3478_v26 = vpop.permute.xlu1 %3477  ;;  %v3812_v27 = vld [vmem:[#allocation2 + $0x141] sm:$0xff] }
 0x4dc   : > { %3569 = vst.msk [vmem:[#allocation3 + $0x28] sm:$0xff] %vm3563_vm8, %v3478_v26  ;;  %v3476_v53 = vpop.permute.xlu0 %3475  ;;  %7191 = vmatpush3.bf16.xpose.msk.msra.mxu0 %vm9647_vm10, %v7189_v18  ;;  %v3996_v26 = vld [vmem:[#allocation2 + $0xda] sm:$0xff] }
 0x4dd   : > { %3568 = vst.msk [vmem:[#allocation3 + $0x20] sm:$0xff] %vm3563_vm8, %v3476_v53  ;;  %4064 = vrot.lane.b32.xlu1 %v3991_v0, %s7466_s14  ;;  %7194 = vmatprep.subr.msk.bf16.mxu0 %vm9647_vm10, %v7192_v59  ;;  %v11610_v0 = vld [vmem:[#allocation21_spill] sm:$0xff]  ;;  %v3619_v18 = vld [vmem:[#allocation2 + $0x140] sm:$0xff] }
 0x4de   : > { %4062 = vrot.lane.b32.xlu0 %v3990_v3, %s7466_s14  ;;  %v11611_v3 = vld [vmem:[#allocation24_spill] sm:$0xff] }
 0x4df   : > { %v3482_v36 = vpop.permute.xlu1 %3481  ;;  %v3811_v59 = vld [vmem:[#allocation2 + $0x139] sm:$0xff] }
 0x4e0   : > { %3571 = vst.msk [vmem:[#allocation3 + $0x38] sm:$0xff] %vm3563_vm8, %v3482_v36  ;;  %v3480_v43 = vpop.permute.xlu0 %3479  ;;  %v7195_v36 = vpack.c.bf16 %v11611_v3, %v11610_v0  ;;  %v3621_v0 = vld [vmem:[#allocation2 + $0x158] sm:$0xff]  ;;  %v11616_v3 = vmov 1.0  }
 0x4e1   : > { %3570 = vst.msk [vmem:[#allocation3 + $0x30] sm:$0xff] %vm3563_vm8, %v3480_v43  ;;  %3875 = vrot.lane.b32.xlu1 %v3800_v50, %s7465_s13  ;;  %v11613_v43 = vld [vmem:[#allocation41_spill] sm:$0xff] }
 0x4e2   : > { %3873 = vrot.lane.b32.xlu0 %v3799_v34, %s7465_s13  ;;  %v7198_v50 = vpack.c.bf16 %v11613_v43, %v11612_v52  ;;  %v3806_v34 = vld [vmem:[#allocation2 + $0xf9] sm:$0xff]  ;;  %v3813_v43 = vld [vmem:[#allocation2 + $0x151] sm:$0xff] }
 0x4e3   : > { %v3486_v56 = vpop.permute.xlu1 %3485  ;;  %v3814_v52 = vld [vmem:[#allocation2 + $0x159] sm:$0xff] }
 0x4e4   : > { %3573 = vst.msk [vmem:[#allocation3 + $0x48] sm:$0xff] %vm3563_vm8, %v3486_v56  ;;  %v3484_v62 = vpop.permute.xlu0 %3483  ;;  %7197 = vmatpush3.bf16.xpose.msk.msra.mxu0 %vm9647_vm10, %v7195_v36  ;;  %v3805_v56 = vld [vmem:[#allocation2 + $0xf1] sm:$0xff] }
 0x4e5   : > { %3572 = vst.msk [vmem:[#allocation3 + $0x40] sm:$0xff] %vm3563_vm8, %v3484_v62  ;;  %4068 = vrot.lane.b32.xlu1 %v3993_v17, %s7466_s14  ;;  %7200 = vmatprep.subr.msk.bf16.mxu0 %vm9647_vm10, %v7198_v50  ;;  %v11614_v17 = vld [vmem:[#allocation23_spill] sm:$0xff]  ;;  %v3620_v36 = vld [vmem:[#allocation2 + $0x150] sm:$0xff] }
 0x4e6   : > { %4066 = vrot.lane.b32.xlu0 %v3992_v40, %s7466_s14  ;;  %v11615_v40 = vld [vmem:[#allocation26_spill] sm:$0xff] }
 0x4e7   : > { %v3490_v58 = vpop.permute.xlu1 %3489 }
 0x4e8   : > { %3575 = vst.msk [vmem:[#allocation3 + $0x58] sm:$0xff] %vm3563_vm8, %v3490_v58  ;;  %v3488_v25 = vpop.permute.xlu0 %3487  ;;  %v7201_v58 = vpack.c.bf16 %v11615_v40, %v11614_v17  ;;  %v3623_v40 = vld [vmem:[#allocation2 + $0x170] sm:$0xff] }
 0x4e9   : > { %3574 = vst.msk [vmem:[#allocation3 + $0x50] sm:$0xff] %vm3563_vm8, %v3488_v25  ;;  %3686 = vrot.lane.b32.xlu1 %v3609_v8, %s7464_s12 }
 0x4ea   : > { %3684 = vrot.lane.b32.xlu0 %v3608_v20, %s7464_s12 }
 0x4eb   : > { %v3494_v22 = vpop.permute.xlu1 %3493 }
 0x4ec   : > { %3577 = vst.msk [vmem:[#allocation3 + $0x68] sm:$0xff] %vm3563_vm8, %v3494_v22  ;;  %v3492_v19 = vpop.permute.xlu0 %3491  ;;  %7203 = vmatpush3.bf16.xpose.msk.msra.mxu0 %vm9647_vm10, %v7201_v58  ;;  %v3808_v22 = vld [vmem:[#allocation2 + $0x111] sm:$0xff]  ;;  %v3622_v58 = vld [vmem:[#allocation2 + $0x168] sm:$0xff] }
 0x4ed   : > { %3576 = vst.msk [vmem:[#allocation3 + $0x60] sm:$0xff] %vm3563_vm8, %v3492_v19  ;;  %3879 = vrot.lane.b32.xlu1 %v3802_v14, %s7465_s13  ;;  %v3807_v19 = vld [vmem:[#allocation2 + $0x109] sm:$0xff]  ;;  %7106 = vmatprep.subr.msk.mxu0 %vm4241_vm12, %v4240_v38 }
 0x4ee   : > { %3877 = vrot.lane.b32.xlu0 %v3801_v11, %s7465_s13  ;;  %v7367_v11 = vld [vmem:[%s11286_s1] sm:$0xff] }
 0x4ef   : > { %v3498_v31 = vpop.permute.xlu1 %3497 }
 0x4f0   : > { %3579 = vst.msk [vmem:[#allocation3 + $0x78] sm:$0xff] %vm3563_vm8, %v3498_v31  ;;  %v3496_v32 = vpop.permute.xlu0 %3495 }
 0x4f1   : > { %3578 = vst.msk [vmem:[#allocation3 + $0x70] sm:$0xff] %vm3563_vm8, %v3496_v32  ;;  %4072 = vrot.lane.b32.xlu1 %v3995_v61, %s7466_s14  ;;  %v3617_v61 = vld [vmem:[#allocation2 + $0x128] sm:$0xff] }
 0x4f2   : > { %4070 = vrot.lane.b32.xlu0 %v3994_v48, %s7466_s14  ;;  %v3810_v48 = vld [vmem:[#allocation2 + $0x129] sm:$0xff] }
 0x4f3   : > { %v3502_v30 = vpop.permute.xlu1 %3501  ;;  %6921 = vmatmul.mubr.msk.f32.vlgmr.msra.gmra.mrb[0].mxu0 %vm2035_vm9, %v7367_v11  ;;  %vm3949_vm9 = vcmask 523712  }
 0x4f4   : > { %3581 = vst.msk [vmem:[#allocation3 + $0x88] sm:$0xff] %vm3563_vm8, %v3502_v30  ;;  %v3500_v46 = vpop.permute.xlu0 %3499  ;;  %7107 = vmatpush3.xpose.msk.msra.mxu0 %vm4241_vm12, %v4240_v38  ;;  %v3809_v30 = vld [vmem:[#allocation2 + $0x121] sm:$0xff] }
 0x4f5   : > { %3580 = vst.msk [vmem:[#allocation3 + $0x80] sm:$0xff] %vm3563_vm8, %v3500_v46  ;;  %3690 = vrot.lane.b32.xlu1 %v3611_v29, %s7464_s12 }
 0x4f6   : > { %3688 = vrot.lane.b32.xlu0 %v3610_v45, %s7464_s12  ;;  %v4003_v45 = vld [vmem:[#allocation2 + $0x12a] sm:$0xff] }
 0x4f7   : > { %v3506_v49 = vpop.permute.xlu1 %3505 }
 0x4f8   : > { %3583 = vst.msk [vmem:[#allocation3 + $0x98] sm:$0xff] %vm3563_vm8, %v3506_v49  ;;  %v3504_v57 = vpop.permute.xlu0 %3503  ;;  %v4002_v49 = vld [vmem:[#allocation2 + $0x122] sm:$0xff] }
 0x4f9   : > { %3582 = vst.msk [vmem:[#allocation3 + $0x90] sm:$0xff] %vm3563_vm8, %v3504_v57  ;;  %3883 = vrot.lane.b32.xlu1 %v3804_v10, %s7465_s13  ;;  %v3618_v57 = vld [vmem:[#allocation2 + $0x138] sm:$0xff] }
 0x4fa   : > { %3881 = vrot.lane.b32.xlu0 %v3803_v51, %s7465_s13 }
 0x4fb   : > { %v3510_v47 = vpop.permute.xlu1 %3509 }
 0x4fc   : > { %3585 = vst.msk [vmem:[#allocation3 + $0xa8] sm:$0xff] %vm3563_vm8, %v3510_v47  ;;  %v3508_v54 = vpop.permute.xlu0 %3507 }
 0x4fd   : > { %3584 = vst.msk [vmem:[#allocation3 + $0xa0] sm:$0xff] %vm3563_vm8, %v3508_v54  ;;  %4076 = vrot.lane.b32.xlu1 %v3997_v5, %s7466_s14  ;;  %v4005_v54 = vld [vmem:[#allocation2 + $0x142] sm:$0xff]  ;;  %v4004_v5 = vld [vmem:[#allocation2 + $0x13a] sm:$0xff] }
 0x4fe   : > { %4074 = vrot.lane.b32.xlu0 %v3996_v26, %s7466_s14 }
 0x4ff   : > { %v3514_v53 = vpop.permute.xlu1 %3513 }
 0x500   : > { %3587 = vst.msk [vmem:[#allocation3 + $0xb8] sm:$0xff] %vm3563_vm8, %v3514_v53  ;;  %v3512_v44 = vpop.permute.xlu0 %3511 }
 0x501   : > { %3586 = vst.msk [vmem:[#allocation3 + $0xb0] sm:$0xff] %vm3563_vm8, %v3512_v44  ;;  %3694 = vrot.lane.b32.xlu1 %v3613_v39, %s7464_s12 }
 0x502   : > { %3692 = vrot.lane.b32.xlu0 %v3612_v7, %s7464_s12 }
 0x503   : > { %v3518_v24 = vpop.permute.xlu1 %3517 }
 0x504   : > { %3589 = vst.msk [vmem:[#allocation3 + $0xc8] sm:$0xff] %vm3563_vm8, %v3518_v24  ;;  %v3516_v55 = vpop.permute.xlu0 %3515  ;;  %v4007_v24 = vld [vmem:[#allocation2 + $0x15a] sm:$0xff] }
 0x505   : > { %3588 = vst.msk [vmem:[#allocation3 + $0xc0] sm:$0xff] %vm3563_vm8, %v3516_v55  ;;  %3887 = vrot.lane.b32.xlu1 %v3806_v34, %s7465_s13  ;;  %v4006_v34 = vld [vmem:[#allocation2 + $0x152] sm:$0xff] }
 0x506   : > { %3885 = vrot.lane.b32.xlu0 %v3805_v56, %s7465_s13 }
 0x507   : > { %v3522_v62 = vpop.permute.xlu1 %3521 }
 0x508   : > { %3591 = vst.msk [vmem:[#allocation3 + $0xd8] sm:$0xff] %vm3563_vm8, %v3522_v62  ;;  %v3520_v15 = vpop.permute.xlu0 %3519 }
 0x509   : > { %3590 = vst.msk [vmem:[#allocation3 + $0xd0] sm:$0xff] %vm3563_vm8, %v3520_v15  ;;  %4080 = vrot.lane.b32.xlu1 %v3999_v23, %s7466_s14 }
 0x50a   : > { %4078 = vrot.lane.b32.xlu0 %v3998_v63, %s7466_s14  ;;  %v3816_v63 = vld [vmem:[#allocation2 + $0x171] sm:$0xff] }
 0x50b   : > { %v3526_v25 = vpop.permute.xlu1 %3525 }
 0x50c   : > { %3593 = vst.msk [vmem:[#allocation3 + $0xe8] sm:$0xff] %vm3563_vm8, %v3526_v25  ;;  %v3524_v8 = vpop.permute.xlu0 %3523 }
 0x50d   : > { %3592 = vst.msk [vmem:[#allocation3 + $0xe0] sm:$0xff] %vm3563_vm8, %v3524_v8  ;;  %3698 = vrot.lane.b32.xlu1 %v3615_v41, %s7464_s12  ;;  %v3815_v8 = vld [vmem:[#allocation2 + $0x169] sm:$0xff] }
 0x50e   : > { %3696 = vrot.lane.b32.xlu0 %v3614_v37, %s7464_s12 }
 0x50f   : > { %v3530_v4 = vpop.permute.xlu1 %3529 }
 0x510   : > { %3595 = vst.msk [vmem:[#allocation3 + $0xf8] sm:$0xff] %vm3563_vm8, %v3530_v4  ;;  %v3528_v20 = vpop.permute.xlu0 %3527 }
 0x511   : > { %3594 = vst.msk [vmem:[#allocation3 + $0xf0] sm:$0xff] %vm3563_vm8, %v3528_v20  ;;  %3891 = vrot.lane.b32.xlu1 %v3808_v22, %s7465_s13  ;;  %v4009_v20 = vld [vmem:[#allocation2 + $0x172] sm:$0xff]  ;;  %v4008_v22 = vld [vmem:[#allocation2 + $0x16a] sm:$0xff] }
 0x512   : > { %3889 = vrot.lane.b32.xlu0 %v3807_v19, %s7465_s13 }
 0x513   : > { %v3663_v14 = vpop.permute.xlu1 %3662 }
 0x514   : > { %3758 = vst.msk [vmem:[#allocation3 + $0x8] sm:$0xff] %vm3756_vm11, %v3663_v14  ;;  %v3661_v31 = vpop.permute.xlu0 %3660  ;;  %v3625_v14 = vld [vmem:[#allocation2 + $0x188] sm:$0xff] }
 0x515   : > { %3757 = vst.msk [vmem:[#allocation3] sm:$0xff] %vm3756_vm11, %v3661_v31  ;;  %4084 = vrot.lane.b32.xlu1 %v4001_v6, %s7466_s14  ;;  %v3624_v31 = vld [vmem:[#allocation2 + $0x180] sm:$0xff] }
 0x516   : > { %4082 = vrot.lane.b32.xlu0 %v4000_v12, %s7466_s14 }
 0x517   : > { %v3667_v2 = vpop.permute.xlu1 %3666 }
 0x518   : > { %3760 = vst.msk [vmem:[#allocation3 + $0x18] sm:$0xff] %vm3756_vm11, %v3667_v2  ;;  %v3665_v32 = vpop.permute.xlu0 %3664 }
 0x519   : > { %3759 = vst.msk [vmem:[#allocation3 + $0x10] sm:$0xff] %vm3756_vm11, %v3665_v32  ;;  %3702 = vrot.lane.b32.xlu1 %v3617_v61, %s7464_s12 }
 0x51a   : > { %3700 = vrot.lane.b32.xlu0 %v3616_v28, %s7464_s12 }
 0x51b   : > { %v3671_v42 = vpop.permute.xlu1 %3670 }
 0x51c   : > { %3762 = vst.msk [vmem:[#allocation3 + $0x28] sm:$0xff] %vm3756_vm11, %v3671_v42  ;;  %v3669_v60 = vpop.permute.xlu0 %3668 }
 0x51d   : > { %3761 = vst.msk [vmem:[#allocation3 + $0x20] sm:$0xff] %vm3756_vm11, %v3669_v60  ;;  %3895 = vrot.lane.b32.xlu1 %v3810_v48, %s7465_s13  ;;  %v3626_v60 = vld [vmem:[#allocation2 + $0x198] sm:$0xff]  ;;  %v3820_v48 = vld [vmem:[#allocation2 + $0x1a1] sm:$0xff] }
 0x51e   : > { %3893 = vrot.lane.b32.xlu0 %v3809_v30, %s7465_s13  ;;  %v3819_v30 = vld [vmem:[#allocation2 + $0x199] sm:$0xff] }
 0x51f   : > { %v3675_v46 = vpop.permute.xlu1 %3674 }
 0x520   : > { %3764 = vst.msk [vmem:[#allocation3 + $0x38] sm:$0xff] %vm3756_vm11, %v3675_v46  ;;  %v3673_v29 = vpop.permute.xlu0 %3672 }
 0x521   : > { %3763 = vst.msk [vmem:[#allocation3 + $0x30] sm:$0xff] %vm3756_vm11, %v3673_v29  ;;  %4088 = vrot.lane.b32.xlu1 %v4003_v45, %s7466_s14 }
 0x522   : > { %4086 = vrot.lane.b32.xlu0 %v4002_v49, %s7466_s14  ;;  %v4013_v49 = vld [vmem:[#allocation2 + $0x1a2] sm:$0xff] }
 0x523   : > { %v3679_v21 = vpop.permute.xlu1 %3678 }
 0x524   : > { %3766 = vst.msk [vmem:[#allocation3 + $0x48] sm:$0xff] %vm3756_vm11, %v3679_v21  ;;  %v3677_v13 = vpop.permute.xlu0 %3676 }
 0x525   : > { %3765 = vst.msk [vmem:[#allocation3 + $0x40] sm:$0xff] %vm3756_vm11, %v3677_v13  ;;  %3706 = vrot.lane.b32.xlu1 %v3619_v18, %s7464_s12  ;;  %v4012_v13 = vld [vmem:[#allocation2 + $0x19a] sm:$0xff] }
 0x526   : > { %3704 = vrot.lane.b32.xlu0 %v3618_v57, %s7464_s12 }
 0x527   : > { %v3683_v10 = vpop.permute.xlu1 %3682 }
 0x528   : > { %3768 = vst.msk [vmem:[#allocation3 + $0x58] sm:$0xff] %vm3756_vm11, %v3683_v10  ;;  %v3681_v1 = vpop.permute.xlu0 %3680 }
 0x529   : > { %3767 = vst.msk [vmem:[#allocation3 + $0x50] sm:$0xff] %vm3756_vm11, %v3681_v1  ;;  %3899 = vrot.lane.b32.xlu1 %v3812_v27, %s7465_s13 }
 0x52a   : > { %3897 = vrot.lane.b32.xlu0 %v3811_v59, %s7465_s13 }
 0x52b   : > { %v3856_v51 = vpop.permute.xlu1 %3855 }
 0x52c   : > { %3951 = vst.msk [vmem:[#allocation3 + $0x8] sm:$0xff] %vm3949_vm9, %v3856_v51  ;;  %v3854_v47 = vpop.permute.xlu0 %3853 }
 0x52d   : > { %3950 = vst.msk [vmem:[#allocation3] sm:$0xff] %vm3949_vm9, %v3854_v47  ;;  %4092 = vrot.lane.b32.xlu1 %v4005_v54, %s7466_s14 }
 0x52e   : > { %4090 = vrot.lane.b32.xlu0 %v4004_v5, %s7466_s14 }
 0x52f   : > { %v4049_v26 = vpop.permute.xlu1 %4048 }
 0x530   : > { %4144 = vst.msk [vmem:[#allocation3 + $0x8] sm:$0xff] %vm4142_vm14, %v4049_v26  ;;  %v4047_v53 = vpop.permute.xlu0 %4046 }
 0x531   : > { %4177 = vst.msk [vmem:[#allocation3 + $0x8] sm:$0xff] %vm4175_vm15, %v11616_v3  ;;  %3710 = vrot.lane.b32.xlu1 %v3621_v0, %s7464_s12 }
 0x532   : > { %4143 = vst.msk [vmem:[#allocation3] sm:$0xff] %vm4142_vm14, %v4047_v53  ;;  %3708 = vrot.lane.b32.xlu0 %v3620_v36, %s7464_s12 }
 0x533   : > { %4176 = vst.msk [vmem:[#allocation3] sm:$0xff] %vm4175_vm15, %v11616_v3  ;;  %v3860_v44 = vpop.permute.xlu1 %3859 }
 0x534   : > { %3953 = vst.msk [vmem:[#allocation3 + $0x18] sm:$0xff] %vm3949_vm9, %v3860_v44  ;;  %v3858_v39 = vpop.permute.xlu0 %3857 }
 0x535   : > { %3952 = vst.msk [vmem:[#allocation3 + $0x10] sm:$0xff] %vm3949_vm9, %v3858_v39  ;;  %3903 = vrot.lane.b32.xlu1 %v3814_v52, %s7465_s13 }
 0x536   : > { %3901 = vrot.lane.b32.xlu0 %v3813_v43, %s7465_s13 }
 0x537   : > { %v4053_v50 = vpop.permute.xlu1 %4052 }
 0x538   : > { %4146 = vst.msk [vmem:[#allocation3 + $0x18] sm:$0xff] %vm4142_vm14, %v4053_v50  ;;  %v4051_v7 = vpop.permute.xlu0 %4050  ;;  %v9827_v55 = vld [vmem:[#allocation3 + $0x8] sm:$0xff] }
 0x539   : > { %11617 = vst [vmem:[#allocation43_spill] sm:$0xff] %v9827_v55  ;;  %4179 = vst.msk [vmem:[#allocation3 + $0x18] sm:$0xff] %vm4175_vm15, %v11616_v3  ;;  %4096 = vrot.lane.b32.xlu1 %v4007_v24, %s7466_s14 }
 0x53a   : > { %4145 = vst.msk [vmem:[#allocation3 + $0x10] sm:$0xff] %vm4142_vm14, %v4051_v7  ;;  %v9833_v56 = vld [vmem:[#allocation3] sm:$0xff]  ;;  %4094 = vrot.lane.b32.xlu0 %v4006_v34, %s7466_s14 }
 0x53b   : > { %11618 = vst [vmem:[#allocation44_spill] sm:$0xff] %v9833_v56  ;;  %4178 = vst.msk [vmem:[#allocation3 + $0x10] sm:$0xff] %vm4175_vm15, %v11616_v3  ;;  %7108 = vmatprep.mubr.msk.f32.mxu0 %vm4241_vm12, %v9833_v56  ;;  %v3864_v62 = vpop.permute.xlu1 %3863 }
 0x53c   : > { %7109 = vmatmul.mubr.msk.f32.vlgmr.msra.gmra.mrb[2].mxu0 %vm4241_vm12, %v9827_v55  ;;  %3955 = vst.msk [vmem:[#allocation3 + $0x28] sm:$0xff] %vm3949_vm9, %v3864_v62  ;;  %v3862_v17 = vpop.permute.xlu0 %3861 }
 0x53d   : > { %3954 = vst.msk [vmem:[#allocation3 + $0x20] sm:$0xff] %vm3949_vm9, %v3862_v17  ;;  %3714 = vrot.lane.b32.xlu1 %v3623_v40, %s7464_s12 }
 0x53e   : > { %3712 = vrot.lane.b32.xlu0 %v3622_v58, %s7464_s12 }
 0x53f   : > { %v4057_v15 = vpop.permute.xlu1 %4056 }
 0x540   : > { %4148 = vst.msk [vmem:[#allocation3 + $0x28] sm:$0xff] %vm4142_vm14, %v4057_v15  ;;  %v4055_v23 = vpop.permute.xlu0 %4054  ;;  %v9847_v25 = vld [vmem:[#allocation3 + $0x18] sm:$0xff] }
 0x541   : > { %11619 = vst [vmem:[#allocation45_spill] sm:$0xff] %v9847_v25  ;;  %4181 = vst.msk [vmem:[#allocation3 + $0x28] sm:$0xff] %vm4175_vm15, %v11616_v3  ;;  %3907 = vrot.lane.b32.xlu1 %v3816_v63, %s7465_s13 }
 0x542   : > { %4147 = vst.msk [vmem:[#allocation3 + $0x20] sm:$0xff] %vm4142_vm14, %v4055_v23  ;;  %v9853_v41 = vld [vmem:[#allocation3 + $0x10] sm:$0xff]  ;;  %3905 = vrot.lane.b32.xlu0 %v3815_v8, %s7465_s13 }
 0x543   : > { %11620 = vst [vmem:[#allocation46_spill] sm:$0xff] %v9853_v41  ;;  %4180 = vst.msk [vmem:[#allocation3 + $0x20] sm:$0xff] %vm4175_vm15, %v11616_v3  ;;  %7111 = vmatprep.mubr.msk.f32.mxu0 %vm4241_vm12, %v9853_v41  ;;  %v3868_v37 = vpop.permute.xlu1 %3867 }
 0x544   : > { %7112 = vmatmul.mubr.msk.f32.gmra.mrb[4].mxu0 %vm4241_vm12, %v9847_v25  ;;  %3957 = vst.msk [vmem:[#allocation3 + $0x38] sm:$0xff] %vm3949_vm9, %v3868_v37  ;;  %v3866_v4 = vpop.permute.xlu0 %3865 }
 0x545   : > { %3956 = vst.msk [vmem:[#allocation3 + $0x30] sm:$0xff] %vm3949_vm9, %v3866_v4  ;;  %4100 = vrot.lane.b32.xlu1 %v4009_v20, %s7466_s14 }
 0x546   : > { %4098 = vrot.lane.b32.xlu0 %v4008_v22, %s7466_s14 }
 0x547   : > { %v4061_v19 = vpop.permute.xlu1 %4060 }
 0x548   : > { %4150 = vst.msk [vmem:[#allocation3 + $0x38] sm:$0xff] %vm4142_vm14, %v4061_v19  ;;  %v4059_v38 = vpop.permute.xlu0 %4058  ;;  %v9867_v11 = vld [vmem:[#allocation3 + $0x28] sm:$0xff] }
 0x549   : > { %11621 = vst [vmem:[#allocation47_spill] sm:$0xff] %v9867_v11  ;;  %4183 = vst.msk [vmem:[#allocation3 + $0x38] sm:$0xff] %vm4175_vm15, %v11616_v3  ;;  %3718 = vrot.lane.b32.xlu1 %v3625_v14, %s7464_s12 }
 0x54a   : > { %4149 = vst.msk [vmem:[#allocation3 + $0x30] sm:$0xff] %vm4142_vm14, %v4059_v38  ;;  %v9873_v6 = vld [vmem:[#allocation3 + $0x20] sm:$0xff]  ;;  %3716 = vrot.lane.b32.xlu0 %v3624_v31, %s7464_s12 }
 0x54b   : > { %11622 = vst [vmem:[#allocation48_spill] sm:$0xff] %v9873_v6  ;;  %4182 = vst.msk [vmem:[#allocation3 + $0x30] sm:$0xff] %vm4175_vm15, %v11616_v3  ;;  %7114 = vmatprep.mubr.msk.f32.mxu0 %vm4241_vm12, %v9873_v6  ;;  %v3872_v12 = vpop.permute.xlu1 %3871 }
 0x54c   : > { %7115 = vmatmul.mubr.msk.f32.gmra.mrb[6].mxu0 %vm4241_vm12, %v9867_v11  ;;  %3959 = vst.msk [vmem:[#allocation3 + $0x48] sm:$0xff] %vm3949_vm9, %v3872_v12  ;;  %v3870_v2 = vpop.permute.xlu0 %3869 }
 0x54d   : > { %3958 = vst.msk [vmem:[#allocation3 + $0x40] sm:$0xff] %vm3949_vm9, %v3870_v2  ;;  %3911 = vrot.lane.b32.xlu1 %v9469_v16, %s7465_s13  ;;  %v3627_v16 = vld [vmem:[#allocation2 + $0x1a0] sm:$0xff] }
 0x54e   : > { %3909 = vrot.lane.b32.xlu0 %v9474_v35, %s7465_s13 }
 0x54f   : > { %v4065_v32 = vpop.permute.xlu1 %4064 }
 0x550   : > { %4152 = vst.msk [vmem:[#allocation3 + $0x48] sm:$0xff] %vm4142_vm14, %v4065_v32  ;;  %v4063_v61 = vpop.permute.xlu0 %4062  ;;  %v9889_v28 = vld [vmem:[#allocation3 + $0x38] sm:$0xff] }
 0x551   : > { %11623 = vst [vmem:[#allocation49_spill] sm:$0xff] %v9889_v28  ;;  %4185 = vst.msk [vmem:[#allocation3 + $0x48] sm:$0xff] %vm4175_vm15, %v11616_v3  ;;  %4104 = vrot.lane.b32.xlu1 %v9569_v33, %s7466_s14 }
 0x552   : > { %4151 = vst.msk [vmem:[#allocation3 + $0x40] sm:$0xff] %vm4142_vm14, %v4063_v61  ;;  %v9896_v42 = vld [vmem:[#allocation3 + $0x30] sm:$0xff]  ;;  %4102 = vrot.lane.b32.xlu0 %v9574_v9, %s7466_s14 }
 0x553   : > { %11624 = vst [vmem:[#allocation50_spill] sm:$0xff] %v9896_v42  ;;  %4184 = vst.msk [vmem:[#allocation3 + $0x40] sm:$0xff] %vm4175_vm15, %v11616_v3  ;;  %7117 = vmatprep.mubr.msk.f32.mxu0 %vm4241_vm12, %v9896_v42  ;;  %v3876_v35 = vpop.permute.xlu1 %3875 }
 0x554   : > { %7118 = vmatmul.mubr.msk.f32.gmra.mrb[8].mxu0 %vm4241_vm12, %v9889_v28  ;;  %3961 = vst.msk [vmem:[#allocation3 + $0x58] sm:$0xff] %vm3949_vm9, %v3876_v35  ;;  %v3874_v33 = vpop.permute.xlu0 %3873 }
 0x555   : > { %3960 = vst.msk [vmem:[#allocation3 + $0x50] sm:$0xff] %vm3949_vm9, %v3874_v33  ;;  %3722 = vrot.lane.b32.xlu1 %v3627_v16, %s7464_s12 }
 0x556   : > { %3720 = vrot.lane.b32.xlu0 %v3626_v60, %s7464_s12 }
 0x557   : > { %v4069_v9 = vpop.permute.xlu1 %4068 }
 0x558   : > { %4154 = vst.msk [vmem:[#allocation3 + $0x58] sm:$0xff] %vm4142_vm14, %v4069_v9  ;;  %v4067_v46 = vpop.permute.xlu0 %4066  ;;  %v9911_v29 = vld [vmem:[#allocation3 + $0x48] sm:$0xff]  ;;  %v4838_v9 = vld [vmem:[#allocation2 + $0x9] sm:$0xff] }
 0x559   : > { %11625 = vst [vmem:[#allocation51_spill] sm:$0xff] %v9911_v29  ;;  %4187 = vst.msk [vmem:[#allocation3 + $0x58] sm:$0xff] %vm4175_vm15, %v11616_v3  ;;  %3915 = vrot.lane.b32.xlu1 %v3820_v48, %s7465_s13 }
 0x55a   : > { %4153 = vst.msk [vmem:[#allocation3 + $0x50] sm:$0xff] %vm4142_vm14, %v4067_v46  ;;  %v9916_v45 = vld [vmem:[#allocation3 + $0x40] sm:$0xff]  ;;  %3913 = vrot.lane.b32.xlu0 %v3819_v30, %s7465_s13  ;;  %v4837_v30 = vld [vmem:[#allocation2 + $0x1] sm:$0xff] }
 0x55b   : > { %11626 = vst [vmem:[#allocation52_spill] sm:$0xff] %v9916_v45  ;;  %4186 = vst.msk [vmem:[#allocation3 + $0x50] sm:$0xff] %vm4175_vm15, %v11616_v3  ;;  %7120 = vmatprep.mubr.msk.f32.mxu0 %vm4241_vm12, %v9916_v45  ;;  %v3687_v21 = vpop.permute.xlu1 %3686 }
 0x55c   : > { %7121 = vmatmul.mubr.msk.f32.gmra.mrb[10].mxu0 %vm4241_vm12, %v9911_v29  ;;  %3770 = vst.msk [vmem:[#allocation3 + $0x68] sm:$0xff] %vm3756_vm11, %v3687_v21  ;;  %v3685_v18 = vpop.permute.xlu0 %3684 }
 0x55d   : > { %3769 = vst.msk [vmem:[#allocation3 + $0x60] sm:$0xff] %vm3756_vm11, %v3685_v18  ;;  %4108 = vrot.lane.b32.xlu1 %v4013_v49, %s7466_s14 }
 0x55e   : > { %4106 = vrot.lane.b32.xlu0 %v4012_v13, %s7466_s14 }
 0x55f   : > { %v3880_v57 = vpop.permute.xlu1 %3879 }
 0x560   : > { %3963 = vst.msk [vmem:[#allocation3 + $0x68] sm:$0xff] %vm3949_vm9, %v3880_v57  ;;  %v3878_v10 = vpop.permute.xlu0 %3877  ;;  %v9931_v1 = vld [vmem:[#allocation3 + $0x58] sm:$0xff] }
 0x561   : > { %11627 = vst [vmem:[#allocation53_spill] sm:$0xff] %v9931_v1  ;;  %3962 = vst.msk [vmem:[#allocation3 + $0x60] sm:$0xff] %vm3949_vm9, %v3878_v10  ;;  %4903 = vrot.lane.b32.xlu1 %v4838_v9, %s7455_s17 }
 0x562   : > { %v9934_v27 = vld [vmem:[#allocation3 + $0x50] sm:$0xff]  ;;  %4901 = vrot.lane.b32.xlu0 %v4837_v30, %s7455_s17 }
 0x563   : > { %11628 = vst [vmem:[#allocation54_spill] sm:$0xff] %v9934_v27  ;;  %7123 = vmatprep.mubr.msk.f32.mxu0 %vm4241_vm12, %v9934_v27  ;;  %v4073_v59 = vpop.permute.xlu1 %4072 }
 0x564   : > { %7124 = vmatmul.mubr.msk.f32.gmra.mrb[12].mxu0 %vm4241_vm12, %v9931_v1  ;;  %4156 = vst.msk [vmem:[#allocation3 + $0x68] sm:$0xff] %vm4142_vm14, %v4073_v59  ;;  %v4071_v51 = vpop.permute.xlu0 %4070 }
 0x565   : > { %4189 = vst.msk [vmem:[#allocation3 + $0x68] sm:$0xff] %vm4175_vm15, %v11616_v3 }
 0x566   : > { %4155 = vst.msk [vmem:[#allocation3 + $0x60] sm:$0xff] %vm4142_vm14, %v4071_v51 }
 0x567   : > { %4188 = vst.msk [vmem:[#allocation3 + $0x60] sm:$0xff] %vm4175_vm15, %v11616_v3  ;;  %v3691_v47 = vpop.permute.xlu1 %3690 }
 0x568   : > { %3772 = vst.msk [vmem:[#allocation3 + $0x78] sm:$0xff] %vm3756_vm11, %v3691_v47  ;;  %v3689_v54 = vpop.permute.xlu0 %3688 }
 0x569   : > { %3771 = vst.msk [vmem:[#allocation3 + $0x70] sm:$0xff] %vm3756_vm11, %v3689_v54 }
 0x56b   : > { %v3884_v5 = vpop.permute.xlu1 %3883 }
 0x56c   : > { %3965 = vst.msk [vmem:[#allocation3 + $0x78] sm:$0xff] %vm3949_vm9, %v3884_v5  ;;  %v3882_v26 = vpop.permute.xlu0 %3881  ;;  %v9949_v53 = vld [vmem:[#allocation3 + $0x68] sm:$0xff] }
 0x56d   : > { %11629 = vst [vmem:[#allocation55_spill] sm:$0xff] %v9949_v53  ;;  %3964 = vst.msk [vmem:[#allocation3 + $0x70] sm:$0xff] %vm3949_vm9, %v3882_v26 }
 0x56e   : > { %v9952_v0 = vld [vmem:[#allocation3 + $0x60] sm:$0xff] }
 0x56f   : > { %11630 = vst [vmem:[#allocation56_spill] sm:$0xff] %v9952_v0  ;;  %7126 = vmatprep.mubr.msk.f32.mxu0 %vm4241_vm12, %v9952_v0  ;;  %v4077_v36 = vpop.permute.xlu1 %4076 }
 0x570   : > { %7127 = vmatmul.mubr.msk.f32.gmra.mrb[14].mxu0 %vm4241_vm12, %v9949_v53  ;;  %4158 = vst.msk [vmem:[#allocation3 + $0x78] sm:$0xff] %vm4142_vm14, %v4077_v36  ;;  %v4075_v44 = vpop.permute.xlu0 %4074 }
 0x571   : > { %4191 = vst.msk [vmem:[#allocation3 + $0x78] sm:$0xff] %vm4175_vm15, %v11616_v3 }
 0x572   : > { %4157 = vst.msk [vmem:[#allocation3 + $0x70] sm:$0xff] %vm4142_vm14, %v4075_v44 }
 0x573   : > { %4190 = vst.msk [vmem:[#allocation3 + $0x70] sm:$0xff] %vm4175_vm15, %v11616_v3  ;;  %v3695_v39 = vpop.permute.xlu1 %3694 }
 0x574   : > { %3774 = vst.msk [vmem:[#allocation3 + $0x88] sm:$0xff] %vm3756_vm11, %v3695_v39  ;;  %v3693_v52 = vpop.permute.xlu0 %3692 }
 0x575   : > { %3773 = vst.msk [vmem:[#allocation3 + $0x80] sm:$0xff] %vm3756_vm11, %v3693_v52 }
 0x577   : > { %v3888_v43 = vpop.permute.xlu1 %3887 }
 0x578   : > { %3967 = vst.msk [vmem:[#allocation3 + $0x88] sm:$0xff] %vm3949_vm9, %v3888_v43  ;;  %v3886_v50 = vpop.permute.xlu0 %3885  ;;  %v9967_v7 = vld [vmem:[#allocation3 + $0x78] sm:$0xff] }
 0x579   : > { %11631 = vst [vmem:[#allocation57_spill] sm:$0xff] %v9967_v7  ;;  %3966 = vst.msk [vmem:[#allocation3 + $0x80] sm:$0xff] %vm3949_vm9, %v3886_v50 }
 0x57a   : > { %v9970_v24 = vld [vmem:[#allocation3 + $0x70] sm:$0xff] }
 0x57b   : > { %11632 = vst [vmem:[#allocation58_spill] sm:$0xff] %v9970_v24  ;;  %7129 = vmatprep.mubr.msk.f32.mxu0 %vm4241_vm12, %v9970_v24  ;;  %v4081_v34 = vpop.permute.xlu1 %4080 }
 0x57c   : > { %7130 = vmatmul.mubr.msk.f32.gmra.mrb[16].mxu0 %vm4241_vm12, %v9967_v7  ;;  %4160 = vst.msk [vmem:[#allocation3 + $0x88] sm:$0xff] %vm4142_vm14, %v4081_v34  ;;  %v4079_v62 = vpop.permute.xlu0 %4078 }
 0x57d   : > { %4193 = vst.msk [vmem:[#allocation3 + $0x88] sm:$0xff] %vm4175_vm15, %v11616_v3 }
 0x57e   : > { %4159 = vst.msk [vmem:[#allocation3 + $0x80] sm:$0xff] %vm4142_vm14, %v4079_v62 }
 0x57f   : > { %4192 = vst.msk [vmem:[#allocation3 + $0x80] sm:$0xff] %vm4175_vm15, %v11616_v3  ;;  %v3699_v17 = vpop.permute.xlu1 %3698 }
 0x580   : > { %3776 = vst.msk [vmem:[#allocation3 + $0x98] sm:$0xff] %vm3756_vm11, %v3699_v17  ;;  %v3697_v40 = vpop.permute.xlu0 %3696 }
 0x581   : > { %3775 = vst.msk [vmem:[#allocation3 + $0x90] sm:$0xff] %vm3756_vm11, %v3697_v40 }
 0x583   : > { %v3892_v58 = vpop.permute.xlu1 %3891 }
 0x584   : > { %3969 = vst.msk [vmem:[#allocation3 + $0x98] sm:$0xff] %vm3949_vm9, %v3892_v58  ;;  %v3890_v15 = vpop.permute.xlu0 %3889  ;;  %v9985_v23 = vld [vmem:[#allocation3 + $0x88] sm:$0xff] }
 0x585   : > { %11633 = vst [vmem:[#allocation59_spill] sm:$0xff] %v9985_v23  ;;  %3968 = vst.msk [vmem:[#allocation3 + $0x90] sm:$0xff] %vm3949_vm9, %v3890_v15 }
 0x586   : > { %v9988_v63 = vld [vmem:[#allocation3 + $0x80] sm:$0xff] }
 0x587   : > { %11634 = vst [vmem:[#allocation60_spill] sm:$0xff] %v9988_v63  ;;  %7132 = vmatprep.mubr.msk.f32.mxu0 %vm4241_vm12, %v9988_v63  ;;  %v4085_v8 = vpop.permute.xlu1 %4084 }
 0x588   : > { %7133 = vmatmul.mubr.msk.f32.gmra.mrb[18].mxu0 %vm4241_vm12, %v9985_v23  ;;  %4162 = vst.msk [vmem:[#allocation3 + $0x98] sm:$0xff] %vm4142_vm14, %v4085_v8  ;;  %v4083_v37 = vpop.permute.xlu0 %4082 }
 0x589   : > { %4195 = vst.msk [vmem:[#allocation3 + $0x98] sm:$0xff] %vm4175_vm15, %v11616_v3 }
 0x58a   : > { %4161 = vst.msk [vmem:[#allocation3 + $0x90] sm:$0xff] %vm4142_vm14, %v4083_v37 }
 0x58b   : > { %4194 = vst.msk [vmem:[#allocation3 + $0x90] sm:$0xff] %vm4175_vm15, %v11616_v3  ;;  %v3703_v4 = vpop.permute.xlu1 %3702 }
 0x58c   : > { %3778 = vst.msk [vmem:[#allocation3 + $0xa8] sm:$0xff] %vm3756_vm11, %v3703_v4  ;;  %v3701_v20 = vpop.permute.xlu0 %3700  ;;  %v11647_v4 = vld [vmem:[#allocation42_spill] sm:$0xff] }
 0x58d   : > { %3777 = vst.msk [vmem:[#allocation3 + $0xa0] sm:$0xff] %vm3756_vm11, %v3701_v20 }
 0x58f   : > { %v3896_v22 = vpop.permute.xlu1 %3895 }
 0x590   : > { %3971 = vst.msk [vmem:[#allocation3 + $0xa8] sm:$0xff] %vm3949_vm9, %v3896_v22  ;;  %v3894_v19 = vpop.permute.xlu0 %3893  ;;  %v10003_v38 = vld [vmem:[#allocation3 + $0x98] sm:$0xff] }
 0x591   : > { %11635 = vst [vmem:[#allocation61_spill] sm:$0xff] %v10003_v38  ;;  %3970 = vst.msk [vmem:[#allocation3 + $0xa0] sm:$0xff] %vm3949_vm9, %v3894_v19 }
 0x592   : > { %v10006_v14 = vld [vmem:[#allocation3 + $0x90] sm:$0xff] }
 0x593   : > { %11636 = vst [vmem:[#allocation62_spill] sm:$0xff] %v10006_v14  ;;  %7135 = vmatprep.mubr.msk.f32.mxu0 %vm4241_vm12, %v10006_v14  ;;  %v4089_v31 = vpop.permute.xlu1 %4088 }
 0x594   : > { %7136 = vmatmul.mubr.msk.f32.gmra.mrb[20].mxu0 %vm4241_vm12, %v10003_v38  ;;  %4164 = vst.msk [vmem:[#allocation3 + $0xa8] sm:$0xff] %vm4142_vm14, %v4089_v31  ;;  %v4087_v12 = vpop.permute.xlu0 %4086 }
 0x595   : > { %4197 = vst.msk [vmem:[#allocation3 + $0xa8] sm:$0xff] %vm4175_vm15, %v11616_v3 }
 0x596   : > { %4163 = vst.msk [vmem:[#allocation3 + $0xa0] sm:$0xff] %vm4142_vm14, %v4087_v12 }
 0x597   : > { %4196 = vst.msk [vmem:[#allocation3 + $0xa0] sm:$0xff] %vm4175_vm15, %v11616_v3  ;;  %v3707_v2 = vpop.permute.xlu1 %3706 }
 0x598   : > { %3780 = vst.msk [vmem:[#allocation3 + $0xb8] sm:$0xff] %vm3756_vm11, %v3707_v2  ;;  %v3705_v32 = vpop.permute.xlu0 %3704  ;;  %v10109_v2 = vstv %s6783_s10  ;;  %s7388_s10 = sshll.u32 %s7467_s7, 4  ;;  %s7389_s10 = int_to_ptr.vmem [resolvable:$false] %s7388_s10 }
 0x599   : > { %3779 = vst.msk [vmem:[#allocation3 + $0xb0] sm:$0xff] %vm3756_vm11, %v3705_v32 }
 0x59b   : > { %v3900_v61 = vpop.permute.xlu1 %3899 }
 0x59c   : > { %3973 = vst.msk [vmem:[#allocation3 + $0xb8] sm:$0xff] %vm3949_vm9, %v3900_v61  ;;  %v3898_v16 = vpop.permute.xlu0 %3897  ;;  %v10021_v35 = vld [vmem:[#allocation3 + $0xa8] sm:$0xff] }
 0x59d   : > { %11637 = vst [vmem:[#allocation63_spill] sm:$0xff] %v10021_v35  ;;  %3972 = vst.msk [vmem:[#allocation3 + $0xb0] sm:$0xff] %vm3949_vm9, %v3898_v16 }
 0x59e   : > { %v10024_v60 = vld [vmem:[#allocation3 + $0xa0] sm:$0xff] }
 0x59f   : > { %11638 = vst [vmem:[#allocation64_spill] sm:$0xff] %v10024_v60  ;;  %7138 = vmatprep.mubr.msk.f32.mxu0 %vm4241_vm12, %v10024_v60  ;;  %v4093_v33 = vpop.permute.xlu1 %4092 }
 0x5a0   : > { %7139 = vmatmul.mubr.msk.f32.gmra.mrb[22].mxu0 %vm4241_vm12, %v10021_v35  ;;  %4166 = vst.msk [vmem:[#allocation3 + $0xb8] sm:$0xff] %vm4142_vm14, %v4093_v33  ;;  %v4091_v48 = vpop.permute.xlu0 %4090 }
 0x5a1   : > { %4199 = vst.msk [vmem:[#allocation3 + $0xb8] sm:$0xff] %vm4175_vm15, %v11616_v3 }
 0x5a2   : > { %4165 = vst.msk [vmem:[#allocation3 + $0xb0] sm:$0xff] %vm4142_vm14, %v4091_v48 }
 0x5a3   : > { %4198 = vst.msk [vmem:[#allocation3 + $0xb0] sm:$0xff] %vm4175_vm15, %v11616_v3  ;;  %v3711_v46 = vpop.permute.xlu1 %3710 }
 0x5a4   : > { %3782 = vst.msk [vmem:[#allocation3 + $0xc8] sm:$0xff] %vm3756_vm11, %v3711_v46  ;;  %v3709_v49 = vpop.permute.xlu0 %3708 }
 0x5a5   : > { %3781 = vst.msk [vmem:[#allocation3 + $0xc0] sm:$0xff] %vm3756_vm11, %v3709_v49 }
 0x5a7   : > { %v3904_v21 = vpop.permute.xlu1 %3903 }
 0x5a8   : > { %3975 = vst.msk [vmem:[#allocation3 + $0xc8] sm:$0xff] %vm3949_vm9, %v3904_v21  ;;  %v3902_v13 = vpop.permute.xlu0 %3901  ;;  %v10041_v18 = vld [vmem:[#allocation3 + $0xb8] sm:$0xff] }
 0x5a9   : > { %11639 = vst [vmem:[#allocation65_spill] sm:$0xff] %v10041_v18  ;;  %3974 = vst.msk [vmem:[#allocation3 + $0xc0] sm:$0xff] %vm3949_vm9, %v3902_v13 }
 0x5aa   : > { %v10044_v57 = vld [vmem:[#allocation3 + $0xb0] sm:$0xff] }
 0x5ab   : > { %11640 = vst [vmem:[#allocation66_spill] sm:$0xff] %v10044_v57  ;;  %7141 = vmatprep.mubr.msk.f32.mxu0 %vm4241_vm12, %v10044_v57  ;;  %v4097_v10 = vpop.permute.xlu1 %4096 }
 0x5ac   : > { %7142 = vmatmul.mubr.msk.f32.gmra.mrb[24].mxu0 %vm4241_vm12, %v10041_v18  ;;  %4168 = vst.msk [vmem:[#allocation3 + $0xc8] sm:$0xff] %vm4142_vm14, %v4097_v10  ;;  %v4095_v59 = vpop.permute.xlu0 %4094 }
 0x5ad   : > { %4201 = vst.msk [vmem:[#allocation3 + $0xc8] sm:$0xff] %vm4175_vm15, %v11616_v3 }
 0x5ae   : > { %4167 = vst.msk [vmem:[#allocation3 + $0xc0] sm:$0xff] %vm4142_vm14, %v4095_v59 }
 0x5af   : > { %4200 = vst.msk [vmem:[#allocation3 + $0xc0] sm:$0xff] %vm4175_vm15, %v11616_v3  ;;  %v3715_v51 = vpop.permute.xlu1 %3714 }
 0x5b0   : > { %3784 = vst.msk [vmem:[#allocation3 + $0xd8] sm:$0xff] %vm3756_vm11, %v3715_v51  ;;  %v3713_v47 = vpop.permute.xlu0 %3712 }
 0x5b1   : > { %3783 = vst.msk [vmem:[#allocation3 + $0xd0] sm:$0xff] %vm3756_vm11, %v3713_v47 }
 0x5b3   : > { %v3908_v54 = vpop.permute.xlu1 %3907 }
 0x5b4   : > { %3977 = vst.msk [vmem:[#allocation3 + $0xd8] sm:$0xff] %vm3949_vm9, %v3908_v54  ;;  %v3906_v5 = vpop.permute.xlu0 %3905  ;;  %v10059_v26 = vld [vmem:[#allocation3 + $0xc8] sm:$0xff] }
 0x5b5   : > { %11641 = vst [vmem:[#allocation67_spill] sm:$0xff] %v10059_v26  ;;  %3976 = vst.msk [vmem:[#allocation3 + $0xd0] sm:$0xff] %vm3949_vm9, %v3906_v5 }
 0x5b6   : > { %v10062_v36 = vld [vmem:[#allocation3 + $0xc0] sm:$0xff] }
 0x5b7   : > { %11642 = vst [vmem:[#allocation68_spill] sm:$0xff] %v10062_v36  ;;  %7144 = vmatprep.mubr.msk.f32.mxu0 %vm4241_vm12, %v10062_v36  ;;  %v4101_v44 = vpop.permute.xlu1 %4100 }
 0x5b8   : > { %7145 = vmatmul.mubr.msk.f32.gmra.mrb[26].mxu0 %vm4241_vm12, %v10059_v26  ;;  %4170 = vst.msk [vmem:[#allocation3 + $0xd8] sm:$0xff] %vm4142_vm14, %v4101_v44  ;;  %v4099_v39 = vpop.permute.xlu0 %4098 }
 0x5b9   : > { %4203 = vst.msk [vmem:[#allocation3 + $0xd8] sm:$0xff] %vm4175_vm15, %v11616_v3 }
 0x5ba   : > { %4169 = vst.msk [vmem:[#allocation3 + $0xd0] sm:$0xff] %vm4142_vm14, %v4099_v39 }
 0x5bb   : > { %4202 = vst.msk [vmem:[#allocation3 + $0xd0] sm:$0xff] %vm4175_vm15, %v11616_v3  ;;  %v3719_v52 = vpop.permute.xlu1 %3718 }
 0x5bc   : > { %3786 = vst.msk [vmem:[#allocation3 + $0xe8] sm:$0xff] %vm3756_vm11, %v3719_v52  ;;  %v3717_v43 = vpop.permute.xlu0 %3716 }
 0x5bd   : > { %3785 = vst.msk [vmem:[#allocation3 + $0xe0] sm:$0xff] %vm3756_vm11, %v3717_v43 }
 0x5bf   : > { %v3912_v50 = vpop.permute.xlu1 %3911 }
 0x5c0   : > { %3979 = vst.msk [vmem:[#allocation3 + $0xe8] sm:$0xff] %vm3949_vm9, %v3912_v50  ;;  %v3910_v34 = vpop.permute.xlu0 %3909  ;;  %v10077_v62 = vld [vmem:[#allocation3 + $0xd8] sm:$0xff] }
 0x5c1   : > { %11643 = vst [vmem:[#allocation69_spill] sm:$0xff] %v10077_v62  ;;  %3978 = vst.msk [vmem:[#allocation3 + $0xe0] sm:$0xff] %vm3949_vm9, %v3910_v34 }
 0x5c2   : > { %v10080_v17 = vld [vmem:[#allocation3 + $0xd0] sm:$0xff] }
 0x5c3   : > { %11644 = vst [vmem:[#allocation70_spill] sm:$0xff] %v10080_v17  ;;  %7147 = vmatprep.mubr.msk.f32.mxu0 %vm4241_vm12, %v10080_v17  ;;  %v4105_v40 = vpop.permute.xlu1 %4104 }
 0x5c4   : > { %7148 = vmatmul.mubr.msk.f32.gmra.mrb[28].mxu0 %vm4241_vm12, %v10077_v62  ;;  %4172 = vst.msk [vmem:[#allocation3 + $0xe8] sm:$0xff] %vm4142_vm14, %v4105_v40  ;;  %v4103_v58 = vpop.permute.xlu0 %4102 }
 0x5c5   : > { %4205 = vst.msk [vmem:[#allocation3 + $0xe8] sm:$0xff] %vm4175_vm15, %v11616_v3 }
 0x5c6   : > { %4171 = vst.msk [vmem:[#allocation3 + $0xe0] sm:$0xff] %vm4142_vm14, %v4103_v58  ;;  %v2201_v37 = vpop.f32.mrb[0].mxu0 }
 0x5c7   : > { %4204 = vst.msk [vmem:[#allocation3 + $0xe0] sm:$0xff] %vm4175_vm15, %v11616_v3  ;;  %vm2206_vm1 = vcmp.gt.f32.partialorder %v2201_v37, 0.0  ;;  %v2209_v20 = vmul.f32 %v11647_v4, %v2201_v37  ;;  %v2203_v22 = vpop.f32.mrb[1].mxu0  ;;  %v3723_v54 = vpop.permute.xlu1 %3722 }
 0x5c8   : > { %vm2207_vm2 = vcmp.gt.f32.partialorder %v2203_v22, 0.0  ;;  %v2210_v19 = vmul.f32 %v11647_v4, %v2203_v22  ;;  %v3721_v5 = vpop.permute.xlu0 %3720  ;;  %3788 = vst.msk [vmem:[#allocation3 + $0xf8] sm:$0xff] %vm3756_vm11, %v3723_v54 }
 0x5c9   : > { %v2211_v31 = vsel %vm2206_vm1, %v2201_v37, %v2209_v20  ;;  %3787 = vst.msk [vmem:[#allocation3 + $0xf0] sm:$0xff] %vm3756_vm11, %v3721_v5 }
 0x5ca   : > { %6615 = vst [vmem:[%s10105_s8] sm:$0xff] %v2211_v31  ;;  %v2212_v12 = vsel %vm2207_vm2, %v2203_v22, %v2210_v19 }
 0x5cb   : > { %6616 = vst [vmem:[%s10105_s8 + $0x8] sm:$0xff] %v2212_v12  ;;  %v3916_v50 = vpop.permute.xlu1 %3915 }
 0x5cc   : > { %v10092_v15 = vld [vmem:[#allocation3 + $0xe8] sm:$0xff]  ;;  %3981 = vst.msk [vmem:[#allocation3 + $0xf8] sm:$0xff] %vm3949_vm9, %v3916_v50  ;;  %v3914_v40 = vpop.permute.xlu0 %3913 }
 0x5cd   : > { %11645 = vst [vmem:[#allocation71_spill] sm:$0xff] %v10092_v15  ;;  %3980 = vst.msk [vmem:[#allocation3 + $0xf0] sm:$0xff] %vm3949_vm9, %v3914_v40 }
 0x5ce   : > { %v10094_v8 = vld [vmem:[#allocation3 + $0xe0] sm:$0xff] }
 0x5cf   : > { %11646 = vst [vmem:[#allocation72_spill] sm:$0xff] %v10094_v8  ;;  %7150 = vmatprep.mubr.msk.f32.mxu0 %vm4241_vm12, %v10094_v8 }
 0x5d0   : > { %7151 = vmatmul.mubr.msk.f32.gmra.mrb[30].mxu0 %vm4241_vm12, %v10092_v15 }
 0x60f   : > { %v7110_v32 = vpop.f32.mrb[2].mxu0 }
 0x610   : > { %vm4645_vm3 = vcmp.gt.f32.partialorder %v7110_v32, 0.0  ;;  %v4677_v61 = vmul.f32 %v7110_v32, %v10109_v2  ;;  %v4485_v16 = vpop.f32.mrb[3].mxu0 }
 0x611   : > { %vm4644_vm4 = vcmp.gt.f32.partialorder %v4485_v16, 0.0  ;;  %v4676_v33 = vmul.f32 %v4485_v16, %v10109_v2 }
 0x612   : > { %v4709_v48 = vsel %vm4645_vm3, %v7110_v32, %v4677_v61  ;;  %v4109_v61 = vpop.permute.xlu1 %4108 }
 0x613   : > { %4741 = vst.msk [vmem:[#allocation2 + $0x21] sm:$0xff] %vm237_vm0, %v4709_v48  ;;  %v4708_v9 = vsel %vm4644_vm4, %v4485_v16, %v4676_v33  ;;  %v4107_v33 = vpop.permute.xlu0 %4106 }
 0x614   : > { %4740 = vst.msk [vmem:[#allocation2 + $0x19] sm:$0xff] %vm237_vm0, %v4708_v9 }
 0x615   : > { %4174 = vst.msk [vmem:[#allocation3 + $0xf8] sm:$0xff] %vm4142_vm14, %v4109_v61  ;;  %4173 = vst.msk [vmem:[#allocation3 + $0xf0] sm:$0xff] %vm4142_vm14, %v4107_v33 }
 0x616   : > { %4207 = vst.msk [vmem:[#allocation3 + $0xf8] sm:$0xff] %vm4175_vm15, %v11616_v3  ;;  %4206 = vst.msk [vmem:[#allocation3 + $0xf0] sm:$0xff] %vm4175_vm15, %v11616_v3 }
 0x617   : > { %v7113_v30 = vpop.f32.mrb[4].mxu0 }
 0x618   : > { %vm4647_vm10 = vcmp.gt.f32.partialorder %v7113_v30, 0.0  ;;  %v4679_v46 = vmul.f32 %v7113_v30, %v10109_v2  ;;  %v4495_v49 = vpop.f32.mrb[5].mxu0 }
 0x619   : > { %vm4646_vm1 = vcmp.gt.f32.partialorder %v4495_v49, 0.0  ;;  %v4678_v21 = vmul.f32 %v4495_v49, %v10109_v2 }
 0x61a   : > { %v4711_v13 = vsel %vm4647_vm10, %v7113_v30, %v4679_v46  ;;  %v10117_v10 = vld [vmem:[#allocation2 + $0x21] sm:$0xff] }
 0x61b   : > { %4743 = vst.msk [vmem:[#allocation2 + $0x39] sm:$0xff] %vm237_vm0, %v4711_v13  ;;  %v4710_v59 = vsel %vm4646_vm1, %v4495_v49, %v4678_v21  ;;  %4907 = vrot.lane.b32.xlu1 %v10117_v10, %s7455_s17  ;;  %v10122_v51 = vld [vmem:[#allocation2 + $0x19] sm:$0xff] }
 0x61c   : > { %v10124_v47 = vld [vmem:[#allocation2 + $0x20] sm:$0xff]  ;;  %4742 = vst.msk [vmem:[#allocation2 + $0x31] sm:$0xff] %vm237_vm0, %v4710_v59  ;;  %4905 = vrot.lane.b32.xlu0 %v10122_v51, %s7455_s17  ;;  %v10131_v44 = vld [vmem:[#allocation2 + $0x18] sm:$0xff] }
 0x61d   : > { %4808 = vst.msk [vmem:[#allocation3 + $0x18] sm:$0xff] %vm237_vm0, %v10124_v47  ;;  %4807 = vst.msk [vmem:[#allocation3 + $0x10] sm:$0xff] %vm237_vm0, %v10131_v44 }
 0x61f   : > { %v7116_v39 = vpop.f32.mrb[6].mxu0 }
 0x620   : > { %vm4649_vm2 = vcmp.gt.f32.partialorder %v7116_v39, 0.0  ;;  %v4681_v52 = vmul.f32 %v7116_v39, %v10109_v2  ;;  %v4505_v43 = vpop.f32.mrb[7].mxu0 }
 0x621   : > { %vm4648_vm3 = vcmp.gt.f32.partialorder %v4505_v43, 0.0  ;;  %v4680_v34 = vmul.f32 %v4505_v43, %v10109_v2 }
 0x622   : > { %v4713_v58 = vsel %vm4649_vm2, %v7116_v39, %v4681_v52  ;;  %v10140_v37 = vld [vmem:[#allocation2 + $0x39] sm:$0xff] }
 0x623   : > { %4745 = vst.msk [vmem:[#allocation2 + $0x51] sm:$0xff] %vm237_vm0, %v4713_v58  ;;  %v4712_v4 = vsel %vm4648_vm3, %v4505_v43, %v4680_v34  ;;  %4911 = vrot.lane.b32.xlu1 %v10140_v37, %s7455_s17  ;;  %v10146_v20 = vld [vmem:[#allocation2 + $0x31] sm:$0xff]  ;;  %v10189_v58 = vld [vmem:[#allocation3 + $0xf0] sm:$0xff] }
 0x624   : > { %v10148_v22 = vld [vmem:[#allocation2 + $0x38] sm:$0xff]  ;;  %4744 = vst.msk [vmem:[#allocation2 + $0x49] sm:$0xff] %vm237_vm0, %v4712_v4  ;;  %4909 = vrot.lane.b32.xlu0 %v10146_v20, %s7455_s17  ;;  %v10155_v19 = vld [vmem:[#allocation2 + $0x30] sm:$0xff]  ;;  %11648 = vst [vmem:[#allocation27_spill] sm:$0xff] %v10189_v58  ;;  %7153 = vmatprep.mubr.msk.f32.mxu0 %vm4241_vm12, %v10189_v58 }
 0x625   : > { %4810 = vst.msk [vmem:[#allocation3 + $0x28] sm:$0xff] %vm237_vm0, %v10148_v22  ;;  %4809 = vst.msk [vmem:[#allocation3 + $0x20] sm:$0xff] %vm237_vm0, %v10155_v19  ;;  %v10195_v4 = vld [vmem:[#allocation3 + $0xf8] sm:$0xff] }
 0x626   : > { %11649 = vst [vmem:[#allocation30_spill] sm:$0xff] %v10195_v4  ;;  %7154 = vmatmul.mubr.msk.f32.gmra.mrb[32].mxu0 %vm4241_vm12, %v10195_v4 }
 0x627   : > { %v7119_v31 = vpop.f32.mrb[8].mxu0 }
 0x628   : > { %vm4651_vm4 = vcmp.gt.f32.partialorder %v7119_v31, 0.0  ;;  %v4683_v12 = vmul.f32 %v7119_v31, %v10109_v2  ;;  %v4515_v32 = vpop.f32.mrb[9].mxu0 }
 0x629   : > { %vm4650_vm10 = vcmp.gt.f32.partialorder %v4515_v32, 0.0  ;;  %v4682_v16 = vmul.f32 %v4515_v32, %v10109_v2 }
 0x62a   : > { %v4715_v48 = vsel %vm4651_vm4, %v7119_v31, %v4683_v12  ;;  %v4844_v9 = vld [vmem:[#allocation2 + $0x51] sm:$0xff] }
 0x62b   : > { %4747 = vst.msk [vmem:[#allocation2 + $0x69] sm:$0xff] %vm237_vm0, %v4715_v48  ;;  %v4714_v30 = vsel %vm4650_vm10, %v4515_v32, %v4682_v16  ;;  %4915 = vrot.lane.b32.xlu1 %v4844_v9, %s7455_s17  ;;  %v4843_v46 = vld [vmem:[#allocation2 + $0x49] sm:$0xff] }
 0x62c   : > { %v10169_v49 = vld [vmem:[#allocation2 + $0x50] sm:$0xff]  ;;  %4746 = vst.msk [vmem:[#allocation2 + $0x61] sm:$0xff] %vm237_vm0, %v4714_v30  ;;  %4913 = vrot.lane.b32.xlu0 %v4843_v46, %s7455_s17  ;;  %v10175_v21 = vld [vmem:[#allocation2 + $0x48] sm:$0xff] }
 0x62d   : > { %4812 = vst.msk [vmem:[#allocation3 + $0x38] sm:$0xff] %vm237_vm0, %v10169_v49  ;;  %4811 = vst.msk [vmem:[#allocation3 + $0x30] sm:$0xff] %vm237_vm0, %v10175_v21 }
 0x62f   : > { %v7122_v13 = vpop.f32.mrb[10].mxu0 }
 0x630   : > { %vm4653_vm1 = vcmp.gt.f32.partialorder %v7122_v13, 0.0  ;;  %v4685_v59 = vmul.f32 %v7122_v13, %v10109_v2  ;;  %v4525_v54 = vpop.f32.mrb[11].mxu0 }
 0x631   : > { %vm4652_vm2 = vcmp.gt.f32.partialorder %v4525_v54, 0.0  ;;  %v4684_v5 = vmul.f32 %v4525_v54, %v10109_v2 }
 0x632   : > { %v4717_v39 = vsel %vm4653_vm1, %v7122_v13, %v4685_v59  ;;  %v4846_v52 = vld [vmem:[#allocation2 + $0x69] sm:$0xff] }
 0x633   : > { %4749 = vst.msk [vmem:[#allocation2 + $0x81] sm:$0xff] %vm237_vm0, %v4717_v39  ;;  %v4716_v43 = vsel %vm4652_vm2, %v4525_v54, %v4684_v5  ;;  %4919 = vrot.lane.b32.xlu1 %v4846_v52, %s7455_s17  ;;  %v4845_v50 = vld [vmem:[#allocation2 + $0x61] sm:$0xff] }
 0x634   : > { %4748 = vst.msk [vmem:[#allocation2 + $0x79] sm:$0xff] %vm237_vm0, %v4716_v43  ;;  %4917 = vrot.lane.b32.xlu0 %v4845_v50, %s7455_s17  ;;  %v10185_v34 = vld [vmem:[#allocation2 + $0x68] sm:$0xff]  ;;  %v10187_v40 = vld [vmem:[#allocation2 + $0x60] sm:$0xff] }
 0x635   : > { %4814 = vst.msk [vmem:[#allocation3 + $0x48] sm:$0xff] %vm237_vm0, %v10185_v34  ;;  %4813 = vst.msk [vmem:[#allocation3 + $0x40] sm:$0xff] %vm237_vm0, %v10187_v40 }
 0x637   : > { %v7125_v31 = vpop.f32.mrb[12].mxu0 }
 0x638   : > { %vm4655_vm3 = vcmp.gt.f32.partialorder %v7125_v31, 0.0  ;;  %v4687_v12 = vmul.f32 %v7125_v31, %v10109_v2  ;;  %v4535_v32 = vpop.f32.mrb[13].mxu0 }
 0x639   : > { %vm4654_vm4 = vcmp.gt.f32.partialorder %v4535_v32, 0.0  ;;  %v4686_v61 = vmul.f32 %v4535_v32, %v10109_v2 }
 0x63a   : > { %v4719_v16 = vsel %vm4655_vm3, %v7125_v31, %v4687_v12  ;;  %v4848_v33 = vld [vmem:[#allocation2 + $0x81] sm:$0xff] }
 0x63b   : > { %4751 = vst.msk [vmem:[#allocation2 + $0x99] sm:$0xff] %vm237_vm0, %v4719_v16  ;;  %v4718_v48 = vsel %vm4654_vm4, %v4535_v32, %v4686_v61  ;;  %4923 = vrot.lane.b32.xlu1 %v4848_v33, %s7455_s17  ;;  %v4847_v9 = vld [vmem:[#allocation2 + $0x79] sm:$0xff]  ;;  %v5040_v6 = vld [vmem:[#allocation2 + $0x82] sm:$0xff] }
 0x63c   : > { %v10205_v30 = vld [vmem:[#allocation2 + $0x80] sm:$0xff]  ;;  %4750 = vst.msk [vmem:[#allocation2 + $0x91] sm:$0xff] %vm237_vm0, %v4718_v48  ;;  %4921 = vrot.lane.b32.xlu0 %v4847_v9, %s7455_s17  ;;  %v10211_v46 = vld [vmem:[#allocation2 + $0x78] sm:$0xff] }
 0x63d   : > { %4816 = vst.msk [vmem:[#allocation3 + $0x58] sm:$0xff] %vm237_vm0, %v10205_v30  ;;  %4815 = vst.msk [vmem:[#allocation3 + $0x50] sm:$0xff] %vm237_vm0, %v10211_v46  ;;  %v5039_v35 = vld [vmem:[#allocation2 + $0x7a] sm:$0xff] }
 0x642   : > { %v4850_v13 = vld [vmem:[#allocation2 + $0x99] sm:$0xff] }
 0x643   : > { %v7128_v59 = vpop.f32.mrb[14].mxu0  ;;  %4927 = vrot.lane.b32.xlu1 %v4850_v13, %s7455_s17  ;;  %v4849_v54 = vld [vmem:[#allocation2 + $0x91] sm:$0xff]  ;;  %v5042_v60 = vld [vmem:[#allocation2 + $0x9a] sm:$0xff] }
 0x644   : > { %v10216_v5 = vld [vmem:[#allocation2 + $0x98] sm:$0xff]  ;;  %vm4657_vm10 = vcmp.gt.f32.partialorder %v7128_v59, 0.0  ;;  %v4689_v39 = vmul.f32 %v7128_v59, %v10109_v2  ;;  %v4545_v52 = vpop.f32.mrb[15].mxu0  ;;  %4925 = vrot.lane.b32.xlu0 %v4849_v54, %s7455_s17  ;;  %v10222_v43 = vld [vmem:[#allocation2 + $0x90] sm:$0xff] }
 0x645   : > { %4818 = vst.msk [vmem:[#allocation3 + $0x68] sm:$0xff] %vm237_vm0, %v10216_v5  ;;  %vm4656_vm1 = vcmp.gt.f32.partialorder %v4545_v52, 0.0  ;;  %v4688_v50 = vmul.f32 %v4545_v52, %v10109_v2  ;;  %4817 = vst.msk [vmem:[#allocation3 + $0x60] sm:$0xff] %vm237_vm0, %v10222_v43 }
 0x646   : > { %v4721_v31 = vsel %vm4657_vm10, %v7128_v59, %v4689_v39 }
 0x647   : > { %4753 = vst.msk [vmem:[#allocation2 + $0xb1] sm:$0xff] %vm237_vm0, %v4721_v31  ;;  %v4720_v12 = vsel %vm4656_vm1, %v4545_v52, %v4688_v50 }
 0x648   : > { %4752 = vst.msk [vmem:[#allocation2 + $0xa9] sm:$0xff] %vm237_vm0, %v4720_v12 }
 0x64e   : > { %v4852_v32 = vld [vmem:[#allocation2 + $0xb1] sm:$0xff] }
 0x64f   : > { %v7131_v61 = vpop.f32.mrb[16].mxu0  ;;  %4931 = vrot.lane.b32.xlu1 %v4852_v32, %s7455_s17  ;;  %v4851_v16 = vld [vmem:[#allocation2 + $0xa9] sm:$0xff]  ;;  %v5044_v41 = vld [vmem:[#allocation2 + $0xb2] sm:$0xff] }
 0x650   : > { %v10230_v33 = vld [vmem:[#allocation2 + $0xb0] sm:$0xff]  ;;  %vm4659_vm2 = vcmp.gt.f32.partialorder %v7131_v61, 0.0  ;;  %v4691_v48 = vmul.f32 %v7131_v61, %v10109_v2  ;;  %v4555_v9 = vpop.f32.mrb[17].mxu0  ;;  %4929 = vrot.lane.b32.xlu0 %v4851_v16, %s7455_s17  ;;  %v10236_v13 = vld [vmem:[#allocation2 + $0xa8] sm:$0xff] }
 0x651   : > { %4820 = vst.msk [vmem:[#allocation3 + $0x78] sm:$0xff] %vm237_vm0, %v10230_v33  ;;  %vm4658_vm3 = vcmp.gt.f32.partialorder %v4555_v9, 0.0  ;;  %v4690_v59 = vmul.f32 %v4555_v9, %v10109_v2  ;;  %4819 = vst.msk [vmem:[#allocation3 + $0x70] sm:$0xff] %vm237_vm0, %v10236_v13  ;;  %v5043_v38 = vld [vmem:[#allocation2 + $0xaa] sm:$0xff] }
 0x652   : > { %v4723_v54 = vsel %vm4659_vm2, %v7131_v61, %v4691_v48 }
 0x653   : > { %4755 = vst.msk [vmem:[#allocation2 + $0xc9] sm:$0xff] %vm237_vm0, %v4723_v54  ;;  %v4722_v39 = vsel %vm4658_vm3, %v4555_v9, %v4690_v59  ;;  %v4774_v54 = vld [vmem:[#allocation2 + $0x8] sm:$0xff] }
 0x654   : > { %4754 = vst.msk [vmem:[#allocation2 + $0xc1] sm:$0xff] %vm237_vm0, %v4722_v39  ;;  %v4773_v39 = vld [vmem:[#allocation2] sm:$0xff]  ;;  %4806 = vst.msk [vmem:[#allocation3 + $0x8] sm:$0xff] %vm237_vm0, %v4774_v54 }
 0x655   : > { %4805 = vst.msk [vmem:[#allocation3] sm:$0xff] %vm237_vm0, %v4773_v39 }
 0x65a   : > { %v4854_v52 = vld [vmem:[#allocation2 + $0xc9] sm:$0xff] }
 0x65b   : > { %v7134_v50 = vpop.f32.mrb[18].mxu0  ;;  %4935 = vrot.lane.b32.xlu1 %v4854_v52, %s7455_s17  ;;  %v4853_v31 = vld [vmem:[#allocation2 + $0xc1] sm:$0xff]  ;;  %v4904_v52 = vpop.permute.xlu1 %4903 }
 0x65c   : > { %v4790_v12 = vld [vmem:[#allocation2 + $0xc8] sm:$0xff]  ;;  %vm4661_vm4 = vcmp.gt.f32.partialorder %v7134_v50, 0.0  ;;  %v4693_v32 = vmul.f32 %v7134_v50, %v10109_v2  ;;  %v4565_v16 = vpop.f32.mrb[19].mxu0  ;;  %4933 = vrot.lane.b32.xlu0 %v4853_v31, %s7455_s17  ;;  %v10247_v61 = vld [vmem:[#allocation2 + $0xc0] sm:$0xff]  ;;  %v4902_v31 = vpop.permute.xlu0 %4901  ;;  %4998 = vst.msk [vmem:[#allocation3 + $0x8] sm:$0xff] %vm2791_vm13, %v4904_v52 }
 0x65d   : > { %4822 = vst.msk [vmem:[#allocation3 + $0x88] sm:$0xff] %vm237_vm0, %v4790_v12  ;;  %vm4660_vm10 = vcmp.gt.f32.partialorder %v4565_v16, 0.0  ;;  %v4692_v48 = vmul.f32 %v4565_v16, %v10109_v2  ;;  %4821 = vst.msk [vmem:[#allocation3 + $0x80] sm:$0xff] %vm237_vm0, %v10247_v61 }
 0x65e   : > { %v4725_v9 = vsel %vm4661_vm4, %v7134_v50, %v4693_v32  ;;  %4997 = vst.msk [vmem:[#allocation3] sm:$0xff] %vm2791_vm13, %v4902_v31 }
 0x65f   : > { %4757 = vst.msk [vmem:[#allocation2 + $0xe1] sm:$0xff] %vm237_vm0, %v4725_v9  ;;  %v4724_v59 = vsel %vm4660_vm10, %v4565_v16, %v4692_v48 }
 0x660   : > { %4756 = vst.msk [vmem:[#allocation2 + $0xd9] sm:$0xff] %vm237_vm0, %v4724_v59 }
 0x666   : > { %v10258_v12 = vld [vmem:[#allocation2 + $0xe1] sm:$0xff] }
 0x667   : > { %v7137_v50 = vpop.f32.mrb[20].mxu0  ;;  %4939 = vrot.lane.b32.xlu1 %v10258_v12, %s7455_s17  ;;  %v10262_v32 = vld [vmem:[#allocation2 + $0xd9] sm:$0xff] }
 0x668   : > { %v10264_v16 = vld [vmem:[#allocation2 + $0xe0] sm:$0xff]  ;;  %vm4663_vm1 = vcmp.gt.f32.partialorder %v7137_v50, 0.0  ;;  %v4695_v48 = vmul.f32 %v7137_v50, %v10109_v2  ;;  %v4575_v9 = vpop.f32.mrb[21].mxu0  ;;  %4937 = vrot.lane.b32.xlu0 %v10262_v32, %s7455_s17  ;;  %v10271_v59 = vld [vmem:[#allocation2 + $0xd8] sm:$0xff] }
 0x669   : > { %4824 = vst.msk [vmem:[#allocation3 + $0x98] sm:$0xff] %vm237_vm0, %v10264_v16  ;;  %vm4662_vm2 = vcmp.gt.f32.partialorder %v4575_v9, 0.0  ;;  %v4694_v54 = vmul.f32 %v4575_v9, %v10109_v2  ;;  %4823 = vst.msk [vmem:[#allocation3 + $0x90] sm:$0xff] %vm237_vm0, %v10271_v59 }
 0x66a   : > { %v4727_v39 = vsel %vm4663_vm1, %v7137_v50, %v4695_v48 }
 0x66b   : > { %4759 = vst.msk [vmem:[#allocation2 + $0xf9] sm:$0xff] %vm237_vm0, %v4727_v39  ;;  %v4726_v52 = vsel %vm4662_vm2, %v4575_v9, %v4694_v54 }
 0x66c   : > { %4758 = vst.msk [vmem:[#allocation2 + $0xf1] sm:$0xff] %vm237_vm0, %v4726_v52 }
 0x672   : > { %v10278_v31 = vld [vmem:[#allocation2 + $0xf9] sm:$0xff] }
 0x673   : > { %v7140_v7 = vpop.f32.mrb[22].mxu0  ;;  %4943 = vrot.lane.b32.xlu1 %v10278_v31, %s7455_s17  ;;  %v10282_v24 = vld [vmem:[#allocation2 + $0xf1] sm:$0xff] }
 0x674   : > { %v10284_v4 = vld [vmem:[#allocation2 + $0xf8] sm:$0xff]  ;;  %vm4665_vm3 = vcmp.gt.f32.partialorder %v7140_v7, 0.0  ;;  %v4697_v58 = vmul.f32 %v7140_v7, %v10109_v2  ;;  %v4585_v53 = vpop.f32.mrb[23].mxu0  ;;  %4941 = vrot.lane.b32.xlu0 %v10282_v24, %s7455_s17  ;;  %v10291_v50 = vld [vmem:[#allocation2 + $0xf0] sm:$0xff] }
 0x675   : > { %4826 = vst.msk [vmem:[#allocation3 + $0xa8] sm:$0xff] %vm237_vm0, %v10284_v4  ;;  %vm4664_vm4 = vcmp.gt.f32.partialorder %v4585_v53, 0.0  ;;  %v4696_v48 = vmul.f32 %v4585_v53, %v10109_v2  ;;  %4825 = vst.msk [vmem:[#allocation3 + $0xa0] sm:$0xff] %vm237_vm0, %v10291_v50 }
 0x676   : > { %v4729_v9 = vsel %vm4665_vm3, %v7140_v7, %v4697_v58 }
 0x677   : > { %4761 = vst.msk [vmem:[#allocation2 + $0x111] sm:$0xff] %vm237_vm0, %v4729_v9  ;;  %v4728_v54 = vsel %vm4664_vm4, %v4585_v53, %v4696_v48 }
 0x678   : > { %4760 = vst.msk [vmem:[#allocation2 + $0x109] sm:$0xff] %vm237_vm0, %v4728_v54 }
 0x67e   : > { %v10298_v39 = vld [vmem:[#allocation2 + $0x111] sm:$0xff] }
 0x67f   : > { %v7143_v52 = vpop.f32.mrb[24].mxu0  ;;  %4947 = vrot.lane.b32.xlu1 %v10298_v39, %s7455_s17  ;;  %v10302_v0 = vld [vmem:[#allocation2 + $0x109] sm:$0xff] }
 0x680   : > { %v10304_v15 = vld [vmem:[#allocation2 + $0x110] sm:$0xff]  ;;  %vm4667_vm10 = vcmp.gt.f32.partialorder %v7143_v52, 0.0  ;;  %v4699_v8 = vmul.f32 %v7143_v52, %v10109_v2  ;;  %v4595_v1 = vpop.f32.mrb[25].mxu0  ;;  %4945 = vrot.lane.b32.xlu0 %v10302_v0, %s7455_s17  ;;  %v10311_v53 = vld [vmem:[#allocation2 + $0x108] sm:$0xff] }
 0x681   : > { %4828 = vst.msk [vmem:[#allocation3 + $0xb8] sm:$0xff] %vm237_vm0, %v10304_v15  ;;  %vm4666_vm1 = vcmp.gt.f32.partialorder %v4595_v1, 0.0  ;;  %v4698_v7 = vmul.f32 %v4595_v1, %v10109_v2  ;;  %4827 = vst.msk [vmem:[#allocation3 + $0xb0] sm:$0xff] %vm237_vm0, %v10311_v53 }
 0x682   : > { %v4731_v58 = vsel %vm4667_vm10, %v7143_v52, %v4699_v8 }
 0x683   : > { %4763 = vst.msk [vmem:[#allocation2 + $0x129] sm:$0xff] %vm237_vm0, %v4731_v58  ;;  %v4730_v48 = vsel %vm4666_vm1, %v4595_v1, %v4698_v7 }
 0x684   : > { %4762 = vst.msk [vmem:[#allocation2 + $0x121] sm:$0xff] %vm237_vm0, %v4730_v48 }
 0x68a   : > { %v10318_v9 = vld [vmem:[#allocation2 + $0x129] sm:$0xff] }
 0x68b   : > { %v7146_v54 = vpop.f32.mrb[26].mxu0  ;;  %4951 = vrot.lane.b32.xlu1 %v10318_v9, %s7455_s17  ;;  %v10322_v27 = vld [vmem:[#allocation2 + $0x121] sm:$0xff] }
 0x68c   : > { %v10324_v62 = vld [vmem:[#allocation2 + $0x128] sm:$0xff]  ;;  %vm4669_vm2 = vcmp.gt.f32.partialorder %v7146_v54, 0.0  ;;  %v4701_v17 = vmul.f32 %v7146_v54, %v10109_v2  ;;  %v4605_v29 = vpop.f32.mrb[27].mxu0  ;;  %4949 = vrot.lane.b32.xlu0 %v10322_v27, %s7455_s17  ;;  %v10331_v1 = vld [vmem:[#allocation2 + $0x120] sm:$0xff] }
 0x68d   : > { %4830 = vst.msk [vmem:[#allocation3 + $0xc8] sm:$0xff] %vm237_vm0, %v10324_v62  ;;  %vm4668_vm3 = vcmp.gt.f32.partialorder %v4605_v29, 0.0  ;;  %v4700_v8 = vmul.f32 %v4605_v29, %v10109_v2  ;;  %v4908_v52 = vpop.permute.xlu1 %4907  ;;  %4829 = vst.msk [vmem:[#allocation3 + $0xc0] sm:$0xff] %vm237_vm0, %v10331_v1  ;;  %v10464_v14 = vld [vmem:[#allocation2 + $0x122] sm:$0xff] }
 0x68e   : > { %v4733_v7 = vsel %vm4669_vm2, %v7146_v54, %v4701_v17  ;;  %5000 = vst.msk [vmem:[#allocation3 + $0x18] sm:$0xff] %vm2791_vm13, %v4908_v52  ;;  %v4906_v58 = vpop.permute.xlu0 %4905 }
 0x68f   : > { %4765 = vst.msk [vmem:[#allocation2 + $0x141] sm:$0xff] %vm237_vm0, %v4733_v7  ;;  %v4732_v48 = vsel %vm4668_vm3, %v4605_v29, %v4700_v8 }
 0x690   : > { %4999 = vst.msk [vmem:[#allocation3 + $0x10] sm:$0xff] %vm2791_vm13, %v4906_v58 }
 0x691   : > { %4764 = vst.msk [vmem:[#allocation2 + $0x139] sm:$0xff] %vm237_vm0, %v4732_v48 }
 0x695   : > { %v4912_v45 = vpop.permute.xlu1 %4911 }
 0x696   : > { %v4864_v26 = vld [vmem:[#allocation2 + $0x141] sm:$0xff]  ;;  %5002 = vst.msk [vmem:[#allocation3 + $0x28] sm:$0xff] %vm2791_vm13, %v4912_v45  ;;  %v4910_v36 = vpop.permute.xlu0 %4909 }
 0x697   : > { %v7149_v28 = vpop.f32.mrb[28].mxu0  ;;  %4955 = vrot.lane.b32.xlu1 %v4864_v26, %s7455_s17  ;;  %5001 = vst.msk [vmem:[#allocation3 + $0x20] sm:$0xff] %vm2791_vm13, %v4910_v36  ;;  %v10468_v55 = vld [vmem:[#allocation2 + $0x142] sm:$0xff] }
 0x698   : > { %v4863_v42 = vld [vmem:[#allocation2 + $0x139] sm:$0xff]  ;;  %vm4671_vm4 = vcmp.gt.f32.partialorder %v7149_v28, 0.0  ;;  %v4703_v29 = vmul.f32 %v7149_v28, %v10109_v2  ;;  %v4615_v54 = vpop.f32.mrb[29].mxu0 }
 0x699   : > { %v10343_v17 = vld [vmem:[#allocation2 + $0x140] sm:$0xff]  ;;  %4953 = vrot.lane.b32.xlu0 %v4863_v42, %s7455_s17  ;;  %v10349_v8 = vld [vmem:[#allocation2 + $0x138] sm:$0xff]  ;;  %vm4670_vm10 = vcmp.gt.f32.partialorder %v4615_v54, 0.0  ;;  %v4702_v45 = vmul.f32 %v4615_v54, %v10109_v2 }
 0x69a   : > { %4832 = vst.msk [vmem:[#allocation3 + $0xd8] sm:$0xff] %vm237_vm0, %v10343_v17  ;;  %4831 = vst.msk [vmem:[#allocation3 + $0xd0] sm:$0xff] %vm237_vm0, %v10349_v8  ;;  %v4735_v26 = vsel %vm4671_vm4, %v7149_v28, %v4703_v29  ;;  %v10473_v23 = vld [vmem:[#allocation2 + $0x13a] sm:$0xff] }
 0x69b   : > { %4767 = vst.msk [vmem:[#allocation2 + $0x159] sm:$0xff] %vm237_vm0, %v4735_v26  ;;  %v4734_v36 = vsel %vm4670_vm10, %v4615_v54, %v4702_v45 }
 0x69c   : > { %4766 = vst.msk [vmem:[#allocation2 + $0x151] sm:$0xff] %vm237_vm0, %v4734_v36 }
 0x69d   : > { %v4916_v52 = vpop.permute.xlu1 %4915 }
 0x69e   : > { %5004 = vst.msk [vmem:[#allocation3 + $0x38] sm:$0xff] %vm2791_vm13, %v4916_v52  ;;  %v4914_v42 = vpop.permute.xlu0 %4913 }
 0x69f   : > { %5003 = vst.msk [vmem:[#allocation3 + $0x30] sm:$0xff] %vm2791_vm13, %v4914_v42 }
 0x6a2   : > { %v4866_v7 = vld [vmem:[#allocation2 + $0x159] sm:$0xff] }
 0x6a3   : > { %v7152_v58 = vpop.f32.mrb[30].mxu0  ;;  %4959 = vrot.lane.b32.xlu1 %v4866_v7, %s7455_s17  ;;  %v4865_v48 = vld [vmem:[#allocation2 + $0x151] sm:$0xff]  ;;  %v5058_v63 = vld [vmem:[#allocation2 + $0x15a] sm:$0xff] }
 0x6a4   : > { %v10359_v18 = vld [vmem:[#allocation2 + $0x158] sm:$0xff]  ;;  %vm4673_vm1 = vcmp.gt.f32.partialorder %v7152_v58, 0.0  ;;  %v4705_v28 = vmul.f32 %v7152_v58, %v10109_v2  ;;  %v4625_v29 = vpop.f32.mrb[31].mxu0  ;;  %4957 = vrot.lane.b32.xlu0 %v4865_v48, %s7455_s17  ;;  %v10365_v54 = vld [vmem:[#allocation2 + $0x150] sm:$0xff] }
 0x6a5   : > { %11650 = vst [vmem:[#allocation25_spill] sm:$0xff] %v10359_v18  ;;  %4834 = vst.msk [vmem:[#allocation3 + $0xe8] sm:$0xff] %vm237_vm0, %v10359_v18  ;;  %vm4672_vm2 = vcmp.gt.f32.partialorder %v4625_v29, 0.0  ;;  %v4704_v45 = vmul.f32 %v4625_v29, %v10109_v2  ;;  %v4920_v26 = vpop.permute.xlu1 %4919 }
 0x6a6   : > { %11651 = vst [vmem:[#allocation28_spill] sm:$0xff] %v10365_v54  ;;  %4833 = vst.msk [vmem:[#allocation3 + $0xe0] sm:$0xff] %vm237_vm0, %v10365_v54  ;;  %v4737_v36 = vsel %vm4673_vm1, %v7152_v58, %v4705_v28  ;;  %v4918_v52 = vpop.permute.xlu0 %4917  ;;  %v5030_v28 = vld [vmem:[#allocation2 + $0xa] sm:$0xff] }
 0x6a7   : > { %5006 = vst.msk [vmem:[#allocation3 + $0x48] sm:$0xff] %vm2791_vm13, %v4920_v26  ;;  %v4736_v42 = vsel %vm4672_vm2, %v4625_v29, %v4704_v45  ;;  %5005 = vst.msk [vmem:[#allocation3 + $0x40] sm:$0xff] %vm2791_vm13, %v4918_v52  ;;  %v5029_v45 = vld [vmem:[#allocation2 + $0x2] sm:$0xff]  ;;  %v10398_v52 = vld [vmem:[#allocation2 + $0x3a] sm:$0xff] }
 0x6a8   : > { %4769 = vst.msk [vmem:[#allocation2 + $0x171] sm:$0xff] %vm237_vm0, %v4737_v36  ;;  %4768 = vst.msk [vmem:[#allocation2 + $0x169] sm:$0xff] %vm237_vm0, %v4736_v42  ;;  %v10393_v36 = vld [vmem:[#allocation2 + $0x1a] sm:$0xff]  ;;  %v10402_v42 = vld [vmem:[#allocation2 + $0x32] sm:$0xff] }
 0x6ad   : > { %v4924_v7 = vpop.permute.xlu1 %4923 }
 0x6ae   : > { %5008 = vst.msk [vmem:[#allocation3 + $0x58] sm:$0xff] %vm2791_vm13, %v4924_v7  ;;  %v4922_v57 = vpop.permute.xlu0 %4921  ;;  %v10406_v7 = vld [vmem:[#allocation2 + $0x52] sm:$0xff] }
 0x6af   : > { %v4868_v48 = vld [vmem:[#allocation2 + $0x171] sm:$0xff]  ;;  %v4867_v11 = vld [vmem:[#allocation2 + $0x169] sm:$0xff]  ;;  %5007 = vst.msk [vmem:[#allocation3 + $0x50] sm:$0xff] %vm2791_vm13, %v4922_v57 }
 0x6b0   : > { %4963 = vrot.lane.b32.xlu1 %v4868_v48, %s7455_s17  ;;  %v10377_v58 = vld [vmem:[#allocation2 + $0x170] sm:$0xff]  ;;  %4961 = vrot.lane.b32.xlu0 %v4867_v11, %s7455_s17  ;;  %v10382_v29 = vld [vmem:[#allocation2 + $0x168] sm:$0xff]  ;;  %s7390_s17 = scalar_lea.vmem %s7389_s10, 1536 }
 0x6b1   : > { %11652 = vst [vmem:[#allocation10_spill] sm:$0xff] %v10377_v58  ;;  %4836 = vst.msk [vmem:[#allocation3 + $0xf8] sm:$0xff] %vm237_vm0, %v10377_v58  ;;  %v10388_v57 = vld [vmem:[#allocation2 + $0x22] sm:$0xff]  ;;  %v10410_v48 = vld [vmem:[#allocation2 + $0x4a] sm:$0xff] }
 0x6b2   : > { %11653 = vst [vmem:[#allocation12_spill] sm:$0xff] %v10382_v29  ;;  %4835 = vst.msk [vmem:[#allocation3 + $0xf0] sm:$0xff] %vm237_vm0, %v10382_v29  ;;  %v5057_v58 = vld [vmem:[#allocation2 + $0x152] sm:$0xff] }
 0x6b3   : > { %v5060_v29 = vld [vmem:[#allocation2 + $0x172] sm:$0xff] }
 0x6b4   : > { %5095 = vrot.lane.b32.xlu1 %v5030_v28, %s7457_s25  ;;  %5093 = vrot.lane.b32.xlu0 %v5029_v45, %s7457_s25  ;;  %v10414_v45 = vld [vmem:[#allocation2 + $0x6a] sm:$0xff] }
 0x6b5   : > { %v4928_v26 = vpop.permute.xlu1 %4927 }
 0x6b6   : > { %5010 = vst.msk [vmem:[#allocation3 + $0x68] sm:$0xff] %vm2791_vm13, %v4928_v26  ;;  %v4926_v11 = vpop.permute.xlu0 %4925 }
 0x6b7   : > { %5009 = vst.msk [vmem:[#allocation3 + $0x60] sm:$0xff] %vm2791_vm13, %v4926_v11  ;;  %v10419_v11 = vld [vmem:[#allocation2 + $0x62] sm:$0xff] }
 0x6b8   : > { %5099 = vrot.lane.b32.xlu1 %v10388_v57, %s7457_s25  ;;  %5097 = vrot.lane.b32.xlu0 %v10393_v36, %s7457_s25 }
 0x6bc   : > { %5103 = vrot.lane.b32.xlu1 %v10398_v52, %s7457_s25  ;;  %5101 = vrot.lane.b32.xlu0 %v10402_v42, %s7457_s25 }
 0x6c0   : > { %5107 = vrot.lane.b32.xlu1 %v10406_v7, %s7457_s25  ;;  %5105 = vrot.lane.b32.xlu0 %v10410_v48, %s7457_s25 }
 0x6c1   : > { %v4932_v28 = vpop.permute.xlu1 %4931 }
 0x6c2   : > { %5012 = vst.msk [vmem:[#allocation3 + $0x78] sm:$0xff] %vm2791_vm13, %v4932_v28  ;;  %v4930_v26 = vpop.permute.xlu0 %4929  ;;  %v5041_v28 = vld [vmem:[#allocation2 + $0x92] sm:$0xff] }
 0x6c3   : > { %5011 = vst.msk [vmem:[#allocation3 + $0x70] sm:$0xff] %vm2791_vm13, %v4930_v26 }
 0x6c4   : > { %5111 = vrot.lane.b32.xlu1 %v10414_v45, %s7457_s25  ;;  %5109 = vrot.lane.b32.xlu0 %v10419_v11, %s7457_s25 }
 0x6c8   : > { %5115 = vrot.lane.b32.xlu1 %v5040_v6, %s7457_s25  ;;  %5113 = vrot.lane.b32.xlu0 %v5039_v35, %s7457_s25  ;;  %v5046_v6 = vld [vmem:[#allocation2 + $0xca] sm:$0xff]  ;;  %v5045_v35 = vld [vmem:[#allocation2 + $0xc2] sm:$0xff] }
 0x6cc   : > { %5119 = vrot.lane.b32.xlu1 %v5042_v60, %s7457_s25  ;;  %5117 = vrot.lane.b32.xlu0 %v5041_v28, %s7457_s25  ;;  %v10434_v60 = vld [vmem:[#allocation2 + $0xe2] sm:$0xff]  ;;  %v10442_v28 = vld [vmem:[#allocation2 + $0xfa] sm:$0xff] }
 0x6cd   : > { %v4936_v25 = vpop.permute.xlu1 %4935 }
 0x6ce   : > { %5014 = vst.msk [vmem:[#allocation3 + $0x88] sm:$0xff] %vm2791_vm13, %v4936_v25  ;;  %v4934_v26 = vpop.permute.xlu0 %4933  ;;  %v10438_v25 = vld [vmem:[#allocation2 + $0xda] sm:$0xff] }
 0x6cf   : > { %5013 = vst.msk [vmem:[#allocation3 + $0x80] sm:$0xff] %vm2791_vm13, %v4934_v26  ;;  %v10447_v26 = vld [vmem:[#allocation2 + $0xf2] sm:$0xff] }
 0x6d0   : > { %5123 = vrot.lane.b32.xlu1 %v5044_v41, %s7457_s25  ;;  %5121 = vrot.lane.b32.xlu0 %v5043_v38, %s7457_s25 }
 0x6d4   : > { %5127 = vrot.lane.b32.xlu1 %v5046_v6, %s7457_s25  ;;  %5125 = vrot.lane.b32.xlu0 %v5045_v35, %s7457_s25  ;;  %v10452_v6 = vld [vmem:[#allocation2 + $0x112] sm:$0xff]  ;;  %v10456_v35 = vld [vmem:[#allocation2 + $0x10a] sm:$0xff] }
 0x6d8   : > { %5131 = vrot.lane.b32.xlu1 %v10434_v60, %s7457_s25  ;;  %5129 = vrot.lane.b32.xlu0 %v10438_v25, %s7457_s25 }
 0x6d9   : > { %v4940_v41 = vpop.permute.xlu1 %4939 }
 0x6da   : > { %5016 = vst.msk [vmem:[#allocation3 + $0x98] sm:$0xff] %vm2791_vm13, %v4940_v41  ;;  %v4938_v38 = vpop.permute.xlu0 %4937  ;;  %v10460_v41 = vld [vmem:[#allocation2 + $0x12a] sm:$0xff] }
 0x6db   : > { %5015 = vst.msk [vmem:[#allocation3 + $0x90] sm:$0xff] %vm2791_vm13, %v4938_v38 }
 0x6dc   : > { %5135 = vrot.lane.b32.xlu1 %v10442_v28, %s7457_s25  ;;  %5133 = vrot.lane.b32.xlu0 %v10447_v26, %s7457_s25 }
 0x6e0   : > { %5139 = vrot.lane.b32.xlu1 %v10452_v6, %s7457_s25  ;;  %5137 = vrot.lane.b32.xlu0 %v10456_v35, %s7457_s25 }
 0x6e4   : > { %5143 = vrot.lane.b32.xlu1 %v10460_v41, %s7457_s25  ;;  %5141 = vrot.lane.b32.xlu0 %v10464_v14, %s7457_s25 }
 0x6e5   : > { %v4944_v38 = vpop.permute.xlu1 %4943 }
 0x6e6   : > { %5018 = vst.msk [vmem:[#allocation3 + $0xa8] sm:$0xff] %vm2791_vm13, %v4944_v38  ;;  %v4942_v56 = vpop.permute.xlu0 %4941  ;;  %v5059_v38 = vld [vmem:[#allocation2 + $0x16a] sm:$0xff] }
 0x6e7   : > { %5017 = vst.msk [vmem:[#allocation3 + $0xa0] sm:$0xff] %vm2791_vm13, %v4942_v56 }
 0x6e8   : > { %5147 = vrot.lane.b32.xlu1 %v10468_v55, %s7457_s25  ;;  %5145 = vrot.lane.b32.xlu0 %v10473_v23, %s7457_s25 }
 0x6ec   : > { %5151 = vrot.lane.b32.xlu1 %v5058_v63, %s7457_s25  ;;  %5149 = vrot.lane.b32.xlu0 %v5057_v58, %s7457_s25 }
 0x6f0   : > { %5155 = vrot.lane.b32.xlu1 %v5060_v29, %s7457_s25  ;;  %5153 = vrot.lane.b32.xlu0 %v5059_v38, %s7457_s25 }
 0x6f1   : > { %v4948_v18 = vpop.permute.xlu1 %4947 }
 0x6f2   : > { %5020 = vst.msk [vmem:[#allocation3 + $0xb8] sm:$0xff] %vm2791_vm13, %v4948_v18  ;;  %v4946_v54 = vpop.permute.xlu0 %4945 }
 0x6f3   : > { %5019 = vst.msk [vmem:[#allocation3 + $0xb0] sm:$0xff] %vm2791_vm13, %v4946_v54 }
 0x6f4   : > { %5287 = vrot.lane.b32.xlu1 %v10124_v47, %s7459_s30  ;;  %5285 = vrot.lane.b32.xlu0 %v10131_v44, %s7459_s30 }
 0x6f8   : > { %5291 = vrot.lane.b32.xlu1 %v10148_v22, %s7459_s30  ;;  %5289 = vrot.lane.b32.xlu0 %v10155_v19, %s7459_s30 }
 0x6fc   : > { %5295 = vrot.lane.b32.xlu1 %v10169_v49, %s7459_s30  ;;  %5293 = vrot.lane.b32.xlu0 %v10175_v21, %s7459_s30 }
 0x6fd   : > { %v4952_v56 = vpop.permute.xlu1 %4951 }
 0x6fe   : > { %5022 = vst.msk [vmem:[#allocation3 + $0xc8] sm:$0xff] %vm2791_vm13, %v4952_v56  ;;  %v4950_v63 = vpop.permute.xlu0 %4949 }
 0x6ff   : > { %5021 = vst.msk [vmem:[#allocation3 + $0xc0] sm:$0xff] %vm2791_vm13, %v4950_v63 }
 0x700   : > { %5299 = vrot.lane.b32.xlu1 %v10185_v34, %s7459_s30  ;;  %5297 = vrot.lane.b32.xlu0 %v10187_v40, %s7459_s30 }
 0x704   : > { %5303 = vrot.lane.b32.xlu1 %v10205_v30, %s7459_s30  ;;  %5301 = vrot.lane.b32.xlu0 %v10211_v46, %s7459_s30 }
 0x708   : > { %5307 = vrot.lane.b32.xlu1 %v10216_v5, %s7459_s30  ;;  %5305 = vrot.lane.b32.xlu0 %v10222_v43, %s7459_s30 }
 0x709   : > { %v4956_v18 = vpop.permute.xlu1 %4955 }
 0x70a   : > { %5024 = vst.msk [vmem:[#allocation3 + $0xd8] sm:$0xff] %vm2791_vm13, %v4956_v18 }
 0x70b   : > { %v4954_v47 = vpop.permute.xlu0 %4953 }
 0x70c   : > { %5311 = vrot.lane.b32.xlu1 %v10230_v33, %s7459_s30  ;;  %5023 = vst.msk [vmem:[#allocation3 + $0xd0] sm:$0xff] %vm2791_vm13, %v4954_v47  ;;  %5309 = vrot.lane.b32.xlu0 %v10236_v13, %s7459_s30 }
 0x710   : > { %5317 = vrot.lane.b32.xlu1 %v10271_v59, %s7459_s30  ;;  %5313 = vrot.lane.b32.xlu0 %v10247_v61, %s7459_s30 }
 0x714   : > { %5509 = vrot.lane.b32.xlu1 %v10262_v32, %s7461_s9  ;;  %5319 = vrot.lane.b32.xlu0 %v10264_v16, %s7459_s30 }
 0x715   : > { %v4960_v44 = vpop.permute.xlu1 %4959 }
 0x716   : > { %5026 = vst.msk [vmem:[#allocation3 + $0xe8] sm:$0xff] %vm2791_vm13, %v4960_v44  ;;  %v4958_v33 = vpop.permute.xlu0 %4957 }
 0x717   : > { %5025 = vst.msk [vmem:[#allocation3 + $0xe0] sm:$0xff] %vm2791_vm13, %v4958_v33 }
 0x718   : > { %5477 = vrot.lane.b32.xlu1 %v10122_v51, %s7461_s9  ;;  %5511 = vrot.lane.b32.xlu0 %v10258_v12, %s7461_s9 }
 0x71c   : > { %5701 = vrot.lane.b32.xlu1 %v10438_v25, %s7463_s11  ;;  %5479 = vrot.lane.b32.xlu0 %v10117_v10, %s7461_s9 }
 0x720   : > { %5669 = vrot.lane.b32.xlu1 %v10393_v36, %s7463_s11  ;;  %5703 = vrot.lane.b32.xlu0 %v10434_v60, %s7463_s11 }
 0x722   : > { %v4964_v13 = vpop.permute.xlu1 %4963  ;;  %v4962_v51 = vpop.permute.xlu0 %4961 }
 0x723   : > { %5028 = vst.msk [vmem:[#allocation3 + $0xf8] sm:$0xff] %vm2791_vm13, %v4964_v13  ;;  %5027 = vst.msk [vmem:[#allocation3 + $0xf0] sm:$0xff] %vm2791_vm13, %v4962_v51 }
 0x724   : > { %5893 = vrot.lane.b32.xlu1 %v10291_v50, %s7464_s12  ;;  %5671 = vrot.lane.b32.xlu0 %v10388_v57, %s7463_s11 }
 0x726   : > { %v5096_v61 = vpop.permute.xlu1 %5095  ;;  %v5094_v10 = vpop.permute.xlu0 %5093 }
 0x727   : > { %5190 = vst.msk [vmem:[#allocation3 + $0x8] sm:$0xff] %vm2984_vm5, %v5096_v61  ;;  %5189 = vst.msk [vmem:[#allocation3] sm:$0xff] %vm2984_vm5, %v5094_v10 }
 0x728   : > { %5861 = vrot.lane.b32.xlu1 %v10155_v19, %s7464_s12  ;;  %5895 = vrot.lane.b32.xlu0 %v10284_v4, %s7464_s12 }
 0x72a   : > { %v5100_v12 = vpop.permute.xlu1 %5099  ;;  %v5098_v32 = vpop.permute.xlu0 %5097 }
 0x72b   : > { %5192 = vst.msk [vmem:[#allocation3 + $0x18] sm:$0xff] %vm2984_vm5, %v5100_v12  ;;  %5191 = vst.msk [vmem:[#allocation3 + $0x10] sm:$0xff] %vm2984_vm5, %v5098_v32 }
 0x72c   : > { %6085 = vrot.lane.b32.xlu1 %v10282_v24, %s7465_s13  ;;  %5863 = vrot.lane.b32.xlu0 %v10148_v22, %s7464_s12 }
 0x72e   : > { %v5104_v16 = vpop.permute.xlu1 %5103  ;;  %v5102_v59 = vpop.permute.xlu0 %5101 }
 0x72f   : > { %5194 = vst.msk [vmem:[#allocation3 + $0x28] sm:$0xff] %vm2984_vm5, %v5104_v16  ;;  %5193 = vst.msk [vmem:[#allocation3 + $0x20] sm:$0xff] %vm2984_vm5, %v5102_v59 }
 0x730   : > { %6053 = vrot.lane.b32.xlu1 %v10146_v20, %s7465_s13  ;;  %6087 = vrot.lane.b32.xlu0 %v10278_v31, %s7465_s13 }
 0x732   : > { %v5108_v19 = vpop.permute.xlu1 %5107  ;;  %v5106_v54 = vpop.permute.xlu0 %5105 }
 0x733   : > { %5196 = vst.msk [vmem:[#allocation3 + $0x38] sm:$0xff] %vm2984_vm5, %v5108_v19  ;;  %5195 = vst.msk [vmem:[#allocation3 + $0x30] sm:$0xff] %vm2984_vm5, %v5106_v54 }
 0x734   : > { %6277 = vrot.lane.b32.xlu1 %v10447_v26, %s7466_s14  ;;  %6055 = vrot.lane.b32.xlu0 %v10140_v37, %s7465_s13 }
 0x736   : > { %v5112_v22 = vpop.permute.xlu1 %5111  ;;  %v5110_v58 = vpop.permute.xlu0 %5109 }
 0x737   : > { %5198 = vst.msk [vmem:[#allocation3 + $0x48] sm:$0xff] %vm2984_vm5, %v5112_v22  ;;  %5197 = vst.msk [vmem:[#allocation3 + $0x40] sm:$0xff] %vm2984_vm5, %v5110_v58 }
 0x738   : > { %6245 = vrot.lane.b32.xlu1 %v10402_v42, %s7466_s14  ;;  %6279 = vrot.lane.b32.xlu0 %v10442_v28, %s7466_s14 }
 0x73a   : > { %v5116_v29 = vpop.permute.xlu1 %5115  ;;  %v5114_v57 = vpop.permute.xlu0 %5113 }
 0x73b   : > { %5200 = vst.msk [vmem:[#allocation3 + $0x58] sm:$0xff] %vm2984_vm5, %v5116_v29  ;;  %5199 = vst.msk [vmem:[#allocation3 + $0x50] sm:$0xff] %vm2984_vm5, %v5114_v57 }
 0x73c   : > { %5321 = vrot.lane.b32.xlu1 %v10291_v50, %s7459_s30  ;;  %6247 = vrot.lane.b32.xlu0 %v10398_v52, %s7466_s14 }
 0x73e   : > { %v5120_v36 = vpop.permute.xlu1 %5119  ;;  %v5118_v60 = vpop.permute.xlu0 %5117 }
 0x73f   : > { %5202 = vst.msk [vmem:[#allocation3 + $0x68] sm:$0xff] %vm2984_vm5, %v5120_v36  ;;  %5201 = vst.msk [vmem:[#allocation3 + $0x60] sm:$0xff] %vm2984_vm5, %v5118_v60 }
 0x740   : > { %5513 = vrot.lane.b32.xlu1 %v10282_v24, %s7461_s9  ;;  %5323 = vrot.lane.b32.xlu0 %v10284_v4, %s7459_s30 }
 0x742   : > { %v5124_v25 = vpop.permute.xlu1 %5123  ;;  %v5122_v38 = vpop.permute.xlu0 %5121 }
 0x743   : > { %5204 = vst.msk [vmem:[#allocation3 + $0x78] sm:$0xff] %vm2984_vm5, %v5124_v25  ;;  %5203 = vst.msk [vmem:[#allocation3 + $0x70] sm:$0xff] %vm2984_vm5, %v5122_v38 }
 0x744   : > { %5481 = vrot.lane.b32.xlu1 %v10146_v20, %s7461_s9  ;;  %5515 = vrot.lane.b32.xlu0 %v10278_v31, %s7461_s9 }
 0x746   : > { %v5128_v50 = vpop.permute.xlu1 %5127  ;;  %v5126_v56 = vpop.permute.xlu0 %5125 }
 0x747   : > { %5206 = vst.msk [vmem:[#allocation3 + $0x88] sm:$0xff] %vm2984_vm5, %v5128_v50  ;;  %5205 = vst.msk [vmem:[#allocation3 + $0x80] sm:$0xff] %vm2984_vm5, %v5126_v56  ;;  %v7155_v56 = vpop.f32.mrb[32].mxu0 }
 0x748   : > { %5705 = vrot.lane.b32.xlu1 %v10447_v26, %s7463_s11  ;;  %5483 = vrot.lane.b32.xlu0 %v10140_v37, %s7461_s9  ;;  %vm4675_vm13 = vcmp.gt.f32.partialorder %v7155_v56, 0.0 }
 0x74a   : > { %v5132_v24 = vpop.permute.xlu1 %5131  ;;  %v5130_v4 = vpop.permute.xlu0 %5129 }
 0x74b   : > { %5208 = vst.msk [vmem:[#allocation3 + $0x98] sm:$0xff] %vm2984_vm5, %v5132_v24  ;;  %5207 = vst.msk [vmem:[#allocation3 + $0x90] sm:$0xff] %vm2984_vm5, %v5130_v4  ;;  %v4707_v4 = vmul.f32 %v7155_v56, %v10109_v2 }
 0x74c   : > { %5673 = vrot.lane.b32.xlu1 %v10402_v42, %s7463_s11  ;;  %5707 = vrot.lane.b32.xlu0 %v10442_v28, %s7463_s11 }
 0x74e   : > { %v5136_v20 = vpop.permute.xlu1 %5135  ;;  %v5134_v31 = vpop.permute.xlu0 %5133 }
 0x74f   : > { %5210 = vst.msk [vmem:[#allocation3 + $0xa8] sm:$0xff] %vm2984_vm5, %v5136_v20  ;;  %5209 = vst.msk [vmem:[#allocation3 + $0xa0] sm:$0xff] %vm2984_vm5, %v5134_v31  ;;  %v4739_v20 = vsel %vm4675_vm13, %v7155_v56, %v4707_v4 }
 0x750   : > { %5897 = vrot.lane.b32.xlu1 %v10311_v53, %s7464_s12  ;;  %5675 = vrot.lane.b32.xlu0 %v10398_v52, %s7463_s11  ;;  %4771 = vst.msk [vmem:[#allocation2 + $0x189] sm:$0xff] %vm237_vm0, %v4739_v20 }
 0x752   : > { %v5140_v37 = vpop.permute.xlu1 %5139  ;;  %v5138_v26 = vpop.permute.xlu0 %5137 }
 0x753   : > { %5212 = vst.msk [vmem:[#allocation3 + $0xb8] sm:$0xff] %vm2984_vm5, %v5140_v37  ;;  %5211 = vst.msk [vmem:[#allocation3 + $0xb0] sm:$0xff] %vm2984_vm5, %v5138_v26 }
 0x754   : > { %5865 = vrot.lane.b32.xlu1 %v10175_v21, %s7464_s12  ;;  %5899 = vrot.lane.b32.xlu0 %v10304_v15, %s7464_s12  ;;  %v5991_v21 = vld [vmem:[#allocation2 + $0x49] sm:$0xff] }
 0x756   : > { %v5144_v42 = vpop.permute.xlu1 %5143  ;;  %v5142_v28 = vpop.permute.xlu0 %5141 }
 0x757   : > { %5214 = vst.msk [vmem:[#allocation3 + $0xc8] sm:$0xff] %vm2984_vm5, %v5144_v42  ;;  %5213 = vst.msk [vmem:[#allocation3 + $0xc0] sm:$0xff] %vm2984_vm5, %v5142_v28 }
 0x758   : > { %6089 = vrot.lane.b32.xlu1 %v10302_v0, %s7465_s13  ;;  %5867 = vrot.lane.b32.xlu0 %v10169_v49, %s7464_s12  ;;  %v5992_v49 = vld [vmem:[#allocation2 + $0x51] sm:$0xff] }
 0x75a   : > { %v5148_v52 = vpop.permute.xlu1 %5147  ;;  %v5146_v63 = vpop.permute.xlu0 %5145 }
 0x75b   : > { %5216 = vst.msk [vmem:[#allocation3 + $0xd8] sm:$0xff] %vm2984_vm5, %v5148_v52  ;;  %5215 = vst.msk [vmem:[#allocation3 + $0xd0] sm:$0xff] %vm2984_vm5, %v5146_v63  ;;  %v6011_v63 = vld [vmem:[#allocation2 + $0x139] sm:$0xff] }
 0x75c   : > { %6057 = vrot.lane.b32.xlu1 %v5991_v21, %s7465_s13  ;;  %6091 = vrot.lane.b32.xlu0 %v10298_v39, %s7465_s13 }
 0x75e   : > { %v5152_v18 = vpop.permute.xlu1 %5151  ;;  %v5150_v47 = vpop.permute.xlu0 %5149 }
 0x75f   : > { %5218 = vst.msk [vmem:[#allocation3 + $0xe8] sm:$0xff] %vm2984_vm5, %v5152_v18  ;;  %5217 = vst.msk [vmem:[#allocation3 + $0xe0] sm:$0xff] %vm2984_vm5, %v5150_v47  ;;  %v5995_v18 = vld [vmem:[#allocation2 + $0x79] sm:$0xff]  ;;  %v6012_v47 = vld [vmem:[#allocation2 + $0x141] sm:$0xff] }
 0x760   : > { %6281 = vrot.lane.b32.xlu1 %v10456_v35, %s7466_s14  ;;  %6059 = vrot.lane.b32.xlu0 %v5992_v49, %s7465_s13 }
 0x762   : > { %v5156_v44 = vpop.permute.xlu1 %5155  ;;  %v5154_v33 = vpop.permute.xlu0 %5153 }
 0x763   : > { %5220 = vst.msk [vmem:[#allocation3 + $0xf8] sm:$0xff] %vm2984_vm5, %v5156_v44  ;;  %5219 = vst.msk [vmem:[#allocation3 + $0xf0] sm:$0xff] %vm2984_vm5, %v5154_v33 }
 0x764   : > { %6249 = vrot.lane.b32.xlu1 %v10410_v48, %s7466_s14  ;;  %6283 = vrot.lane.b32.xlu0 %v10452_v6, %s7466_s14 }
 0x766   : > { %v5288_v13 = vpop.permute.xlu1 %5287  ;;  %v5286_v51 = vpop.permute.xlu0 %5285 }
 0x767   : > { %5382 = vst.msk [vmem:[#allocation3 + $0x8] sm:$0xff] %vm3177_vm6, %v5288_v13  ;;  %5381 = vst.msk [vmem:[#allocation3] sm:$0xff] %vm3177_vm6, %v5286_v51  ;;  %v6187_v51 = vld [vmem:[#allocation2 + $0x7a] sm:$0xff] }
 0x768   : > { %5325 = vrot.lane.b32.xlu1 %v10311_v53, %s7459_s30  ;;  %6251 = vrot.lane.b32.xlu0 %v10406_v7, %s7466_s14 }
 0x76a   : > { %v5292_v61 = vpop.permute.xlu1 %5291  ;;  %v5290_v10 = vpop.permute.xlu0 %5289 }
 0x76b   : > { %5384 = vst.msk [vmem:[#allocation3 + $0x18] sm:$0xff] %vm3177_vm6, %v5292_v61  ;;  %5383 = vst.msk [vmem:[#allocation3 + $0x10] sm:$0xff] %vm3177_vm6, %v5290_v10 }
 0x76c   : > { %5517 = vrot.lane.b32.xlu1 %v10302_v0, %s7461_s9  ;;  %5327 = vrot.lane.b32.xlu0 %v10304_v15, %s7459_s30 }
 0x76e   : > { %v5296_v12 = vpop.permute.xlu1 %5295  ;;  %v5294_v32 = vpop.permute.xlu0 %5293 }
 0x76f   : > { %5386 = vst.msk [vmem:[#allocation3 + $0x28] sm:$0xff] %vm3177_vm6, %v5296_v12  ;;  %5385 = vst.msk [vmem:[#allocation3 + $0x20] sm:$0xff] %vm3177_vm6, %v5294_v32 }
 0x770   : > { %5485 = vrot.lane.b32.xlu1 %v5991_v21, %s7461_s9  ;;  %5519 = vrot.lane.b32.xlu0 %v10298_v39, %s7461_s9 }
 0x772   : > { %v5300_v53 = vpop.permute.xlu1 %5299  ;;  %v5298_v16 = vpop.permute.xlu0 %5297 }
 0x773   : > { %5388 = vst.msk [vmem:[#allocation3 + $0x38] sm:$0xff] %vm3177_vm6, %v5300_v53  ;;  %5387 = vst.msk [vmem:[#allocation3 + $0x30] sm:$0xff] %vm3177_vm6, %v5298_v16 }
 0x774   : > { %5709 = vrot.lane.b32.xlu1 %v10456_v35, %s7463_s11  ;;  %5487 = vrot.lane.b32.xlu0 %v5992_v49, %s7461_s9 }
 0x776   : > { %v5304_v0 = vpop.permute.xlu1 %5303  ;;  %v5302_v15 = vpop.permute.xlu0 %5301 }
 0x777   : > { %5390 = vst.msk [vmem:[#allocation3 + $0x48] sm:$0xff] %vm3177_vm6, %v5304_v0  ;;  %5389 = vst.msk [vmem:[#allocation3 + $0x40] sm:$0xff] %vm3177_vm6, %v5302_v15  ;;  %v5629_v0 = vld [vmem:[#allocation2 + $0x13a] sm:$0xff] }
 0x778   : > { %5677 = vrot.lane.b32.xlu1 %v10410_v48, %s7463_s11  ;;  %5711 = vrot.lane.b32.xlu0 %v10452_v6, %s7463_s11 }
 0x77a   : > { %v5308_v39 = vpop.permute.xlu1 %5307  ;;  %v5306_v59 = vpop.permute.xlu0 %5305 }
 0x77b   : > { %5392 = vst.msk [vmem:[#allocation3 + $0x58] sm:$0xff] %vm3177_vm6, %v5308_v39  ;;  %5391 = vst.msk [vmem:[#allocation3 + $0x50] sm:$0xff] %vm3177_vm6, %v5306_v59  ;;  %v5630_v39 = vld [vmem:[#allocation2 + $0x142] sm:$0xff] }
 0x77c   : > { %5901 = vrot.lane.b32.xlu1 %v10331_v1, %s7464_s12  ;;  %5679 = vrot.lane.b32.xlu0 %v10406_v7, %s7463_s11 }
 0x77e   : > { %v5312_v35 = vpop.permute.xlu1 %5311  ;;  %v5310_v19 = vpop.permute.xlu0 %5309 }
 0x77f   : > { %5394 = vst.msk [vmem:[#allocation3 + $0x68] sm:$0xff] %vm3177_vm6, %v5312_v35  ;;  %5393 = vst.msk [vmem:[#allocation3 + $0x60] sm:$0xff] %vm3177_vm6, %v5310_v19  ;;  %v11654_v19 = vld [vmem:[#allocation28_spill] sm:$0xff] }
 0x780   : > { %5869 = vrot.lane.b32.xlu1 %v10187_v40, %s7464_s12  ;;  %5903 = vrot.lane.b32.xlu0 %v10324_v62, %s7464_s12  ;;  %v5993_v40 = vld [vmem:[#allocation2 + $0x61] sm:$0xff] }
 0x782   : > { %v5318_v48 = vpop.permute.xlu1 %5317  ;;  %v5314_v6 = vpop.permute.xlu0 %5313 }
 0x783   : > { %5397 = vst.msk [vmem:[#allocation3 + $0x80] sm:$0xff] %vm3177_vm6, %v5318_v48  ;;  %5395 = vst.msk [vmem:[#allocation3 + $0x70] sm:$0xff] %vm3177_vm6, %v5314_v6 }
 0x784   : > { %6093 = vrot.lane.b32.xlu1 %v10322_v27, %s7465_s13  ;;  %5871 = vrot.lane.b32.xlu0 %v10185_v34, %s7464_s12  ;;  %v5994_v34 = vld [vmem:[#allocation2 + $0x69] sm:$0xff] }
 0x786   : > { %v5510_v7 = vpop.permute.xlu1 %5509  ;;  %v5320_v54 = vpop.permute.xlu0 %5319 }
 0x787   : > { %5589 = vst.msk [vmem:[#allocation3 + $0x80] sm:$0xff] %vm3370_vm7, %v5510_v7  ;;  %v11655_v7 = vld [vmem:[#allocation25_spill] sm:$0xff] }
 0x788   : > { %5398 = vst.msk [vmem:[#allocation3 + $0x88] sm:$0xff] %vm3177_vm6, %v5320_v54  ;;  %6061 = vrot.lane.b32.xlu1 %v5993_v40, %s7465_s13  ;;  %6095 = vrot.lane.b32.xlu0 %v10318_v9, %s7465_s13 }
 0x78a   : > { %v5478_v22 = vpop.permute.xlu1 %5477  ;;  %v5512_v58 = vpop.permute.xlu0 %5511 }
 0x78b   : > { %5573 = vst.msk [vmem:[#allocation3] sm:$0xff] %vm3370_vm7, %v5478_v22  ;;  %5590 = vst.msk [vmem:[#allocation3 + $0x88] sm:$0xff] %vm3370_vm7, %v5512_v58  ;;  %v6013_v22 = vld [vmem:[#allocation2 + $0x151] sm:$0xff] }
 0x78c   : > { %6285 = vrot.lane.b32.xlu1 %v10464_v14, %s7466_s14  ;;  %6063 = vrot.lane.b32.xlu0 %v5994_v34, %s7465_s13 }
 0x78e   : > { %v5702_v29 = vpop.permute.xlu1 %5701  ;;  %v5480_v57 = vpop.permute.xlu0 %5479 }
 0x78f   : > { %5781 = vst.msk [vmem:[#allocation3 + $0x80] sm:$0xff] %vm3563_vm8, %v5702_v29  ;;  %v6014_v29 = vld [vmem:[#allocation2 + $0x159] sm:$0xff] }
 0x790   : > { %5574 = vst.msk [vmem:[#allocation3 + $0x8] sm:$0xff] %vm3370_vm7, %v5480_v57  ;;  %6253 = vrot.lane.b32.xlu1 %v10419_v11, %s7466_s14  ;;  %6287 = vrot.lane.b32.xlu0 %v10460_v41, %s7466_s14 }
 0x792   : > { %v5670_v9 = vpop.permute.xlu1 %5669  ;;  %v5704_v36 = vpop.permute.xlu0 %5703 }
 0x793   : > { %5765 = vst.msk [vmem:[#allocation3] sm:$0xff] %vm3563_vm8, %v5670_v9  ;;  %5782 = vst.msk [vmem:[#allocation3 + $0x88] sm:$0xff] %vm3563_vm8, %v5704_v36  ;;  %v6205_v36 = vld [vmem:[#allocation2 + $0x152] sm:$0xff] }
 0x794   : > { %5329 = vrot.lane.b32.xlu1 %v10331_v1, %s7459_s30  ;;  %6255 = vrot.lane.b32.xlu0 %v10414_v45, %s7466_s14  ;;  %v5436_v1 = vld [vmem:[#allocation2 + $0x129] sm:$0xff] }
 0x796   : > { %v5894_v60 = vpop.permute.xlu1 %5893  ;;  %v5672_v25 = vpop.permute.xlu0 %5671 }
 0x797   : > { %5973 = vst.msk [vmem:[#allocation3 + $0x80] sm:$0xff] %vm3756_vm11, %v5894_v60 }
 0x798   : > { %5766 = vst.msk [vmem:[#allocation3 + $0x8] sm:$0xff] %vm3563_vm8, %v5672_v25  ;;  %5521 = vrot.lane.b32.xlu1 %v10322_v27, %s7461_s9  ;;  %5331 = vrot.lane.b32.xlu0 %v10324_v62, %s7459_s30  ;;  %v4635_v62 = vpop.f32.mrb[33].mxu0 }
 0x799   : > { %vm4674_vm5 = vcmp.gt.f32.partialorder %v4635_v62, 0.0  ;;  %v4706_v31 = vmul.f32 %v4635_v62, %v10109_v2 }
 0x79a   : > { %v5862_v38 = vpop.permute.xlu1 %5861  ;;  %v5896_v50 = vpop.permute.xlu0 %5895 }
 0x79b   : > { %5957 = vst.msk [vmem:[#allocation3] sm:$0xff] %vm3756_vm11, %v5862_v38  ;;  %5974 = vst.msk [vmem:[#allocation3 + $0x88] sm:$0xff] %vm3756_vm11, %v5896_v50  ;;  %v4738_v26 = vsel %vm4674_vm5, %v4635_v62, %v4706_v31  ;;  %v6189_v38 = vld [vmem:[#allocation2 + $0x92] sm:$0xff]  ;;  %v6206_v50 = vld [vmem:[#allocation2 + $0x15a] sm:$0xff] }
 0x79c   : > { %5489 = vrot.lane.b32.xlu1 %v5993_v40, %s7461_s9  ;;  %5523 = vrot.lane.b32.xlu0 %v5436_v1, %s7461_s9  ;;  %4770 = vst.msk [vmem:[#allocation2 + $0x181] sm:$0xff] %vm237_vm0, %v4738_v26  ;;  %vm10945_vm0 = vmpackc.low %vm4241_vm12, %vm4241_vm12 }
 0x79e   : > { %v6086_v24 = vpop.permute.xlu1 %6085  ;;  %v5864_v27 = vpop.permute.xlu0 %5863 }
 0x79f   : > { %6165 = vst.msk [vmem:[#allocation3 + $0x80] sm:$0xff] %vm3949_vm9, %v6086_v24  ;;  %v6190_v24 = vld [vmem:[#allocation2 + $0x9a] sm:$0xff] }
 0x7a0   : > { %5958 = vst.msk [vmem:[#allocation3 + $0x8] sm:$0xff] %vm3756_vm11, %v5864_v27  ;;  %5713 = vrot.lane.b32.xlu1 %v10464_v14, %s7463_s11  ;;  %5491 = vrot.lane.b32.xlu0 %v5994_v34, %s7461_s9  ;;  %v5997_v34 = vld [vmem:[#allocation2 + $0x91] sm:$0xff] }
 0x7a2   : > { %v6054_v37 = vpop.permute.xlu1 %6053  ;;  %v6088_v42 = vpop.permute.xlu0 %6087 }
 0x7a3   : > { %6149 = vst.msk [vmem:[#allocation3] sm:$0xff] %vm3949_vm9, %v6054_v37  ;;  %6166 = vst.msk [vmem:[#allocation3 + $0x88] sm:$0xff] %vm3949_vm9, %v6088_v42 }
 0x7a4   : > { %5681 = vrot.lane.b32.xlu1 %v10419_v11, %s7463_s11  ;;  %5715 = vrot.lane.b32.xlu0 %v10460_v41, %s7463_s11 }
 0x7a6   : > { %v6278_v14 = vpop.permute.xlu1 %6277  ;;  %v6056_v28 = vpop.permute.xlu0 %6055 }
 0x7a7   : > { %6357 = vst.msk [vmem:[#allocation3 + $0x80] sm:$0xff] %vm4142_vm14, %v6278_v14 }
 0x7a8   : > { %6389 = vst.msk [vmem:[#allocation3 + $0x80] sm:$0xff] %vm4175_vm15, %v11616_v3  ;;  %5905 = vrot.lane.b32.xlu1 %v10349_v8, %s7464_s12  ;;  %5683 = vrot.lane.b32.xlu0 %v10414_v45, %s7463_s11 }
 0x7a9   : > { %6150 = vst.msk [vmem:[#allocation3 + $0x8] sm:$0xff] %vm3949_vm9, %v6056_v28 }
 0x7aa   : > { %v6246_v52 = vpop.permute.xlu1 %6245  ;;  %v6280_v11 = vpop.permute.xlu0 %6279 }
 0x7ab   : > { %6341 = vst.msk [vmem:[#allocation3] sm:$0xff] %vm4142_vm14, %v6246_v52  ;;  %6358 = vst.msk [vmem:[#allocation3 + $0x88] sm:$0xff] %vm4142_vm14, %v6280_v11  ;;  %v11656_v52 = vld [vmem:[#allocation12_spill] sm:$0xff] }
 0x7ac   : > { %6373 = vst.msk [vmem:[#allocation3] sm:$0xff] %vm4175_vm15, %v11616_v3  ;;  %5873 = vrot.lane.b32.xlu1 %v10211_v46, %s7464_s12  ;;  %6390 = vst.msk [vmem:[#allocation3 + $0x88] sm:$0xff] %vm4175_vm15, %v11616_v3  ;;  %5907 = vrot.lane.b32.xlu0 %v10343_v17, %s7464_s12 }
 0x7ae   : > { %v5322_v41 = vpop.permute.xlu1 %5321  ;;  %v6248_v45 = vpop.permute.xlu0 %6247 }
 0x7af   : > { %5399 = vst.msk [vmem:[#allocation3 + $0x90] sm:$0xff] %vm3177_vm6, %v5322_v41 }
 0x7b0   : > { %6342 = vst.msk [vmem:[#allocation3 + $0x8] sm:$0xff] %vm4142_vm14, %v6248_v45  ;;  %6097 = vrot.lane.b32.xlu1 %v6011_v63, %s7465_s13  ;;  %5875 = vrot.lane.b32.xlu0 %v10205_v30, %s7464_s12  ;;  %v5996_v30 = vld [vmem:[#allocation2 + $0x81] sm:$0xff] }
 0x7b1   : > { %6374 = vst.msk [vmem:[#allocation3 + $0x8] sm:$0xff] %vm4175_vm15, %v11616_v3  ;;  %v5807_v45 = vld [vmem:[#allocation2 + $0xa8] sm:$0xff] }
 0x7b2   : > { %v5514_v46 = vpop.permute.xlu1 %5513  ;;  %v5324_v21 = vpop.permute.xlu0 %5323 }
 0x7b3   : > { %5591 = vst.msk [vmem:[#allocation3 + $0x90] sm:$0xff] %vm3370_vm7, %v5514_v46 }
 0x7b4   : > { %5400 = vst.msk [vmem:[#allocation3 + $0x98] sm:$0xff] %vm3177_vm6, %v5324_v21  ;;  %6065 = vrot.lane.b32.xlu1 %v5995_v18, %s7465_s13  ;;  %6099 = vrot.lane.b32.xlu0 %v6012_v47, %s7465_s13 }
 0x7b6   : > { %v5482_v49 = vpop.permute.xlu1 %5481  ;;  %v5516_v44 = vpop.permute.xlu0 %5515 }
 0x7b7   : > { %5575 = vst.msk [vmem:[#allocation3 + $0x10] sm:$0xff] %vm3370_vm7, %v5482_v49  ;;  %5592 = vst.msk [vmem:[#allocation3 + $0x98] sm:$0xff] %vm3370_vm7, %v5516_v44 }
 0x7b8   : > { %6289 = vrot.lane.b32.xlu1 %v10473_v23, %s7466_s14  ;;  %6067 = vrot.lane.b32.xlu0 %v5996_v30, %s7465_s13  ;;  %v6188_v23 = vld [vmem:[#allocation2 + $0x82] sm:$0xff] }
 0x7ba   : > { %v5706_v33 = vpop.permute.xlu1 %5705  ;;  %v5484_v13 = vpop.permute.xlu0 %5483 }
 0x7bb   : > { %5783 = vst.msk [vmem:[#allocation3 + $0x90] sm:$0xff] %vm3563_vm8, %v5706_v33  ;;  %v6016_v33 = vld [vmem:[#allocation2 + $0x171] sm:$0xff] }
 0x7bc   : > { %5576 = vst.msk [vmem:[#allocation3 + $0x18] sm:$0xff] %vm3370_vm7, %v5484_v13  ;;  %6257 = vrot.lane.b32.xlu1 %v6187_v51, %s7466_s14  ;;  %6291 = vrot.lane.b32.xlu0 %v10468_v55, %s7466_s14 }
 0x7be   : > { %v5674_v61 = vpop.permute.xlu1 %5673  ;;  %v5708_v10 = vpop.permute.xlu0 %5707 }
 0x7bf   : > { %5767 = vst.msk [vmem:[#allocation3 + $0x10] sm:$0xff] %vm3563_vm8, %v5674_v61  ;;  %5784 = vst.msk [vmem:[#allocation3 + $0x98] sm:$0xff] %vm3563_vm8, %v5708_v10  ;;  %v6207_v61 = vld [vmem:[#allocation2 + $0x16a] sm:$0xff] }
 0x7c0   : > { %5333 = vrot.lane.b32.xlu1 %v10349_v8, %s7459_s30  ;;  %6259 = vrot.lane.b32.xlu0 %v6188_v23, %s7466_s14  ;;  %v6000_v10 = vld [vmem:[#allocation2 + $0xb1] sm:$0xff] }
 0x7c2   : > { %v5898_v12 = vpop.permute.xlu1 %5897  ;;  %v5676_v32 = vpop.permute.xlu0 %5675 }
 0x7c3   : > { %5975 = vst.msk [vmem:[#allocation3 + $0x90] sm:$0xff] %vm3756_vm11, %v5898_v12 }
 0x7c4   : > { %5768 = vst.msk [vmem:[#allocation3 + $0x18] sm:$0xff] %vm3563_vm8, %v5676_v32  ;;  %5525 = vrot.lane.b32.xlu1 %v6011_v63, %s7461_s9  ;;  %5335 = vrot.lane.b32.xlu0 %v10343_v17, %s7459_s30  ;;  %v11657_v63 = vld [vmem:[#allocation10_spill] sm:$0xff] }
 0x7c5   : > { %v6191_v32 = vld [vmem:[#allocation2 + $0xaa] sm:$0xff] }
 0x7c6   : > { %v5866_v55 = vpop.permute.xlu1 %5865  ;;  %v5900_v53 = vpop.permute.xlu0 %5899 }
 0x7c7   : > { %5959 = vst.msk [vmem:[#allocation3 + $0x10] sm:$0xff] %vm3756_vm11, %v5866_v55  ;;  %5976 = vst.msk [vmem:[#allocation3 + $0x98] sm:$0xff] %vm3756_vm11, %v5900_v53  ;;  %v6208_v55 = vld [vmem:[#allocation2 + $0x172] sm:$0xff] }
 0x7c8   : > { %5493 = vrot.lane.b32.xlu1 %v5995_v18, %s7461_s9  ;;  %5527 = vrot.lane.b32.xlu0 %v6012_v47, %s7461_s9  ;;  %v6015_v18 = vld [vmem:[#allocation2 + $0x169] sm:$0xff] }
 0x7c9   : > { %v5808_v47 = vld [vmem:[#allocation2 + $0xb0] sm:$0xff] }
 0x7ca   : > { %v6090_v8 = vpop.permute.xlu1 %6089  ;;  %v5868_v16 = vpop.permute.xlu0 %5867 }
 0x7cb   : > { %6167 = vst.msk [vmem:[#allocation3 + $0x90] sm:$0xff] %vm3949_vm9, %v6090_v8 }
 0x7cc   : > { %5960 = vst.msk [vmem:[#allocation3 + $0x18] sm:$0xff] %vm3756_vm11, %v5868_v16  ;;  %5717 = vrot.lane.b32.xlu1 %v5629_v0, %s7463_s11  ;;  %5495 = vrot.lane.b32.xlu0 %v5996_v30, %s7461_s9  ;;  %v5999_v30 = vld [vmem:[#allocation2 + $0xa9] sm:$0xff]  ;;  %v6192_v16 = vld [vmem:[#allocation2 + $0xb2] sm:$0xff] }
 0x7ce   : > { %v6058_v17 = vpop.permute.xlu1 %6057  ;;  %v6092_v15 = vpop.permute.xlu0 %6091 }
 0x7cf   : > { %6151 = vst.msk [vmem:[#allocation3 + $0x10] sm:$0xff] %vm3949_vm9, %v6058_v17  ;;  %6168 = vst.msk [vmem:[#allocation3 + $0x98] sm:$0xff] %vm3949_vm9, %v6092_v15  ;;  %v5250_v15 = vld [vmem:[#allocation2 + $0x170] sm:$0xff] }
 0x7d0   : > { %5685 = vrot.lane.b32.xlu1 %v6187_v51, %s7463_s11  ;;  %5719 = vrot.lane.b32.xlu0 %v5630_v39, %s7463_s11 }
 0x7d2   : > { %v6282_v59 = vpop.permute.xlu1 %6281  ;;  %v6060_v35 = vpop.permute.xlu0 %6059 }
 0x7d3   : > { %6359 = vst.msk [vmem:[#allocation3 + $0x90] sm:$0xff] %vm4142_vm14, %v6282_v59 }
 0x7d4   : > { %6391 = vst.msk [vmem:[#allocation3 + $0x90] sm:$0xff] %vm4175_vm15, %v11616_v3  ;;  %5909 = vrot.lane.b32.xlu1 %v11654_v19, %s7464_s12  ;;  %5687 = vrot.lane.b32.xlu0 %v6188_v23, %s7463_s11 }
 0x7d5   : > { %6152 = vst.msk [vmem:[#allocation3 + $0x18] sm:$0xff] %vm3949_vm9, %v6060_v35 }
 0x7d6   : > { %v6250_v48 = vpop.permute.xlu1 %6249  ;;  %v6284_v6 = vpop.permute.xlu0 %6283 }
 0x7d7   : > { %6343 = vst.msk [vmem:[#allocation3 + $0x10] sm:$0xff] %vm4142_vm14, %v6250_v48  ;;  %6360 = vst.msk [vmem:[#allocation3 + $0x98] sm:$0xff] %vm4142_vm14, %v6284_v6 }
 0x7d8   : > { %6375 = vst.msk [vmem:[#allocation3 + $0x10] sm:$0xff] %vm4175_vm15, %v11616_v3  ;;  %5877 = vrot.lane.b32.xlu1 %v10222_v43, %s7464_s12  ;;  %6392 = vst.msk [vmem:[#allocation3 + $0x98] sm:$0xff] %vm4175_vm15, %v11616_v3  ;;  %5911 = vrot.lane.b32.xlu0 %v11655_v7, %s7464_s12 }
 0x7da   : > { %v5326_v54 = vpop.permute.xlu1 %5325  ;;  %v6252_v40 = vpop.permute.xlu0 %6251 }
 0x7db   : > { %5401 = vst.msk [vmem:[#allocation3 + $0xa0] sm:$0xff] %vm3177_vm6, %v5326_v54 }
 0x7dc   : > { %6344 = vst.msk [vmem:[#allocation3 + $0x18] sm:$0xff] %vm4142_vm14, %v6252_v40  ;;  %6101 = vrot.lane.b32.xlu1 %v6013_v22, %s7465_s13  ;;  %5879 = vrot.lane.b32.xlu0 %v10216_v5, %s7464_s12  ;;  %v5998_v5 = vld [vmem:[#allocation2 + $0x99] sm:$0xff] }
 0x7dd   : > { %6376 = vst.msk [vmem:[#allocation3 + $0x18] sm:$0xff] %vm4175_vm15, %v11616_v3  ;;  %v10906_v40 = vld [vmem:[#allocation2 + $0x180] sm:$0xff] }
 0x7de   : > { %v5518_v43 = vpop.permute.xlu1 %5517  ;;  %v5328_v58 = vpop.permute.xlu0 %5327 }
 0x7df   : > { %5593 = vst.msk [vmem:[#allocation3 + $0xa0] sm:$0xff] %vm3370_vm7, %v5518_v43 }
 0x7e0   : > { %5402 = vst.msk [vmem:[#allocation3 + $0xa8] sm:$0xff] %vm3177_vm6, %v5328_v58  ;;  %6069 = vrot.lane.b32.xlu1 %v5997_v34, %s7465_s13  ;;  %6103 = vrot.lane.b32.xlu0 %v6014_v29, %s7465_s13  ;;  %v5809_v58 = vld [vmem:[#allocation2 + $0xc0] sm:$0xff] }
 0x7e2   : > { %v5486_v57 = vpop.permute.xlu1 %5485  ;;  %v5520_v9 = vpop.permute.xlu0 %5519 }
 0x7e3   : > { %5577 = vst.msk [vmem:[#allocation3 + $0x20] sm:$0xff] %vm3370_vm7, %v5486_v57  ;;  %5594 = vst.msk [vmem:[#allocation3 + $0xa8] sm:$0xff] %vm3370_vm7, %v5520_v9  ;;  %v11659_v57 = vld [vmem:[#allocation59_spill] sm:$0xff] }
 0x7e4   : > { %6293 = vrot.lane.b32.xlu1 %v6205_v36, %s7466_s14  ;;  %6071 = vrot.lane.b32.xlu0 %v5998_v5, %s7465_s13 }
 0x7e6   : > { %v5710_v60 = vpop.permute.xlu1 %5709  ;;  %v5488_v25 = vpop.permute.xlu0 %5487 }
 0x7e7   : > { %5785 = vst.msk [vmem:[#allocation3 + $0xa0] sm:$0xff] %vm3563_vm8, %v5710_v60  ;;  %v11661_v60 = vld [vmem:[#allocation43_spill] sm:$0xff] }
 0x7e8   : > { %5578 = vst.msk [vmem:[#allocation3 + $0x28] sm:$0xff] %vm3370_vm7, %v5488_v25  ;;  %6261 = vrot.lane.b32.xlu1 %v6189_v38, %s7466_s14  ;;  %6295 = vrot.lane.b32.xlu0 %v6206_v50, %s7466_s14 }
 0x7ea   : > { %v5678_v1 = vpop.permute.xlu1 %5677  ;;  %v5712_v56 = vpop.permute.xlu0 %5711 }
 0x7eb   : > { %5769 = vst.msk [vmem:[#allocation3 + $0x20] sm:$0xff] %vm3563_vm8, %v5678_v1  ;;  %5786 = vst.msk [vmem:[#allocation3 + $0xa8] sm:$0xff] %vm3563_vm8, %v5712_v56  ;;  %v10935_v1 = vld [vmem:[#allocation2 + $0xc8] sm:$0xff]  ;;  %v11662_v56 = vld [vmem:[#allocation62_spill] sm:$0xff] }
 0x7ec   : > { %5337 = vrot.lane.b32.xlu1 %v11654_v19, %s7459_s30  ;;  %6263 = vrot.lane.b32.xlu0 %v6190_v24, %s7466_s14 }
 0x7ee   : > { %v5902_v4 = vpop.permute.xlu1 %5901  ;;  %v5680_v27 = vpop.permute.xlu0 %5679 }
 0x7ef   : > { %5977 = vst.msk [vmem:[#allocation3 + $0xa0] sm:$0xff] %vm3756_vm11, %v5902_v4 }
 0x7f0   : > { %5770 = vst.msk [vmem:[#allocation3 + $0x28] sm:$0xff] %vm3563_vm8, %v5680_v27  ;;  %5529 = vrot.lane.b32.xlu1 %v6013_v22, %s7461_s9  ;;  %5339 = vrot.lane.b32.xlu0 %v11655_v7, %s7459_s30 }
 0x7f2   : > { %v5870_v62 = vpop.permute.xlu1 %5869  ;;  %v5904_v20 = vpop.permute.xlu0 %5903 }
 0x7f3   : > { %5961 = vst.msk [vmem:[#allocation3 + $0x20] sm:$0xff] %vm3756_vm11, %v5870_v62  ;;  %5978 = vst.msk [vmem:[#allocation3 + $0xa8] sm:$0xff] %vm3756_vm11, %v5904_v20  ;;  %v6421_v62 = vld [vmem:[#allocation3 + $0x80] sm:$0xff]  ;;  %v6422_v20 = vld [vmem:[#allocation3 + $0x88] sm:$0xff] }
 0x7f4   : > { %5497 = vrot.lane.b32.xlu1 %v5997_v34, %s7461_s9  ;;  %5531 = vrot.lane.b32.xlu0 %v6014_v29, %s7461_s9  ;;  %v10919_v34 = vld [vmem:[#allocation2 + $0x188] sm:$0xff]  ;;  %v11658_v29 = vld [vmem:[#allocation60_spill] sm:$0xff] }
 0x7f5   : > { %v7204_v9 = vpack.c.bf16 %v11659_v57, %v11658_v29  ;;  %v11674_v57 = vld [vmem:[#allocation50_spill] sm:$0xff] }
 0x7f6   : > { %v6094_v31 = vpop.permute.xlu1 %6093  ;;  %v5872_v37 = vpop.permute.xlu0 %5871 }
 0x7f7   : > { %6169 = vst.msk [vmem:[#allocation3 + $0xa0] sm:$0xff] %vm3949_vm9, %v6094_v31  ;;  %7206 = vmatprep.subr.msk.bf16.mxu1 %vm10945_vm0, %v7204_v9  ;;  %v11675_v9 = vld [vmem:[#allocation49_spill] sm:$0xff] }
 0x7f8   : > { %5962 = vst.msk [vmem:[#allocation3 + $0x28] sm:$0xff] %vm3756_vm11, %v5872_v37  ;;  %5721 = vrot.lane.b32.xlu1 %v6205_v36, %s7463_s11  ;;  %5499 = vrot.lane.b32.xlu0 %v5998_v5, %s7461_s9  ;;  %v11660_v5 = vld [vmem:[#allocation44_spill] sm:$0xff]  ;;  %v7252_v37 = vpack.c.bf16 %v6422_v20, %v6421_v62 }
 0x7f9   : > { %v7207_v25 = vpack.c.bf16 %v11661_v60, %v11660_v5  ;;  %v11676_v60 = vld [vmem:[#allocation68_spill] sm:$0xff] }
 0x7fa   : > { %v6062_v26 = vpop.permute.xlu1 %6061  ;;  %v6096_v42 = vpop.permute.xlu0 %6095  ;;  %7254 = vmatprep.subr.msk.bf16.mxu0 %vm10945_vm0, %v7252_v37  ;;  %v11678_v37 = vld [vmem:[#allocation52_spill] sm:$0xff] }
 0x7fb   : > { %6153 = vst.msk [vmem:[#allocation3 + $0x20] sm:$0xff] %vm3949_vm9, %v6062_v26  ;;  %6170 = vst.msk [vmem:[#allocation3 + $0xa8] sm:$0xff] %vm3949_vm9, %v6096_v42  ;;  %v10952_v42 = vld [vmem:[#allocation2 + $0xc1] sm:$0xff]  ;;  %7209 = vmatpush3.bf16.xpose.msk.msra.mxu1 %vm10945_vm0, %v7207_v25  ;;  %v11677_v25 = vld [vmem:[#allocation67_spill] sm:$0xff] }
 0x7fc   : > { %5689 = vrot.lane.b32.xlu1 %v6189_v38, %s7463_s11  ;;  %5723 = vrot.lane.b32.xlu0 %v6206_v50, %s7463_s11  ;;  %v10930_v50 = vld [vmem:[#allocation2 + $0x181] sm:$0xff] }
 0x7fe   : > { %v6286_v14 = vpop.permute.xlu1 %6285  ;;  %v6064_v28 = vpop.permute.xlu0 %6063 }
 0x7ff   : > { %6361 = vst.msk [vmem:[#allocation3 + $0xa0] sm:$0xff] %vm4142_vm14, %v6286_v14  ;;  %v6405_v14 = vld [vmem:[#allocation3] sm:$0xff] }
 0x800   : > { %6393 = vst.msk [vmem:[#allocation3 + $0xa0] sm:$0xff] %vm4175_vm15, %v11616_v3  ;;  %5913 = vrot.lane.b32.xlu1 %v11656_v52, %s7464_s12  ;;  %5691 = vrot.lane.b32.xlu0 %v6190_v24, %s7463_s11  ;;  %v11663_v24 = vld [vmem:[#allocation61_spill] sm:$0xff] }
 0x801   : > { %6154 = vst.msk [vmem:[#allocation3 + $0x28] sm:$0xff] %vm3949_vm9, %v6064_v28  ;;  %v7210_v4 = vpack.c.bf16 %v11663_v24, %v11662_v56  ;;  %v6406_v28 = vld [vmem:[#allocation3 + $0x8] sm:$0xff] }
 0x802   : > { %v6254_v11 = vpop.permute.xlu1 %6253  ;;  %v6288_v41 = vpop.permute.xlu0 %6287 }
 0x803   : > { %6345 = vst.msk [vmem:[#allocation3 + $0x20] sm:$0xff] %vm4142_vm14, %v6254_v11  ;;  %6362 = vst.msk [vmem:[#allocation3 + $0xa8] sm:$0xff] %vm4142_vm14, %v6288_v41  ;;  %v7255_v11 = vpack.c.bf16 %v6406_v28, %v6405_v14  ;;  %7212 = vmatprep.subr.msk.bf16.mxu1 %vm10945_vm0, %v7210_v4 }
 0x804   : > { %6377 = vst.msk [vmem:[#allocation3 + $0x20] sm:$0xff] %vm4175_vm15, %v11616_v3  ;;  %5881 = vrot.lane.b32.xlu1 %v5807_v45, %s7464_s12  ;;  %6394 = vst.msk [vmem:[#allocation3 + $0xa8] sm:$0xff] %vm4175_vm15, %v11616_v3  ;;  %5915 = vrot.lane.b32.xlu0 %v11657_v63, %s7464_s12  ;;  %v11666_v45 = vld [vmem:[#allocation46_spill] sm:$0xff]  ;;  %v11667_v63 = vld [vmem:[#allocation45_spill] sm:$0xff] }
 0x805   : > { %7257 = vmatpush3.bf16.xpose.msk.msra.mxu0 %vm10945_vm0, %v7255_v11  ;;  %v11681_v11 = vld [vmem:[#allocation69_spill] sm:$0xff] }
 0x806   : > { %v5330_v46 = vpop.permute.xlu1 %5329  ;;  %v6256_v21 = vpop.permute.xlu0 %6255 }
 0x807   : > { %5403 = vst.msk [vmem:[#allocation3 + $0xb0] sm:$0xff] %vm3177_vm6, %v5330_v46  ;;  %v7213_v46 = vpack.c.bf16 %v11667_v63, %v11666_v45  ;;  %v5828_v63 = vld [vmem:[#allocation2 + $0x1a0] sm:$0xff] }
 0x808   : > { %6346 = vst.msk [vmem:[#allocation3 + $0x28] sm:$0xff] %vm4142_vm14, %v6256_v21  ;;  %6105 = vrot.lane.b32.xlu1 %v6015_v18, %s7465_s13  ;;  %5883 = vrot.lane.b32.xlu0 %v5808_v47, %s7464_s12  ;;  %v11668_v47 = vld [vmem:[#allocation64_spill] sm:$0xff] }
 0x809   : > { %6378 = vst.msk [vmem:[#allocation3 + $0x28] sm:$0xff] %vm4175_vm15, %v11616_v3  ;;  %7215 = vmatpush3.bf16.xpose.msk.msra.mxu1 %vm10945_vm0, %v7213_v46 }
 0x80a   : > { %v5522_v49 = vpop.permute.xlu1 %5521  ;;  %v5332_v44 = vpop.permute.xlu0 %5331 }
 0x80b   : > { %5595 = vst.msk [vmem:[#allocation3 + $0xb0] sm:$0xff] %vm3370_vm7, %v5522_v49  ;;  %v11669_v49 = vld [vmem:[#allocation63_spill] sm:$0xff] }
 0x80c   : > { %5404 = vst.msk [vmem:[#allocation3 + $0xb8] sm:$0xff] %vm3177_vm6, %v5332_v44  ;;  %6073 = vrot.lane.b32.xlu1 %v5999_v30, %s7465_s13  ;;  %6107 = vrot.lane.b32.xlu0 %v6016_v33, %s7465_s13  ;;  %v7216_v44 = vpack.c.bf16 %v11669_v49, %v11668_v47  ;;  %v11683_v47 = vld [vmem:[#allocation53_spill] sm:$0xff] }
 0x80e   : > { %v5490_v13 = vpop.permute.xlu1 %5489  ;;  %v5524_v51 = vpop.permute.xlu0 %5523  ;;  %7218 = vmatprep.subr.msk.bf16.mxu1 %vm10945_vm0, %v7216_v44 }
 0x80f   : > { %5579 = vst.msk [vmem:[#allocation3 + $0x30] sm:$0xff] %vm3370_vm7, %v5490_v13  ;;  %5596 = vst.msk [vmem:[#allocation3 + $0xb8] sm:$0xff] %vm3370_vm7, %v5524_v51  ;;  %v6424_v13 = vld [vmem:[#allocation3 + $0x98] sm:$0xff] }
 0x810   : > { %6297 = vrot.lane.b32.xlu1 %v6207_v61, %s7466_s14  ;;  %6075 = vrot.lane.b32.xlu0 %v6000_v10, %s7465_s13 }
 0x812   : > { %v5714_v23 = vpop.permute.xlu1 %5713  ;;  %v5492_v12 = vpop.permute.xlu0 %5491 }
 0x813   : > { %5787 = vst.msk [vmem:[#allocation3 + $0xb0] sm:$0xff] %vm3563_vm8, %v5714_v23  ;;  %v10984_v23 = vld [vmem:[#allocation2 + $0xc2] sm:$0xff] }
 0x814   : > { %5580 = vst.msk [vmem:[#allocation3 + $0x38] sm:$0xff] %vm3370_vm7, %v5492_v12  ;;  %6265 = vrot.lane.b32.xlu1 %v6191_v32, %s7466_s14  ;;  %6299 = vrot.lane.b32.xlu0 %v6208_v55, %s7466_s14  ;;  %v6407_v12 = vld [vmem:[#allocation3 + $0x10] sm:$0xff] }
 0x816   : > { %v5682_v53 = vpop.permute.xlu1 %5681  ;;  %v5716_v8 = vpop.permute.xlu0 %5715 }
 0x817   : > { %5771 = vst.msk [vmem:[#allocation3 + $0x30] sm:$0xff] %vm3563_vm8, %v5682_v53  ;;  %5788 = vst.msk [vmem:[#allocation3 + $0xb8] sm:$0xff] %vm3563_vm8, %v5716_v8 }
 0x818   : > { %5341 = vrot.lane.b32.xlu1 %v11656_v52, %s7459_s30  ;;  %6267 = vrot.lane.b32.xlu0 %v6192_v16, %s7466_s14  ;;  %v10959_v52 = vld [vmem:[#allocation2 + $0x189] sm:$0xff] }
 0x81a   : > { %v5906_v0 = vpop.permute.xlu1 %5905  ;;  %v5684_v17 = vpop.permute.xlu0 %5683 }
 0x81b   : > { %5979 = vst.msk [vmem:[#allocation3 + $0xb0] sm:$0xff] %vm3756_vm11, %v5906_v0  ;;  %v11671_v0 = vld [vmem:[#allocation47_spill] sm:$0xff] }
 0x81c   : > { %5772 = vst.msk [vmem:[#allocation3 + $0x38] sm:$0xff] %vm3563_vm8, %v5684_v17  ;;  %5533 = vrot.lane.b32.xlu1 %v6015_v18, %s7461_s9  ;;  %5343 = vrot.lane.b32.xlu0 %v5250_v15, %s7459_s30  ;;  %v10972_v18 = vld [vmem:[#allocation2 + $0x182] sm:$0xff] }
 0x81e   : > { %v5874_v39 = vpop.permute.xlu1 %5873  ;;  %v5908_v59 = vpop.permute.xlu0 %5907 }
 0x81f   : > { %5963 = vst.msk [vmem:[#allocation3 + $0x30] sm:$0xff] %vm3756_vm11, %v5874_v39  ;;  %5980 = vst.msk [vmem:[#allocation3 + $0xb8] sm:$0xff] %vm3756_vm11, %v5908_v59  ;;  %v11672_v39 = vld [vmem:[#allocation66_spill] sm:$0xff]  ;;  %v11673_v59 = vld [vmem:[#allocation65_spill] sm:$0xff] }
 0x820   : > { %5501 = vrot.lane.b32.xlu1 %v5999_v30, %s7461_s9  ;;  %5535 = vrot.lane.b32.xlu0 %v6016_v33, %s7461_s9  ;;  %v10979_v30 = vld [vmem:[#allocation2 + $0xc9] sm:$0xff]  ;;  %v6423_v33 = vld [vmem:[#allocation3 + $0x90] sm:$0xff] }
 0x821   : > { %v7258_v51 = vpack.c.bf16 %v6424_v13, %v6423_v33  ;;  %v11685_v33 = vld [vmem:[#allocation71_spill] sm:$0xff] }
 0x822   : > { %v6098_v35 = vpop.permute.xlu1 %6097  ;;  %v5876_v19 = vpop.permute.xlu0 %5875 }
 0x823   : > { %6171 = vst.msk [vmem:[#allocation3 + $0xb0] sm:$0xff] %vm3949_vm9, %v6098_v35  ;;  %7260 = vmatprep.subr.msk.bf16.mxu0 %vm10945_vm0, %v7258_v51  ;;  %v7222_v35 = vpack.c.bf16 %v11673_v59, %v11672_v39  ;;  %v11688_v59 = vld [vmem:[#allocation27_spill] sm:$0xff] }
 0x824   : > { %5964 = vst.msk [vmem:[#allocation3 + $0x38] sm:$0xff] %vm3756_vm11, %v5876_v19  ;;  %5725 = vrot.lane.b32.xlu1 %v6207_v61, %s7463_s11  ;;  %5503 = vrot.lane.b32.xlu0 %v6000_v10, %s7461_s9  ;;  %v6194_v19 = vld [vmem:[#allocation2 + $0xca] sm:$0xff] }
 0x826   : > { %v6066_v48 = vpop.permute.xlu1 %6065  ;;  %v6100_v6 = vpop.permute.xlu0 %6099 }
 0x827   : > { %6155 = vst.msk [vmem:[#allocation3 + $0x30] sm:$0xff] %vm3949_vm9, %v6066_v48  ;;  %6172 = vst.msk [vmem:[#allocation3 + $0xb8] sm:$0xff] %vm3949_vm9, %v6100_v6  ;;  %v6425_v48 = vld [vmem:[#allocation3 + $0xa0] sm:$0xff]  ;;  %v6426_v6 = vld [vmem:[#allocation3 + $0xa8] sm:$0xff] }
 0x828   : > { %5693 = vrot.lane.b32.xlu1 %v6191_v32, %s7463_s11  ;;  %5727 = vrot.lane.b32.xlu0 %v6208_v55, %s7463_s11  ;;  %v6408_v32 = vld [vmem:[#allocation3 + $0x18] sm:$0xff] }
 0x829   : > { %v6210_v55 = vld [vmem:[#allocation2 + $0x18a] sm:$0xff]  ;;  %v7261_v53 = vpack.c.bf16 %v6408_v32, %v6407_v12  ;;  %v6020_v12 = vld [vmem:[#allocation2 + $0x1a1] sm:$0xff] }
 0x82a   : > { %v6290_v7 = vpop.permute.xlu1 %6289  ;;  %v6068_v54 = vpop.permute.xlu0 %6067 }
 0x82b   : > { %6363 = vst.msk [vmem:[#allocation3 + $0xb0] sm:$0xff] %vm4142_vm14, %v6290_v7  ;;  %7263 = vmatpush3.bf16.xpose.msk.msra.mxu0 %vm10945_vm0, %v7261_v53  ;;  %v7264_v7 = vpack.c.bf16 %v6426_v6, %v6425_v48 }
 0x82c   : > { %6395 = vst.msk [vmem:[#allocation3 + $0xb0] sm:$0xff] %vm4175_vm15, %v11616_v3  ;;  %5917 = vrot.lane.b32.xlu1 %v10906_v40, %s7464_s12  ;;  %5695 = vrot.lane.b32.xlu0 %v6192_v16, %s7463_s11  ;;  %v11670_v16 = vld [vmem:[#allocation48_spill] sm:$0xff] }
 0x82d   : > { %6156 = vst.msk [vmem:[#allocation3 + $0x38] sm:$0xff] %vm3949_vm9, %v6068_v54  ;;  %v7219_v17 = vpack.c.bf16 %v11671_v0, %v11670_v16  ;;  %7266 = vmatprep.subr.msk.bf16.mxu0 %vm10945_vm0, %v7264_v7  ;;  %v11687_v16 = vld [vmem:[#allocation55_spill] sm:$0xff] }
 0x82e   : > { %v6258_v22 = vpop.permute.xlu1 %6257  ;;  %v6292_v43 = vpop.permute.xlu0 %6291 }
 0x82f   : > { %6347 = vst.msk [vmem:[#allocation3 + $0x30] sm:$0xff] %vm4142_vm14, %v6258_v22  ;;  %6364 = vst.msk [vmem:[#allocation3 + $0xb8] sm:$0xff] %vm4142_vm14, %v6292_v43  ;;  %7221 = vmatpush3.bf16.xpose.msk.msra.mxu1 %vm10945_vm0, %v7219_v17  ;;  %v6409_v43 = vld [vmem:[#allocation3 + $0x20] sm:$0xff] }
 0x830   : > { %6379 = vst.msk [vmem:[#allocation3 + $0x30] sm:$0xff] %vm4175_vm15, %v11616_v3  ;;  %5885 = vrot.lane.b32.xlu1 %v5809_v58, %s7464_s12  ;;  %6396 = vst.msk [vmem:[#allocation3 + $0xb8] sm:$0xff] %vm4175_vm15, %v11616_v3  ;;  %5919 = vrot.lane.b32.xlu0 %v10919_v34, %s7464_s12  ;;  %v6410_v58 = vld [vmem:[#allocation3 + $0x28] sm:$0xff] }
 0x831   : > { %7224 = vmatprep.subr.msk.bf16.mxu1 %vm10945_vm0, %v7222_v35  ;;  %v11689_v35 = vld [vmem:[#allocation30_spill] sm:$0xff] }
 0x832   : > { %v5334_v36 = vpop.permute.xlu1 %5333  ;;  %v6260_v38 = vpop.permute.xlu0 %6259 }
 0x833   : > { %5405 = vst.msk [vmem:[#allocation3 + $0xc0] sm:$0xff] %vm3177_vm6, %v5334_v36  ;;  %v7225_v36 = vpack.c.bf16 %v11675_v9, %v11674_v57  ;;  %v6211_v57 = vld [vmem:[#allocation2 + $0x19a] sm:$0xff]  ;;  %v11690_v9 = vld [vmem:[#allocation58_spill] sm:$0xff] }
 0x834   : > { %6348 = vst.msk [vmem:[#allocation3 + $0x38] sm:$0xff] %vm4142_vm14, %v6260_v38  ;;  %6109 = vrot.lane.b32.xlu1 %v10930_v50, %s7465_s13  ;;  %5887 = vrot.lane.b32.xlu0 %v10935_v1, %s7464_s12  ;;  %v7228_v38 = vpack.c.bf16 %v11677_v25, %v11676_v60 }
 0x835   : > { %6380 = vst.msk [vmem:[#allocation3 + $0x38] sm:$0xff] %vm4175_vm15, %v11616_v3 }
 0x836   : > { %v5526_v31 = vpop.permute.xlu1 %5525  ;;  %v5336_v26 = vpop.permute.xlu0 %5335 }
 0x837   : > { %5597 = vst.msk [vmem:[#allocation3 + $0xc0] sm:$0xff] %vm3370_vm7, %v5526_v31  ;;  %7227 = vmatpush3.bf16.xpose.msk.msra.mxu1 %vm10945_vm0, %v7225_v36  ;;  %v6411_v62 = vld [vmem:[#allocation3 + $0x30] sm:$0xff]  ;;  %v11691_v36 = vld [vmem:[#allocation57_spill] sm:$0xff] }
 0x838   : > { %5406 = vst.msk [vmem:[#allocation3 + $0xc8] sm:$0xff] %vm3177_vm6, %v5336_v26  ;;  %6077 = vrot.lane.b32.xlu1 %v10952_v42, %s7465_s13  ;;  %6111 = vrot.lane.b32.xlu0 %v10959_v52, %s7465_s13  ;;  %v11679_v26 = vld [vmem:[#allocation51_spill] sm:$0xff] }
 0x839   : > { %7230 = vmatprep.subr.msk.bf16.mxu1 %vm10945_vm0, %v7228_v38  ;;  %v7231_v14 = vpack.c.bf16 %v11679_v26, %v11678_v37 }
 0x83a   : > { %v5494_v41 = vpop.permute.xlu1 %5493  ;;  %v5528_v21 = vpop.permute.xlu0 %5527 }
 0x83b   : > { %5581 = vst.msk [vmem:[#allocation3 + $0x40] sm:$0xff] %vm3370_vm7, %v5494_v41  ;;  %5598 = vst.msk [vmem:[#allocation3 + $0xc8] sm:$0xff] %vm3370_vm7, %v5528_v21  ;;  %v5827_v21 = vld [vmem:[#allocation2 + $0x198] sm:$0xff] }
 0x83c   : > { %6301 = vrot.lane.b32.xlu1 %v10972_v18, %s7466_s14  ;;  %6079 = vrot.lane.b32.xlu0 %v10979_v30, %s7465_s13  ;;  %v6412_v20 = vld [vmem:[#allocation3 + $0x38] sm:$0xff] }
 0x83d   : > { %v7273_v31 = vpack.c.bf16 %v6412_v20, %v6411_v62  ;;  %v7368_v20 = vld [vmem:[%s11287_s2] sm:$0xff] }
 0x83e   : > { %v5718_v61 = vpop.permute.xlu1 %5717  ;;  %v5496_v10 = vpop.permute.xlu0 %5495 }
 0x83f   : > { %5789 = vst.msk [vmem:[#allocation3 + $0xc0] sm:$0xff] %vm3563_vm8, %v5718_v61  ;;  %7233 = vmatpush3.bf16.xpose.msk.msra.mxu1 %vm10945_vm0, %v7231_v14 }
 0x840   : > { %5582 = vst.msk [vmem:[#allocation3 + $0x48] sm:$0xff] %vm3370_vm7, %v5496_v10  ;;  %6269 = vrot.lane.b32.xlu1 %v10984_v23, %s7466_s14  ;;  %6303 = vrot.lane.b32.xlu0 %v6210_v55, %s7466_s14  ;;  %v5812_v10 = vld [vmem:[#allocation2 + $0xe0] sm:$0xff] }
 0x842   : > { %v5686_v8 = vpop.permute.xlu1 %5685  ;;  %v5720_v15 = vpop.permute.xlu0 %5719 }
 0x843   : > { %5773 = vst.msk [vmem:[#allocation3 + $0x40] sm:$0xff] %vm3563_vm8, %v5686_v8  ;;  %5790 = vst.msk [vmem:[#allocation3 + $0xc8] sm:$0xff] %vm3563_vm8, %v5720_v15  ;;  %v11686_v8 = vld [vmem:[#allocation56_spill] sm:$0xff] }
 0x844   : > { %5345 = vrot.lane.b32.xlu1 %v10906_v40, %s7459_s30  ;;  %6271 = vrot.lane.b32.xlu0 %v6194_v19, %s7466_s14  ;;  %v7267_v40 = vpack.c.bf16 %v6410_v58, %v6409_v43  ;;  %v7243_v0 = vpack.c.bf16 %v11687_v16, %v11686_v8  ;;  %v6212_v58 = vld [vmem:[#allocation2 + $0x1a2] sm:$0xff] }
 0x846   : > { %v5910_v54 = vpop.permute.xlu1 %5909  ;;  %v5688_v22 = vpop.permute.xlu0 %5687  ;;  %7269 = vmatpush3.bf16.xpose.msk.msra.mxu0 %vm10945_vm0, %v7267_v40 }
 0x847   : > { %5981 = vst.msk [vmem:[#allocation3 + $0xc0] sm:$0xff] %vm3756_vm11, %v5910_v54  ;;  %v6004_v54 = vld [vmem:[#allocation2 + $0xe1] sm:$0xff] }
 0x848   : > { %5774 = vst.msk [vmem:[#allocation3 + $0x48] sm:$0xff] %vm3563_vm8, %v5688_v22  ;;  %5315 = vrot.lane.b32.xlu1 %v10935_v1, %s7459_s30  ;;  %5347 = vrot.lane.b32.xlu0 %v10919_v34, %s7459_s30  ;;  %v6427_v1 = vld [vmem:[#allocation3 + $0xb0] sm:$0xff]  ;;  %v6428_v34 = vld [vmem:[#allocation3 + $0xb8] sm:$0xff] }
 0x849   : > { %v7270_v56 = vpack.c.bf16 %v6428_v34, %v6427_v1  ;;  %v6003_v22 = vld [vmem:[#allocation2 + $0xd9] sm:$0xff]  ;;  %v6196_v1 = vld [vmem:[#allocation2 + $0xe2] sm:$0xff] }
 0x84a   : > { %v5878_v29 = vpop.permute.xlu1 %5877  ;;  %v5912_v5 = vpop.permute.xlu0 %5911  ;;  %v11119_v34 = vld [vmem:[%s11288_s3] sm:$0xff] }
 0x84b   : > { %5965 = vst.msk [vmem:[#allocation3 + $0x40] sm:$0xff] %vm3756_vm11, %v5878_v29  ;;  %5982 = vst.msk [vmem:[#allocation3 + $0xc8] sm:$0xff] %vm3756_vm11, %v5912_v5  ;;  %7272 = vmatprep.subr.msk.bf16.mxu0 %vm10945_vm0, %v7270_v56  ;;  %v7249_v5 = vpack.c.bf16 %v11691_v36, %v11690_v9  ;;  %v6195_v56 = vld [vmem:[#allocation2 + $0xda] sm:$0xff]  ;;  %7054 = vmatprep.mubr.msk.f32.mxu0 %vm4241_vm12, %v11119_v34 }
 0x84c   : > { %5539 = vrot.lane.b32.xlu1 %v10959_v52, %s7461_s9  ;;  %5537 = vrot.lane.b32.xlu0 %v10930_v50, %s7461_s9  ;;  %v11680_v52 = vld [vmem:[#allocation70_spill] sm:$0xff] }
 0x84d   : > { %v7234_v41 = vpack.c.bf16 %v11681_v11, %v11680_v52 }
 0x84e   : > { %v6102_v24 = vpop.permute.xlu1 %6101  ;;  %v5880_v4 = vpop.permute.xlu0 %5879  ;;  %7275 = vmatpush3.bf16.xpose.msk.msra.mxu0 %vm10945_vm0, %v7273_v31 }
 0x84f   : > { %6173 = vst.msk [vmem:[#allocation3 + $0xc0] sm:$0xff] %vm3949_vm9, %v6102_v24  ;;  %7236 = vmatprep.subr.msk.bf16.mxu1 %vm10945_vm0, %v7234_v41 }
 0x850   : > { %5966 = vst.msk [vmem:[#allocation3 + $0x48] sm:$0xff] %vm3756_vm11, %v5880_v4  ;;  %5507 = vrot.lane.b32.xlu1 %v10979_v30, %s7461_s9  ;;  %5505 = vrot.lane.b32.xlu0 %v10952_v42, %s7461_s9  ;;  %v11684_v30 = vld [vmem:[#allocation72_spill] sm:$0xff] }
 0x851   : > { %v7240_v13 = vpack.c.bf16 %v11685_v33, %v11684_v30 }
 0x852   : > { %v6070_v50 = vpop.permute.xlu1 %6069  ;;  %v6104_v28 = vpop.permute.xlu0 %6103 }
 0x853   : > { %6157 = vst.msk [vmem:[#allocation3 + $0x40] sm:$0xff] %vm3949_vm9, %v6070_v50  ;;  %6174 = vst.msk [vmem:[#allocation3 + $0xc8] sm:$0xff] %vm3949_vm9, %v6104_v28 }
 0x854   : > { %5731 = vrot.lane.b32.xlu1 %v6210_v55, %s7463_s11  ;;  %5729 = vrot.lane.b32.xlu0 %v10972_v18, %s7463_s11  ;;  %v11682_v18 = vld [vmem:[#allocation54_spill] sm:$0xff]  ;;  %v6019_v55 = vld [vmem:[#allocation2 + $0x199] sm:$0xff] }
 0x855   : > { %v7237_v49 = vpack.c.bf16 %v11683_v47, %v11682_v18 }
 0x856   : > { %v6294_v42 = vpop.permute.xlu1 %6293  ;;  %v6072_v45 = vpop.permute.xlu0 %6071 }
 0x857   : > { %6365 = vst.msk [vmem:[#allocation3 + $0xc0] sm:$0xff] %vm4142_vm14, %v6294_v42  ;;  %7239 = vmatpush3.bf16.xpose.msk.msra.mxu1 %vm10945_vm0, %v7237_v49 }
 0x858   : > { %6397 = vst.msk [vmem:[#allocation3 + $0xc0] sm:$0xff] %vm4175_vm15, %v11616_v3  ;;  %5699 = vrot.lane.b32.xlu1 %v6194_v19, %s7463_s11  ;;  %5697 = vrot.lane.b32.xlu0 %v10984_v23, %s7463_s11  ;;  %v5811_v23 = vld [vmem:[#allocation2 + $0xd8] sm:$0xff]  ;;  %v7246_v19 = vpack.c.bf16 %v11689_v35, %v11688_v59 }
 0x859   : > { %6158 = vst.msk [vmem:[#allocation3 + $0x48] sm:$0xff] %vm3949_vm9, %v6072_v45  ;;  %7242 = vmatprep.subr.msk.bf16.mxu1 %vm10945_vm0, %v7240_v13 }
 0x85a   : > { %v6262_v46 = vpop.permute.xlu1 %6261  ;;  %v6296_v44 = vpop.permute.xlu0 %6295 }
 0x85b   : > { %6349 = vst.msk [vmem:[#allocation3 + $0x40] sm:$0xff] %vm4142_vm14, %v6262_v46  ;;  %6366 = vst.msk [vmem:[#allocation3 + $0xc8] sm:$0xff] %vm4142_vm14, %v6296_v44 }
 0x85c   : > { %6381 = vst.msk [vmem:[#allocation3 + $0x40] sm:$0xff] %vm4175_vm15, %v11616_v3  ;;  %5923 = vrot.lane.b32.xlu1 %v5828_v63, %s7464_s12  ;;  %6398 = vst.msk [vmem:[#allocation3 + $0xc8] sm:$0xff] %vm4175_vm15, %v11616_v3  ;;  %5921 = vrot.lane.b32.xlu0 %v5827_v21, %s7464_s12 }
 0x85e   : > { %v5338_v51 = vpop.permute.xlu1 %5337  ;;  %v6264_v61 = vpop.permute.xlu0 %6263 }
 0x85f   : > { %5407 = vst.msk [vmem:[#allocation3 + $0xd0] sm:$0xff] %vm3177_vm6, %v5338_v51  ;;  %v6429_v53 = vld [vmem:[#allocation3 + $0xc0] sm:$0xff]  ;;  %7245 = vmatpush3.bf16.xpose.msk.msra.mxu1 %vm10945_vm0, %v7243_v0 }
 0x860   : > { %6350 = vst.msk [vmem:[#allocation3 + $0x48] sm:$0xff] %vm4142_vm14, %v6264_v61  ;;  %5891 = vrot.lane.b32.xlu1 %v5812_v10, %s7464_s12  ;;  %5889 = vrot.lane.b32.xlu0 %v5811_v23, %s7464_s12  ;;  %s6850_s12 = sld [smem:[#allocation4 + $0x2]] }
 0x861   : > { %6382 = vst.msk [vmem:[#allocation3 + $0x48] sm:$0xff] %vm4175_vm15, %v11616_v3  ;;  %7248 = vmatprep.subr.msk.bf16.mxu1 %vm10945_vm0, %v7246_v19 }
 0x862   : > { %v5530_v32 = vpop.permute.xlu1 %5529  ;;  %v5340_v17 = vpop.permute.xlu0 %5339 }
 0x863   : > { %5599 = vst.msk [vmem:[#allocation3 + $0xd0] sm:$0xff] %vm3370_vm7, %v5530_v32  ;;  %v6430_v15 = vld [vmem:[#allocation3 + $0xc8] sm:$0xff]  ;;  %v6413_v6 = vld [vmem:[#allocation3 + $0x40] sm:$0xff] }
 0x864   : > { %5408 = vst.msk [vmem:[#allocation3 + $0xd8] sm:$0xff] %vm3177_vm6, %v5340_v17  ;;  %6115 = vrot.lane.b32.xlu1 %v6020_v12, %s7465_s13  ;;  %6113 = vrot.lane.b32.xlu0 %v6019_v55, %s7465_s13  ;;  %v7276_v39 = vpack.c.bf16 %v6430_v15, %v6429_v53 }
 0x866   : > { %v5498_v48 = vpop.permute.xlu1 %5497  ;;  %v5532_v7 = vpop.permute.xlu0 %5531  ;;  %7278 = vmatprep.subr.msk.bf16.mxu0 %vm10945_vm0, %v7276_v39  ;;  %v6610_v27 = vstv %s6850_s12 }
 0x867   : > { %5583 = vst.msk [vmem:[#allocation3 + $0x50] sm:$0xff] %vm3370_vm7, %v5498_v48  ;;  %5600 = vst.msk [vmem:[#allocation3 + $0xd8] sm:$0xff] %vm3370_vm7, %v5532_v7  ;;  %7251 = vmatpush3.bf16.xpose.msk.msra.mxu1 %vm10945_vm0, %v7249_v5 }
 0x868   : > { %6083 = vrot.lane.b32.xlu1 %v6004_v54, %s7465_s13  ;;  %v6414_v43 = vld [vmem:[#allocation3 + $0x48] sm:$0xff]  ;;  %6081 = vrot.lane.b32.xlu0 %v6003_v22, %s7465_s13  ;;  %s6635_s13 = sshll.u32 %s10105_s8, 4  ;;  %s11232_s13 = int_to_ptr.vmem [resolvable:$true] %s6635_s13 }
 0x869   : > { %v7279_v40 = vpack.c.bf16 %v6414_v43, %v6413_v6  ;;  %s7384_s26 = scalar_lea.vmem %s11232_s13, 768  ;;  %p7391_p13 = scmp.lt.s32.totalorder %s11232_s13, %s7389_s10 }
 0x86a   : > { %v5722_v29 = vpop.permute.xlu1 %5721  ;;  %v5500_v60 = vpop.permute.xlu0 %5499  ;;  %p7385_p9 = scmp.ne.s32.totalorder %s11232_s13, %s7384_s26  ;;  %p7392_p0 = scmp.lt.s32.totalorder %s7390_s17, %s7384_s26 }
 0x86b   : > { %5791 = vst.msk [vmem:[#allocation3 + $0xd0] sm:$0xff] %vm3563_vm8, %v5722_v29  ;;  %7281 = vmatpush3.bf16.xpose.msk.msra.mxu0 %vm10945_vm0, %v7279_v40 }
 0x86c   : > { %5584 = vst.msk [vmem:[#allocation3 + $0x58] sm:$0xff] %vm3370_vm7, %v5500_v60  ;;  %6307 = vrot.lane.b32.xlu1 %v6212_v58, %s7466_s14  ;;  %6305 = vrot.lane.b32.xlu0 %v6211_v57, %s7466_s14  ;;  %p7386_p10 = pnand %p7385_p9, %p7537_p5  ;;  %p7393_p1 = por %p7392_p0, %p7391_p13 }
 0x86e   : > { %v5690_v25 = vpop.permute.xlu1 %5689  ;;  %v5724_v38 = vpop.permute.xlu0 %5723  ;;  %6988 = vmatmul.mubr.msk.f32.vlgmr.msra.gmra.mrb[32].mxu1 %vm4241_vm12, %v7368_v20  ;;  %p7387_p12 = pneg %p7386_p10 }
 0x86f   : > { %5775 = vst.msk [vmem:[#allocation3 + $0x50] sm:$0xff] %vm3563_vm8, %v5690_v25  ;;  %5792 = vst.msk [vmem:[#allocation3 + $0xd8] sm:$0xff] %vm3563_vm8, %v5724_v38 }
 0x870   : > { %6275 = vrot.lane.b32.xlu1 %v6196_v1, %s7466_s14  ;;  %6273 = vrot.lane.b32.xlu0 %v6195_v56, %s7466_s14  ;;  %s7301_s14 = smul.u32 768, %s7520_s22  ;;  %s11243_s22 = scalar_lea.sflag [#allocation5], %s229_s6 }
 0x871   : > { %p7394_p2 = pnand %p7393_p1, %p7387_p12 }
 0x872   : > { %v5914_v24 = vpop.permute.xlu1 %5913  ;;  %v5692_v4 = vpop.permute.xlu0 %5691  ;;  %s11237_s23 = scalar_lea.hbm %s11290_s5, %s7301_s14 }
 0x873   : > { %5983 = vst.msk [vmem:[#allocation3 + $0xd0] sm:$0xff] %vm3756_vm11, %v5914_v24 }
 0x874   : > { %5776 = vst.msk [vmem:[#allocation3 + $0x58] sm:$0xff] %vm3563_vm8, %v5692_v4 }
 0x876   : > { %v5882_v62 = vpop.permute.xlu1 %5881  ;;  %v5916_v31 = vpop.permute.xlu0 %5915 }
 0x877   : > { %5967 = vst.msk [vmem:[#allocation3 + $0x50] sm:$0xff] %vm3756_vm11, %v5882_v62  ;;  %5984 = vst.msk [vmem:[#allocation3 + $0xd8] sm:$0xff] %vm3756_vm11, %v5916_v31 }
 0x87a   : > { %v6106_v50 = vpop.permute.xlu1 %6105  ;;  %v5884_v37 = vpop.permute.xlu0 %5883 }
 0x87b   : > { %6175 = vst.msk [vmem:[#allocation3 + $0xd0] sm:$0xff] %vm3949_vm9, %v6106_v50 }
 0x87c   : > { %5968 = vst.msk [vmem:[#allocation3 + $0x58] sm:$0xff] %vm3756_vm11, %v5884_v37 }
 0x87e   : > { %v6074_v26 = vpop.permute.xlu1 %6073  ;;  %v6108_v14 = vpop.permute.xlu0 %6107 }
 0x87f   : > { %6159 = vst.msk [vmem:[#allocation3 + $0x50] sm:$0xff] %vm3949_vm9, %v6074_v26  ;;  %6176 = vst.msk [vmem:[#allocation3 + $0xd8] sm:$0xff] %vm3949_vm9, %v6108_v14 }
 0x882   : > { %v6298_v28 = vpop.permute.xlu1 %6297  ;;  %v6076_v52 = vpop.permute.xlu0 %6075 }
 0x883   : > { %6367 = vst.msk [vmem:[#allocation3 + $0xd0] sm:$0xff] %vm4142_vm14, %v6298_v28 }
 0x884   : > { %6399 = vst.msk [vmem:[#allocation3 + $0xd0] sm:$0xff] %vm4175_vm15, %v11616_v3 }
 0x885   : > { %6160 = vst.msk [vmem:[#allocation3 + $0x58] sm:$0xff] %vm3949_vm9, %v6076_v52 }
 0x886   : > { %v6266_v11 = vpop.permute.xlu1 %6265  ;;  %v6300_v41 = vpop.permute.xlu0 %6299 }
 0x887   : > { %6351 = vst.msk [vmem:[#allocation3 + $0x50] sm:$0xff] %vm4142_vm14, %v6266_v11  ;;  %6368 = vst.msk [vmem:[#allocation3 + $0xd8] sm:$0xff] %vm4142_vm14, %v6300_v41 }
 0x888   : > { %6383 = vst.msk [vmem:[#allocation3 + $0x50] sm:$0xff] %vm4175_vm15, %v11616_v3  ;;  %6400 = vst.msk [vmem:[#allocation3 + $0xd8] sm:$0xff] %vm4175_vm15, %v11616_v3 }
 0x88a   : > { %v5342_v42 = vpop.permute.xlu1 %5341  ;;  %v6268_v45 = vpop.permute.xlu0 %6267 }
 0x88b   : > { %5409 = vst.msk [vmem:[#allocation3 + $0xe0] sm:$0xff] %vm3177_vm6, %v5342_v42  ;;  %v6431_v46 = vld [vmem:[#allocation3 + $0xd0] sm:$0xff] }
 0x88c   : > { %6352 = vst.msk [vmem:[#allocation3 + $0x58] sm:$0xff] %vm4142_vm14, %v6268_v45 }
 0x88d   : > { %6384 = vst.msk [vmem:[#allocation3 + $0x58] sm:$0xff] %vm4175_vm15, %v11616_v3 }
 0x88e   : > { %v5534_v63 = vpop.permute.xlu1 %5533  ;;  %v5344_v21 = vpop.permute.xlu0 %5343 }
 0x88f   : > { %5601 = vst.msk [vmem:[#allocation3 + $0xe0] sm:$0xff] %vm3370_vm7, %v5534_v63  ;;  %v6432_v18 = vld [vmem:[#allocation3 + $0xd8] sm:$0xff]  ;;  %v6415_v44 = vld [vmem:[#allocation3 + $0x50] sm:$0xff] }
 0x890   : > { %5410 = vst.msk [vmem:[#allocation3 + $0xe8] sm:$0xff] %vm3177_vm6, %v5344_v21  ;;  %v7282_v47 = vpack.c.bf16 %v6432_v18, %v6431_v46 }
 0x892   : > { %v5502_v49 = vpop.permute.xlu1 %5501  ;;  %v5536_v30 = vpop.permute.xlu0 %5535  ;;  %7284 = vmatprep.subr.msk.bf16.mxu0 %vm10945_vm0, %v7282_v47 }
 0x893   : > { %5585 = vst.msk [vmem:[#allocation3 + $0x60] sm:$0xff] %vm3370_vm7, %v5502_v49  ;;  %5602 = vst.msk [vmem:[#allocation3 + $0xe8] sm:$0xff] %vm3370_vm7, %v5536_v30 }
 0x894   : > { %v6416_v33 = vld [vmem:[#allocation3 + $0x58] sm:$0xff] }
 0x895   : > { %v7285_v13 = vpack.c.bf16 %v6416_v33, %v6415_v44 }
 0x896   : > { %v5726_v51 = vpop.permute.xlu1 %5725  ;;  %v5504_v61 = vpop.permute.xlu0 %5503 }
 0x897   : > { %5793 = vst.msk [vmem:[#allocation3 + $0xe0] sm:$0xff] %vm3563_vm8, %v5726_v51  ;;  %7287 = vmatpush3.bf16.xpose.msk.msra.mxu0 %vm10945_vm0, %v7285_v13 }
 0x898   : > { %5586 = vst.msk [vmem:[#allocation3 + $0x68] sm:$0xff] %vm3370_vm7, %v5504_v61 }
 0x89a   : > { %v5694_v10 = vpop.permute.xlu1 %5693  ;;  %v5728_v23 = vpop.permute.xlu0 %5727 }
 0x89b   : > { %5777 = vst.msk [vmem:[#allocation3 + $0x60] sm:$0xff] %vm3563_vm8, %v5694_v10  ;;  %5794 = vst.msk [vmem:[#allocation3 + $0xe8] sm:$0xff] %vm3563_vm8, %v5728_v23 }
 0x89e   : > { %v5918_v12 = vpop.permute.xlu1 %5917  ;;  %v5696_v32 = vpop.permute.xlu0 %5695 }
 0x89f   : > { %5985 = vst.msk [vmem:[#allocation3 + $0xe0] sm:$0xff] %vm3756_vm11, %v5918_v12 }
 0x8a0   : > { %5778 = vst.msk [vmem:[#allocation3 + $0x68] sm:$0xff] %vm3563_vm8, %v5696_v32 }
 0x8a2   : > { %v5886_v55 = vpop.permute.xlu1 %5885  ;;  %v5920_v53 = vpop.permute.xlu0 %5919 }
 0x8a3   : > { %5969 = vst.msk [vmem:[#allocation3 + $0x60] sm:$0xff] %vm3756_vm11, %v5886_v55  ;;  %5986 = vst.msk [vmem:[#allocation3 + $0xe8] sm:$0xff] %vm3756_vm11, %v5920_v53 }
 0x8a6   : > { %v6110_v8 = vpop.permute.xlu1 %6109  ;;  %v5888_v16 = vpop.permute.xlu0 %5887 }
 0x8a7   : > { %6177 = vst.msk [vmem:[#allocation3 + $0xe0] sm:$0xff] %vm3949_vm9, %v6110_v8 }
 0x8a8   : > { %5970 = vst.msk [vmem:[#allocation3 + $0x68] sm:$0xff] %vm3756_vm11, %v5888_v16 }
 0x8aa   : > { %v6078_v0 = vpop.permute.xlu1 %6077  ;;  %v6112_v17 = vpop.permute.xlu0 %6111 }
 0x8ab   : > { %6161 = vst.msk [vmem:[#allocation3 + $0x60] sm:$0xff] %vm3949_vm9, %v6078_v0  ;;  %6178 = vst.msk [vmem:[#allocation3 + $0xe8] sm:$0xff] %vm3949_vm9, %v6112_v17 }
 0x8ae   : > { %v6302_v15 = vpop.permute.xlu1 %6301  ;;  %v6080_v39 = vpop.permute.xlu0 %6079 }
 0x8af   : > { %6369 = vst.msk [vmem:[#allocation3 + $0xe0] sm:$0xff] %vm4142_vm14, %v6302_v15 }
 0x8b0   : > { %6401 = vst.msk [vmem:[#allocation3 + $0xe0] sm:$0xff] %vm4175_vm15, %v11616_v3 }
 0x8b1   : > { %6162 = vst.msk [vmem:[#allocation3 + $0x68] sm:$0xff] %vm3949_vm9, %v6080_v39 }
 0x8b2   : > { %v6270_v59 = vpop.permute.xlu1 %6269  ;;  %v6304_v35 = vpop.permute.xlu0 %6303 }
 0x8b3   : > { %6353 = vst.msk [vmem:[#allocation3 + $0x60] sm:$0xff] %vm4142_vm14, %v6270_v59  ;;  %6370 = vst.msk [vmem:[#allocation3 + $0xe8] sm:$0xff] %vm4142_vm14, %v6304_v35 }
 0x8b4   : > { %6385 = vst.msk [vmem:[#allocation3 + $0x60] sm:$0xff] %vm4175_vm15, %v11616_v3  ;;  %6402 = vst.msk [vmem:[#allocation3 + $0xe8] sm:$0xff] %vm4175_vm15, %v11616_v3 }
 0x8b6   : > { %v5346_v19 = vpop.permute.xlu1 %5345  ;;  %v6272_v48 = vpop.permute.xlu0 %6271 }
 0x8b7   : > { %5411 = vst.msk [vmem:[#allocation3 + $0xf0] sm:$0xff] %vm3177_vm6, %v5346_v19  ;;  %v6433_v7 = vld [vmem:[#allocation3 + $0xe0] sm:$0xff] }
 0x8b8   : > { %6354 = vst.msk [vmem:[#allocation3 + $0x68] sm:$0xff] %vm4142_vm14, %v6272_v48 }
 0x8b9   : > { %6386 = vst.msk [vmem:[#allocation3 + $0x68] sm:$0xff] %vm4175_vm15, %v11616_v3 }
 0x8ba   : > { %v5316_v6 = vpop.permute.xlu1 %5315  ;;  %v5348_v54 = vpop.permute.xlu0 %5347 }
 0x8bb   : > { %5396 = vst.msk [vmem:[#allocation3 + $0x78] sm:$0xff] %vm3177_vm6, %v5316_v6  ;;  %5412 = vst.msk [vmem:[#allocation3 + $0xf8] sm:$0xff] %vm3177_vm6, %v5348_v54  ;;  %v6434_v22 = vld [vmem:[#allocation3 + $0xe8] sm:$0xff]  ;;  %v6417_v40 = vld [vmem:[#allocation3 + $0x60] sm:$0xff] }
 0x8bc   : > { %v7288_v43 = vpack.c.bf16 %v6434_v22, %v6433_v7 }
 0x8be   : > { %v5540_v58 = vpop.permute.xlu1 %5539  ;;  %v5538_v29 = vpop.permute.xlu0 %5537  ;;  %7290 = vmatprep.subr.msk.bf16.mxu0 %vm10945_vm0, %v7288_v43 }
 0x8bf   : > { %5604 = vst.msk [vmem:[#allocation3 + $0xf8] sm:$0xff] %vm3370_vm7, %v5540_v58  ;;  %5603 = vst.msk [vmem:[#allocation3 + $0xf0] sm:$0xff] %vm3370_vm7, %v5538_v29 }
 0x8c0   : > { %v6418_v57 = vld [vmem:[#allocation3 + $0x68] sm:$0xff] }
 0x8c1   : > { %v7291_v9 = vpack.c.bf16 %v6418_v57, %v6417_v40 }
 0x8c2   : > { %v5508_v36 = vpop.permute.xlu1 %5507  ;;  %v5506_v5 = vpop.permute.xlu0 %5505 }
 0x8c3   : > { %5588 = vst.msk [vmem:[#allocation3 + $0x78] sm:$0xff] %vm3370_vm7, %v5508_v36  ;;  %7293 = vmatpush3.bf16.xpose.msk.msra.mxu0 %vm10945_vm0, %v7291_v9  ;;  %5587 = vst.msk [vmem:[#allocation3 + $0x70] sm:$0xff] %vm3370_vm7, %v5506_v5 }
 0x8c6   : > { %v5732_v60 = vpop.permute.xlu1 %5731  ;;  %v5730_v25 = vpop.permute.xlu0 %5729 }
 0x8c7   : > { %5796 = vst.msk [vmem:[#allocation3 + $0xf8] sm:$0xff] %vm3563_vm8, %v5732_v60  ;;  %5795 = vst.msk [vmem:[#allocation3 + $0xf0] sm:$0xff] %vm3563_vm8, %v5730_v25 }
 0x8ca   : > { %v5700_v38 = vpop.permute.xlu1 %5699  ;;  %v5698_v1 = vpop.permute.xlu0 %5697 }
 0x8cb   : > { %5780 = vst.msk [vmem:[#allocation3 + $0x78] sm:$0xff] %vm3563_vm8, %v5700_v38  ;;  %5779 = vst.msk [vmem:[#allocation3 + $0x70] sm:$0xff] %vm3563_vm8, %v5698_v1 }
 0x8ce   : > { %v5924_v56 = vpop.permute.xlu1 %5923  ;;  %v5922_v24 = vpop.permute.xlu0 %5921 }
 0x8cf   : > { %5988 = vst.msk [vmem:[#allocation3 + $0xf8] sm:$0xff] %vm3756_vm11, %v5924_v56  ;;  %5987 = vst.msk [vmem:[#allocation3 + $0xf0] sm:$0xff] %vm3756_vm11, %v5922_v24 }
 0x8d2   : > { %v5892_v4 = vpop.permute.xlu1 %5891  ;;  %v5890_v62 = vpop.permute.xlu0 %5889 }
 0x8d3   : > { %5972 = vst.msk [vmem:[#allocation3 + $0x78] sm:$0xff] %vm3756_vm11, %v5892_v4  ;;  %5971 = vst.msk [vmem:[#allocation3 + $0x70] sm:$0xff] %vm3756_vm11, %v5890_v62 }
 0x8d6   : > { %v6116_v20 = vpop.permute.xlu1 %6115  ;;  %v6114_v31 = vpop.permute.xlu0 %6113 }
 0x8d7   : > { %6180 = vst.msk [vmem:[#allocation3 + $0xf8] sm:$0xff] %vm3949_vm9, %v6116_v20  ;;  %6179 = vst.msk [vmem:[#allocation3 + $0xf0] sm:$0xff] %vm3949_vm9, %v6114_v31 }
 0x8da   : > { %v6084_v50 = vpop.permute.xlu1 %6083  ;;  %v6082_v37 = vpop.permute.xlu0 %6081 }
 0x8db   : > { %6164 = vst.msk [vmem:[#allocation3 + $0x78] sm:$0xff] %vm3949_vm9, %v6084_v50  ;;  %6163 = vst.msk [vmem:[#allocation3 + $0x70] sm:$0xff] %vm3949_vm9, %v6082_v37 }
 0x8de   : > { %v6308_v26 = vpop.permute.xlu1 %6307  ;;  %v6306_v14 = vpop.permute.xlu0 %6305 }
 0x8df   : > { %6372 = vst.msk [vmem:[#allocation3 + $0xf8] sm:$0xff] %vm4142_vm14, %v6308_v26  ;;  %6371 = vst.msk [vmem:[#allocation3 + $0xf0] sm:$0xff] %vm4142_vm14, %v6306_v14 }
 0x8e0   : > { %6404 = vst.msk [vmem:[#allocation3 + $0xf8] sm:$0xff] %vm4175_vm15, %v11616_v3  ;;  %6403 = vst.msk [vmem:[#allocation3 + $0xf0] sm:$0xff] %vm4175_vm15, %v11616_v3 }
 0x8e2   : > { %v6276_v28 = vpop.permute.xlu1 %6275  ;;  %v6274_v52 = vpop.permute.xlu0 %6273 }
 0x8e3   : > { %6356 = vst.msk [vmem:[#allocation3 + $0x78] sm:$0xff] %vm4142_vm14, %v6276_v28  ;;  %6355 = vst.msk [vmem:[#allocation3 + $0x70] sm:$0xff] %vm4142_vm14, %v6274_v52 }
 0x8e4   : > { %6388 = vst.msk [vmem:[#allocation3 + $0x78] sm:$0xff] %vm4175_vm15, %v11616_v3  ;;  %6387 = vst.msk [vmem:[#allocation3 + $0x70] sm:$0xff] %vm4175_vm15, %v11616_v3 }
 0x8e7   : > { %v6436_v11 = vld [vmem:[#allocation3 + $0xf8] sm:$0xff]  ;;  %v6435_v41 = vld [vmem:[#allocation3 + $0xf0] sm:$0xff] }
 0x8e8   : > { %v7294_v42 = vpack.c.bf16 %v6436_v11, %v6435_v41 }
 0x8ea   : > { %7296 = vmatprep.subr.msk.bf16.mxu0 %vm10945_vm0, %v7294_v42 }
 0x8eb   : > { %v6420_v45 = vld [vmem:[#allocation3 + $0x78] sm:$0xff]  ;;  %v6419_v63 = vld [vmem:[#allocation3 + $0x70] sm:$0xff] }
 0x8ec   : > { %v7297_v46 = vpack.c.bf16 %v6420_v45, %v6419_v63 }
 0x8ee   : > { %7299 = vmatpush3.bf16.xpose.msk.msra.mxu0 %vm10945_vm0, %v7297_v46 }
 0x8f5   : > { %7055 = vmatmul.mubr.msk.f32.vlgmr.msra.gmra.mrb[34].mxu0 %vm4241_vm12, %v11119_v34 }
 0x941   : > { %v4407_v3 = vpop.f32.mrb[32].mxu1 }
 0x942   : > { %vm4412_vm6 = vcmp.gt.f32.partialorder %v4407_v3, 0.0  ;;  %v4415_v21 = vmul.f32 %v10109_v2, %v4407_v3  ;;  %v4409_v18 = vpop.f32.mrb[33].mxu1 }
 0x943   : > { %vm4413_vm7 = vcmp.gt.f32.partialorder %v4409_v18, 0.0  ;;  %v4416_v47 = vmul.f32 %v10109_v2, %v4409_v18 }
 0x944   : > { %v4417_v49 = vsel %vm4412_vm6, %v4407_v3, %v4415_v21 }
 0x945   : > { %6617 = vst [vmem:[%s10105_s8 + $0x10] sm:$0xff] %v4417_v49  ;;  %v4418_v44 = vsel %vm4413_vm7, %v4409_v18, %v4416_v47 }
 0x946   : > { %6618 = vst [vmem:[%s10105_s8 + $0x18] sm:$0xff] %v4418_v44 }
 0x9c8   : > { %v6603_v34 = vpop.f32.mrb[34].mxu0 }
 0x9c9   : > { %vm6608_vm8 = vcmp.gt.f32.partialorder %v6603_v34, 0.0  ;;  %v6605_v30 = vpop.f32.mrb[35].mxu0  ;;  %v6611_v33 = vmul.f32 %v6610_v27, %v6603_v34 }
 0x9ca   : > { %vm6609_vm11 = vcmp.gt.f32.partialorder %v6605_v30, 0.0  ;;  %v6612_v2 = vmul.f32 %v6610_v27, %v6605_v30 }
 0x9cb   : > { %v6613_v13 = vsel %vm6608_vm8, %v6603_v34, %v6611_v33 }
 0x9cc   : > { %v6614_v51 = vsel %vm6609_vm11, %v6605_v30, %v6612_v2  ;;  %6619 = vst [vmem:[%s10105_s8 + $0x20] sm:$0xff] %v6613_v13 }
 0x9cd   : > { %6620 = vst [vmem:[%s10105_s8 + $0x28] sm:$0xff] %v6614_v51 }
 0x9ce   : > { %7397 = shalt.err (!%p7394_p2)
}
 0x9cf   : > { %s7398_s6 = scalar_lea.hbm %s11237_s23, 768  ;;  %s7402_s9 = scalar_lea.hbm %s11290_s5, 1536 }
 0x9d0   : > { %p7399_p3 = scmp.ne.s32.totalorder %s11237_s23, %s7398_s6  ;;  %p7403_p8 = scmp.lt.u32.totalorder %s11237_s23, %s11290_s5 }
 0x9d1   : > { %p7404_p11 = scmp.lt.u32.totalorder %s7402_s9, %s7398_s6  ;;  %p7406_p10 = scmp.lt.u32.totalorder %s7398_s6, %s11237_s23 }
 0x9d2   : > { %p7400_p4 = pnand %p7399_p3, %p7537_p5 }
 0x9d3   : > { %p7405_p9 = por %p7404_p11, %p7403_p8 }
 0x9d4   : > { %p7401_p7 = pneg %p7400_p4 }
 0x9d5   : > { %p7407_p12 = por %p7406_p10, %p7405_p9 }
 0x9d7   : > { %p7408_p13 = pnand %p7407_p12, %p7401_p7 }
 0x9d9   : > { %7411 = shalt.err (!%p7408_p13)
}
 0x9da   : > { %s7468_s14 = smov 256  }
 0x9db   : > { %7306 = dma.vmem_to_hbm [thread:$0]  (%p7537_p5), %s11232_s13, 768, %s11237_s23, %s11243_s22, %s7468_s14, %s7468_s14, %s7457_s25  }
 0x9dc PF: > { %p7318_p0 = scmp.ge.s32.totalorder %s7450_s21, 2  ;;  %s6650_s15 = sand.u32 1, %s7438_s18  }
 0x9dd   : > { %s6651_s16 = scalar_lea.sflag [#allocation5], %s6650_s15 }
 0x9de   : > { %p7313_p1 = pnand %p7318_p0, %p7541_p6 }
 0x9e0   : > { %7433 = dma.done.wait (!%p7313_p1), %s6651_s16, 768  }
 0x9e1   : > { %7435 = vsyncadd (!%p7313_p1), %s6651_s16, 4294966528  ;;  %p16_p2 = scmp.ge.s32.totalorder %s7524_s24, 4   ;;  %s11692_s18 = smov %s7442_s19 }
 0x9e2   : > { %s11693_s19 = smov %s7446_s20  ;;  %s11694_s20 = smov %s7535_s27 }
 0x9e3   : > { %s11695_s21 = smov %s7524_s24  ;;  %18 = sbr.rel (!%p16_p2) target bundleno = 4 (0x4), region = 82 }
 0x9ea   :  { %6656 = vsyncpa [#allocation5], 1 }
 0x9eb   :  { %6658 = vsyncpa [#allocation5 + $0x1], 1 }
 0x9ec   :  { %6659 = vsyncpa [#allocation6], 1 }
 0x9ed   :  { %6661 = vsyncpa [#allocation6 + $0x1], 1 }

</bundles_post_ra>
